<compile_context>
chip_gen: v7x
topology: tpu7x:2x2x1
jax: 0.10.0
libtpu: 0.0.40
codegen_flags: <defaults>
</compile_context>

<pallas_src>
import inspect

import jax
import jax.numpy as jnp
import numpy as np
from jax.experimental import pallas as pl
from jax.experimental.pallas import tpu as pltpu

# ---------------------------------------------------------------------------
# Model hyper-parameters (from the PyTorch __init__).
# ---------------------------------------------------------------------------
NUM_FTRS = 1280          # efficientnet_b0 classifier[1].in_features
ATT_HIDDEN = NUM_FTRS // 2          # 640
ATT_HIDDEN_PAD = 768                # 3 x 256: full MXU passes on v6e/v7x (exact zero-pad)
SHARED_DIM = 512
EMB_DIM = 64
LEVEL_HIDDEN = 256
HIERARCHY_LEVELS = 5
TARGET_DIM = 10
OUT_PAD = 128            # lane-dense padded output width (sliced to TARGET_DIM)
BN_EPS = 1e-5

TILE_B_MAX = 256         # full MXU height on v6e/v7x
_MIN_SPLIT_ROWS = 64     # don't split the batch into tiles thinner than this

# Compatibility guard: pipeline_mode / Buffered are recent BlockSpec features.
try:
    _HAS_PIPELINE_MODE = (
        hasattr(pl, "Buffered")
        and "pipeline_mode" in inspect.signature(pl.BlockSpec).parameters
    )
except (TypeError, ValueError):  # pragma: no cover - defensive
    _HAS_PIPELINE_MODE = False


def _round_up(x, m):
    return ((x + m - 1) // m) * m


def _choose_tile_b(batch):
    """Batch-tile size: big enough to fill the MXU, >=2 grid steps when the
    batch is large so v7x's two TensorCores both get work."""
    b_pad8 = _round_up(max(batch, 1), 8)
    if b_pad8 >= 2 * _MIN_SPLIT_ROWS:
        return min(TILE_B_MAX, _round_up(-(-b_pad8 // 2), 8))
    return min(TILE_B_MAX, b_pad8)


# ---------------------------------------------------------------------------
# Fused head kernel: attention gate + fc_shared(+BN folded)+ReLU + 5 level heads.
# All weights are VMEM-resident across the batch grid; activations are f32,
# matmul inputs are bf16 with f32 MXU accumulation.
# ---------------------------------------------------------------------------
def head_kernel(
    feats_ref,    # (TB, 1280) bf16  backbone features (batch tile)
    aw1_ref,      # (1280, 768) bf16 attention Linear 1 (hidden zero-padded)
    ab1_ref,      # (1, 768)    f32
    aw2_ref,      # (768, 1280) bf16 attention Linear 2 (rows zero-padded)
    ab2_ref,      # (1, 1280)   f32
    fw_ref,       # (1280, 512) bf16 fc_shared with eval-BN folded in
    fb_ref,       # (1, 512)    f32
    w1_ref,       # (512, 1280) bf16 level stage-1 weights stacked along N
    b1_ref,       # (1, 1280)   f32  stage-1 bias incl. precomputed emb part
    w2_ref,       # (1280, 128) bf16 level stage-2 weights stacked along K (/5)
    b2_ref,       # (1, 128)    f32  averaged stage-2 bias (lane padded)
    out_ref,      # (TB, 128)   f32
):
    f32 = jnp.float32
    bf16 = jnp.bfloat16

    feats_bf16 = feats_ref[...]                                         # (TB, F)
    feats = feats_bf16.astype(f32)                                      # for gating

    # ---- attention gate: Linear -> ReLU -> Linear -> Sigmoid ----
    h = jnp.dot(feats_bf16, aw1_ref[...],
                preferred_element_type=f32) + ab1_ref[...]
    h = jnp.maximum(h, 0.0)
    logits = jnp.dot(h.astype(bf16), aw2_ref[...],
                     preferred_element_type=f32) + ab2_ref[...]
    weighted = feats * jax.nn.sigmoid(logits)                           # f32 VPU/EUP

    # ---- fc_shared (+ folded eval-mode BatchNorm1d) -> ReLU ----
    shared = jnp.dot(weighted.astype(bf16), fw_ref[...],
                     preferred_element_type=f32) + fb_ref[...]
    shared = jnp.maximum(shared, 0.0)                                   # (TB, 512)

    # ---- 5 hierarchy heads, fused into two matmuls (Dropout = identity) ----
    h1 = jnp.dot(shared.astype(bf16), w1_ref[...],
                 preferred_element_type=f32) + b1_ref[...]              # (TB, 5*256)
    h1 = jnp.maximum(h1, 0.0)
    out_ref[...] = jnp.dot(h1.astype(bf16), w2_ref[...],
                           preferred_element_type=f32) + b2_ref[...]    # (TB, 128)


# ---------------------------------------------------------------------------
# Parameter preprocessing: BN fold, attention padding, level-bias precompute,
# level fusion, lane padding, bf16 cast.  All transformations are exact in f32
# except the final bf16 cast of the big weight matrices.  Run ONCE.
# ---------------------------------------------------------------------------
def prepare_head_params(p):
    f32 = jnp.float32
    bf16 = jnp.bfloat16
    L = HIERARCHY_LEVELS

    # Fold eval-mode BatchNorm1d into fc_shared (exact).
    fcs_w = p["fcs_w"] * p["bn_scale"]                       # (F,512)*(1,512)
    fcs_b = p["fcs_b"] * p["bn_scale"] + p["bn_shift"]       # (1,512)

    # Zero-pad attention hidden 640 -> 768 (exact: ReLU(0)=0, zero rows of aw2
    # contribute nothing).
    aw1 = jnp.zeros((NUM_FTRS, ATT_HIDDEN_PAD), f32).at[:, :ATT_HIDDEN].set(p["att_w1"])
    ab1 = jnp.zeros((1, ATT_HIDDEN_PAD), f32).at[:, :ATT_HIDDEN].set(p["att_b1"])
    aw2 = jnp.zeros((ATT_HIDDEN_PAD, NUM_FTRS), f32).at[:ATT_HIDDEN, :].set(p["att_w2"])

    # Precompute batch-independent per-level embedding bias (exact, f32):
    #   cat([shared, emb]) @ W1 == shared @ W1_s + (emb @ W1_e + b1)
    lvl_bias = jnp.einsum("le,leh->lh", p["emb"], p["w1e"]) + p["b1"][:, 0, :]

    # Stack level stage-1 weights along N: (512, L*256); bias (1, L*256).
    w1_all = jnp.transpose(p["w1s"], (1, 0, 2)).reshape(SHARED_DIM, L * LEVEL_HIDDEN)
    b1_all = lvl_bias.reshape(1, L * LEVEL_HIDDEN)

    # Stack level stage-2 weights along K and pre-divide by L (mean over levels):
    #   mean_l(h1_l @ W2_l + b2_l) == h1_flat @ (stack_K(W2_l)/L) + mean_l(b2_l)
    w2_stack = p["w2"].reshape(L * LEVEL_HIDDEN, TARGET_DIM) / L
    b2_avg = jnp.mean(p["b2"][:, 0, :], axis=0, keepdims=True)

    # Pad output width to a full lane (dense vector stores).
    w2_pad = jnp.zeros((L * LEVEL_HIDDEN, OUT_PAD), f32).at[:, :TARGET_DIM].set(w2_stack)
    b2_pad = jnp.zeros((1, OUT_PAD), f32).at[:, :TARGET_DIM].set(b2_avg)

    return dict(
        att_w1=aw1.astype(bf16),        att_b1=ab1.astype(f32),
        att_w2=aw2.astype(bf16),        att_b2=p["att_b2"].astype(f32),
        fcs_w=fcs_w.astype(bf16),       fcs_b=fcs_b.astype(f32),
        w1_all=w1_all.astype(bf16),     b1_all=b1_all.astype(f32),
        w2_all=w2_pad.astype(bf16),     b2_all=b2_pad.astype(f32),
    )


# ---------------------------------------------------------------------------
# Forward implementation (jitted via build_forward).
# ---------------------------------------------------------------------------
def _weight_spec(arr):
    """Whole-array block with a constant index_map -> stays VMEM-resident across
    the batch grid.  Single-buffered (grid-invariant, no second copy needed)."""
    idx_map = lambda i: (0, 0)
    if _HAS_PIPELINE_MODE:
        return pl.BlockSpec(arr.shape, idx_map, pipeline_mode=pl.Buffered(1))
    return pl.BlockSpec(arr.shape, idx_map)


def _forward_impl(x, proj_w, proj_b, head):
    B = x.shape[0]

    # Backbone stand-in (EfficientNet-B0 not translated): GAP + linear proj,
    # done by XLA so only (B, 1280) features ever enter VMEM.  bf16 halves the
    # per-tile streaming DMA (matmuls consume bf16 anyway).
    pooled = jnp.mean(x.astype(jnp.float32), axis=(2, 3))               # (B, C)
    feats = (pooled @ proj_w + proj_b).astype(jnp.bfloat16)             # (B, F)

    # Batch tiling.
    tile_b = _choose_tile_b(B)
    b_pad = _round_up(B, tile_b)
    if b_pad != B:
        feats = jnp.pad(feats, ((0, b_pad - B), (0, 0)))
    grid = (b_pad // tile_b,)

    weights = (
        head["att_w1"], head["att_b1"], head["att_w2"], head["att_b2"],
        head["fcs_w"], head["fcs_b"],
        head["w1_all"], head["b1_all"], head["w2_all"], head["b2_all"],
    )

    grid_spec = pltpu.PrefetchScalarGridSpec(
        num_scalar_prefetch=0,
        grid=grid,
        in_specs=[pl.BlockSpec((tile_b, NUM_FTRS), lambda i: (i, 0))]
        + [_weight_spec(w) for w in weights],
        out_specs=pl.BlockSpec((tile_b, OUT_PAD), lambda i: (i, 0)),
    )

    out = pl.pallas_call(
        head_kernel,
        out_shape=jax.ShapeDtypeStruct((b_pad, OUT_PAD), jnp.float32),
        grid_spec=grid_spec,
        compiler_params=pltpu.CompilerParams(
            dimension_semantics=("parallel",),     # v7x: shard batch over 2 TCs
            vmem_limit_bytes=32 << 20,             # v7x-safe (64 MiB physical)
        ),
    )(feats, *weights)

    return out[:B, :TARGET_DIM]


def build_forward(params):
    """Prepare (fold/stack/pad/cast) the head weights ONCE and return a jitted
    forward(x).  Repeated calls skip all weight preprocessing."""
    head = prepare_head_params(params)
    proj_w, proj_b = params["proj_w"], params["proj_b"]
    fwd = jax.jit(_forward_impl)

    def forward(x):
        return fwd(x, proj_w, proj_b, head)

    return forward


def hierarchical_attention_forward(x, params):
    """One-shot convenience wrapper (prepares weights every call); prefer
    build_forward() for repeated inference."""
    return build_forward(params)(x)


# ---------------------------------------------------------------------------
# Deterministic parameter construction + references for validation.
# ---------------------------------------------------------------------------
def make_params(key, in_channels):
    ks = jax.random.split(key, 12)
    s = 0.02  # synthetic weights, not a checkpoint

    params = {
        "proj_w": s * jax.random.normal(ks[0], (in_channels, NUM_FTRS), jnp.float32),
        "proj_b": s * jax.random.normal(ks[1], (1, NUM_FTRS), jnp.float32),
        "att_w1": s * jax.random.normal(ks[2], (NUM_FTRS, ATT_HIDDEN), jnp.float32),
        "att_b1": s * jax.random.normal(ks[3], (1, ATT_HIDDEN), jnp.float32),
        "att_w2": s * jax.random.normal(ks[4], (ATT_HIDDEN, NUM_FTRS), jnp.float32),
        "att_b2": s * jax.random.normal(ks[5], (1, NUM_FTRS), jnp.float32),
        "fcs_w": s * jax.random.normal(ks[6], (NUM_FTRS, SHARED_DIM), jnp.float32),
        "fcs_b": s * jax.random.normal(ks[7], (1, SHARED_DIM), jnp.float32),
        "emb": s * jax.random.normal(ks[8], (HIERARCHY_LEVELS, EMB_DIM), jnp.float32),
        "w1s": s * jax.random.normal(
            ks[9], (HIERARCHY_LEVELS, SHARED_DIM, LEVEL_HIDDEN), jnp.float32),
        "w1e": s * jax.random.normal(
            ks[10], (HIERARCHY_LEVELS, EMB_DIM, LEVEL_HIDDEN), jnp.float32),
        "b1": jnp.zeros((HIERARCHY_LEVELS, 1, LEVEL_HIDDEN), jnp.float32),
        "w2": s * jax.random.normal(
            ks[11], (HIERARCHY_LEVELS, LEVEL_HIDDEN, TARGET_DIM), jnp.float32),
        "b2": jnp.zeros((HIERARCHY_LEVELS, 1, TARGET_DIM), jnp.float32),
    }

    # BatchNorm1d(512) at PyTorch defaults, eval mode.
    gamma = jnp.ones((SHARED_DIM,), jnp.float32)
    beta = jnp.zeros((SHARED_DIM,), jnp.float32)
    running_mean = jnp.zeros((SHARED_DIM,), jnp.float32)
    running_var = jnp.ones((SHARED_DIM,), jnp.float32)
    scale = gamma / jnp.sqrt(running_var + BN_EPS)
    shift = beta - running_mean * scale
    params["bn_scale"] = scale.reshape(1, SHARED_DIM)
    params["bn_shift"] = shift.reshape(1, SHARED_DIM)
    return params


def reference_head(feats_bf16, head):
    """Un-fused per-level reference using the same prepared (bf16) params."""
    bf16, f32 = jnp.bfloat16, jnp.float32
    feats = feats_bf16.astype(f32)

    def bdot(a, w):
        return jnp.dot(a.astype(bf16), w, preferred_element_type=f32)

    h = jnp.maximum(bdot(feats_bf16, head["att_w1"]) + head["att_b1"], 0.0)
    att = jax.nn.sigmoid(bdot(h, head["att_w2"]) + head["att_b2"])
    weighted = feats * att
    shared = jnp.maximum(bdot(weighted, head["fcs_w"]) + head["fcs_b"], 0.0)
    out = head["b2_all"]
    for i in range(HIERARCHY_LEVELS):
        sl = slice(i * LEVEL_HIDDEN, (i + 1) * LEVEL_HIDDEN)
        h1 = jnp.maximum(bdot(shared, head["w1_all"][:, sl]) + head["b1_all"][:, sl], 0.0)
        out = out + bdot(h1, head["w2_all"][sl, :])          # w2_all already / L
    return out[:, :TARGET_DIM]


def reference_forward_f32(x, p):
    """Full-f32 reference faithful to the PyTorch forward structure (eval mode)."""
    B = x.shape[0]
    pooled = jnp.mean(x, axis=(2, 3))
    feats = pooled @ p["proj_w"] + p["proj_b"]
    h = jnp.maximum(feats @ p["att_w1"] + p["att_b1"], 0.0)
    att = jax.nn.sigmoid(h @ p["att_w2"] + p["att_b2"])
    weighted = feats * att
    shared = weighted @ p["fcs_w"] + p["fcs_b"]
    shared = shared * p["bn_scale"] + p["bn_shift"]          # BatchNorm1d (eval)
    shared = jnp.maximum(shared, 0.0)
    outs = []
    for i in range(HIERARCHY_LEVELS):
        emb = jnp.broadcast_to(p["emb"][i], (B, EMB_DIM))
        li = jnp.concatenate([shared, emb], axis=1)
        w1 = jnp.concatenate([p["w1s"][i], p["w1e"][i]], axis=0)
        h1 = jnp.maximum(li @ w1 + p["b1"][i], 0.0)          # Dropout = identity
        outs.append(h1 @ p["w2"][i] + p["b2"][i])
    return sum(outs) / HIERARCHY_LEVELS


if __name__ == "__main__":
    key = jax.random.PRNGKey(0)
    k_x, k_p = jax.random.split(key)

    # Small NCHW input consistent with an image backbone (3 input channels).
    x = jax.random.normal(k_x, (2, 3, 16, 16), jnp.float32)
    params = make_params(k_p, in_channels=3)

    forward = build_forward(params)                 # weight prep + jit, once
    out = jax.block_until_ready(forward(x))
    assert out.shape == (2, TARGET_DIM)

    # Second call hits the jit cache (no re-prep, no re-trace) and must match.
    out2 = jax.block_until_ready(forward(x))
    np.testing.assert_allclose(np.asarray(out), np.asarray(out2))

    # Tight check: kernel vs un-fused per-level reference on the same prepared
    # (BN-folded, bias-precomputed, padded, bf16) parameters and bf16 feats.
    pooled = jnp.mean(x, axis=(2, 3))
    feats_bf16 = (pooled @ params["proj_w"] + params["proj_b"]).astype(jnp.bfloat16)
    head = prepare_head_params(params)
    ref_tight = jax.block_until_ready(reference_head(feats_bf16, head))
    np.testing.assert_allclose(np.asarray(out), np.asarray(ref_tight),
                               rtol=2e-3, atol=2e-5)

    # Semantics check: full-f32 reference faithful to the PyTorch structure
    # (loose tolerance absorbs the intentional bf16 feature/weight quantization).
    ref_f32 = jax.block_until_ready(reference_forward_f32(x, params))
    np.testing.assert_allclose(np.asarray(out), np.asarray(ref_f32),
                               rtol=5e-2, atol=5e-4)

    print("KERNEL_OK")
</pallas_src>

<mosaic_0001>
module attributes {stable_mosaic.version = 11 : i64} {
  func.func @head_kernel(%arg0: i32, %arg1: memref<8x1280xbf16, #tpu.memory_space<vmem>>, %arg2: memref<1280x768xbf16, #tpu.memory_space<vmem>>, %arg3: memref<1x768xf32, #tpu.memory_space<vmem>>, %arg4: memref<768x1280xbf16, #tpu.memory_space<vmem>>, %arg5: memref<1x1280xf32, #tpu.memory_space<vmem>>, %arg6: memref<1280x512xbf16, #tpu.memory_space<vmem>>, %arg7: memref<1x512xf32, #tpu.memory_space<vmem>>, %arg8: memref<512x1280xbf16, #tpu.memory_space<vmem>>, %arg9: memref<1x1280xf32, #tpu.memory_space<vmem>>, %arg10: memref<1280x128xbf16, #tpu.memory_space<vmem>>, %arg11: memref<1x128xf32, #tpu.memory_space<vmem>>, %arg12: memref<8x128xf32, #tpu.memory_space<vmem>>) attributes {dimension_semantics = [#tpu.dimension_semantics<parallel>], iteration_bounds = array<i64: 1>, scalar_prefetch = 0 : i64, scratch_operands = 0 : i64, tpu.core_type = #tpu.core_type<tc>, window_params = [{transform_indices = @transform_0, window_bounds = array<i64: 8, 1280>}, {pipeline_mode = #tpu.pipeline_mode<synchronous>, transform_indices = @transform_1, window_bounds = array<i64: 1280, 768>}, {pipeline_mode = #tpu.pipeline_mode<synchronous>, transform_indices = @transform_2, window_bounds = array<i64: 1, 768>}, {pipeline_mode = #tpu.pipeline_mode<synchronous>, transform_indices = @transform_3, window_bounds = array<i64: 768, 1280>}, {pipeline_mode = #tpu.pipeline_mode<synchronous>, transform_indices = @transform_4, window_bounds = array<i64: 1, 1280>}, {pipeline_mode = #tpu.pipeline_mode<synchronous>, transform_indices = @transform_5, window_bounds = array<i64: 1280, 512>}, {pipeline_mode = #tpu.pipeline_mode<synchronous>, transform_indices = @transform_6, window_bounds = array<i64: 1, 512>}, {pipeline_mode = #tpu.pipeline_mode<synchronous>, transform_indices = @transform_7, window_bounds = array<i64: 512, 1280>}, {pipeline_mode = #tpu.pipeline_mode<synchronous>, transform_indices = @transform_8, window_bounds = array<i64: 1, 1280>}, {pipeline_mode = #tpu.pipeline_mode<synchronous>, transform_indices = @transform_9, window_bounds = array<i64: 1280, 128>}, {pipeline_mode = #tpu.pipeline_mode<synchronous>, transform_indices = @transform_10, window_bounds = array<i64: 1, 128>}, {transform_indices = @transform_11, window_bounds = array<i64: 8, 128>}]} {
    %c0 = arith.constant 0 : index
    %c0_0 = arith.constant 0 : index
    %0 = vector.load %arg1[%c0, %c0_0] : memref<8x1280xbf16, #tpu.memory_space<vmem>>, vector<8x1280xbf16>
    %1 = arith.extf %0 : vector<8x1280xbf16> to vector<8x1280xf32>
    %c0_1 = arith.constant 0 : index
    %c0_2 = arith.constant 0 : index
    %2 = vector.load %arg2[%c0_1, %c0_2] : memref<1280x768xbf16, #tpu.memory_space<vmem>>, vector<1280x768xbf16>
    %cst = arith.constant dense<0.000000e+00> : vector<8x768xf32>
    %3 = tpu.matmul %0, %2, %cst {dimension_numbers = #tpu.dot_dimension_numbers<[1], [0], [0], [1], [0, 0, 1, 1], [], []>} : vector<8x1280xbf16>, vector<1280x768xbf16>, vector<8x768xf32> -> vector<8x768xf32>
    %c0_3 = arith.constant 0 : index
    %c0_4 = arith.constant 0 : index
    %4 = vector.load %arg3[%c0_3, %c0_4] : memref<1x768xf32, #tpu.memory_space<vmem>>, vector<1x768xf32>
    %5 = vector.broadcast %4 : vector<1x768xf32> to vector<8x768xf32>
    %6 = arith.addf %3, %5 : vector<8x768xf32>
    %cst_5 = arith.constant 0.000000e+00 : f32
    %7 = vector.broadcast %cst_5 : f32 to vector<8x768xf32>
    %8 = arith.maximumf %6, %7 : vector<8x768xf32>
    %9 = arith.truncf %8 : vector<8x768xf32> to vector<8x768xbf16>
    %c0_6 = arith.constant 0 : index
    %c0_7 = arith.constant 0 : index
    %10 = vector.load %arg4[%c0_6, %c0_7] : memref<768x1280xbf16, #tpu.memory_space<vmem>>, vector<768x1280xbf16>
    %cst_8 = arith.constant dense<0.000000e+00> : vector<8x1280xf32>
    %11 = tpu.matmul %9, %10, %cst_8 {dimension_numbers = #tpu.dot_dimension_numbers<[1], [0], [0], [1], [0, 0, 1, 1], [], []>} : vector<8x768xbf16>, vector<768x1280xbf16>, vector<8x1280xf32> -> vector<8x1280xf32>
    %c0_9 = arith.constant 0 : index
    %c0_10 = arith.constant 0 : index
    %12 = vector.load %arg5[%c0_9, %c0_10] : memref<1x1280xf32, #tpu.memory_space<vmem>>, vector<1x1280xf32>
    %13 = vector.broadcast %12 : vector<1x1280xf32> to vector<8x1280xf32>
    %14 = arith.addf %11, %13 : vector<8x1280xf32>
    %15 = arith.negf %14 : vector<8x1280xf32>
    %16 = math.exp %15 : vector<8x1280xf32>
    %cst_11 = arith.constant 1.000000e+00 : f32
    %17 = vector.broadcast %cst_11 : f32 to vector<8x1280xf32>
    %18 = arith.addf %17, %16 : vector<8x1280xf32>
    %19 = arith.divf %17, %18 : vector<8x1280xf32>
    %20 = arith.mulf %1, %19 : vector<8x1280xf32>
    %21 = arith.truncf %20 : vector<8x1280xf32> to vector<8x1280xbf16>
    %c0_12 = arith.constant 0 : index
    %c0_13 = arith.constant 0 : index
    %22 = vector.load %arg6[%c0_12, %c0_13] : memref<1280x512xbf16, #tpu.memory_space<vmem>>, vector<1280x512xbf16>
    %cst_14 = arith.constant dense<0.000000e+00> : vector<8x512xf32>
    %23 = tpu.matmul %21, %22, %cst_14 {dimension_numbers = #tpu.dot_dimension_numbers<[1], [0], [0], [1], [0, 0, 1, 1], [], []>} : vector<8x1280xbf16>, vector<1280x512xbf16>, vector<8x512xf32> -> vector<8x512xf32>
    %c0_15 = arith.constant 0 : index
    %c0_16 = arith.constant 0 : index
    %24 = vector.load %arg7[%c0_15, %c0_16] : memref<1x512xf32, #tpu.memory_space<vmem>>, vector<1x512xf32>
    %25 = vector.broadcast %24 : vector<1x512xf32> to vector<8x512xf32>
    %26 = arith.addf %23, %25 : vector<8x512xf32>
    %cst_17 = arith.constant 0.000000e+00 : f32
    %27 = vector.broadcast %cst_17 : f32 to vector<8x512xf32>
    %28 = arith.maximumf %26, %27 : vector<8x512xf32>
    %29 = arith.truncf %28 : vector<8x512xf32> to vector<8x512xbf16>
    %c0_18 = arith.constant 0 : index
    %c0_19 = arith.constant 0 : index
    %30 = vector.load %arg8[%c0_18, %c0_19] : memref<512x1280xbf16, #tpu.memory_space<vmem>>, vector<512x1280xbf16>
    %cst_20 = arith.constant dense<0.000000e+00> : vector<8x1280xf32>
    %31 = tpu.matmul %29, %30, %cst_20 {dimension_numbers = #tpu.dot_dimension_numbers<[1], [0], [0], [1], [0, 0, 1, 1], [], []>} : vector<8x512xbf16>, vector<512x1280xbf16>, vector<8x1280xf32> -> vector<8x1280xf32>
    %c0_21 = arith.constant 0 : index
    %c0_22 = arith.constant 0 : index
    %32 = vector.load %arg9[%c0_21, %c0_22] : memref<1x1280xf32, #tpu.memory_space<vmem>>, vector<1x1280xf32>
    %33 = vector.broadcast %32 : vector<1x1280xf32> to vector<8x1280xf32>
    %34 = arith.addf %31, %33 : vector<8x1280xf32>
    %cst_23 = arith.constant 0.000000e+00 : f32
    %35 = vector.broadcast %cst_23 : f32 to vector<8x1280xf32>
    %36 = arith.maximumf %34, %35 : vector<8x1280xf32>
    %37 = arith.truncf %36 : vector<8x1280xf32> to vector<8x1280xbf16>
    %c0_24 = arith.constant 0 : index
    %c0_25 = arith.constant 0 : index
    %38 = vector.load %arg10[%c0_24, %c0_25] : memref<1280x128xbf16, #tpu.memory_space<vmem>>, vector<1280x128xbf16>
    %cst_26 = arith.constant dense<0.000000e+00> : vector<8x128xf32>
    %39 = tpu.matmul %37, %38, %cst_26 {dimension_numbers = #tpu.dot_dimension_numbers<[1], [0], [0], [1], [0, 0, 1, 1], [], []>} : vector<8x1280xbf16>, vector<1280x128xbf16>, vector<8x128xf32> -> vector<8x128xf32>
    %c0_27 = arith.constant 0 : index
    %c0_28 = arith.constant 0 : index
    %40 = vector.load %arg11[%c0_27, %c0_28] : memref<1x128xf32, #tpu.memory_space<vmem>>, vector<1x128xf32>
    %41 = vector.broadcast %40 : vector<1x128xf32> to vector<8x128xf32>
    %42 = arith.addf %39, %41 : vector<8x128xf32>
    %c0_29 = arith.constant 0 : index
    %c0_30 = arith.constant 0 : index
    %43 = vector.load %arg12[%c0_29, %c0_30] : memref<8x128xf32, #tpu.memory_space<vmem>>, vector<8x128xf32>
    tpu.vector_store %arg12[%c0_29, %c0_30], %42 {strides = array<i32>} : memref<8x128xf32, #tpu.memory_space<vmem>>, vector<8x128xf32>,
    return
  }
  func.func @transform_0(%arg0: i32) -> (i32, i32) {
    %c0_i32 = arith.constant 0 : i32
    %c0_i32_0 = arith.constant 0 : i32
    return %arg0, %c0_i32 : i32, i32
  }
  func.func @transform_1(%arg0: i32) -> (i32, i32) {
    %c0_i32 = arith.constant 0 : i32
    %c0_i32_0 = arith.constant 0 : i32
    %c0_i32_1 = arith.constant 0 : i32
    return %c0_i32, %c0_i32_0 : i32, i32
  }
  func.func @transform_2(%arg0: i32) -> (i32, i32) {
    %c0_i32 = arith.constant 0 : i32
    %c0_i32_0 = arith.constant 0 : i32
    %c0_i32_1 = arith.constant 0 : i32
    return %c0_i32, %c0_i32_0 : i32, i32
  }
  func.func @transform_3(%arg0: i32) -> (i32, i32) {
    %c0_i32 = arith.constant 0 : i32
    %c0_i32_0 = arith.constant 0 : i32
    %c0_i32_1 = arith.constant 0 : i32
    return %c0_i32, %c0_i32_0 : i32, i32
  }
  func.func @transform_4(%arg0: i32) -> (i32, i32) {
    %c0_i32 = arith.constant 0 : i32
    %c0_i32_0 = arith.constant 0 : i32
    %c0_i32_1 = arith.constant 0 : i32
    return %c0_i32, %c0_i32_0 : i32, i32
  }
  func.func @transform_5(%arg0: i32) -> (i32, i32) {
    %c0_i32 = arith.constant 0 : i32
    %c0_i32_0 = arith.constant 0 : i32
    %c0_i32_1 = arith.constant 0 : i32
    return %c0_i32, %c0_i32_0 : i32, i32
  }
  func.func @transform_6(%arg0: i32) -> (i32, i32) {
    %c0_i32 = arith.constant 0 : i32
    %c0_i32_0 = arith.constant 0 : i32
    %c0_i32_1 = arith.constant 0 : i32
    return %c0_i32, %c0_i32_0 : i32, i32
  }
  func.func @transform_7(%arg0: i32) -> (i32, i32) {
    %c0_i32 = arith.constant 0 : i32
    %c0_i32_0 = arith.constant 0 : i32
    %c0_i32_1 = arith.constant 0 : i32
    return %c0_i32, %c0_i32_0 : i32, i32
  }
  func.func @transform_8(%arg0: i32) -> (i32, i32) {
    %c0_i32 = arith.constant 0 : i32
    %c0_i32_0 = arith.constant 0 : i32
    %c0_i32_1 = arith.constant 0 : i32
    return %c0_i32, %c0_i32_0 : i32, i32
  }
  func.func @transform_9(%arg0: i32) -> (i32, i32) {
    %c0_i32 = arith.constant 0 : i32
    %c0_i32_0 = arith.constant 0 : i32
    %c0_i32_1 = arith.constant 0 : i32
    return %c0_i32, %c0_i32_0 : i32, i32
  }
  func.func @transform_10(%arg0: i32) -> (i32, i32) {
    %c0_i32 = arith.constant 0 : i32
    %c0_i32_0 = arith.constant 0 : i32
    %c0_i32_1 = arith.constant 0 : i32
    return %c0_i32, %c0_i32_0 : i32, i32
  }
  func.func @transform_11(%arg0: i32) -> (i32, i32) {
    %c0_i32 = arith.constant 0 : i32
    %c0_i32_0 = arith.constant 0 : i32
    return %arg0, %c0_i32 : i32, i32
  }
}

</mosaic_0001>

<bundles_post_ra>
// kernel: _forward_impl.1
= control target key start
LH: loop header
LB: loop body
LE: loop exit
PB: predicated region body
PF: predicated region fallthrough
CT: control target
= control target key end

     0   :  { %16 = vsyncpa [#allocation3], 0  ;;  %s18296_s0 = inlined_call_operand.vmem [shape: bf16[8,1280], index: 0, kind: input, shape index: {}]   ;;  %s18297_s1 = inlined_call_operand.hbm [shape: bf16[1280,768], index: 1, kind: input, shape index: {}]   ;;  %s18298_s2 = inlined_call_operand.hbm [shape: f32[1,768], index: 2, kind: input, shape index: {}]   ;;  %s18299_s3 = inlined_call_operand.hbm [shape: bf16[768,1280], index: 3, kind: input, shape index: {}]   ;;  %s18300_s4 = inlined_call_operand.hbm [shape: f32[1,1280], index: 4, kind: input, shape index: {}]   ;;  %s18301_s5 = inlined_call_operand.hbm [shape: bf16[1280,512], index: 5, kind: input, shape index: {}]   ;;  %s18302_s6 = inlined_call_operand.hbm [shape: f32[1,512], index: 6, kind: input, shape index: {}]   ;;  %s18303_s7 = inlined_call_operand.hbm [shape: bf16[512,1280], index: 7, kind: input, shape index: {}]   ;;  %s18304_s8 = inlined_call_operand.hbm [shape: f32[1,1280], index: 8, kind: input, shape index: {}]   ;;  %s18305_s9 = inlined_call_operand.hbm [shape: bf16[1280,128], index: 9, kind: input, shape index: {}]   ;;  %s18306_s10 = inlined_call_operand.hbm [shape: f32[1,128], index: 10, kind: input, shape index: {}]   ;;  %s18307_s11 = inlined_call_operand.vmem [shape: f32[8,128], index: 11, kind: output, shape index: {}]  }
   0x1   :  { %17 = vsyncpa [#allocation5], 0 }
   0x2   :  { %18 = vsyncpa [#allocation8], 0 }
   0x3   :  { %19 = vsyncpa [#allocation11], 0 }
   0x4   :  { %20 = vsyncpa [#allocation14], 0 }
   0x5   :  { %21 = vsyncpa [#allocation17], 0  ;;  %s17773_s17 = smov [#allocation4]   ;;  %s17774_s19 = smov [#allocation7]  }
   0x6   :  { %s42_s18 = sshll.u32 %s17773_s17, 4  ;;  %s64_s20 = sshll.u32 %s17774_s19, 4  ;;  %s43_s18 = int_to_ptr.vmem [resolvable:$true] %s42_s18  ;;  %s65_s20 = int_to_ptr.vmem [resolvable:$true] %s64_s20 }
   0x7   :  { %s17541_s23 = scalar_lea.hbm %s18298_s2, 96 }
   0x8   :  { %p17542_p0 = scmp.ne.s32.totalorder %s18298_s2, %s17541_s23  ;;  %p17545_p1 = scmp.lt.u32.totalorder %s17541_s23, %s18298_s2 }
   0xa   :  { %p17547_p2 = pnand %p17545_p1, %p17542_p0 }
   0xc   :  { %17550 = shalt.err (!%p17547_p2)
}
   0xd   :  { %s17551_s28 = scalar_lea.vmem %s43_s18, 96  ;;  %p17556_p4 = scmp.lt.s32.totalorder %s43_s18, %s43_s18 }
   0xe   :  { %p17552_p3 = scmp.ne.s32.totalorder %s43_s18, %s17551_s28  ;;  %p17557_p5 = scmp.lt.s32.totalorder %s17551_s28, %s17551_s28 }
  0x10   :  { %p17558_p6 = por %p17557_p5, %p17556_p4 }
  0x12   :  { %p17559_p7 = pnand %p17558_p6, %p17552_p3 }
  0x14   :  { %17562 = shalt.err (!%p17559_p7)
}
  0x15   :  { %45 = dma.hbm_to_vmem [thread:$0]  %s18298_s2, 96, %s43_s18, [#allocation5]  }
  0x16   :  { %s17563_s14 = scalar_lea.hbm %s18300_s4, 160 }
  0x17   :  { %p17564_p8 = scmp.ne.s32.totalorder %s18300_s4, %s17563_s14  ;;  %p17567_p9 = scmp.lt.u32.totalorder %s17563_s14, %s18300_s4 }
  0x19   :  { %p17569_p10 = pnand %p17567_p9, %p17564_p8 }
  0x1b   :  { %17572 = shalt.err (!%p17569_p10)
}
  0x1c   :  { %s17573_s21 = scalar_lea.vmem %s65_s20, 160  ;;  %p17578_p12 = scmp.lt.s32.totalorder %s65_s20, %s65_s20 }
  0x1d   :  { %p17574_p11 = scmp.ne.s32.totalorder %s65_s20, %s17573_s21  ;;  %p17579_p13 = scmp.lt.s32.totalorder %s17573_s21, %s17573_s21 }
  0x1f   :  { %p17580_p0 = por %p17579_p13, %p17578_p12 }
  0x21   :  { %p17581_p1 = pnand %p17580_p0, %p17574_p11 }
  0x23   :  { %17584 = shalt.err (!%p17581_p1)
}
  0x24   :  { %67 = dma.hbm_to_vmem [thread:$0]  %s18300_s4, 160, %s65_s20, [#allocation8]  }
  0x25   :  { %s17775_s22 = smov [#allocation10]   ;;  %s17776_s24 = smov [#allocation13]  }
  0x26   :  { %s86_s23 = sshll.u32 %s17775_s22, 4  ;;  %s108_s25 = sshll.u32 %s17776_s24, 4  ;;  %s87_s23 = int_to_ptr.vmem [resolvable:$true] %s86_s23  ;;  %s109_s25 = int_to_ptr.vmem [resolvable:$true] %s108_s25 }
  0x27   :  { %s17585_s28 = scalar_lea.hbm %s18302_s6, 64 }
  0x28   :  { %p17586_p2 = scmp.ne.s32.totalorder %s18302_s6, %s17585_s28  ;;  %p17589_p3 = scmp.lt.u32.totalorder %s17585_s28, %s18302_s6 }
  0x2a   :  { %p17591_p4 = pnand %p17589_p3, %p17586_p2 }
  0x2c   :  { %17594 = shalt.err (!%p17591_p4)
}
  0x2d   :  { %s17595_s4 = scalar_lea.vmem %s87_s23, 64  ;;  %p17600_p6 = scmp.lt.s32.totalorder %s87_s23, %s87_s23 }
  0x2e   :  { %p17596_p5 = scmp.ne.s32.totalorder %s87_s23, %s17595_s4  ;;  %p17601_p7 = scmp.lt.s32.totalorder %s17595_s4, %s17595_s4 }
  0x30   :  { %p17602_p8 = por %p17601_p7, %p17600_p6 }
  0x32   :  { %p17603_p9 = pnand %p17602_p8, %p17596_p5 }
  0x34   :  { %17606 = shalt.err (!%p17603_p9)
}
  0x35   :  { %89 = dma.hbm_to_vmem [thread:$0]  %s18302_s6, 64, %s87_s23, [#allocation11]  }
  0x36   :  { %s17607_s17 = scalar_lea.hbm %s18304_s8, 160 }
  0x37   :  { %p17608_p10 = scmp.ne.s32.totalorder %s18304_s8, %s17607_s17  ;;  %p17611_p11 = scmp.lt.u32.totalorder %s17607_s17, %s18304_s8 }
  0x39   :  { %p17613_p12 = pnand %p17611_p11, %p17608_p10 }
  0x3b   :  { %17616 = shalt.err (!%p17613_p12)
}
  0x3c   :  { %s17617_s22 = scalar_lea.vmem %s109_s25, 160  ;;  %p17622_p0 = scmp.lt.s32.totalorder %s109_s25, %s109_s25 }
  0x3d   :  { %p17618_p13 = scmp.ne.s32.totalorder %s109_s25, %s17617_s22  ;;  %p17623_p1 = scmp.lt.s32.totalorder %s17617_s22, %s17617_s22 }
  0x3f   :  { %p17624_p2 = por %p17623_p1, %p17622_p0 }
  0x41   :  { %p17625_p3 = pnand %p17624_p2, %p17618_p13 }
  0x43   :  { %17628 = shalt.err (!%p17625_p3)
}
  0x44   :  { %111 = dma.hbm_to_vmem [thread:$0]  %s18304_s8, 160, %s109_s25, [#allocation14]  }
  0x45   :  { %s17777_s24 = smov [#allocation2]   ;;  %s17629_s29 = scalar_lea.hbm %s18297_s1, 61440 }
  0x46   :  { %s29_s26 = sshll.u32 %s17777_s24, 4  ;;  %p17630_p4 = scmp.ne.s32.totalorder %s18297_s1, %s17629_s29  ;;  %s30_s26 = int_to_ptr.vmem [resolvable:$true] %s29_s26 }
  0x47   :  { %p17633_p5 = scmp.lt.u32.totalorder %s17629_s29, %s18297_s1 }
  0x49   :  { %p17635_p6 = pnand %p17633_p5, %p17630_p4 }
  0x4b   :  { %17638 = shalt.err (!%p17635_p6)
}
  0x4c   :  { %s17639_s20 = scalar_lea.vmem %s30_s26, 61440  ;;  %p17644_p8 = scmp.lt.s32.totalorder %s30_s26, %s30_s26 }
  0x4d   :  { %p17640_p7 = scmp.ne.s32.totalorder %s30_s26, %s17639_s20  ;;  %p17645_p9 = scmp.lt.s32.totalorder %s17639_s20, %s17639_s20 }
  0x4f   :  { %p17646_p10 = por %p17645_p9, %p17644_p8 }
  0x51   :  { %p17647_p11 = pnand %p17646_p10, %p17640_p7 }
  0x53   :  { %17650 = shalt.err (!%p17647_p11)
}
  0x54   :  { %s17778_s8 = smov 384   ;;  %s17779_s25 = smov 24  }
  0x55   :  { %35 = dma.hbm_to_vmem [thread:$0]  %s18297_s1, 61440, %s30_s26, [#allocation3], %s17778_s8, %s17778_s8, %s17779_s25  }
  0x56   :  { %s17780_s16 = smov [#allocation6]   ;;  %s17651_s2 = scalar_lea.hbm %s18299_s3, 61440 }
  0x57   :  { %s51_s17 = sshll.u32 %s17780_s16, 4  ;;  %p17652_p12 = scmp.ne.s32.totalorder %s18299_s3, %s17651_s2  ;;  %s52_s17 = int_to_ptr.vmem [resolvable:$true] %s51_s17 }
  0x58   :  { %p17655_p13 = scmp.lt.u32.totalorder %s17651_s2, %s18299_s3 }
  0x5a   :  { %p17657_p0 = pnand %p17655_p13, %p17652_p12 }
  0x5c   :  { %17660 = shalt.err (!%p17657_p0)
}
  0x5d   :  { %s17661_s24 = scalar_lea.vmem %s52_s17, 61440  ;;  %p17666_p2 = scmp.lt.s32.totalorder %s52_s17, %s52_s17 }
  0x5e   :  { %p17662_p1 = scmp.ne.s32.totalorder %s52_s17, %s17661_s24  ;;  %p17667_p3 = scmp.lt.s32.totalorder %s17661_s24, %s17661_s24 }
  0x60   :  { %p17668_p4 = por %p17667_p3, %p17666_p2 }
  0x62   :  { %p17669_p5 = pnand %p17668_p4, %p17662_p1 }
  0x64   :  { %17672 = shalt.err (!%p17669_p5)
}
  0x65   :  { %s17781_s1 = smov 640   ;;  %s17782_s26 = smov 40  }
  0x66   :  { %57 = dma.hbm_to_vmem [thread:$0]  %s18299_s3, 61440, %s52_s17, [#allocation5], %s17781_s1, %s17781_s1, %s17782_s26  }
  0x67   :  { %s17783_s29 = smov [#allocation9]   ;;  %s17673_s4 = scalar_lea.hbm %s18301_s5, 40960 }
  0x68   :  { %s73_s30 = sshll.u32 %s17783_s29, 4  ;;  %p17674_p6 = scmp.ne.s32.totalorder %s18301_s5, %s17673_s4  ;;  %s74_s30 = int_to_ptr.vmem [resolvable:$true] %s73_s30 }
  0x69   :  { %p17677_p7 = scmp.lt.u32.totalorder %s17673_s4, %s18301_s5 }
  0x6b   :  { %p17679_p8 = pnand %p17677_p7, %p17674_p6 }
  0x6d   :  { %17682 = shalt.err (!%p17679_p8)
}
  0x6e   :  { %s17683_s15 = scalar_lea.vmem %s74_s30, 40960  ;;  %p17688_p10 = scmp.lt.s32.totalorder %s74_s30, %s74_s30 }
  0x6f   :  { %p17684_p9 = scmp.ne.s32.totalorder %s74_s30, %s17683_s15  ;;  %p17689_p11 = scmp.lt.s32.totalorder %s17683_s15, %s17683_s15 }
  0x71   :  { %p17690_p12 = por %p17689_p11, %p17688_p10 }
  0x73   :  { %p17691_p13 = pnand %p17690_p12, %p17684_p9 }
  0x75   :  { %17694 = shalt.err (!%p17691_p13)
}
  0x76   :  { %s17784_s3 = smov 256   ;;  %s17785_s16 = smov 16  }
  0x77   :  { %79 = dma.hbm_to_vmem [thread:$0]  %s18301_s5, 40960, %s74_s30, [#allocation8], %s17784_s3, %s17784_s3, %s17785_s16  }
  0x78   :  { %s17786_s21 = smov [#allocation12]   ;;  %s17787_s18 = smov [#allocation15]  }
  0x79   :  { %s95_s2 = sshll.u32 %s17786_s21, 4  ;;  %s117_s22 = sshll.u32 %s17787_s18, 4  ;;  %s96_s2 = int_to_ptr.vmem [resolvable:$true] %s95_s2  ;;  %s118_s22 = int_to_ptr.vmem [resolvable:$true] %s117_s22 }
  0x7a   :  { %s17695_s24 = scalar_lea.hbm %s18303_s7, 40960 }
  0x7b   :  { %p17696_p0 = scmp.ne.s32.totalorder %s18303_s7, %s17695_s24  ;;  %p17699_p1 = scmp.lt.u32.totalorder %s17695_s24, %s18303_s7 }
  0x7d   :  { %p17701_p2 = pnand %p17699_p1, %p17696_p0 }
  0x7f   :  { %17704 = shalt.err (!%p17701_p2)
}
  0x80   :  { %s17705_s5 = scalar_lea.vmem %s96_s2, 40960  ;;  %p17710_p4 = scmp.lt.s32.totalorder %s96_s2, %s96_s2 }
  0x81   :  { %p17706_p3 = scmp.ne.s32.totalorder %s96_s2, %s17705_s5  ;;  %p17711_p5 = scmp.lt.s32.totalorder %s17705_s5, %s17705_s5 }
  0x83   :  { %p17712_p6 = por %p17711_p5, %p17710_p4 }
  0x85   :  { %p17713_p7 = pnand %p17712_p6, %p17706_p3 }
  0x87   :  { %17716 = shalt.err (!%p17713_p7)
}
  0x88   :  { %101 = dma.hbm_to_vmem [thread:$0]  %s18303_s7, 40960, %s96_s2, [#allocation11], %s17781_s1, %s17781_s1, %s17782_s26  }
  0x89   :  { %s17717_s8 = scalar_lea.hbm %s18305_s9, 10240 }
  0x8a   :  { %p17718_p8 = scmp.ne.s32.totalorder %s18305_s9, %s17717_s8  ;;  %p17721_p9 = scmp.lt.u32.totalorder %s17717_s8, %s18305_s9 }
  0x8c   :  { %p17723_p10 = pnand %p17721_p9, %p17718_p8 }
  0x8e   :  { %17726 = shalt.err (!%p17723_p10)
}
  0x8f   :  { %s17727_s16 = scalar_lea.vmem %s118_s22, 10240  ;;  %p17732_p12 = scmp.lt.s32.totalorder %s118_s22, %s118_s22 }
  0x90   :  { %p17728_p11 = scmp.ne.s32.totalorder %s118_s22, %s17727_s16  ;;  %p17733_p13 = scmp.lt.s32.totalorder %s17727_s16, %s17727_s16 }
  0x92   :  { %p17734_p0 = por %p17733_p13, %p17732_p12 }
  0x94   :  { %p17735_p1 = pnand %p17734_p0, %p17728_p11 }
  0x96   :  { %17738 = shalt.err (!%p17735_p1)
}
  0x97   :  { %s17788_s7 = smov 64   ;;  %s17789_s1 = smov 4  }
  0x98   :  { %123 = dma.hbm_to_vmem [thread:$0]  %s18305_s9, 10240, %s118_s22, [#allocation14], %s17788_s7, %s17788_s7, %s17789_s1  }
  0x99   :  { %s17790_s19 = smov [#allocation16]   ;;  %s17739_s6 = scalar_lea.hbm %s18306_s10, 16 }
  0x9a   :  { %s130_s21 = sshll.u32 %s17790_s19, 4  ;;  %p17740_p2 = scmp.ne.s32.totalorder %s18306_s10, %s17739_s6  ;;  %s131_s21 = int_to_ptr.vmem [resolvable:$true] %s130_s21 }
  0x9b   :  { %p17743_p3 = scmp.lt.u32.totalorder %s17739_s6, %s18306_s10 }
  0x9d   :  { %p17745_p4 = pnand %p17743_p3, %p17740_p2 }
  0x9f   :  { %17748 = shalt.err (!%p17745_p4)
}
  0xa0   :  { %s17749_s29 = scalar_lea.vmem %s131_s21, 16  ;;  %s17753_s9 = scalar_lea.vmem %s131_s21, 32 }
  0xa1   :  { %p17750_p5 = scmp.ne.s32.totalorder %s131_s21, %s17749_s29  ;;  %p17754_p6 = scmp.lt.s32.totalorder %s131_s21, %s131_s21 }
  0xa2   :  { %p17755_p7 = scmp.lt.s32.totalorder %s17753_s9, %s17749_s29 }
  0xa4   :  { %p17756_p8 = por %p17755_p7, %p17754_p6 }
  0xa6   :  { %p17757_p9 = pnand %p17756_p8, %p17750_p5 }
  0xa8   :  { %17760 = shalt.err (!%p17757_p9)
}
  0xa9   :  { %133 = dma.hbm_to_vmem [thread:$0]  %s18306_s10, 16, %s131_s21, [#allocation17]  }
  0xaa   :  { %17761 = dma.done.wait [#allocation3], 61440  }
  0xab   :  { %17762 = vsyncadd [#allocation3], 4294905856 }
  0xac   :  { %17763 = dma.done.wait [#allocation5], 61536  }
  0xad   :  { %17764 = vsyncadd [#allocation5], 4294905760 }
  0xae   :  { %17765 = dma.done.wait [#allocation8], 41120  }
  0xaf   :  { %17766 = vsyncadd [#allocation8], 4294926176 }
  0xb0   :  { %17767 = dma.done.wait [#allocation11], 41024  }
  0xb1   :  { %17768 = vsyncadd [#allocation11], 4294926272 }
  0xb2   :  { %17769 = dma.done.wait [#allocation14], 10400  }
  0xb3   :  { %17770 = vsyncadd [#allocation14], 4294956896 }
  0xb4   :  { %17771 = dma.done.wait [#allocation17], 16  }
  0xb5   :  { %17772 = vsyncadd [#allocation17], 4294967280  ;;  %v15004_v0 = vld [vmem:[#allocation2 + $0x4] ss:$24 sps:$4 sm:$0xff]   ;;  %v15008_v2 = vld [vmem:[#allocation2] ss:$24 sps:$4 sm:$0xff]  }
  0xb6   :  { %v15006_v1 = vld [vmem:[#allocation2 + $0xc] ss:$24 sps:$4 sm:$0xff]   ;;  %3127 = vmatprep.subr.bf16.mxu0 %v15004_v0  ;;  %v15009_v3 = vld [vmem:[#allocation2 + $0x8] ss:$24 sps:$4 sm:$0xff]   ;;  %v15012_v5 = vld [vmem:[#allocation2 + $0x3c] ss:$24 sps:$4 sm:$0xff]  }
  0xb7   :  { %3332 = vmatprep.subr.bf16.mxu1 %v15006_v1  ;;  %v15010_v4 = vld [vmem:[#allocation2 + $0x34] ss:$24 sps:$4 sm:$0xff]   ;;  %3128 = vmatpush1.bf16.msra.mxu0 %v15008_v2  ;;  %v15014_v6 = vld [vmem:[#allocation2 + $0x30] ss:$24 sps:$4 sm:$0xff]   ;;  %v15016_v8 = vld [vmem:[#allocation2 + $0x64] ss:$24 sps:$4 sm:$0xff]  }
  0xb8   :  { %3333 = vmatpush1.bf16.msra.mxu1 %v15009_v3  ;;  %3129 = vmatprep.subr.bf16.mxu0 %v15010_v4  ;;  %v15015_v7 = vld [vmem:[#allocation2 + $0x38] ss:$24 sps:$4 sm:$0xff]   ;;  %v15018_v9 = vld [vmem:[#allocation2 + $0x6c] ss:$24 sps:$4 sm:$0xff]   ;;  %v15021_v11 = vld [vmem:[#allocation2 + $0x68] ss:$24 sps:$4 sm:$0xff]  }
  0xb9   :  { %3334 = vmatprep.subr.bf16.mxu1 %v15012_v5  ;;  %v15020_v10 = vld [vmem:[#allocation2 + $0x60] ss:$24 sps:$4 sm:$0xff]   ;;  %v15022_v12 = vld [vmem:[#allocation2 + $0x94] ss:$24 sps:$4 sm:$0xff]   ;;  %v15026_v14 = vld [vmem:[#allocation2 + $0x90] ss:$24 sps:$4 sm:$0xff]  }
  0xba   :  { %v15024_v13 = vld [vmem:[#allocation2 + $0x9c] ss:$24 sps:$4 sm:$0xff]   ;;  %v15027_v15 = vld [vmem:[#allocation2 + $0x98] ss:$24 sps:$4 sm:$0xff]   ;;  %v15030_v17 = vld [vmem:[#allocation2 + $0xcc] ss:$24 sps:$4 sm:$0xff]  }
  0xbb   :  { %3130 = vmatpush1.bf16.msra.mxu0 %v15014_v6  ;;  %v15028_v16 = vld [vmem:[#allocation2 + $0xc4] ss:$24 sps:$4 sm:$0xff]   ;;  %v15032_v18 = vld [vmem:[#allocation2 + $0xc0] ss:$24 sps:$4 sm:$0xff]   ;;  %v15034_v20 = vld [vmem:[#allocation2 + $0xf4] ss:$24 sps:$4 sm:$0xff]  }
  0xbc   :  { %3335 = vmatpush1.bf16.msra.mxu1 %v15015_v7  ;;  %3131 = vmatprep.subr.bf16.mxu0 %v15016_v8  ;;  %v15033_v19 = vld [vmem:[#allocation2 + $0xc8] ss:$24 sps:$4 sm:$0xff]   ;;  %v15036_v21 = vld [vmem:[#allocation2 + $0xfc] ss:$24 sps:$4 sm:$0xff]   ;;  %v15039_v23 = vld [vmem:[#allocation2 + $0xf8] ss:$24 sps:$4 sm:$0xff]  }
  0xbd   :  { %3336 = vmatprep.subr.bf16.mxu1 %v15018_v9  ;;  %v15038_v22 = vld [vmem:[#allocation2 + $0xf0] ss:$24 sps:$4 sm:$0xff]   ;;  %v15040_v24 = vld [vmem:[#allocation2 + $0x124] ss:$24 sps:$4 sm:$0xff]   ;;  %v15044_v26 = vld [vmem:[#allocation2 + $0x120] ss:$24 sps:$4 sm:$0xff]  }
  0xbe   :  { %v15042_v25 = vld [vmem:[#allocation2 + $0x12c] ss:$24 sps:$4 sm:$0xff]   ;;  %v15045_v27 = vld [vmem:[#allocation2 + $0x128] ss:$24 sps:$4 sm:$0xff]   ;;  %v15048_v29 = vld [vmem:[#allocation2 + $0x15c] ss:$24 sps:$4 sm:$0xff]  }
  0xbf   :  { %3132 = vmatpush1.bf16.msra.mxu0 %v15020_v10  ;;  %v15046_v28 = vld [vmem:[#allocation2 + $0x154] ss:$24 sps:$4 sm:$0xff]   ;;  %v15050_v30 = vld [vmem:[#allocation2 + $0x150] ss:$24 sps:$4 sm:$0xff]   ;;  %v15052_v32 = vld [vmem:[#allocation2 + $0x184] ss:$24 sps:$4 sm:$0xff]  }
  0xc0   :  { %3337 = vmatpush1.bf16.msra.mxu1 %v15021_v11  ;;  %3133 = vmatprep.subr.bf16.mxu0 %v15022_v12  ;;  %v15051_v31 = vld [vmem:[#allocation2 + $0x158] ss:$24 sps:$4 sm:$0xff]   ;;  %v15054_v33 = vld [vmem:[#allocation2 + $0x18c] ss:$24 sps:$4 sm:$0xff]   ;;  %v15057_v35 = vld [vmem:[#allocation2 + $0x188] ss:$24 sps:$4 sm:$0xff]  }
  0xc1   :  { %3338 = vmatprep.subr.bf16.mxu1 %v15024_v13  ;;  %v15056_v34 = vld [vmem:[#allocation2 + $0x180] ss:$24 sps:$4 sm:$0xff]   ;;  %v15058_v36 = vld [vmem:[#allocation2 + $0x1b4] ss:$24 sps:$4 sm:$0xff]   ;;  %v15062_v38 = vld [vmem:[#allocation2 + $0x1b0] ss:$24 sps:$4 sm:$0xff]  }
  0xc2   :  { %v15060_v37 = vld [vmem:[#allocation2 + $0x1bc] ss:$24 sps:$4 sm:$0xff]   ;;  %v15063_v39 = vld [vmem:[#allocation2 + $0x1b8] ss:$24 sps:$4 sm:$0xff]   ;;  %v15066_v41 = vld [vmem:[#allocation2 + $0x1ec] ss:$24 sps:$4 sm:$0xff]  }
  0xc3   :  { %3134 = vmatpush1.bf16.msra.mxu0 %v15026_v14  ;;  %v15064_v40 = vld [vmem:[#allocation2 + $0x1e4] ss:$24 sps:$4 sm:$0xff]   ;;  %v15068_v42 = vld [vmem:[#allocation2 + $0x1e0] ss:$24 sps:$4 sm:$0xff]   ;;  %v15070_v44 = vld [vmem:[#allocation2 + $0x214] ss:$24 sps:$4 sm:$0xff]  }
  0xc4   :  { %3339 = vmatpush1.bf16.msra.mxu1 %v15027_v15  ;;  %3135 = vmatprep.subr.bf16.mxu0 %v15028_v16  ;;  %v15069_v43 = vld [vmem:[#allocation2 + $0x1e8] ss:$24 sps:$4 sm:$0xff]   ;;  %v15072_v45 = vld [vmem:[#allocation2 + $0x21c] ss:$24 sps:$4 sm:$0xff]   ;;  %v15075_v49 = vld [vmem:[#allocation2 + $0x218] ss:$24 sps:$4 sm:$0xff]  }
  0xc5   :  { %3340 = vmatprep.subr.bf16.mxu1 %v15030_v17  ;;  %v165_v46 = vld [vmem:[%s18296_s0] sm:$0xff]  ;;  %v15074_v47 = vld [vmem:[#allocation2 + $0x210] ss:$24 sps:$4 sm:$0xff]   ;;  %v15078_v51 = vld [vmem:[#allocation2 + $0x24c] ss:$24 sps:$4 sm:$0xff]  }
  0xc6   :  { %v17980_v48 = vcombine.high %v165_v46, %v165_v46  ;;  %v15076_v50 = vld [vmem:[#allocation2 + $0x244] ss:$24 sps:$4 sm:$0xff]   ;;  %v15080_v52 = vld [vmem:[#allocation2 + $0x240] ss:$24 sps:$4 sm:$0xff]   ;;  %v15082_v54 = vld [vmem:[#allocation2 + $0x274] ss:$24 sps:$4 sm:$0xff]   ;;  %v17984_v5 = vcombine.low %v165_v46, %v165_v46 }
  0xc7   :  { %3136 = vmatpush1.bf16.msra.mxu0 %v15032_v18  ;;  %v15081_v53 = vld [vmem:[#allocation2 + $0x248] ss:$24 sps:$4 sm:$0xff]   ;;  %v15084_v55 = vld [vmem:[#allocation2 + $0x27c] ss:$24 sps:$4 sm:$0xff]   ;;  %v15087_v57 = vld [vmem:[#allocation2 + $0x278] ss:$24 sps:$4 sm:$0xff]  }
  0xc8   :  { %3341 = vmatpush1.bf16.msra.mxu1 %v15033_v19  ;;  %3137 = vmatprep.subr.bf16.mxu0 %v15034_v20  ;;  %v15086_v56 = vld [vmem:[#allocation2 + $0x270] ss:$24 sps:$4 sm:$0xff]   ;;  %v15088_v58 = vld [vmem:[#allocation2 + $0x2a4] ss:$24 sps:$4 sm:$0xff]   ;;  %v15092_v60 = vld [vmem:[#allocation2 + $0x2a0] ss:$24 sps:$4 sm:$0xff]  }
  0xc9   :  { %3342 = vmatprep.subr.bf16.mxu1 %v15036_v21  ;;  %3159 = vmatprep.mubr.bf16.mxu0 %v17980_v48  ;;  %v15090_v59 = vld [vmem:[#allocation2 + $0x2ac] ss:$24 sps:$4 sm:$0xff]   ;;  %v15093_v61 = vld [vmem:[#allocation2 + $0x2a8] ss:$24 sps:$4 sm:$0xff]   ;;  %v15096_v63 = vld [vmem:[#allocation2 + $0x2dc] ss:$24 sps:$4 sm:$0xff]  }
  0xca   :  { %3364 = vmatprep.mubr.bf16.mxu1 %v17980_v48  ;;  %v15094_v62 = vld [vmem:[#allocation2 + $0x2d4] ss:$24 sps:$4 sm:$0xff]   ;;  %v15098_v0 = vld [vmem:[#allocation2 + $0x2d0] ss:$24 sps:$4 sm:$0xff]   ;;  %v15103_v2 = vld [vmem:[#allocation2 + $0x304] ss:$24 sps:$4 sm:$0xff]  }
  0xcb   :  { %3138 = vmatpush1.bf16.msra.mxu0 %v15038_v22  ;;  %v15099_v1 = vld [vmem:[#allocation2 + $0x2d8] ss:$24 sps:$4 sm:$0xff]   ;;  %v15106_v3 = vld [vmem:[#allocation2 + $0x30c] ss:$24 sps:$4 sm:$0xff]   ;;  %v15104_v6 = vld [vmem:[#allocation2 + $0x308] ss:$24 sps:$4 sm:$0xff]  }
  0xcc   :  { %3343 = vmatpush1.bf16.msra.mxu1 %v15039_v23  ;;  %3139 = vmatprep.subr.bf16.mxu0 %v15040_v24  ;;  %v15101_v4 = vld [vmem:[#allocation2 + $0x300] ss:$24 sps:$4 sm:$0xff]   ;;  %v15110_v7 = vld [vmem:[#allocation2 + $0x334] ss:$24 sps:$4 sm:$0xff]   ;;  %v15108_v9 = vld [vmem:[#allocation2 + $0x330] ss:$24 sps:$4 sm:$0xff]  }
  0xcd   :  { %3344 = vmatprep.subr.bf16.mxu1 %v15042_v25  ;;  %v15113_v8 = vld [vmem:[#allocation2 + $0x33c] ss:$24 sps:$4 sm:$0xff]   ;;  %v15111_v10 = vld [vmem:[#allocation2 + $0x338] ss:$24 sps:$4 sm:$0xff]   ;;  %v15119_v12 = vld [vmem:[#allocation2 + $0x36c] ss:$24 sps:$4 sm:$0xff]  }
  0xce   :  { %v15116_v11 = vld [vmem:[#allocation2 + $0x364] ss:$24 sps:$4 sm:$0xff]   ;;  %v15114_v13 = vld [vmem:[#allocation2 + $0x360] ss:$24 sps:$4 sm:$0xff]   ;;  %v15122_v15 = vld [vmem:[#allocation2 + $0x394] ss:$24 sps:$4 sm:$0xff]  }
  0xcf   :  { %3140 = vmatpush1.bf16.msra.mxu0 %v15044_v26  ;;  %v15117_v14 = vld [vmem:[#allocation2 + $0x368] ss:$24 sps:$4 sm:$0xff]   ;;  %v15125_v16 = vld [vmem:[#allocation2 + $0x39c] ss:$24 sps:$4 sm:$0xff]   ;;  %v15123_v18 = vld [vmem:[#allocation2 + $0x398] ss:$24 sps:$4 sm:$0xff]  }
  0xd0   :  { %3345 = vmatpush1.bf16.msra.mxu1 %v15045_v27  ;;  %3141 = vmatprep.subr.bf16.mxu0 %v15046_v28  ;;  %v15120_v17 = vld [vmem:[#allocation2 + $0x390] ss:$24 sps:$4 sm:$0xff]   ;;  %v15128_v19 = vld [vmem:[#allocation2 + $0x3c4] ss:$24 sps:$4 sm:$0xff]   ;;  %v15126_v21 = vld [vmem:[#allocation2 + $0x3c0] ss:$24 sps:$4 sm:$0xff]  }
  0xd1   :  { %3346 = vmatprep.subr.bf16.mxu1 %v15048_v29  ;;  %v15131_v20 = vld [vmem:[#allocation2 + $0x3cc] ss:$24 sps:$4 sm:$0xff]   ;;  %v15129_v22 = vld [vmem:[#allocation2 + $0x3c8] ss:$24 sps:$4 sm:$0xff]   ;;  %v15137_v24 = vld [vmem:[#allocation2 + $0x3fc] ss:$24 sps:$4 sm:$0xff]  }
  0xd2   :  { %v15134_v23 = vld [vmem:[#allocation2 + $0x3f4] ss:$24 sps:$4 sm:$0xff]   ;;  %v15132_v25 = vld [vmem:[#allocation2 + $0x3f0] ss:$24 sps:$4 sm:$0xff]   ;;  %v15140_v27 = vld [vmem:[#allocation2 + $0x424] ss:$24 sps:$4 sm:$0xff]  }
  0xd3   :  { %3142 = vmatpush1.bf16.msra.mxu0 %v15050_v30  ;;  %v15135_v26 = vld [vmem:[#allocation2 + $0x3f8] ss:$24 sps:$4 sm:$0xff]   ;;  %v15143_v28 = vld [vmem:[#allocation2 + $0x42c] ss:$24 sps:$4 sm:$0xff]  }
  0xd4   :  { %3347 = vmatpush1.bf16.msra.mxu1 %v15051_v31  ;;  %3143 = vmatprep.subr.bf16.mxu0 %v15052_v32  ;;  %v17991_v29 = vld [vmem:[%s18296_s0 + $0x8] sm:$0xff] }
  0xd5   :  { %3348 = vmatprep.subr.bf16.mxu1 %v15054_v33  ;;  %v17995_v30 = vcombine.high %v17991_v29, %v17991_v29  ;;  %v15138_v31 = vld [vmem:[#allocation2 + $0x420] ss:$24 sps:$4 sm:$0xff]   ;;  %v15146_v33 = vld [vmem:[#allocation2 + $0x454] ss:$24 sps:$4 sm:$0xff]  }
  0xd6   :  { %v15141_v32 = vld [vmem:[#allocation2 + $0x428] ss:$24 sps:$4 sm:$0xff]   ;;  %v15167_v46 = vld [vmem:[#allocation2 + $0x4ec] ss:$24 sps:$4 sm:$0xff]  }
  0xd7   :  { %3144 = vmatpush1.bf16.msra.mxu0 %v15056_v34  ;;  %v15149_v34 = vld [vmem:[#allocation2 + $0x45c] ss:$24 sps:$4 sm:$0xff]  }
  0xd8   :  { %3349 = vmatpush1.bf16.msra.mxu1 %v15057_v35  ;;  %3145 = vmatprep.subr.bf16.mxu0 %v15058_v36  ;;  %v15144_v35 = vld [vmem:[#allocation2 + $0x450] ss:$24 sps:$4 sm:$0xff]  }
  0xd9   :  { %3350 = vmatprep.subr.bf16.mxu1 %v15060_v37  ;;  %v15147_v36 = vld [vmem:[#allocation2 + $0x458] ss:$24 sps:$4 sm:$0xff]   ;;  %v15152_v37 = vld [vmem:[#allocation2 + $0x484] ss:$24 sps:$4 sm:$0xff]  }
  0xdb   :  { %3146 = vmatpush1.bf16.msra.mxu0 %v15062_v38  ;;  %v15155_v38 = vld [vmem:[#allocation2 + $0x48c] ss:$24 sps:$4 sm:$0xff]  }
  0xdc   :  { %3351 = vmatpush1.bf16.msra.mxu1 %v15063_v39  ;;  %3147 = vmatprep.subr.bf16.mxu0 %v15064_v40  ;;  %v15150_v39 = vld [vmem:[#allocation2 + $0x480] ss:$24 sps:$4 sm:$0xff]  }
  0xdd   :  { %3352 = vmatprep.subr.bf16.mxu1 %v15066_v41  ;;  %v15153_v40 = vld [vmem:[#allocation2 + $0x488] ss:$24 sps:$4 sm:$0xff]   ;;  %v15158_v41 = vld [vmem:[#allocation2 + $0x4b4] ss:$24 sps:$4 sm:$0xff]  }
  0xdf   :  { %3148 = vmatpush1.bf16.msra.mxu0 %v15068_v42  ;;  %v15161_v42 = vld [vmem:[#allocation2 + $0x4bc] ss:$24 sps:$4 sm:$0xff]  }
  0xe0   :  { %3353 = vmatpush1.bf16.msra.mxu1 %v15069_v43  ;;  %3149 = vmatprep.subr.bf16.mxu0 %v15070_v44  ;;  %v15156_v43 = vld [vmem:[#allocation2 + $0x4b0] ss:$24 sps:$4 sm:$0xff]  }
  0xe1   :  { %3354 = vmatprep.subr.bf16.mxu1 %v15072_v45  ;;  %v15159_v44 = vld [vmem:[#allocation2 + $0x4b8] ss:$24 sps:$4 sm:$0xff]   ;;  %v15164_v45 = vld [vmem:[#allocation2 + $0x4e4] ss:$24 sps:$4 sm:$0xff]  }
  0xe3   :  { %3150 = vmatpush1.bf16.msra.mxu0 %v15074_v47  ;;  %v15162_v47 = vld [vmem:[#allocation2 + $0x4e0] ss:$24 sps:$4 sm:$0xff]  }
  0xe4   :  { %3355 = vmatpush1.bf16.msra.mxu1 %v15075_v49  ;;  %3151 = vmatprep.subr.bf16.mxu0 %v15076_v50  ;;  %v15165_v49 = vld [vmem:[#allocation2 + $0x4e8] ss:$24 sps:$4 sm:$0xff]   ;;  %v15170_v50 = vld [vmem:[#allocation2 + $0x514] ss:$24 sps:$4 sm:$0xff]  }
  0xe5   :  { %3356 = vmatprep.subr.bf16.mxu1 %v15078_v51  ;;  %v15173_v51 = vld [vmem:[#allocation2 + $0x51c] ss:$24 sps:$4 sm:$0xff]  }
  0xe7   :  { %3152 = vmatpush1.bf16.msra.mxu0 %v15080_v52  ;;  %v15168_v52 = vld [vmem:[#allocation2 + $0x510] ss:$24 sps:$4 sm:$0xff]  }
  0xe8   :  { %3357 = vmatpush1.bf16.msra.mxu1 %v15081_v53  ;;  %3153 = vmatprep.subr.bf16.mxu0 %v15082_v54  ;;  %v15171_v53 = vld [vmem:[#allocation2 + $0x518] ss:$24 sps:$4 sm:$0xff]   ;;  %v15176_v54 = vld [vmem:[#allocation2 + $0x544] ss:$24 sps:$4 sm:$0xff]  }
  0xe9   :  { %3358 = vmatprep.subr.bf16.mxu1 %v15084_v55  ;;  %v15179_v55 = vld [vmem:[#allocation2 + $0x54c] ss:$24 sps:$4 sm:$0xff]  }
  0xeb   :  { %3154 = vmatpush1.bf16.msra.mxu0 %v15086_v56  ;;  %v15174_v56 = vld [vmem:[#allocation2 + $0x540] ss:$24 sps:$4 sm:$0xff]  }
  0xec   :  { %3359 = vmatpush1.bf16.msra.mxu1 %v15087_v57  ;;  %3155 = vmatprep.subr.bf16.mxu0 %v15088_v58  ;;  %v15177_v57 = vld [vmem:[#allocation2 + $0x548] ss:$24 sps:$4 sm:$0xff]   ;;  %v15182_v58 = vld [vmem:[#allocation2 + $0x574] ss:$24 sps:$4 sm:$0xff]  }
  0xed   :  { %3360 = vmatprep.subr.bf16.mxu1 %v15090_v59  ;;  %v15185_v59 = vld [vmem:[#allocation2 + $0x57c] ss:$24 sps:$4 sm:$0xff]  }
  0xef   :  { %3156 = vmatpush1.bf16.msra.mxu0 %v15092_v60  ;;  %v15180_v60 = vld [vmem:[#allocation2 + $0x570] ss:$24 sps:$4 sm:$0xff]  }
  0xf0   :  { %3361 = vmatpush1.bf16.msra.mxu1 %v15093_v61  ;;  %3157 = vmatprep.subr.bf16.mxu0 %v15094_v62  ;;  %v15183_v61 = vld [vmem:[#allocation2 + $0x578] ss:$24 sps:$4 sm:$0xff]   ;;  %v15188_v62 = vld [vmem:[#allocation2 + $0x5a4] ss:$24 sps:$4 sm:$0xff]  }
  0xf1   :  { %3362 = vmatprep.subr.bf16.mxu1 %v15096_v63  ;;  %v15191_v63 = vld [vmem:[#allocation2 + $0x5ac] ss:$24 sps:$4 sm:$0xff]  }
  0xf3   :  { %3158 = vmatpush1.bf16.msra.mxu0 %v15098_v0  ;;  %v15186_v0 = vld [vmem:[#allocation2 + $0x5a0] ss:$24 sps:$4 sm:$0xff]  }
  0xf4   :  { %3363 = vmatpush1.bf16.msra.mxu1 %v15099_v1  ;;  %3168 = vmatprep.subr.bf16.mxu0 %v15103_v2  ;;  %v15189_v1 = vld [vmem:[#allocation2 + $0x5a8] ss:$24 sps:$4 sm:$0xff]   ;;  %v15194_v2 = vld [vmem:[#allocation2 + $0x5d4] ss:$24 sps:$4 sm:$0xff]  }
  0xf5   :  { %3373 = vmatprep.subr.bf16.mxu1 %v15106_v3  ;;  %v15197_v3 = vld [vmem:[#allocation2 + $0x5dc] ss:$24 sps:$4 sm:$0xff]  }
  0xf6   :  { %3160 = vmatmul.mubr.bf16.vlgmr.msra.gmra.mrb[0].mxu0 %v17984_v5 }
  0xf7   :  { %3365 = vmatmul.mubr.bf16.vlgmr.msra.gmra.mrb[0].mxu1 %v17984_v5  ;;  %3169 = vmatpush1.bf16.msra.mxu0 %v15101_v4  ;;  %v15192_v4 = vld [vmem:[#allocation2 + $0x5d0] ss:$24 sps:$4 sm:$0xff]  }
  0xf8   :  { %3374 = vmatpush1.bf16.msra.mxu1 %v15104_v6  ;;  %3170 = vmatprep.subr.bf16.mxu0 %v15110_v7  ;;  %v15195_v6 = vld [vmem:[#allocation2 + $0x5d8] ss:$24 sps:$4 sm:$0xff]   ;;  %v15201_v7 = vld [vmem:[#allocation2 + $0x604] ss:$24 sps:$4 sm:$0xff]  }
  0xf9   :  { %3375 = vmatprep.subr.bf16.mxu1 %v15113_v8  ;;  %3200 = vmatprep.mubr.bf16.mxu0 %v17995_v30  ;;  %v15204_v8 = vld [vmem:[#allocation2 + $0x60c] ss:$24 sps:$4 sm:$0xff]  }
  0xfa   :  { %3405 = vmatprep.mubr.bf16.mxu1 %v17995_v30 }
  0xfb   :  { %3171 = vmatpush1.bf16.msra.mxu0 %v15108_v9  ;;  %v15199_v9 = vld [vmem:[#allocation2 + $0x600] ss:$24 sps:$4 sm:$0xff]  }
  0xfc   :  { %3376 = vmatpush1.bf16.msra.mxu1 %v15111_v10  ;;  %3172 = vmatprep.subr.bf16.mxu0 %v15116_v11  ;;  %v18001_v10 = vcombine.low %v17991_v29, %v17991_v29  ;;  %v15202_v11 = vld [vmem:[#allocation2 + $0x608] ss:$24 sps:$4 sm:$0xff]  }
  0xfd   :  { %3377 = vmatprep.subr.bf16.mxu1 %v15119_v12  ;;  %v15208_v12 = vld [vmem:[#allocation2 + $0x634] ss:$24 sps:$4 sm:$0xff]   ;;  %v15227_v29 = vld [vmem:[#allocation2 + $0x6c8] ss:$24 sps:$4 sm:$0xff]  }
  0xff   :  { %3173 = vmatpush1.bf16.msra.mxu0 %v15114_v13  ;;  %v18006_v13 = vld [vmem:[%s18296_s0 + $0x10] sm:$0xff] }
 0x100   :  { %3378 = vmatpush1.bf16.msra.mxu1 %v15117_v14  ;;  %3174 = vmatprep.subr.bf16.mxu0 %v15122_v15  ;;  %v15211_v14 = vld [vmem:[#allocation2 + $0x63c] ss:$24 sps:$4 sm:$0xff]   ;;  %v18010_v15 = vcombine.high %v18006_v13, %v18006_v13 }
 0x101   :  { %3379 = vmatprep.subr.bf16.mxu1 %v15125_v16  ;;  %v15206_v16 = vld [vmem:[#allocation2 + $0x630] ss:$24 sps:$4 sm:$0xff]  }
 0x103   :  { %3175 = vmatpush1.bf16.msra.mxu0 %v15120_v17  ;;  %v15209_v17 = vld [vmem:[#allocation2 + $0x638] ss:$24 sps:$4 sm:$0xff]  }
 0x104   :  { %3380 = vmatpush1.bf16.msra.mxu1 %v15123_v18  ;;  %3176 = vmatprep.subr.bf16.mxu0 %v15128_v19  ;;  %v15214_v18 = vld [vmem:[#allocation2 + $0x664] ss:$24 sps:$4 sm:$0xff]  }
 0x105   :  { %3381 = vmatprep.subr.bf16.mxu1 %v15131_v20  ;;  %v15217_v19 = vld [vmem:[#allocation2 + $0x66c] ss:$24 sps:$4 sm:$0xff]   ;;  %v15212_v20 = vld [vmem:[#allocation2 + $0x660] ss:$24 sps:$4 sm:$0xff]  }
 0x107   :  { %3177 = vmatpush1.bf16.msra.mxu0 %v15126_v21  ;;  %v15215_v21 = vld [vmem:[#allocation2 + $0x668] ss:$24 sps:$4 sm:$0xff]  }
 0x108   :  { %3382 = vmatpush1.bf16.msra.mxu1 %v15129_v22  ;;  %3178 = vmatprep.subr.bf16.mxu0 %v15134_v23  ;;  %v15220_v22 = vld [vmem:[#allocation2 + $0x694] ss:$24 sps:$4 sm:$0xff]  }
 0x109   :  { %3383 = vmatprep.subr.bf16.mxu1 %v15137_v24  ;;  %v15223_v23 = vld [vmem:[#allocation2 + $0x69c] ss:$24 sps:$4 sm:$0xff]   ;;  %v15218_v24 = vld [vmem:[#allocation2 + $0x690] ss:$24 sps:$4 sm:$0xff]  }
 0x10b   :  { %3179 = vmatpush1.bf16.msra.mxu0 %v15132_v25  ;;  %v15221_v25 = vld [vmem:[#allocation2 + $0x698] ss:$24 sps:$4 sm:$0xff]  }
 0x10c   :  { %3384 = vmatpush1.bf16.msra.mxu1 %v15135_v26  ;;  %3180 = vmatprep.subr.bf16.mxu0 %v15140_v27  ;;  %v15226_v26 = vld [vmem:[#allocation2 + $0x6c4] ss:$24 sps:$4 sm:$0xff]  }
 0x10d   :  { %3385 = vmatprep.subr.bf16.mxu1 %v15143_v28  ;;  %v15229_v27 = vld [vmem:[#allocation2 + $0x6cc] ss:$24 sps:$4 sm:$0xff]   ;;  %v15224_v28 = vld [vmem:[#allocation2 + $0x6c0] ss:$24 sps:$4 sm:$0xff]  }
 0x10f   :  { %3181 = vmatpush1.bf16.msra.mxu0 %v15138_v31  ;;  %v15232_v31 = vld [vmem:[#allocation2 + $0x6f4] ss:$24 sps:$4 sm:$0xff]  }
 0x110   :  { %3386 = vmatpush1.bf16.msra.mxu1 %v15141_v32  ;;  %3182 = vmatprep.subr.bf16.mxu0 %v15146_v33  ;;  %v15235_v32 = vld [vmem:[#allocation2 + $0x6fc] ss:$24 sps:$4 sm:$0xff]   ;;  %v15230_v33 = vld [vmem:[#allocation2 + $0x6f0] ss:$24 sps:$4 sm:$0xff]  }
 0x111   :  { %3387 = vmatprep.subr.bf16.mxu1 %v15149_v34  ;;  %v15233_v34 = vld [vmem:[#allocation2 + $0x6f8] ss:$24 sps:$4 sm:$0xff]  }
 0x113   :  { %3183 = vmatpush1.bf16.msra.mxu0 %v15144_v35  ;;  %v15238_v35 = vld [vmem:[#allocation2 + $0x724] ss:$24 sps:$4 sm:$0xff]  }
 0x114   :  { %3388 = vmatpush1.bf16.msra.mxu1 %v15147_v36  ;;  %3184 = vmatprep.subr.bf16.mxu0 %v15152_v37  ;;  %v15241_v36 = vld [vmem:[#allocation2 + $0x72c] ss:$24 sps:$4 sm:$0xff]   ;;  %v15236_v37 = vld [vmem:[#allocation2 + $0x720] ss:$24 sps:$4 sm:$0xff]  }
 0x115   :  { %3389 = vmatprep.subr.bf16.mxu1 %v15155_v38  ;;  %v15239_v38 = vld [vmem:[#allocation2 + $0x728] ss:$24 sps:$4 sm:$0xff]  }
 0x117   :  { %3185 = vmatpush1.bf16.msra.mxu0 %v15150_v39  ;;  %v15244_v39 = vld [vmem:[#allocation2 + $0x754] ss:$24 sps:$4 sm:$0xff]  }
 0x118   :  { %3390 = vmatpush1.bf16.msra.mxu1 %v15153_v40  ;;  %3186 = vmatprep.subr.bf16.mxu0 %v15158_v41  ;;  %v15247_v40 = vld [vmem:[#allocation2 + $0x75c] ss:$24 sps:$4 sm:$0xff]   ;;  %v15242_v41 = vld [vmem:[#allocation2 + $0x750] ss:$24 sps:$4 sm:$0xff]  }
 0x119   :  { %3391 = vmatprep.subr.bf16.mxu1 %v15161_v42  ;;  %v15245_v42 = vld [vmem:[#allocation2 + $0x758] ss:$24 sps:$4 sm:$0xff]  }
 0x11b   :  { %3187 = vmatpush1.bf16.msra.mxu0 %v15156_v43  ;;  %v15250_v43 = vld [vmem:[#allocation2 + $0x784] ss:$24 sps:$4 sm:$0xff]  }
 0x11c   :  { %3392 = vmatpush1.bf16.msra.mxu1 %v15159_v44  ;;  %3188 = vmatprep.subr.bf16.mxu0 %v15164_v45  ;;  %v15253_v44 = vld [vmem:[#allocation2 + $0x78c] ss:$24 sps:$4 sm:$0xff]   ;;  %v15248_v45 = vld [vmem:[#allocation2 + $0x780] ss:$24 sps:$4 sm:$0xff]  }
 0x11d   :  { %3393 = vmatprep.subr.bf16.mxu1 %v15167_v46  ;;  %v15251_v46 = vld [vmem:[#allocation2 + $0x788] ss:$24 sps:$4 sm:$0xff]  }
 0x11f   :  { %3189 = vmatpush1.bf16.msra.mxu0 %v15162_v47  ;;  %v15256_v47 = vld [vmem:[#allocation2 + $0x7b4] ss:$24 sps:$4 sm:$0xff]  }
 0x120   :  { %3394 = vmatpush1.bf16.msra.mxu1 %v15165_v49  ;;  %3190 = vmatprep.subr.bf16.mxu0 %v15170_v50  ;;  %v15259_v49 = vld [vmem:[#allocation2 + $0x7bc] ss:$24 sps:$4 sm:$0xff]   ;;  %v15254_v50 = vld [vmem:[#allocation2 + $0x7b0] ss:$24 sps:$4 sm:$0xff]  }
 0x121   :  { %3395 = vmatprep.subr.bf16.mxu1 %v15173_v51  ;;  %v15257_v51 = vld [vmem:[#allocation2 + $0x7b8] ss:$24 sps:$4 sm:$0xff]  }
 0x123   :  { %3191 = vmatpush1.bf16.msra.mxu0 %v15168_v52  ;;  %v15262_v52 = vld [vmem:[#allocation2 + $0x7e4] ss:$24 sps:$4 sm:$0xff]  }
 0x124   :  { %3396 = vmatpush1.bf16.msra.mxu1 %v15171_v53  ;;  %3192 = vmatprep.subr.bf16.mxu0 %v15176_v54  ;;  %v15265_v53 = vld [vmem:[#allocation2 + $0x7ec] ss:$24 sps:$4 sm:$0xff]   ;;  %v15260_v54 = vld [vmem:[#allocation2 + $0x7e0] ss:$24 sps:$4 sm:$0xff]  }
 0x125   :  { %3397 = vmatprep.subr.bf16.mxu1 %v15179_v55  ;;  %v15263_v55 = vld [vmem:[#allocation2 + $0x7e8] ss:$24 sps:$4 sm:$0xff]  }
 0x127   :  { %3193 = vmatpush1.bf16.msra.mxu0 %v15174_v56  ;;  %v15268_v56 = vld [vmem:[#allocation2 + $0x814] ss:$24 sps:$4 sm:$0xff]  }
 0x128   :  { %3398 = vmatpush1.bf16.msra.mxu1 %v15177_v57  ;;  %3194 = vmatprep.subr.bf16.mxu0 %v15182_v58  ;;  %v15271_v57 = vld [vmem:[#allocation2 + $0x81c] ss:$24 sps:$4 sm:$0xff]   ;;  %v15266_v58 = vld [vmem:[#allocation2 + $0x810] ss:$24 sps:$4 sm:$0xff]  }
 0x129   :  { %3399 = vmatprep.subr.bf16.mxu1 %v15185_v59  ;;  %v15269_v59 = vld [vmem:[#allocation2 + $0x818] ss:$24 sps:$4 sm:$0xff]  }
 0x12b   :  { %3195 = vmatpush1.bf16.msra.mxu0 %v15180_v60  ;;  %v15274_v60 = vld [vmem:[#allocation2 + $0x844] ss:$24 sps:$4 sm:$0xff]  }
 0x12c   :  { %3400 = vmatpush1.bf16.msra.mxu1 %v15183_v61  ;;  %3196 = vmatprep.subr.bf16.mxu0 %v15188_v62  ;;  %v15277_v61 = vld [vmem:[#allocation2 + $0x84c] ss:$24 sps:$4 sm:$0xff]   ;;  %v15272_v62 = vld [vmem:[#allocation2 + $0x840] ss:$24 sps:$4 sm:$0xff]  }
 0x12d   :  { %3401 = vmatprep.subr.bf16.mxu1 %v15191_v63  ;;  %v15275_v63 = vld [vmem:[#allocation2 + $0x848] ss:$24 sps:$4 sm:$0xff]  }
 0x12f   :  { %3197 = vmatpush1.bf16.msra.mxu0 %v15186_v0  ;;  %v15280_v0 = vld [vmem:[#allocation2 + $0x874] ss:$24 sps:$4 sm:$0xff]  }
 0x130   :  { %3402 = vmatpush1.bf16.msra.mxu1 %v15189_v1  ;;  %3198 = vmatprep.subr.bf16.mxu0 %v15194_v2  ;;  %v15283_v1 = vld [vmem:[#allocation2 + $0x87c] ss:$24 sps:$4 sm:$0xff]   ;;  %v15278_v2 = vld [vmem:[#allocation2 + $0x870] ss:$24 sps:$4 sm:$0xff]  }
 0x131   :  { %3403 = vmatprep.subr.bf16.mxu1 %v15197_v3  ;;  %v15281_v3 = vld [vmem:[#allocation2 + $0x878] ss:$24 sps:$4 sm:$0xff]  }
 0x133   :  { %3199 = vmatpush1.bf16.msra.mxu0 %v15192_v4  ;;  %v15286_v4 = vld [vmem:[#allocation2 + $0x8a4] ss:$24 sps:$4 sm:$0xff]  }
 0x134   :  { %3404 = vmatpush1.bf16.msra.mxu1 %v15195_v6  ;;  %3209 = vmatprep.subr.bf16.mxu0 %v15201_v7  ;;  %v15289_v6 = vld [vmem:[#allocation2 + $0x8ac] ss:$24 sps:$4 sm:$0xff]   ;;  %v15284_v7 = vld [vmem:[#allocation2 + $0x8a0] ss:$24 sps:$4 sm:$0xff]  }
 0x135   :  { %3414 = vmatprep.subr.bf16.mxu1 %v15204_v8  ;;  %v15287_v8 = vld [vmem:[#allocation2 + $0x8a8] ss:$24 sps:$4 sm:$0xff]  }
 0x136   :  { %3201 = vmatmul.mubr.bf16.vlgmr.msra.gmra.mrb[0].mxu0 %v18001_v10 }
 0x137   :  { %3406 = vmatmul.mubr.bf16.vlgmr.msra.gmra.mrb[0].mxu1 %v18001_v10  ;;  %3210 = vmatpush1.bf16.msra.mxu0 %v15199_v9  ;;  %v15292_v9 = vld [vmem:[#allocation2 + $0x8d4] ss:$24 sps:$4 sm:$0xff]  }
 0x138   :  { %3415 = vmatpush1.bf16.msra.mxu1 %v15202_v11  ;;  %3211 = vmatprep.subr.bf16.mxu0 %v15208_v12  ;;  %v15295_v11 = vld [vmem:[#allocation2 + $0x8dc] ss:$24 sps:$4 sm:$0xff]   ;;  %v15290_v12 = vld [vmem:[#allocation2 + $0x8d0] ss:$24 sps:$4 sm:$0xff]  }
 0x139   :  { %3416 = vmatprep.subr.bf16.mxu1 %v15211_v14  ;;  %3241 = vmatprep.mubr.bf16.mxu0 %v18010_v15  ;;  %v15293_v14 = vld [vmem:[#allocation2 + $0x8d8] ss:$24 sps:$4 sm:$0xff]  }
 0x13a   :  { %3446 = vmatprep.mubr.bf16.mxu1 %v18010_v15 }
 0x13b   :  { %3212 = vmatpush1.bf16.msra.mxu0 %v15206_v16  ;;  %v15299_v16 = vld [vmem:[#allocation2 + $0x904] ss:$24 sps:$4 sm:$0xff]  }
 0x13c   :  { %3417 = vmatpush1.bf16.msra.mxu1 %v15209_v17  ;;  %3213 = vmatprep.subr.bf16.mxu0 %v15214_v18  ;;  %v15302_v17 = vld [vmem:[#allocation2 + $0x90c] ss:$24 sps:$4 sm:$0xff]   ;;  %v15297_v18 = vld [vmem:[#allocation2 + $0x900] ss:$24 sps:$4 sm:$0xff]  }
 0x13d   :  { %3418 = vmatprep.subr.bf16.mxu1 %v15217_v19  ;;  %v15300_v19 = vld [vmem:[#allocation2 + $0x908] ss:$24 sps:$4 sm:$0xff]  }
 0x13f   :  { %3214 = vmatpush1.bf16.msra.mxu0 %v15212_v20  ;;  %v18018_v20 = vcombine.low %v18006_v13, %v18006_v13  ;;  %v15304_v13 = vld [vmem:[#allocation2 + $0x930] ss:$24 sps:$4 sm:$0xff]  }
 0x140   :  { %3419 = vmatpush1.bf16.msra.mxu1 %v15215_v21  ;;  %3215 = vmatprep.subr.bf16.mxu0 %v15220_v22  ;;  %v18023_v21 = vld [vmem:[%s18296_s0 + $0x18] sm:$0xff] }
 0x141   :  { %3420 = vmatprep.subr.bf16.mxu1 %v15223_v23  ;;  %v15306_v22 = vld [vmem:[#allocation2 + $0x934] ss:$24 sps:$4 sm:$0xff]  }
 0x142   :  { %v15309_v23 = vld [vmem:[#allocation2 + $0x93c] ss:$24 sps:$4 sm:$0xff]  }
 0x143   :  { %3216 = vmatpush1.bf16.msra.mxu0 %v15218_v24  ;;  %v18027_v24 = vcombine.high %v18023_v21, %v18023_v21 }
 0x144   :  { %3421 = vmatpush1.bf16.msra.mxu1 %v15221_v25  ;;  %3217 = vmatprep.subr.bf16.mxu0 %v15226_v26  ;;  %v15307_v25 = vld [vmem:[#allocation2 + $0x938] ss:$24 sps:$4 sm:$0xff]   ;;  %v15312_v26 = vld [vmem:[#allocation2 + $0x964] ss:$24 sps:$4 sm:$0xff]  }
 0x145   :  { %3422 = vmatprep.subr.bf16.mxu1 %v15229_v27  ;;  %v15315_v27 = vld [vmem:[#allocation2 + $0x96c] ss:$24 sps:$4 sm:$0xff]  }
 0x147   :  { %3218 = vmatpush1.bf16.msra.mxu0 %v15224_v28  ;;  %v15310_v28 = vld [vmem:[#allocation2 + $0x960] ss:$24 sps:$4 sm:$0xff]  }
 0x148   :  { %3423 = vmatpush1.bf16.msra.mxu1 %v15227_v29  ;;  %3219 = vmatprep.subr.bf16.mxu0 %v15232_v31  ;;  %v15313_v29 = vld [vmem:[#allocation2 + $0x968] ss:$24 sps:$4 sm:$0xff]   ;;  %v15318_v31 = vld [vmem:[#allocation2 + $0x994] ss:$24 sps:$4 sm:$0xff]  }
 0x149   :  { %3424 = vmatprep.subr.bf16.mxu1 %v15235_v32  ;;  %v15321_v32 = vld [vmem:[#allocation2 + $0x99c] ss:$24 sps:$4 sm:$0xff]  }
 0x14b   :  { %3220 = vmatpush1.bf16.msra.mxu0 %v15230_v33  ;;  %v15316_v33 = vld [vmem:[#allocation2 + $0x990] ss:$24 sps:$4 sm:$0xff]  }
 0x14c   :  { %3425 = vmatpush1.bf16.msra.mxu1 %v15233_v34  ;;  %3221 = vmatprep.subr.bf16.mxu0 %v15238_v35  ;;  %v15319_v34 = vld [vmem:[#allocation2 + $0x998] ss:$24 sps:$4 sm:$0xff]   ;;  %v15324_v35 = vld [vmem:[#allocation2 + $0x9c4] ss:$24 sps:$4 sm:$0xff]  }
 0x14d   :  { %3426 = vmatprep.subr.bf16.mxu1 %v15241_v36  ;;  %v15327_v36 = vld [vmem:[#allocation2 + $0x9cc] ss:$24 sps:$4 sm:$0xff]  }
 0x14f   :  { %3222 = vmatpush1.bf16.msra.mxu0 %v15236_v37  ;;  %v15322_v37 = vld [vmem:[#allocation2 + $0x9c0] ss:$24 sps:$4 sm:$0xff]  }
 0x150   :  { %3427 = vmatpush1.bf16.msra.mxu1 %v15239_v38  ;;  %3223 = vmatprep.subr.bf16.mxu0 %v15244_v39  ;;  %v15325_v38 = vld [vmem:[#allocation2 + $0x9c8] ss:$24 sps:$4 sm:$0xff]   ;;  %v15330_v39 = vld [vmem:[#allocation2 + $0x9f4] ss:$24 sps:$4 sm:$0xff]  }
 0x151   :  { %3428 = vmatprep.subr.bf16.mxu1 %v15247_v40  ;;  %v15333_v40 = vld [vmem:[#allocation2 + $0x9fc] ss:$24 sps:$4 sm:$0xff]  }
 0x153   :  { %3224 = vmatpush1.bf16.msra.mxu0 %v15242_v41  ;;  %v15328_v41 = vld [vmem:[#allocation2 + $0x9f0] ss:$24 sps:$4 sm:$0xff]  }
 0x154   :  { %3429 = vmatpush1.bf16.msra.mxu1 %v15245_v42  ;;  %3225 = vmatprep.subr.bf16.mxu0 %v15250_v43  ;;  %v15331_v42 = vld [vmem:[#allocation2 + $0x9f8] ss:$24 sps:$4 sm:$0xff]   ;;  %v15336_v43 = vld [vmem:[#allocation2 + $0xa24] ss:$24 sps:$4 sm:$0xff]  }
 0x155   :  { %3430 = vmatprep.subr.bf16.mxu1 %v15253_v44  ;;  %v15339_v44 = vld [vmem:[#allocation2 + $0xa2c] ss:$24 sps:$4 sm:$0xff]  }
 0x157   :  { %3226 = vmatpush1.bf16.msra.mxu0 %v15248_v45  ;;  %v15334_v45 = vld [vmem:[#allocation2 + $0xa20] ss:$24 sps:$4 sm:$0xff]  }
 0x158   :  { %3431 = vmatpush1.bf16.msra.mxu1 %v15251_v46  ;;  %3227 = vmatprep.subr.bf16.mxu0 %v15256_v47  ;;  %v15337_v46 = vld [vmem:[#allocation2 + $0xa28] ss:$24 sps:$4 sm:$0xff]   ;;  %v15342_v47 = vld [vmem:[#allocation2 + $0xa54] ss:$24 sps:$4 sm:$0xff]  }
 0x159   :  { %3432 = vmatprep.subr.bf16.mxu1 %v15259_v49  ;;  %v15345_v49 = vld [vmem:[#allocation2 + $0xa5c] ss:$24 sps:$4 sm:$0xff]  }
 0x15b   :  { %3228 = vmatpush1.bf16.msra.mxu0 %v15254_v50  ;;  %v15340_v50 = vld [vmem:[#allocation2 + $0xa50] ss:$24 sps:$4 sm:$0xff]  }
 0x15c   :  { %3433 = vmatpush1.bf16.msra.mxu1 %v15257_v51  ;;  %3229 = vmatprep.subr.bf16.mxu0 %v15262_v52  ;;  %v15343_v51 = vld [vmem:[#allocation2 + $0xa58] ss:$24 sps:$4 sm:$0xff]   ;;  %v15348_v52 = vld [vmem:[#allocation2 + $0xa84] ss:$24 sps:$4 sm:$0xff]  }
 0x15d   :  { %3434 = vmatprep.subr.bf16.mxu1 %v15265_v53  ;;  %v15351_v53 = vld [vmem:[#allocation2 + $0xa8c] ss:$24 sps:$4 sm:$0xff]  }
 0x15f   :  { %3230 = vmatpush1.bf16.msra.mxu0 %v15260_v54  ;;  %v15346_v54 = vld [vmem:[#allocation2 + $0xa80] ss:$24 sps:$4 sm:$0xff]  }
 0x160   :  { %3435 = vmatpush1.bf16.msra.mxu1 %v15263_v55  ;;  %3231 = vmatprep.subr.bf16.mxu0 %v15268_v56  ;;  %v15349_v55 = vld [vmem:[#allocation2 + $0xa88] ss:$24 sps:$4 sm:$0xff]   ;;  %v15354_v56 = vld [vmem:[#allocation2 + $0xab4] ss:$24 sps:$4 sm:$0xff]  }
 0x161   :  { %3436 = vmatprep.subr.bf16.mxu1 %v15271_v57  ;;  %v15357_v57 = vld [vmem:[#allocation2 + $0xabc] ss:$24 sps:$4 sm:$0xff]  }
 0x163   :  { %3232 = vmatpush1.bf16.msra.mxu0 %v15266_v58  ;;  %v15352_v58 = vld [vmem:[#allocation2 + $0xab0] ss:$24 sps:$4 sm:$0xff]  }
 0x164   :  { %3437 = vmatpush1.bf16.msra.mxu1 %v15269_v59  ;;  %3233 = vmatprep.subr.bf16.mxu0 %v15274_v60  ;;  %v15355_v59 = vld [vmem:[#allocation2 + $0xab8] ss:$24 sps:$4 sm:$0xff]   ;;  %v15360_v60 = vld [vmem:[#allocation2 + $0xae4] ss:$24 sps:$4 sm:$0xff]  }
 0x165   :  { %3438 = vmatprep.subr.bf16.mxu1 %v15277_v61  ;;  %v15363_v61 = vld [vmem:[#allocation2 + $0xaec] ss:$24 sps:$4 sm:$0xff]  }
 0x167   :  { %3234 = vmatpush1.bf16.msra.mxu0 %v15272_v62  ;;  %v15358_v62 = vld [vmem:[#allocation2 + $0xae0] ss:$24 sps:$4 sm:$0xff]  }
 0x168   :  { %3439 = vmatpush1.bf16.msra.mxu1 %v15275_v63  ;;  %3235 = vmatprep.subr.bf16.mxu0 %v15280_v0  ;;  %v15361_v63 = vld [vmem:[#allocation2 + $0xae8] ss:$24 sps:$4 sm:$0xff]   ;;  %v15366_v0 = vld [vmem:[#allocation2 + $0xb14] ss:$24 sps:$4 sm:$0xff]  }
 0x169   :  { %3440 = vmatprep.subr.bf16.mxu1 %v15283_v1  ;;  %v15369_v1 = vld [vmem:[#allocation2 + $0xb1c] ss:$24 sps:$4 sm:$0xff]  }
 0x16b   :  { %3236 = vmatpush1.bf16.msra.mxu0 %v15278_v2  ;;  %v15364_v2 = vld [vmem:[#allocation2 + $0xb10] ss:$24 sps:$4 sm:$0xff]  }
 0x16c   :  { %3441 = vmatpush1.bf16.msra.mxu1 %v15281_v3  ;;  %3237 = vmatprep.subr.bf16.mxu0 %v15286_v4  ;;  %v15367_v3 = vld [vmem:[#allocation2 + $0xb18] ss:$24 sps:$4 sm:$0xff]   ;;  %v15372_v4 = vld [vmem:[#allocation2 + $0xb44] ss:$24 sps:$4 sm:$0xff]  }
 0x16d   :  { %3442 = vmatprep.subr.bf16.mxu1 %v15289_v6  ;;  %v15375_v6 = vld [vmem:[#allocation2 + $0xb4c] ss:$24 sps:$4 sm:$0xff]  }
 0x16f   :  { %3238 = vmatpush1.bf16.msra.mxu0 %v15284_v7  ;;  %v15370_v7 = vld [vmem:[#allocation2 + $0xb40] ss:$24 sps:$4 sm:$0xff]  }
 0x170   :  { %3443 = vmatpush1.bf16.msra.mxu1 %v15287_v8  ;;  %3239 = vmatprep.subr.bf16.mxu0 %v15292_v9  ;;  %v15373_v8 = vld [vmem:[#allocation2 + $0xb48] ss:$24 sps:$4 sm:$0xff]   ;;  %v15378_v9 = vld [vmem:[#allocation2 + $0xb74] ss:$24 sps:$4 sm:$0xff]  }
 0x171   :  { %3444 = vmatprep.subr.bf16.mxu1 %v15295_v11  ;;  %v15381_v11 = vld [vmem:[#allocation2 + $0xb7c] ss:$24 sps:$4 sm:$0xff]  }
 0x173   :  { %3240 = vmatpush1.bf16.msra.mxu0 %v15290_v12  ;;  %v15376_v12 = vld [vmem:[#allocation2 + $0xb70] ss:$24 sps:$4 sm:$0xff]  }
 0x174   :  { %3445 = vmatpush1.bf16.msra.mxu1 %v15293_v14  ;;  %3250 = vmatprep.subr.bf16.mxu0 %v15299_v16  ;;  %v15379_v14 = vld [vmem:[#allocation2 + $0xb78] ss:$24 sps:$4 sm:$0xff]   ;;  %v15384_v16 = vld [vmem:[#allocation2 + $0xba4] ss:$24 sps:$4 sm:$0xff]  }
 0x175   :  { %3455 = vmatprep.subr.bf16.mxu1 %v15302_v17  ;;  %v15387_v17 = vld [vmem:[#allocation2 + $0xbac] ss:$24 sps:$4 sm:$0xff]  }
 0x176   :  { %3242 = vmatmul.mubr.bf16.vlgmr.msra.gmra.mrb[0].mxu0 %v18018_v20 }
 0x177   :  { %3447 = vmatmul.mubr.bf16.vlgmr.msra.gmra.mrb[0].mxu1 %v18018_v20  ;;  %3251 = vmatpush1.bf16.msra.mxu0 %v15297_v18  ;;  %v15382_v18 = vld [vmem:[#allocation2 + $0xba0] ss:$24 sps:$4 sm:$0xff]  }
 0x178   :  { %3456 = vmatpush1.bf16.msra.mxu1 %v15300_v19  ;;  %3252 = vmatprep.subr.bf16.mxu0 %v15306_v22  ;;  %v15385_v19 = vld [vmem:[#allocation2 + $0xba8] ss:$24 sps:$4 sm:$0xff]   ;;  %v15390_v22 = vld [vmem:[#allocation2 + $0xbd4] ss:$24 sps:$4 sm:$0xff]  }
 0x179   :  { %3457 = vmatprep.subr.bf16.mxu1 %v15309_v23  ;;  %3282 = vmatprep.mubr.bf16.mxu0 %v18027_v24  ;;  %v15393_v23 = vld [vmem:[#allocation2 + $0xbdc] ss:$24 sps:$4 sm:$0xff]  }
 0x17a   :  { %3487 = vmatprep.mubr.bf16.mxu1 %v18027_v24 }
 0x17b   :  { %3253 = vmatpush1.bf16.msra.mxu0 %v15304_v13  ;;  %v15388_v13 = vld [vmem:[#allocation2 + $0xbd0] ss:$24 sps:$4 sm:$0xff]  }
 0x17c   :  { %3458 = vmatpush1.bf16.msra.mxu1 %v15307_v25  ;;  %3254 = vmatprep.subr.bf16.mxu0 %v15312_v26  ;;  %v15391_v25 = vld [vmem:[#allocation2 + $0xbd8] ss:$24 sps:$4 sm:$0xff]   ;;  %v15397_v26 = vld [vmem:[#allocation2 + $0xc04] ss:$24 sps:$4 sm:$0xff]  }
 0x17d   :  { %3459 = vmatprep.subr.bf16.mxu1 %v15315_v27  ;;  %v15400_v27 = vld [vmem:[#allocation2 + $0xc0c] ss:$24 sps:$4 sm:$0xff]  }
 0x17f   :  { %3255 = vmatpush1.bf16.msra.mxu0 %v15310_v28  ;;  %v18036_v28 = vld [vmem:[%s18296_s0 + $0x20] sm:$0xff] }
 0x180   :  { %3460 = vmatpush1.bf16.msra.mxu1 %v15313_v29  ;;  %3256 = vmatprep.subr.bf16.mxu0 %v15318_v31  ;;  %v15395_v29 = vld [vmem:[#allocation2 + $0xc00] ss:$24 sps:$4 sm:$0xff]  }
 0x181   :  { %3461 = vmatprep.subr.bf16.mxu1 %v15321_v32  ;;  %v15398_v31 = vld [vmem:[#allocation2 + $0xc08] ss:$24 sps:$4 sm:$0xff]   ;;  %v18040_v32 = vcombine.low %v18023_v21, %v18023_v21  ;;  %v15410_v21 = vld [vmem:[#allocation2 + $0xc64] ss:$24 sps:$4 sm:$0xff]  }
 0x183   :  { %3257 = vmatpush1.bf16.msra.mxu0 %v15316_v33  ;;  %v15404_v33 = vld [vmem:[#allocation2 + $0xc34] ss:$24 sps:$4 sm:$0xff]  }
 0x184   :  { %3462 = vmatpush1.bf16.msra.mxu1 %v15319_v34  ;;  %3258 = vmatprep.subr.bf16.mxu0 %v15324_v35  ;;  %v15407_v34 = vld [vmem:[#allocation2 + $0xc3c] ss:$24 sps:$4 sm:$0xff]   ;;  %v15402_v35 = vld [vmem:[#allocation2 + $0xc30] ss:$24 sps:$4 sm:$0xff]  }
 0x185   :  { %3463 = vmatprep.subr.bf16.mxu1 %v15327_v36  ;;  %v15405_v36 = vld [vmem:[#allocation2 + $0xc38] ss:$24 sps:$4 sm:$0xff]  }
 0x187   :  { %3259 = vmatpush1.bf16.msra.mxu0 %v15322_v37  ;;  %v18044_v37 = vcombine.high %v18036_v28, %v18036_v28 }
 0x188   :  { %3464 = vmatpush1.bf16.msra.mxu1 %v15325_v38  ;;  %3260 = vmatprep.subr.bf16.mxu0 %v15330_v39  ;;  %v15413_v38 = vld [vmem:[#allocation2 + $0xc6c] ss:$24 sps:$4 sm:$0xff]   ;;  %v15408_v39 = vld [vmem:[#allocation2 + $0xc60] ss:$24 sps:$4 sm:$0xff]  }
 0x189   :  { %3465 = vmatprep.subr.bf16.mxu1 %v15333_v40  ;;  %v15411_v40 = vld [vmem:[#allocation2 + $0xc68] ss:$24 sps:$4 sm:$0xff]  }
 0x18b   :  { %3261 = vmatpush1.bf16.msra.mxu0 %v15328_v41  ;;  %v15416_v41 = vld [vmem:[#allocation2 + $0xc94] ss:$24 sps:$4 sm:$0xff]  }
 0x18c   :  { %3466 = vmatpush1.bf16.msra.mxu1 %v15331_v42  ;;  %3262 = vmatprep.subr.bf16.mxu0 %v15336_v43  ;;  %v15419_v42 = vld [vmem:[#allocation2 + $0xc9c] ss:$24 sps:$4 sm:$0xff]   ;;  %v15414_v43 = vld [vmem:[#allocation2 + $0xc90] ss:$24 sps:$4 sm:$0xff]  }
 0x18d   :  { %3467 = vmatprep.subr.bf16.mxu1 %v15339_v44  ;;  %v15417_v44 = vld [vmem:[#allocation2 + $0xc98] ss:$24 sps:$4 sm:$0xff]  }
 0x18f   :  { %3263 = vmatpush1.bf16.msra.mxu0 %v15334_v45  ;;  %v15422_v45 = vld [vmem:[#allocation2 + $0xcc4] ss:$24 sps:$4 sm:$0xff]  }
 0x190   :  { %3468 = vmatpush1.bf16.msra.mxu1 %v15337_v46  ;;  %3264 = vmatprep.subr.bf16.mxu0 %v15342_v47  ;;  %v15425_v46 = vld [vmem:[#allocation2 + $0xccc] ss:$24 sps:$4 sm:$0xff]   ;;  %v15420_v47 = vld [vmem:[#allocation2 + $0xcc0] ss:$24 sps:$4 sm:$0xff]  }
 0x191   :  { %3469 = vmatprep.subr.bf16.mxu1 %v15345_v49  ;;  %v15423_v49 = vld [vmem:[#allocation2 + $0xcc8] ss:$24 sps:$4 sm:$0xff]  }
 0x193   :  { %3265 = vmatpush1.bf16.msra.mxu0 %v15340_v50  ;;  %v15428_v50 = vld [vmem:[#allocation2 + $0xcf4] ss:$24 sps:$4 sm:$0xff]  }
 0x194   :  { %3470 = vmatpush1.bf16.msra.mxu1 %v15343_v51  ;;  %3266 = vmatprep.subr.bf16.mxu0 %v15348_v52  ;;  %v15431_v51 = vld [vmem:[#allocation2 + $0xcfc] ss:$24 sps:$4 sm:$0xff]   ;;  %v15426_v52 = vld [vmem:[#allocation2 + $0xcf0] ss:$24 sps:$4 sm:$0xff]  }
 0x195   :  { %3471 = vmatprep.subr.bf16.mxu1 %v15351_v53  ;;  %v15429_v53 = vld [vmem:[#allocation2 + $0xcf8] ss:$24 sps:$4 sm:$0xff]  }
 0x197   :  { %3267 = vmatpush1.bf16.msra.mxu0 %v15346_v54  ;;  %v15434_v54 = vld [vmem:[#allocation2 + $0xd24] ss:$24 sps:$4 sm:$0xff]  }
 0x198   :  { %3472 = vmatpush1.bf16.msra.mxu1 %v15349_v55  ;;  %3268 = vmatprep.subr.bf16.mxu0 %v15354_v56  ;;  %v15437_v55 = vld [vmem:[#allocation2 + $0xd2c] ss:$24 sps:$4 sm:$0xff]   ;;  %v15432_v56 = vld [vmem:[#allocation2 + $0xd20] ss:$24 sps:$4 sm:$0xff]  }
 0x199   :  { %3473 = vmatprep.subr.bf16.mxu1 %v15357_v57  ;;  %v15435_v57 = vld [vmem:[#allocation2 + $0xd28] ss:$24 sps:$4 sm:$0xff]  }
 0x19b   :  { %3269 = vmatpush1.bf16.msra.mxu0 %v15352_v58  ;;  %v15440_v58 = vld [vmem:[#allocation2 + $0xd54] ss:$24 sps:$4 sm:$0xff]  }
 0x19c   :  { %3474 = vmatpush1.bf16.msra.mxu1 %v15355_v59  ;;  %3270 = vmatprep.subr.bf16.mxu0 %v15360_v60  ;;  %v15443_v59 = vld [vmem:[#allocation2 + $0xd5c] ss:$24 sps:$4 sm:$0xff]   ;;  %v15438_v60 = vld [vmem:[#allocation2 + $0xd50] ss:$24 sps:$4 sm:$0xff]  }
 0x19d   :  { %3475 = vmatprep.subr.bf16.mxu1 %v15363_v61  ;;  %v15441_v61 = vld [vmem:[#allocation2 + $0xd58] ss:$24 sps:$4 sm:$0xff]  }
 0x19f   :  { %3271 = vmatpush1.bf16.msra.mxu0 %v15358_v62  ;;  %v15446_v62 = vld [vmem:[#allocation2 + $0xd84] ss:$24 sps:$4 sm:$0xff]  }
 0x1a0   :  { %3476 = vmatpush1.bf16.msra.mxu1 %v15361_v63  ;;  %3272 = vmatprep.subr.bf16.mxu0 %v15366_v0  ;;  %v15449_v63 = vld [vmem:[#allocation2 + $0xd8c] ss:$24 sps:$4 sm:$0xff]   ;;  %v15444_v0 = vld [vmem:[#allocation2 + $0xd80] ss:$24 sps:$4 sm:$0xff]  }
 0x1a1   :  { %3477 = vmatprep.subr.bf16.mxu1 %v15369_v1  ;;  %v15447_v1 = vld [vmem:[#allocation2 + $0xd88] ss:$24 sps:$4 sm:$0xff]  }
 0x1a3   :  { %3273 = vmatpush1.bf16.msra.mxu0 %v15364_v2  ;;  %v15452_v2 = vld [vmem:[#allocation2 + $0xdb4] ss:$24 sps:$4 sm:$0xff]  }
 0x1a4   :  { %3478 = vmatpush1.bf16.msra.mxu1 %v15367_v3  ;;  %3274 = vmatprep.subr.bf16.mxu0 %v15372_v4  ;;  %v15455_v3 = vld [vmem:[#allocation2 + $0xdbc] ss:$24 sps:$4 sm:$0xff]   ;;  %v15450_v4 = vld [vmem:[#allocation2 + $0xdb0] ss:$24 sps:$4 sm:$0xff]  }
 0x1a5   :  { %3479 = vmatprep.subr.bf16.mxu1 %v15375_v6  ;;  %v15453_v6 = vld [vmem:[#allocation2 + $0xdb8] ss:$24 sps:$4 sm:$0xff]  }
 0x1a7   :  { %3275 = vmatpush1.bf16.msra.mxu0 %v15370_v7  ;;  %v15458_v7 = vld [vmem:[#allocation2 + $0xde4] ss:$24 sps:$4 sm:$0xff]  }
 0x1a8   :  { %3480 = vmatpush1.bf16.msra.mxu1 %v15373_v8  ;;  %3276 = vmatprep.subr.bf16.mxu0 %v15378_v9  ;;  %v15461_v8 = vld [vmem:[#allocation2 + $0xdec] ss:$24 sps:$4 sm:$0xff]   ;;  %v15456_v9 = vld [vmem:[#allocation2 + $0xde0] ss:$24 sps:$4 sm:$0xff]  }
 0x1a9   :  { %3481 = vmatprep.subr.bf16.mxu1 %v15381_v11  ;;  %v15459_v11 = vld [vmem:[#allocation2 + $0xde8] ss:$24 sps:$4 sm:$0xff]  }
 0x1ab   :  { %3277 = vmatpush1.bf16.msra.mxu0 %v15376_v12  ;;  %v15464_v12 = vld [vmem:[#allocation2 + $0xe14] ss:$24 sps:$4 sm:$0xff]  }
 0x1ac   :  { %3482 = vmatpush1.bf16.msra.mxu1 %v15379_v14  ;;  %3278 = vmatprep.subr.bf16.mxu0 %v15384_v16  ;;  %v15467_v14 = vld [vmem:[#allocation2 + $0xe1c] ss:$24 sps:$4 sm:$0xff]   ;;  %v15462_v16 = vld [vmem:[#allocation2 + $0xe10] ss:$24 sps:$4 sm:$0xff]  }
 0x1ad   :  { %3483 = vmatprep.subr.bf16.mxu1 %v15387_v17  ;;  %v15465_v17 = vld [vmem:[#allocation2 + $0xe18] ss:$24 sps:$4 sm:$0xff]  }
 0x1af   :  { %3279 = vmatpush1.bf16.msra.mxu0 %v15382_v18  ;;  %v15470_v18 = vld [vmem:[#allocation2 + $0xe44] ss:$24 sps:$4 sm:$0xff]  }
 0x1b0   :  { %3484 = vmatpush1.bf16.msra.mxu1 %v15385_v19  ;;  %3280 = vmatprep.subr.bf16.mxu0 %v15390_v22  ;;  %v15473_v19 = vld [vmem:[#allocation2 + $0xe4c] ss:$24 sps:$4 sm:$0xff]   ;;  %v15468_v22 = vld [vmem:[#allocation2 + $0xe40] ss:$24 sps:$4 sm:$0xff]  }
 0x1b1   :  { %3485 = vmatprep.subr.bf16.mxu1 %v15393_v23  ;;  %v15471_v23 = vld [vmem:[#allocation2 + $0xe48] ss:$24 sps:$4 sm:$0xff]  }
 0x1b3   :  { %3281 = vmatpush1.bf16.msra.mxu0 %v15388_v13  ;;  %v15476_v13 = vld [vmem:[#allocation2 + $0xe74] ss:$24 sps:$4 sm:$0xff]  }
 0x1b4   :  { %3486 = vmatpush1.bf16.msra.mxu1 %v15391_v25  ;;  %3291 = vmatprep.subr.bf16.mxu0 %v15397_v26  ;;  %v15479_v25 = vld [vmem:[#allocation2 + $0xe7c] ss:$24 sps:$4 sm:$0xff]   ;;  %v15474_v26 = vld [vmem:[#allocation2 + $0xe70] ss:$24 sps:$4 sm:$0xff]  }
 0x1b5   :  { %3496 = vmatprep.subr.bf16.mxu1 %v15400_v27  ;;  %v15477_v27 = vld [vmem:[#allocation2 + $0xe78] ss:$24 sps:$4 sm:$0xff]  }
 0x1b6   :  { %3283 = vmatmul.mubr.bf16.vlgmr.msra.gmra.mrb[0].mxu0 %v18040_v32 }
 0x1b7   :  { %3488 = vmatmul.mubr.bf16.vlgmr.msra.gmra.mrb[0].mxu1 %v18040_v32  ;;  %3292 = vmatpush1.bf16.msra.mxu0 %v15395_v29  ;;  %v15482_v29 = vld [vmem:[#allocation2 + $0xea4] ss:$24 sps:$4 sm:$0xff]  }
 0x1b8   :  { %3497 = vmatpush1.bf16.msra.mxu1 %v15398_v31  ;;  %3293 = vmatprep.subr.bf16.mxu0 %v15404_v33  ;;  %v15485_v31 = vld [vmem:[#allocation2 + $0xeac] ss:$24 sps:$4 sm:$0xff]   ;;  %v15480_v33 = vld [vmem:[#allocation2 + $0xea0] ss:$24 sps:$4 sm:$0xff]  }
 0x1b9   :  { %3498 = vmatprep.subr.bf16.mxu1 %v15407_v34  ;;  %3323 = vmatprep.mubr.bf16.mxu0 %v18044_v37  ;;  %v15483_v34 = vld [vmem:[#allocation2 + $0xea8] ss:$24 sps:$4 sm:$0xff]  }
 0x1ba   :  { %3528 = vmatprep.mubr.bf16.mxu1 %v18044_v37 }
 0x1bb   :  { %3294 = vmatpush1.bf16.msra.mxu0 %v15402_v35  ;;  %v15488_v35 = vld [vmem:[#allocation2 + $0xed4] ss:$24 sps:$4 sm:$0xff]  }
 0x1bc   :  { %3499 = vmatpush1.bf16.msra.mxu1 %v15405_v36  ;;  %3295 = vmatprep.subr.bf16.mxu0 %v15410_v21  ;;  %v15491_v36 = vld [vmem:[#allocation2 + $0xedc] ss:$24 sps:$4 sm:$0xff]   ;;  %v15486_v21 = vld [vmem:[#allocation2 + $0xed0] ss:$24 sps:$4 sm:$0xff]  }
 0x1bd   :  { %3500 = vmatprep.subr.bf16.mxu1 %v15413_v38  ;;  %v15489_v38 = vld [vmem:[#allocation2 + $0xed8] ss:$24 sps:$4 sm:$0xff]  }
 0x1bf   :  { %3296 = vmatpush1.bf16.msra.mxu0 %v15408_v39  ;;  %v15496_v39 = vld [vmem:[#allocation2 + $0x14] ss:$24 sps:$4 sm:$0xff]  }
 0x1c0   :  { %3501 = vmatpush1.bf16.msra.mxu1 %v15411_v40  ;;  %3297 = vmatprep.subr.bf16.mxu0 %v15416_v41  ;;  %v18052_v40 = vcombine.low %v18036_v28, %v18036_v28  ;;  %v15494_v41 = vld [vmem:[#allocation2 + $0x10] ss:$24 sps:$4 sm:$0xff]   ;;  %v15503_v28 = vld [vmem:[#allocation2 + $0xa0] ss:$24 sps:$4 sm:$0xff]  }
 0x1c1   :  { %3502 = vmatprep.subr.bf16.mxu1 %v15419_v42  ;;  %v15499_v42 = vld [vmem:[#allocation2 + $0x44] ss:$24 sps:$4 sm:$0xff]  }
 0x1c3   :  { %3298 = vmatpush1.bf16.msra.mxu0 %v15414_v43  ;;  %v15497_v43 = vld [vmem:[#allocation2 + $0x40] ss:$24 sps:$4 sm:$0xff]  }
 0x1c4   :  { %3503 = vmatpush1.bf16.msra.mxu1 %v15417_v44  ;;  %3299 = vmatprep.subr.bf16.mxu0 %v15422_v45  ;;  %v15502_v44 = vld [vmem:[#allocation2 + $0x74] ss:$24 sps:$4 sm:$0xff]   ;;  %v15500_v45 = vld [vmem:[#allocation2 + $0x70] ss:$24 sps:$4 sm:$0xff]  }
 0x1c5   :  { %3504 = vmatprep.subr.bf16.mxu1 %v15425_v46  ;;  %v15505_v46 = vld [vmem:[#allocation2 + $0xa4] ss:$24 sps:$4 sm:$0xff]  }
 0x1c7   :  { %3300 = vmatpush1.bf16.msra.mxu0 %v15420_v47  ;;  %v15508_v47 = vld [vmem:[#allocation2 + $0xd4] ss:$24 sps:$4 sm:$0xff]  }
 0x1c8   :  { %3505 = vmatpush1.bf16.msra.mxu1 %v15423_v49  ;;  %3301 = vmatprep.subr.bf16.mxu0 %v15428_v50  ;;  %v15506_v49 = vld [vmem:[#allocation2 + $0xd0] ss:$24 sps:$4 sm:$0xff]   ;;  %v15511_v50 = vld [vmem:[#allocation2 + $0x104] ss:$24 sps:$4 sm:$0xff]  }
 0x1c9   :  { %3506 = vmatprep.subr.bf16.mxu1 %v15431_v51  ;;  %v15509_v51 = vld [vmem:[#allocation2 + $0x100] ss:$24 sps:$4 sm:$0xff]  }
 0x1cb   :  { %3302 = vmatpush1.bf16.msra.mxu0 %v15426_v52  ;;  %v15514_v52 = vld [vmem:[#allocation2 + $0x134] ss:$24 sps:$4 sm:$0xff]  }
 0x1cc   :  { %3507 = vmatpush1.bf16.msra.mxu1 %v15429_v53  ;;  %3303 = vmatprep.subr.bf16.mxu0 %v15434_v54  ;;  %v15512_v53 = vld [vmem:[#allocation2 + $0x130] ss:$24 sps:$4 sm:$0xff]   ;;  %v15515_v54 = vld [vmem:[#allocation2 + $0x160] ss:$24 sps:$4 sm:$0xff]  }
 0x1cd   :  { %3508 = vmatprep.subr.bf16.mxu1 %v15437_v55  ;;  %v15611_v55 = vld [vmem:[#allocation6] ss:$40 sps:$4 sm:$0xff]  }
 0x1cf   :  { %3304 = vmatpush1.bf16.msra.mxu0 %v15432_v56  ;;  %v15613_v56 = vld [vmem:[#allocation6 + $0x4] ss:$40 sps:$4 sm:$0xff]  }
 0x1d0   :  { %3509 = vmatpush1.bf16.msra.mxu1 %v15435_v57  ;;  %3305 = vmatprep.subr.bf16.mxu0 %v15440_v58  ;;  %v15520_v57 = vld [vmem:[#allocation2 + $0x194] ss:$24 sps:$4 sm:$0xff]   ;;  %v15518_v58 = vld [vmem:[#allocation2 + $0x190] ss:$24 sps:$4 sm:$0xff]  }
 0x1d1   :  { %3510 = vmatprep.subr.bf16.mxu1 %v15443_v59  ;;  %v15617_v59 = vld [vmem:[#allocation6 + $0x50] ss:$40 sps:$4 sm:$0xff]  }
 0x1d3   :  { %3306 = vmatpush1.bf16.msra.mxu0 %v15438_v60  ;;  %v15619_v60 = vld [vmem:[#allocation6 + $0x54] ss:$40 sps:$4 sm:$0xff]  }
 0x1d4   :  { %3511 = vmatpush1.bf16.msra.mxu1 %v15441_v61  ;;  %3307 = vmatprep.subr.bf16.mxu0 %v15446_v62  ;;  %v15523_v61 = vld [vmem:[#allocation2 + $0x1c4] ss:$24 sps:$4 sm:$0xff]   ;;  %v15521_v62 = vld [vmem:[#allocation2 + $0x1c0] ss:$24 sps:$4 sm:$0xff]  }
 0x1d5   :  { %3512 = vmatprep.subr.bf16.mxu1 %v15449_v63  ;;  %v15623_v63 = vld [vmem:[#allocation6 + $0xa0] ss:$40 sps:$4 sm:$0xff]  }
 0x1d7   :  { %3308 = vmatpush1.bf16.msra.mxu0 %v15444_v0  ;;  %v15625_v0 = vld [vmem:[#allocation6 + $0xa4] ss:$40 sps:$4 sm:$0xff]  }
 0x1d8   :  { %3513 = vmatpush1.bf16.msra.mxu1 %v15447_v1  ;;  %3309 = vmatprep.subr.bf16.mxu0 %v15452_v2  ;;  %v15526_v1 = vld [vmem:[#allocation2 + $0x1f4] ss:$24 sps:$4 sm:$0xff]   ;;  %v15524_v2 = vld [vmem:[#allocation2 + $0x1f0] ss:$24 sps:$4 sm:$0xff]  }
 0x1d9   :  { %3514 = vmatprep.subr.bf16.mxu1 %v15455_v3  ;;  %v15629_v3 = vld [vmem:[#allocation6 + $0xf0] ss:$40 sps:$4 sm:$0xff]  }
 0x1db   :  { %3310 = vmatpush1.bf16.msra.mxu0 %v15450_v4  ;;  %v15631_v4 = vld [vmem:[#allocation6 + $0xf4] ss:$40 sps:$4 sm:$0xff]  }
 0x1dc   :  { %3515 = vmatpush1.bf16.msra.mxu1 %v15453_v6  ;;  %3311 = vmatprep.subr.bf16.mxu0 %v15458_v7  ;;  %v15529_v6 = vld [vmem:[#allocation2 + $0x224] ss:$24 sps:$4 sm:$0xff]   ;;  %v15527_v7 = vld [vmem:[#allocation2 + $0x220] ss:$24 sps:$4 sm:$0xff]  }
 0x1dd   :  { %3516 = vmatprep.subr.bf16.mxu1 %v15461_v8  ;;  %v15635_v8 = vld [vmem:[#allocation6 + $0x140] ss:$40 sps:$4 sm:$0xff]  }
 0x1df   :  { %3312 = vmatpush1.bf16.msra.mxu0 %v15456_v9  ;;  %v15637_v9 = vld [vmem:[#allocation6 + $0x144] ss:$40 sps:$4 sm:$0xff]  }
 0x1e0   :  { %3517 = vmatpush1.bf16.msra.mxu1 %v15459_v11  ;;  %3313 = vmatprep.subr.bf16.mxu0 %v15464_v12  ;;  %v15532_v11 = vld [vmem:[#allocation2 + $0x254] ss:$24 sps:$4 sm:$0xff]   ;;  %v15530_v12 = vld [vmem:[#allocation2 + $0x250] ss:$24 sps:$4 sm:$0xff]  }
 0x1e1   :  { %3518 = vmatprep.subr.bf16.mxu1 %v15467_v14  ;;  %v15641_v14 = vld [vmem:[#allocation6 + $0x190] ss:$40 sps:$4 sm:$0xff]  }
 0x1e3   :  { %3314 = vmatpush1.bf16.msra.mxu0 %v15462_v16  ;;  %v15643_v16 = vld [vmem:[#allocation6 + $0x194] ss:$40 sps:$4 sm:$0xff]  }
 0x1e4   :  { %3519 = vmatpush1.bf16.msra.mxu1 %v15465_v17  ;;  %3315 = vmatprep.subr.bf16.mxu0 %v15470_v18  ;;  %v15535_v17 = vld [vmem:[#allocation2 + $0x284] ss:$24 sps:$4 sm:$0xff]   ;;  %v15533_v18 = vld [vmem:[#allocation2 + $0x280] ss:$24 sps:$4 sm:$0xff]  }
 0x1e5   :  { %3520 = vmatprep.subr.bf16.mxu1 %v15473_v19  ;;  %v15647_v19 = vld [vmem:[#allocation6 + $0x1e0] ss:$40 sps:$4 sm:$0xff]  }
 0x1e7   :  { %3316 = vmatpush1.bf16.msra.mxu0 %v15468_v22  ;;  %v15649_v22 = vld [vmem:[#allocation6 + $0x1e4] ss:$40 sps:$4 sm:$0xff]  }
 0x1e8   :  { %3521 = vmatpush1.bf16.msra.mxu1 %v15471_v23  ;;  %3317 = vmatprep.subr.bf16.mxu0 %v15476_v13  ;;  %v15538_v23 = vld [vmem:[#allocation2 + $0x2b4] ss:$24 sps:$4 sm:$0xff]   ;;  %v15536_v13 = vld [vmem:[#allocation2 + $0x2b0] ss:$24 sps:$4 sm:$0xff]  }
 0x1e9   :  { %3522 = vmatprep.subr.bf16.mxu1 %v15479_v25  ;;  %v15653_v25 = vld [vmem:[#allocation6 + $0x230] ss:$40 sps:$4 sm:$0xff]  }
 0x1eb   :  { %3318 = vmatpush1.bf16.msra.mxu0 %v15474_v26  ;;  %v15655_v26 = vld [vmem:[#allocation6 + $0x234] ss:$40 sps:$4 sm:$0xff]  }
 0x1ec   :  { %3523 = vmatpush1.bf16.msra.mxu1 %v15477_v27  ;;  %3319 = vmatprep.subr.bf16.mxu0 %v15482_v29  ;;  %v15541_v27 = vld [vmem:[#allocation2 + $0x2e4] ss:$24 sps:$4 sm:$0xff]   ;;  %v15539_v29 = vld [vmem:[#allocation2 + $0x2e0] ss:$24 sps:$4 sm:$0xff]  }
 0x1ed   :  { %3524 = vmatprep.subr.bf16.mxu1 %v15485_v31  ;;  %v15659_v31 = vld [vmem:[#allocation6 + $0x280] ss:$40 sps:$4 sm:$0xff]  }
 0x1ef   :  { %3320 = vmatpush1.bf16.msra.mxu0 %v15480_v33  ;;  %v15661_v33 = vld [vmem:[#allocation6 + $0x284] ss:$40 sps:$4 sm:$0xff]  }
 0x1f0   :  { %3525 = vmatpush1.bf16.msra.mxu1 %v15483_v34  ;;  %3321 = vmatprep.subr.bf16.mxu0 %v15488_v35  ;;  %v15544_v34 = vld [vmem:[#allocation2 + $0x314] ss:$24 sps:$4 sm:$0xff]   ;;  %v15542_v35 = vld [vmem:[#allocation2 + $0x310] ss:$24 sps:$4 sm:$0xff]  }
 0x1f1   :  { %3526 = vmatprep.subr.bf16.mxu1 %v15491_v36  ;;  %v15665_v36 = vld [vmem:[#allocation6 + $0x2d0] ss:$40 sps:$4 sm:$0xff]  }
 0x1f3   :  { %3322 = vmatpush1.bf16.msra.mxu0 %v15486_v21  ;;  %v15667_v21 = vld [vmem:[#allocation6 + $0x2d4] ss:$40 sps:$4 sm:$0xff]  }
 0x1f4   :  { %3527 = vmatpush1.bf16.msra.mxu1 %v15489_v38  ;;  %3537 = vmatprep.subr.bf16.mxu0 %v15496_v39  ;;  %v15547_v38 = vld [vmem:[#allocation2 + $0x344] ss:$24 sps:$4 sm:$0xff]   ;;  %v15545_v39 = vld [vmem:[#allocation2 + $0x340] ss:$24 sps:$4 sm:$0xff]  }
 0x1f5   :  { %6688 = vmatprep.subr.bf16.mxu1 %v15613_v56  ;;  %v15695_v56 = vld [vmem:[#allocation6 + $0x460] ss:$40 sps:$4 sm:$0xff]  }
 0x1f6   :  { %3324 = vmatmul.mubr.bf16.vlgmr.msra.gmra.mrb[0].mxu0 %v18052_v40 }
 0x1f7   :  { %3529 = vmatmul.mubr.bf16.vlgmr.msra.gmra.mrb[0].mxu1 %v18052_v40  ;;  %3538 = vmatpush1.bf16.msra.mxu0 %v15494_v41  ;;  %v15671_v41 = vld [vmem:[#allocation6 + $0x320] ss:$40 sps:$4 sm:$0xff]  }
 0x1f8   :  { %3569 = vmatprep.mubr.bf16.mxu0 %v17980_v48  ;;  %3539 = vmatprep.subr.bf16.mxu0 %v15499_v42  ;;  %v15517_v48 = vld [vmem:[#allocation2 + $0x164] ss:$24 sps:$4 sm:$0xff]   ;;  %v15673_v42 = vld [vmem:[#allocation6 + $0x324] ss:$40 sps:$4 sm:$0xff]  }
 0x1f9   :  { %6689 = vmatpush1.bf16.msra.mxu1 %v15611_v55  ;;  %v15562_v55 = vld [vmem:[#allocation2 + $0x434] ss:$24 sps:$4 sm:$0xff]  }
 0x1fa   :  { %6690 = vmatprep.subr.bf16.mxu1 %v15619_v60  ;;  %v15701_v60 = vld [vmem:[#allocation6 + $0x4b0] ss:$40 sps:$4 sm:$0xff]  }
 0x1fb   :  { %3540 = vmatpush1.bf16.msra.mxu0 %v15497_v43  ;;  %v15550_v43 = vld [vmem:[#allocation2 + $0x374] ss:$24 sps:$4 sm:$0xff]  }
 0x1fc   :  { %3541 = vmatprep.subr.bf16.mxu0 %v15502_v44  ;;  %v15548_v44 = vld [vmem:[#allocation2 + $0x370] ss:$24 sps:$4 sm:$0xff]  }
 0x1fd   :  { %6691 = vmatpush1.bf16.msra.mxu1 %v15617_v59  ;;  %v15565_v59 = vld [vmem:[#allocation2 + $0x464] ss:$24 sps:$4 sm:$0xff]  }
 0x1fe   :  { %6692 = vmatprep.subr.bf16.mxu1 %v15625_v0  ;;  %v15566_v0 = vld [vmem:[#allocation2 + $0x490] ss:$24 sps:$4 sm:$0xff]  }
 0x1ff   :  { %3542 = vmatpush1.bf16.msra.mxu0 %v15500_v45  ;;  %v15677_v45 = vld [vmem:[#allocation6 + $0x370] ss:$40 sps:$4 sm:$0xff]  }
 0x200   :  { %3543 = vmatprep.subr.bf16.mxu0 %v15505_v46  ;;  %v15679_v46 = vld [vmem:[#allocation6 + $0x374] ss:$40 sps:$4 sm:$0xff]  }
 0x201   :  { %6693 = vmatpush1.bf16.msra.mxu1 %v15623_v63  ;;  %v15568_v63 = vld [vmem:[#allocation2 + $0x494] ss:$24 sps:$4 sm:$0xff]  }
 0x202   :  { %6694 = vmatprep.subr.bf16.mxu1 %v15631_v4  ;;  %v15572_v4 = vld [vmem:[#allocation2 + $0x4f0] ss:$24 sps:$4 sm:$0xff]  }
 0x203   :  { %3544 = vmatpush1.bf16.msra.mxu0 %v15503_v28  ;;  %v15553_v28 = vld [vmem:[#allocation2 + $0x3a4] ss:$24 sps:$4 sm:$0xff]  }
 0x204   :  { %3545 = vmatprep.subr.bf16.mxu0 %v15508_v47  ;;  %v15683_v47 = vld [vmem:[#allocation6 + $0x3c0] ss:$40 sps:$4 sm:$0xff]  }
 0x205   :  { %6695 = vmatpush1.bf16.msra.mxu1 %v15629_v3  ;;  %v15574_v3 = vld [vmem:[#allocation2 + $0x4f4] ss:$24 sps:$4 sm:$0xff]  }
 0x206   :  { %6696 = vmatprep.subr.bf16.mxu1 %v15637_v9  ;;  %v15578_v9 = vld [vmem:[#allocation2 + $0x550] ss:$24 sps:$4 sm:$0xff]  }
 0x207   :  { %3546 = vmatpush1.bf16.msra.mxu0 %v15506_v49  ;;  %v15685_v49 = vld [vmem:[#allocation6 + $0x3c4] ss:$40 sps:$4 sm:$0xff]  }
 0x208   :  { %3547 = vmatprep.subr.bf16.mxu0 %v15511_v50  ;;  %v15554_v50 = vld [vmem:[#allocation2 + $0x3d0] ss:$24 sps:$4 sm:$0xff]  }
 0x209   :  { %6697 = vmatpush1.bf16.msra.mxu1 %v15635_v8  ;;  %v15580_v8 = vld [vmem:[#allocation2 + $0x554] ss:$24 sps:$4 sm:$0xff]  }
 0x20a   :  { %6698 = vmatprep.subr.bf16.mxu1 %v15643_v16  ;;  %v15584_v16 = vld [vmem:[#allocation2 + $0x5b0] ss:$24 sps:$4 sm:$0xff]  }
 0x20b   :  { %3548 = vmatpush1.bf16.msra.mxu0 %v15509_v51  ;;  %v15689_v51 = vld [vmem:[#allocation6 + $0x410] ss:$40 sps:$4 sm:$0xff]  }
 0x20c   :  { %3549 = vmatprep.subr.bf16.mxu0 %v15514_v52  ;;  %v15691_v52 = vld [vmem:[#allocation6 + $0x414] ss:$40 sps:$4 sm:$0xff]  }
 0x20d   :  { %6699 = vmatpush1.bf16.msra.mxu1 %v15641_v14  ;;  %v15586_v14 = vld [vmem:[#allocation2 + $0x5b4] ss:$24 sps:$4 sm:$0xff]  }
 0x20e   :  { %6700 = vmatprep.subr.bf16.mxu1 %v15649_v22  ;;  %v15590_v22 = vld [vmem:[#allocation2 + $0x610] ss:$24 sps:$4 sm:$0xff]  }
 0x20f   :  { %3550 = vmatpush1.bf16.msra.mxu0 %v15512_v53  ;;  %v15559_v53 = vld [vmem:[#allocation2 + $0x404] ss:$24 sps:$4 sm:$0xff]  }
 0x210   :  { %3551 = vmatprep.subr.bf16.mxu0 %v15517_v48  ;;  %v15557_v48 = vld [vmem:[#allocation2 + $0x400] ss:$24 sps:$4 sm:$0xff]  }
 0x211   :  { %6701 = vmatpush1.bf16.msra.mxu1 %v15647_v19  ;;  %v15592_v19 = vld [vmem:[#allocation2 + $0x614] ss:$24 sps:$4 sm:$0xff]  }
 0x212   :  { %6702 = vmatprep.subr.bf16.mxu1 %v15655_v26  ;;  %v15596_v26 = vld [vmem:[#allocation2 + $0x670] ss:$24 sps:$4 sm:$0xff]  }
 0x213   :  { %3552 = vmatpush1.bf16.msra.mxu0 %v15515_v54  ;;  %v15697_v54 = vld [vmem:[#allocation6 + $0x464] ss:$40 sps:$4 sm:$0xff]  }
 0x214   :  { %3553 = vmatprep.subr.bf16.mxu0 %v15520_v57  ;;  %v15560_v57 = vld [vmem:[#allocation2 + $0x430] ss:$24 sps:$4 sm:$0xff]  }
 0x215   :  { %6703 = vmatpush1.bf16.msra.mxu1 %v15653_v25  ;;  %v15598_v25 = vld [vmem:[#allocation2 + $0x674] ss:$24 sps:$4 sm:$0xff]  }
 0x216   :  { %6704 = vmatprep.subr.bf16.mxu1 %v15661_v33  ;;  %v15602_v33 = vld [vmem:[#allocation2 + $0x6d0] ss:$24 sps:$4 sm:$0xff]  }
 0x217   :  { %3554 = vmatpush1.bf16.msra.mxu0 %v15518_v58  ;;  %v15703_v58 = vld [vmem:[#allocation6 + $0x4b4] ss:$40 sps:$4 sm:$0xff]  }
 0x218   :  { %3555 = vmatprep.subr.bf16.mxu0 %v15523_v61  ;;  %v15563_v61 = vld [vmem:[#allocation2 + $0x460] ss:$24 sps:$4 sm:$0xff]  }
 0x219   :  { %6705 = vmatpush1.bf16.msra.mxu1 %v15659_v31  ;;  %v15604_v31 = vld [vmem:[#allocation2 + $0x6d4] ss:$24 sps:$4 sm:$0xff]  }
 0x21a   :  { %6706 = vmatprep.subr.bf16.mxu1 %v15667_v21  ;;  %v15614_v21 = vld [vmem:[#allocation2 + $0x760] ss:$24 sps:$4 sm:$0xff]  }
 0x21b   :  { %3556 = vmatpush1.bf16.msra.mxu0 %v15521_v62  ;;  %v15709_v62 = vld [vmem:[#allocation6 + $0x504] ss:$40 sps:$4 sm:$0xff]  }
 0x21c   :  { %3557 = vmatprep.subr.bf16.mxu0 %v15526_v1  ;;  %v15571_v1 = vld [vmem:[#allocation2 + $0x4c4] ss:$24 sps:$4 sm:$0xff]  }
 0x21d   :  { %6707 = vmatpush1.bf16.msra.mxu1 %v15665_v36  ;;  %v15616_v36 = vld [vmem:[#allocation2 + $0x764] ss:$24 sps:$4 sm:$0xff]  }
 0x21e   :  { %6708 = vmatprep.subr.bf16.mxu1 %v15673_v42  ;;  %v15626_v42 = vld [vmem:[#allocation2 + $0x7c0] ss:$24 sps:$4 sm:$0xff]  }
 0x21f   :  { %3558 = vmatpush1.bf16.msra.mxu0 %v15524_v2  ;;  %v15569_v2 = vld [vmem:[#allocation2 + $0x4c0] ss:$24 sps:$4 sm:$0xff]  }
 0x220   :  { %3559 = vmatprep.subr.bf16.mxu0 %v15529_v6  ;;  %v15577_v6 = vld [vmem:[#allocation2 + $0x524] ss:$24 sps:$4 sm:$0xff]  }
 0x221   :  { %6709 = vmatpush1.bf16.msra.mxu1 %v15671_v41  ;;  %v15628_v41 = vld [vmem:[#allocation2 + $0x7c4] ss:$24 sps:$4 sm:$0xff]  }
 0x222   :  { %6710 = vmatprep.subr.bf16.mxu1 %v15679_v46  ;;  %v15638_v46 = vld [vmem:[#allocation2 + $0x820] ss:$24 sps:$4 sm:$0xff]  }
 0x223   :  { %3560 = vmatpush1.bf16.msra.mxu0 %v15527_v7  ;;  %v15575_v7 = vld [vmem:[#allocation2 + $0x520] ss:$24 sps:$4 sm:$0xff]  }
 0x224   :  { %3561 = vmatprep.subr.bf16.mxu0 %v15532_v11  ;;  %v15583_v11 = vld [vmem:[#allocation2 + $0x584] ss:$24 sps:$4 sm:$0xff]  }
 0x225   :  { %6711 = vmatpush1.bf16.msra.mxu1 %v15677_v45  ;;  %v15640_v45 = vld [vmem:[#allocation2 + $0x824] ss:$24 sps:$4 sm:$0xff]  }
 0x226   :  { %6712 = vmatprep.subr.bf16.mxu1 %v15685_v49  ;;  %v15650_v49 = vld [vmem:[#allocation2 + $0x880] ss:$24 sps:$4 sm:$0xff]  }
 0x227   :  { %3562 = vmatpush1.bf16.msra.mxu0 %v15530_v12  ;;  %v15581_v12 = vld [vmem:[#allocation2 + $0x580] ss:$24 sps:$4 sm:$0xff]  }
 0x228   :  { %3563 = vmatprep.subr.bf16.mxu0 %v15535_v17  ;;  %v15589_v17 = vld [vmem:[#allocation2 + $0x5e4] ss:$24 sps:$4 sm:$0xff]  }
 0x229   :  { %6713 = vmatpush1.bf16.msra.mxu1 %v15683_v47  ;;  %v15652_v47 = vld [vmem:[#allocation2 + $0x884] ss:$24 sps:$4 sm:$0xff]  }
 0x22a   :  { %6714 = vmatprep.subr.bf16.mxu1 %v15691_v52  ;;  %v15662_v52 = vld [vmem:[#allocation2 + $0x8e0] ss:$24 sps:$4 sm:$0xff]  }
 0x22b   :  { %3564 = vmatpush1.bf16.msra.mxu0 %v15533_v18  ;;  %v15587_v18 = vld [vmem:[#allocation2 + $0x5e0] ss:$24 sps:$4 sm:$0xff]  }
 0x22c   :  { %3565 = vmatprep.subr.bf16.mxu0 %v15538_v23  ;;  %v15595_v23 = vld [vmem:[#allocation2 + $0x644] ss:$24 sps:$4 sm:$0xff]  }
 0x22d   :  { %6715 = vmatpush1.bf16.msra.mxu1 %v15689_v51  ;;  %v15664_v51 = vld [vmem:[#allocation2 + $0x8e4] ss:$24 sps:$4 sm:$0xff]  }
 0x22e   :  { %6716 = vmatprep.subr.bf16.mxu1 %v15697_v54  ;;  %v15676_v54 = vld [vmem:[#allocation2 + $0x944] ss:$24 sps:$4 sm:$0xff]  }
 0x22f   :  { %3566 = vmatpush1.bf16.msra.mxu0 %v15536_v13  ;;  %v15593_v13 = vld [vmem:[#allocation2 + $0x640] ss:$24 sps:$4 sm:$0xff]  }
 0x230   :  { %3567 = vmatprep.subr.bf16.mxu0 %v15541_v27  ;;  %v15601_v27 = vld [vmem:[#allocation2 + $0x6a4] ss:$24 sps:$4 sm:$0xff]  }
 0x231   :  { %6717 = vmatpush1.bf16.msra.mxu1 %v15695_v56  ;;  %v15682_v56 = vld [vmem:[#allocation2 + $0x974] ss:$24 sps:$4 sm:$0xff]  }
 0x232   :  { %6718 = vmatprep.subr.bf16.mxu1 %v15703_v58  ;;  %v15680_v58 = vld [vmem:[#allocation2 + $0x970] ss:$24 sps:$4 sm:$0xff]  }
 0x233   :  { %3568 = vmatpush1.bf16.msra.mxu0 %v15539_v29  ;;  %v15599_v29 = vld [vmem:[#allocation2 + $0x6a0] ss:$24 sps:$4 sm:$0xff]  }
 0x234   :  { %3578 = vmatprep.subr.bf16.mxu0 %v15544_v34  ;;  %v15607_v34 = vld [vmem:[#allocation2 + $0x704] ss:$24 sps:$4 sm:$0xff]  }
 0x235   :  { %6719 = vmatpush1.bf16.msra.mxu1 %v15701_v60 }
 0x236   :  { %3570 = vmatmul.mubr.bf16.vlgmr.msra.gmra.mrb[4].mxu0 %v17984_v5  ;;  %v15551_v5 = vld [vmem:[#allocation2 + $0x3a0] ss:$24 sps:$4 sm:$0xff]   ;;  %6729 = vmatprep.subr.bf16.mxu1 %v15709_v62  ;;  %v15694_v62 = vld [vmem:[#allocation2 + $0x9d4] ss:$24 sps:$4 sm:$0xff]  }
 0x237   :  { %3579 = vmatpush1.bf16.msra.mxu0 %v15542_v35  ;;  %3610 = vmatprep.mubr.bf16.mxu0 %v17995_v30  ;;  %v15556_v30 = vld [vmem:[#allocation2 + $0x3d4] ss:$24 sps:$4 sm:$0xff]  }
 0x238   :  { %3580 = vmatprep.subr.bf16.mxu0 %v15547_v38  ;;  %v15610_v35 = vld [vmem:[#allocation2 + $0x734] ss:$24 sps:$4 sm:$0xff]  }
 0x239   :  { %v15622_v38 = vld [vmem:[#allocation2 + $0x794] ss:$24 sps:$4 sm:$0xff]  }
 0x23b   :  { %3581 = vmatpush1.bf16.msra.mxu0 %v15545_v39  ;;  %v15620_v39 = vld [vmem:[#allocation2 + $0x790] ss:$24 sps:$4 sm:$0xff]  }
 0x23c   :  { %3582 = vmatprep.subr.bf16.mxu0 %v15550_v43  ;;  %v15634_v43 = vld [vmem:[#allocation2 + $0x7f4] ss:$24 sps:$4 sm:$0xff]  }
 0x23f   :  { %3583 = vmatpush1.bf16.msra.mxu0 %v15548_v44  ;;  %v15632_v44 = vld [vmem:[#allocation2 + $0x7f0] ss:$24 sps:$4 sm:$0xff]  }
 0x240   :  { %3584 = vmatprep.subr.bf16.mxu0 %v15553_v28  ;;  %v15646_v28 = vld [vmem:[#allocation2 + $0x854] ss:$24 sps:$4 sm:$0xff]  }
 0x243   :  { %3585 = vmatpush1.bf16.msra.mxu0 %v15551_v5  ;;  %v15644_v5 = vld [vmem:[#allocation2 + $0x850] ss:$24 sps:$4 sm:$0xff]  }
 0x244   :  { %3586 = vmatprep.subr.bf16.mxu0 %v15556_v30  ;;  %v15658_v30 = vld [vmem:[#allocation2 + $0x8b4] ss:$24 sps:$4 sm:$0xff]  }
 0x247   :  { %3587 = vmatpush1.bf16.msra.mxu0 %v15554_v50  ;;  %v15656_v50 = vld [vmem:[#allocation2 + $0x8b0] ss:$24 sps:$4 sm:$0xff]  }
 0x248   :  { %3588 = vmatprep.subr.bf16.mxu0 %v15559_v53  ;;  %v15670_v53 = vld [vmem:[#allocation2 + $0x914] ss:$24 sps:$4 sm:$0xff]  }
 0x24b   :  { %3589 = vmatpush1.bf16.msra.mxu0 %v15557_v48  ;;  %v15668_v48 = vld [vmem:[#allocation2 + $0x910] ss:$24 sps:$4 sm:$0xff]  }
 0x24c   :  { %3590 = vmatprep.subr.bf16.mxu0 %v15562_v55  ;;  %v15674_v55 = vld [vmem:[#allocation2 + $0x940] ss:$24 sps:$4 sm:$0xff]  }
 0x24f   :  { %3591 = vmatpush1.bf16.msra.mxu0 %v15560_v57  ;;  %v662_v57 = vlaneseq }
 0x250   :  { %3592 = vmatprep.subr.bf16.mxu0 %v15565_v59  ;;  %v15688_v59 = vld [vmem:[#allocation2 + $0x9a4] ss:$24 sps:$4 sm:$0xff]  }
 0x251   :  { %v18063_v60 = vshrl.u32 %v662_v57, 7  ;;  %v15746_v57 = vld [vmem:[#allocation2 + $0xb80] ss:$24 sps:$4 sm:$0xff]  }
 0x253   :  { %3593 = vmatpush1.bf16.msra.mxu0 %v15563_v61  ;;  %v15686_v61 = vld [vmem:[#allocation2 + $0x9a0] ss:$24 sps:$4 sm:$0xff]  }
 0x254   :  { %3594 = vmatprep.subr.bf16.mxu0 %v15568_v63  ;;  %v15692_v63 = vld [vmem:[#allocation2 + $0x9d0] ss:$24 sps:$4 sm:$0xff]  }
 0x257   :  { %3595 = vmatpush1.bf16.msra.mxu0 %v15566_v0  ;;  %v18065_v0 = vld [vmem:[#allocation4] sm:$0x3f] }
 0x258   :  { %3596 = vmatprep.subr.bf16.mxu0 %v15571_v1  ;;  %v18074_v1 = vsub.s32 3, %v18063_v60 }
 0x25b   :  { %3597 = vmatpush1.bf16.msra.mxu0 %v15569_v2  ;;  %v15700_v2 = vld [vmem:[#allocation2 + $0xa04] ss:$24 sps:$4 sm:$0xff]  }
 0x25c   :  { %3598 = vmatprep.subr.bf16.mxu0 %v15574_v3 }
 0x25f   :  { %3599 = vmatpush1.bf16.msra.mxu0 %v15572_v4 }
 0x260   :  { %3600 = vmatprep.subr.bf16.mxu0 %v15577_v6  ;;  %v677_v6 = vrot.slane %v18065_v0, %v18074_v1 }
 0x263   :  { %3601 = vmatpush1.bf16.msra.mxu0 %v15575_v7  ;;  %v15698_v7 = vld [vmem:[#allocation2 + $0xa00] ss:$24 sps:$4 sm:$0xff]  }
 0x264   :  { %3602 = vmatprep.subr.bf16.mxu0 %v15580_v8  ;;  %v15706_v8 = vld [vmem:[#allocation2 + $0xa34] ss:$24 sps:$4 sm:$0xff]  }
 0x267   :  { %3603 = vmatpush1.bf16.msra.mxu0 %v15578_v9 }
 0x268   :  { %3604 = vmatprep.subr.bf16.mxu0 %v15583_v11 }
 0x26b   :  { %3605 = vmatpush1.bf16.msra.mxu0 %v15581_v12 }
 0x26c   :  { %3606 = vmatprep.subr.bf16.mxu0 %v15586_v14 }
 0x26f   :  { %3607 = vmatpush1.bf16.msra.mxu0 %v15584_v16 }
 0x270   :  { %3608 = vmatprep.subr.bf16.mxu0 %v15589_v17 }
 0x273   :  { %3609 = vmatpush1.bf16.msra.mxu0 %v15587_v18 }
 0x274   :  { %3619 = vmatprep.subr.bf16.mxu0 %v15592_v19 }
 0x276   :  { %3611 = vmatmul.mubr.bf16.vlgmr.msra.gmra.mrb[4].mxu0 %v18001_v10  ;;  %v15605_v10 = vld [vmem:[#allocation2 + $0x700] ss:$24 sps:$4 sm:$0xff]  }
 0x277   :  { %3620 = vmatpush1.bf16.msra.mxu0 %v15590_v22  ;;  %3651 = vmatprep.mubr.bf16.mxu0 %v18010_v15  ;;  %v15608_v15 = vld [vmem:[#allocation2 + $0x730] ss:$24 sps:$4 sm:$0xff]  }
 0x278   :  { %3621 = vmatprep.subr.bf16.mxu0 %v15595_v23  ;;  %v15704_v23 = vld [vmem:[#allocation2 + $0xa30] ss:$24 sps:$4 sm:$0xff]  }
 0x27b   :  { %3622 = vmatpush1.bf16.msra.mxu0 %v15593_v13  ;;  %v15712_v13 = vld [vmem:[#allocation2 + $0xa64] ss:$24 sps:$4 sm:$0xff]  }
 0x27c   :  { %3623 = vmatprep.subr.bf16.mxu0 %v15598_v25 }
 0x27f   :  { %3624 = vmatpush1.bf16.msra.mxu0 %v15596_v26 }
 0x280   :  { %3625 = vmatprep.subr.bf16.mxu0 %v15601_v27 }
 0x283   :  { %3626 = vmatpush1.bf16.msra.mxu0 %v15599_v29 }
 0x284   :  { %3627 = vmatprep.subr.bf16.mxu0 %v15604_v31  ;;  %v15707_v31 = vld [vmem:[#allocation6 + $0x500] ss:$40 sps:$4 sm:$0xff]  }
 0x287   :  { %3628 = vmatpush1.bf16.msra.mxu0 %v15602_v33  ;;  %v15710_v33 = vld [vmem:[#allocation2 + $0xa60] ss:$24 sps:$4 sm:$0xff]  }
 0x288   :  { %3629 = vmatprep.subr.bf16.mxu0 %v15607_v34 }
 0x28b   :  { %3630 = vmatpush1.bf16.msra.mxu0 %v15605_v10 }
 0x28c   :  { %3631 = vmatprep.subr.bf16.mxu0 %v15610_v35  ;;  %v15715_v35 = vld [vmem:[#allocation6 + $0x554] ss:$40 sps:$4 sm:$0xff]  }
 0x28f   :  { %3632 = vmatpush1.bf16.msra.mxu0 %v15608_v15  ;;  %v15718_v15 = vld [vmem:[#allocation2 + $0xa94] ss:$24 sps:$4 sm:$0xff]  }
 0x290   :  { %3633 = vmatprep.subr.bf16.mxu0 %v15616_v36 }
 0x293   :  { %3634 = vmatpush1.bf16.msra.mxu0 %v15614_v21  ;;  %v15713_v21 = vld [vmem:[#allocation6 + $0x550] ss:$40 sps:$4 sm:$0xff]  }
 0x294   :  { %3635 = vmatprep.subr.bf16.mxu0 %v15622_v38  ;;  %v15716_v38 = vld [vmem:[#allocation2 + $0xa90] ss:$24 sps:$4 sm:$0xff]  }
 0x297   :  { %3636 = vmatpush1.bf16.msra.mxu0 %v15620_v39 }
 0x298   :  { %3637 = vmatprep.subr.bf16.mxu0 %v15628_v41  ;;  %v15721_v41 = vld [vmem:[#allocation6 + $0x5a4] ss:$40 sps:$4 sm:$0xff]  }
 0x29b   :  { %3638 = vmatpush1.bf16.msra.mxu0 %v15626_v42  ;;  %v15724_v42 = vld [vmem:[#allocation2 + $0xac4] ss:$24 sps:$4 sm:$0xff]  }
 0x29c   :  { %3639 = vmatprep.subr.bf16.mxu0 %v15634_v43  ;;  %v15719_v43 = vld [vmem:[#allocation6 + $0x5a0] ss:$40 sps:$4 sm:$0xff]  }
 0x29f   :  { %3640 = vmatpush1.bf16.msra.mxu0 %v15632_v44  ;;  %v15722_v44 = vld [vmem:[#allocation2 + $0xac0] ss:$24 sps:$4 sm:$0xff]  }
 0x2a0   :  { %3641 = vmatprep.subr.bf16.mxu0 %v15640_v45  ;;  %v15727_v45 = vld [vmem:[#allocation6 + $0x5f4] ss:$40 sps:$4 sm:$0xff]  }
 0x2a3   :  { %3642 = vmatpush1.bf16.msra.mxu0 %v15638_v46  ;;  %v15730_v46 = vld [vmem:[#allocation2 + $0xaf4] ss:$24 sps:$4 sm:$0xff]  }
 0x2a4   :  { %3643 = vmatprep.subr.bf16.mxu0 %v15646_v28  ;;  %v15725_v28 = vld [vmem:[#allocation6 + $0x5f0] ss:$40 sps:$4 sm:$0xff]  }
 0x2a7   :  { %3644 = vmatpush1.bf16.msra.mxu0 %v15644_v5  ;;  %v15728_v5 = vld [vmem:[#allocation2 + $0xaf0] ss:$24 sps:$4 sm:$0xff]  }
 0x2a8   :  { %3645 = vmatprep.subr.bf16.mxu0 %v15652_v47  ;;  %v15733_v47 = vld [vmem:[#allocation6 + $0x644] ss:$40 sps:$4 sm:$0xff]  }
 0x2ab   :  { %3646 = vmatpush1.bf16.msra.mxu0 %v15650_v49  ;;  %v15736_v49 = vld [vmem:[#allocation2 + $0xb24] ss:$24 sps:$4 sm:$0xff]  }
 0x2ac   :  { %3647 = vmatprep.subr.bf16.mxu0 %v15658_v30  ;;  %v15731_v30 = vld [vmem:[#allocation6 + $0x640] ss:$40 sps:$4 sm:$0xff]  }
 0x2af   :  { %3648 = vmatpush1.bf16.msra.mxu0 %v15656_v50  ;;  %v15734_v50 = vld [vmem:[#allocation2 + $0xb20] ss:$24 sps:$4 sm:$0xff]  }
 0x2b0   :  { %3649 = vmatprep.subr.bf16.mxu0 %v15664_v51  ;;  %v15739_v51 = vld [vmem:[#allocation6 + $0x694] ss:$40 sps:$4 sm:$0xff]  }
 0x2b3   :  { %3650 = vmatpush1.bf16.msra.mxu0 %v15662_v52  ;;  %v15742_v52 = vld [vmem:[#allocation2 + $0xb54] ss:$24 sps:$4 sm:$0xff]  }
 0x2b4   :  { %3660 = vmatprep.subr.bf16.mxu0 %v15670_v53  ;;  %v15737_v53 = vld [vmem:[#allocation6 + $0x690] ss:$40 sps:$4 sm:$0xff]  }
 0x2b6   :  { %3652 = vmatmul.mubr.bf16.vlgmr.msra.gmra.mrb[4].mxu0 %v18018_v20  ;;  %v18068_v20 = vsub.s32 0, %v18063_v60 }
 0x2b7   :  { %3661 = vmatpush1.bf16.msra.mxu0 %v15668_v48  ;;  %3692 = vmatprep.mubr.bf16.mxu0 %v18027_v24  ;;  %v18071_v24 = vsub.s32 1, %v18063_v60  ;;  %v15740_v48 = vld [vmem:[#allocation2 + $0xb50] ss:$24 sps:$4 sm:$0xff]  }
 0x2b8   :  { %3662 = vmatprep.subr.bf16.mxu0 %v15676_v54  ;;  %v665_v3 = vrot.slane %v18065_v0, %v18068_v20  ;;  %v15745_v54 = vld [vmem:[#allocation6 + $0x6e4] ss:$40 sps:$4 sm:$0xff]  }
 0x2b9   :  { %v669_v4 = vrot.slane %v18065_v0, %v18071_v24 }
 0x2bb   :  { %3663 = vmatpush1.bf16.msra.mxu0 %v15674_v55  ;;  %v15748_v55 = vld [vmem:[#allocation2 + $0xb84] ss:$24 sps:$4 sm:$0xff]  }
 0x2bc   :  { %3664 = vmatprep.subr.bf16.mxu0 %v15682_v56  ;;  %v15743_v56 = vld [vmem:[#allocation6 + $0x6e0] ss:$40 sps:$4 sm:$0xff]  }
 0x2bf   :  { %3665 = vmatpush1.bf16.msra.mxu0 %v15680_v58  ;;  %v15751_v58 = vld [vmem:[#allocation6 + $0x734] ss:$40 sps:$4 sm:$0xff]  }
 0x2c0   :  { %3666 = vmatprep.subr.bf16.mxu0 %v15688_v59  ;;  %v15754_v59 = vld [vmem:[#allocation2 + $0xbb4] ss:$24 sps:$4 sm:$0xff]  }
 0x2c3   :  { %3667 = vmatpush1.bf16.msra.mxu0 %v15686_v61  ;;  %v15749_v61 = vld [vmem:[#allocation6 + $0x730] ss:$40 sps:$4 sm:$0xff]  }
 0x2c4   :  { %3668 = vmatprep.subr.bf16.mxu0 %v15694_v62  ;;  %v15752_v62 = vld [vmem:[#allocation2 + $0xbb0] ss:$24 sps:$4 sm:$0xff]  }
 0x2c7   :  { %3669 = vmatpush1.bf16.msra.mxu0 %v15692_v63  ;;  %v15757_v63 = vld [vmem:[#allocation6 + $0x784] ss:$40 sps:$4 sm:$0xff]  }
 0x2c8   :  { %3670 = vmatprep.subr.bf16.mxu0 %v15700_v2  ;;  %v15760_v2 = vld [vmem:[#allocation2 + $0xbe4] ss:$24 sps:$4 sm:$0xff]  }
 0x2c9   :  { %v3325_v9 = vpop.f32.mrb[0].mxu0 }
 0x2ca   :  { %v18082_v11 = vpop.f32.mrb[0].mxu1  ;;  %v14816_v12 = vadd.f32 %v3325_v9, %v665_v3  ;;  %v3327_v14 = vpop.f32.mrb[1].mxu0  ;;  %v15755_v3 = vld [vmem:[#allocation6 + $0x780] ss:$40 sps:$4 sm:$0xff]  }
 0x2cb   :  { %v3532_v16 = vpop.f32.mrb[1].mxu1  ;;  %v14817_v17 = vadd.f32 %v3327_v14, %v669_v4  ;;  %v3329_v19 = vpop.f32.mrb[2].mxu0  ;;  %3671 = vmatpush1.bf16.msra.mxu0 %v15698_v7  ;;  %v15758_v4 = vld [vmem:[#allocation2 + $0xbe0] ss:$24 sps:$4 sm:$0xff]   ;;  %v15766_v7 = vld [vmem:[#allocation2 + $0xc14] ss:$24 sps:$4 sm:$0xff]  }
 0x2cc   :  { %v14819_v18 = vadd.f32 %v3532_v16, %v677_v6  ;;  %v3534_v22 = vpop.f32.mrb[2].mxu1  ;;  %v3742_v25 = vmax.f32 %v14816_v12, 0.0  ;;  %v3330_v26 = vpop.f32.mrb[3].mxu0  ;;  %3672 = vmatprep.subr.bf16.mxu0 %v15706_v8  ;;  %v15763_v6 = vld [vmem:[#allocation6 + $0x7d4] ss:$40 sps:$4 sm:$0xff]  }
 0x2cd   :  { %v3535_v27 = vpop.f32.mrb[3].mxu1  ;;  %v3743_v29 = vmax.f32 %v14817_v17, 0.0  ;;  %v15761_v8 = vld [vmem:[#allocation6 + $0x7d0] ss:$40 sps:$4 sm:$0xff]   ;;  %v15764_v9 = vld [vmem:[#allocation2 + $0xc10] ss:$24 sps:$4 sm:$0xff]  }
 0x2ce   :  { %v3745_v34 = vmax.f32 %v14819_v18, 0.0  ;;  %v18086_v36 = vpack.c.bf16 %v3742_v25, %v3742_v25  ;;  %v15769_v12 = vld [vmem:[#allocation6 + $0x824] ss:$40 sps:$4 sm:$0xff]   ;;  %v15772_v14 = vld [vmem:[#allocation2 + $0xc44] ss:$24 sps:$4 sm:$0xff]  }
 0x2cf   :  { %v18084_v10 = vpack.c.bf16 %v3743_v29, %v3743_v29  ;;  %3673 = vmatpush1.bf16.msra.mxu0 %v15704_v23  ;;  %v15767_v16 = vld [vmem:[#allocation6 + $0x820] ss:$40 sps:$4 sm:$0xff]   ;;  %v15770_v17 = vld [vmem:[#allocation2 + $0xc40] ss:$24 sps:$4 sm:$0xff]  }
 0x2d0   :  { %3674 = vmatprep.subr.bf16.mxu0 %v15712_v13  ;;  %v18089_v39 = vpack.c.bf16 %v3745_v34, %v3745_v34  ;;  %v15775_v18 = vld [vmem:[#allocation6 + $0x874] ss:$40 sps:$4 sm:$0xff]   ;;  %v15778_v19 = vld [vmem:[#allocation2 + $0xc74] ss:$24 sps:$4 sm:$0xff]   ;;  %v15776_v23 = vld [vmem:[#allocation2 + $0xc70] ss:$24 sps:$4 sm:$0xff]  }
 0x2d1   :  { %6720 = vmatprep.mubr.bf16.mxu1 %v18084_v10  ;;  %v15773_v22 = vld [vmem:[#allocation6 + $0x870] ss:$40 sps:$4 sm:$0xff]   ;;  %v15781_v13 = vld [vmem:[#allocation6 + $0x8c4] ss:$40 sps:$4 sm:$0xff]   ;;  %v15779_v26 = vld [vmem:[#allocation6 + $0x8c0] ss:$40 sps:$4 sm:$0xff]  }
 0x2d2   :  { %6721 = vmatmul.mubr.bf16.vlgmr.msra.gmra.mrb[4].mxu1 %v18086_v36  ;;  %v15784_v25 = vld [vmem:[#allocation2 + $0xca4] ss:$24 sps:$4 sm:$0xff]   ;;  %v15782_v27 = vld [vmem:[#allocation2 + $0xca0] ss:$24 sps:$4 sm:$0xff]   ;;  %v15790_v29 = vld [vmem:[#allocation2 + $0xcd4] ss:$24 sps:$4 sm:$0xff]  }
 0x2d3   :  { %6730 = vmatpush1.bf16.msra.mxu1 %v15707_v31  ;;  %3675 = vmatpush1.bf16.msra.mxu0 %v15710_v33  ;;  %v18096_v31 = vsub.s32 2, %v18063_v60  ;;  %v15785_v33 = vld [vmem:[#allocation6 + $0x910] ss:$40 sps:$4 sm:$0xff]   ;;  %v15788_v34 = vld [vmem:[#allocation2 + $0xcd0] ss:$24 sps:$4 sm:$0xff]  }
 0x2d4   :  { %6761 = vmatprep.mubr.bf16.mxu1 %v18089_v39  ;;  %6731 = vmatprep.subr.bf16.mxu1 %v15715_v35  ;;  %v15796_v35 = vld [vmem:[#allocation2 + $0xd04] ss:$24 sps:$4 sm:$0xff]  }
 0x2d5   :  { %3676 = vmatprep.subr.bf16.mxu0 %v15718_v15  ;;  %v673_v15 = vrot.slane %v18065_v0, %v18096_v31  ;;  %v15803_v0 = vld [vmem:[#allocation2 + $0xd60] ss:$24 sps:$4 sm:$0xff]  }
 0x2d7   :  { %6732 = vmatpush1.bf16.msra.mxu1 %v15713_v21  ;;  %3677 = vmatpush1.bf16.msra.mxu0 %v15716_v38  ;;  %v15791_v21 = vld [vmem:[#allocation6 + $0x960] ss:$40 sps:$4 sm:$0xff]   ;;  %v15794_v38 = vld [vmem:[#allocation2 + $0xd00] ss:$24 sps:$4 sm:$0xff]  }
 0x2d8   :  { %6733 = vmatprep.subr.bf16.mxu1 %v15721_v41  ;;  %3678 = vmatprep.subr.bf16.mxu0 %v15724_v42  ;;  %v15799_v41 = vld [vmem:[#allocation6 + $0x9b4] ss:$40 sps:$4 sm:$0xff]   ;;  %v15802_v42 = vld [vmem:[#allocation2 + $0xd34] ss:$24 sps:$4 sm:$0xff]  }
 0x2db   :  { %6734 = vmatpush1.bf16.msra.mxu1 %v15719_v43  ;;  %3679 = vmatpush1.bf16.msra.mxu0 %v15722_v44  ;;  %v14818_v43 = vadd.f32 %v18082_v11, %v673_v15  ;;  %v15797_v44 = vld [vmem:[#allocation6 + $0x9b0] ss:$40 sps:$4 sm:$0xff]   ;;  %v15806_v11 = vld [vmem:[#allocation2 + $0xd90] ss:$24 sps:$4 sm:$0xff]  }
 0x2dc   :  { %6735 = vmatprep.subr.bf16.mxu1 %v15727_v45  ;;  %3680 = vmatprep.subr.bf16.mxu0 %v15730_v46  ;;  %v15800_v45 = vld [vmem:[#allocation2 + $0xd30] ss:$24 sps:$4 sm:$0xff]   ;;  %v15805_v46 = vld [vmem:[#allocation2 + $0xd64] ss:$24 sps:$4 sm:$0xff]  }
 0x2dd   :  { %v15962_v15 = vld [vmem:[#allocation6 + $0xbe0] ss:$40 sps:$4 sm:$0xff]  }
 0x2df   :  { %6736 = vmatpush1.bf16.msra.mxu1 %v15725_v28  ;;  %3681 = vmatpush1.bf16.msra.mxu0 %v15728_v5  ;;  %v3744_v28 = vmax.f32 %v14818_v43, 0.0  ;;  %v15808_v5 = vld [vmem:[#allocation2 + $0xd94] ss:$24 sps:$4 sm:$0xff]  }
 0x2e0   :  { %6737 = vmatprep.subr.bf16.mxu1 %v15733_v47  ;;  %3682 = vmatprep.subr.bf16.mxu0 %v15736_v49  ;;  %v15811_v49 = vld [vmem:[#allocation2 + $0xdc4] ss:$24 sps:$4 sm:$0xff]  }
 0x2e1   :  { %v18101_v47 = vpack.c.bf16 %v3744_v28, %v3744_v28  ;;  %v15854_v43 = vld [vmem:[#allocation6 + $0x290] ss:$40 sps:$4 sm:$0xff]   ;;  %v15857_v28 = vld [vmem:[#allocation6 + $0x2e0] ss:$40 sps:$4 sm:$0xff]  }
 0x2e3   :  { %6738 = vmatpush1.bf16.msra.mxu1 %v15731_v30  ;;  %3683 = vmatpush1.bf16.msra.mxu0 %v15734_v50  ;;  %v15809_v30 = vld [vmem:[#allocation2 + $0xdc0] ss:$24 sps:$4 sm:$0xff]   ;;  %v15814_v50 = vld [vmem:[#allocation2 + $0xdf4] ss:$24 sps:$4 sm:$0xff]  }
 0x2e4   :  { %6739 = vmatprep.subr.bf16.mxu1 %v15739_v51  ;;  %3684 = vmatprep.subr.bf16.mxu0 %v15742_v52  ;;  %v15812_v51 = vld [vmem:[#allocation2 + $0xdf0] ss:$24 sps:$4 sm:$0xff]   ;;  %v15817_v52 = vld [vmem:[#allocation2 + $0xe24] ss:$24 sps:$4 sm:$0xff]  }
 0x2e7   :  { %6740 = vmatpush1.bf16.msra.mxu1 %v15737_v53  ;;  %3685 = vmatpush1.bf16.msra.mxu0 %v15740_v48  ;;  %v15815_v53 = vld [vmem:[#allocation2 + $0xe20] ss:$24 sps:$4 sm:$0xff]   ;;  %v15820_v48 = vld [vmem:[#allocation2 + $0xe54] ss:$24 sps:$4 sm:$0xff]  }
 0x2e8   :  { %6741 = vmatprep.subr.bf16.mxu1 %v15745_v54  ;;  %3686 = vmatprep.subr.bf16.mxu0 %v15748_v55  ;;  %v15818_v54 = vld [vmem:[#allocation2 + $0xe50] ss:$24 sps:$4 sm:$0xff]   ;;  %v15823_v55 = vld [vmem:[#allocation2 + $0xe84] ss:$24 sps:$4 sm:$0xff]  }
 0x2eb   :  { %6742 = vmatpush1.bf16.msra.mxu1 %v15743_v56  ;;  %3687 = vmatpush1.bf16.msra.mxu0 %v15746_v57  ;;  %v15821_v56 = vld [vmem:[#allocation2 + $0xe80] ss:$24 sps:$4 sm:$0xff]   ;;  %v15826_v57 = vld [vmem:[#allocation2 + $0xeb4] ss:$24 sps:$4 sm:$0xff]  }
 0x2ec   :  { %6743 = vmatprep.subr.bf16.mxu1 %v15751_v58  ;;  %3688 = vmatprep.subr.bf16.mxu0 %v15754_v59  ;;  %v15824_v58 = vld [vmem:[#allocation2 + $0xeb0] ss:$24 sps:$4 sm:$0xff]   ;;  %v15829_v59 = vld [vmem:[#allocation2 + $0xee4] ss:$24 sps:$4 sm:$0xff]  }
 0x2ef   :  { %6744 = vmatpush1.bf16.msra.mxu1 %v15749_v61  ;;  %3689 = vmatpush1.bf16.msra.mxu0 %v15752_v62  ;;  %v15827_v61 = vld [vmem:[#allocation2 + $0xee0] ss:$24 sps:$4 sm:$0xff]  }
 0x2f0   :  { %6745 = vmatprep.subr.bf16.mxu1 %v15757_v63  ;;  %3690 = vmatprep.subr.bf16.mxu0 %v15760_v2  ;;  %v15832_v62 = vld [vmem:[#allocation6 + $0x14] ss:$40 sps:$4 sm:$0xff]   ;;  %v15830_v63 = vld [vmem:[#allocation6 + $0x10] ss:$40 sps:$4 sm:$0xff]   ;;  %v15835_v2 = vld [vmem:[#allocation6 + $0x64] ss:$40 sps:$4 sm:$0xff]  }
 0x2f3   :  { %6746 = vmatpush1.bf16.msra.mxu1 %v15755_v3  ;;  %3691 = vmatpush1.bf16.msra.mxu0 %v15758_v4  ;;  %v15926_v3 = vld [vmem:[#allocation6 + $0xa00] ss:$40 sps:$4 sm:$0xff]   ;;  %v15928_v4 = vld [vmem:[#allocation6 + $0xa04] ss:$40 sps:$4 sm:$0xff]  }
 0x2f4   :  { %6747 = vmatprep.subr.bf16.mxu1 %v15763_v6  ;;  %3701 = vmatprep.subr.bf16.mxu0 %v15766_v7  ;;  %v15833_v6 = vld [vmem:[#allocation6 + $0x60] ss:$40 sps:$4 sm:$0xff]   ;;  %v15934_v7 = vld [vmem:[#allocation6 + $0xa54] ss:$40 sps:$4 sm:$0xff]  }
 0x2f6   :  { %3693 = vmatmul.mubr.bf16.vlgmr.msra.gmra.mrb[4].mxu0 %v18040_v32  ;;  %v15787_v32 = vld [vmem:[#allocation6 + $0x914] ss:$40 sps:$4 sm:$0xff]  }
 0x2f7   :  { %6748 = vmatpush1.bf16.msra.mxu1 %v15761_v8  ;;  %3702 = vmatpush1.bf16.msra.mxu0 %v15764_v9  ;;  %v15838_v8 = vld [vmem:[#allocation6 + $0xb4] ss:$40 sps:$4 sm:$0xff]   ;;  %v15932_v9 = vld [vmem:[#allocation6 + $0xa50] ss:$40 sps:$4 sm:$0xff]  }
 0x2f8   :  { %6749 = vmatprep.subr.bf16.mxu1 %v15769_v12  ;;  %3703 = vmatprep.subr.bf16.mxu0 %v15772_v14  ;;  %v15836_v12 = vld [vmem:[#allocation6 + $0xb0] ss:$40 sps:$4 sm:$0xff]   ;;  %v15841_v14 = vld [vmem:[#allocation6 + $0x104] ss:$40 sps:$4 sm:$0xff]  }
 0x2f9   :  { %3733 = vmatprep.mubr.bf16.mxu0 %v18044_v37  ;;  %v15793_v37 = vld [vmem:[#allocation6 + $0x964] ss:$40 sps:$4 sm:$0xff]  }
 0x2fb   :  { %6750 = vmatpush1.bf16.msra.mxu1 %v15767_v16  ;;  %3704 = vmatpush1.bf16.msra.mxu0 %v15770_v17  ;;  %v15940_v16 = vld [vmem:[#allocation6 + $0xaa4] ss:$40 sps:$4 sm:$0xff]   ;;  %v15938_v17 = vld [vmem:[#allocation6 + $0xaa0] ss:$40 sps:$4 sm:$0xff]  }
 0x2fc   :  { %6751 = vmatprep.subr.bf16.mxu1 %v15775_v18  ;;  %3705 = vmatprep.subr.bf16.mxu0 %v15778_v19  ;;  %v15844_v18 = vld [vmem:[#allocation6 + $0x154] ss:$40 sps:$4 sm:$0xff]  }
 0x2fd   :  { %v15946_v19 = vld [vmem:[#allocation6 + $0xaf4] ss:$40 sps:$4 sm:$0xff]  }
 0x2ff   :  { %6752 = vmatpush1.bf16.msra.mxu1 %v15773_v22  ;;  %3706 = vmatpush1.bf16.msra.mxu0 %v15776_v23  ;;  %v15944_v22 = vld [vmem:[#allocation6 + $0xaf0] ss:$40 sps:$4 sm:$0xff]  }
 0x300   :  { %6753 = vmatprep.subr.bf16.mxu1 %v15781_v13  ;;  %3707 = vmatprep.subr.bf16.mxu0 %v15784_v25  ;;  %v15842_v23 = vld [vmem:[#allocation6 + $0x150] ss:$40 sps:$4 sm:$0xff]   ;;  %v15847_v13 = vld [vmem:[#allocation6 + $0x1a4] ss:$40 sps:$4 sm:$0xff]  }
 0x301   :  { %v15952_v25 = vld [vmem:[#allocation6 + $0xb44] ss:$40 sps:$4 sm:$0xff]  }
 0x303   :  { %6754 = vmatpush1.bf16.msra.mxu1 %v15779_v26  ;;  %3708 = vmatpush1.bf16.msra.mxu0 %v15782_v27  ;;  %v15950_v26 = vld [vmem:[#allocation6 + $0xb40] ss:$40 sps:$4 sm:$0xff]  }
 0x304   :  { %6755 = vmatprep.subr.bf16.mxu1 %v15787_v32  ;;  %3709 = vmatprep.subr.bf16.mxu0 %v15790_v29  ;;  %v15845_v27 = vld [vmem:[#allocation6 + $0x1a0] ss:$40 sps:$4 sm:$0xff]   ;;  %v15850_v32 = vld [vmem:[#allocation6 + $0x1f4] ss:$40 sps:$4 sm:$0xff]  }
 0x305   :  { %v15958_v29 = vld [vmem:[#allocation6 + $0xb94] ss:$40 sps:$4 sm:$0xff]  }
 0x307   :  { %6756 = vmatpush1.bf16.msra.mxu1 %v15785_v33  ;;  %3710 = vmatpush1.bf16.msra.mxu0 %v15788_v34  ;;  %v15956_v33 = vld [vmem:[#allocation6 + $0xb90] ss:$40 sps:$4 sm:$0xff]  }
 0x308   :  { %6757 = vmatprep.subr.bf16.mxu1 %v15793_v37  ;;  %3711 = vmatprep.subr.bf16.mxu0 %v15796_v35  ;;  %v15848_v34 = vld [vmem:[#allocation6 + $0x1f0] ss:$40 sps:$4 sm:$0xff]   ;;  %v15853_v37 = vld [vmem:[#allocation6 + $0x244] ss:$40 sps:$4 sm:$0xff]  }
 0x309   :  { %v15964_v35 = vld [vmem:[#allocation6 + $0xbe4] ss:$40 sps:$4 sm:$0xff]  }
 0x30b   :  { %6758 = vmatpush1.bf16.msra.mxu1 %v15791_v21  ;;  %3712 = vmatpush1.bf16.msra.mxu0 %v15794_v38  ;;  %v15851_v21 = vld [vmem:[#allocation6 + $0x240] ss:$40 sps:$4 sm:$0xff]   ;;  %v15856_v38 = vld [vmem:[#allocation6 + $0x294] ss:$40 sps:$4 sm:$0xff]  }
 0x30c   :  { %6759 = vmatprep.subr.bf16.mxu1 %v15799_v41  ;;  %3713 = vmatprep.subr.bf16.mxu0 %v15802_v42  ;;  %v15970_v41 = vld [vmem:[#allocation6 + $0xc34] ss:$40 sps:$4 sm:$0xff]   ;;  %v15968_v42 = vld [vmem:[#allocation6 + $0xc30] ss:$40 sps:$4 sm:$0xff]  }
 0x30f   :  { %6760 = vmatpush1.bf16.msra.mxu1 %v15797_v44  ;;  %3714 = vmatpush1.bf16.msra.mxu0 %v15800_v45  ;;  %v15859_v44 = vld [vmem:[#allocation6 + $0x2e4] ss:$40 sps:$4 sm:$0xff]  }
 0x310   :  { %3715 = vmatprep.subr.bf16.mxu0 %v15805_v46  ;;  %6770 = vmatprep.subr.bf16.mxu1 %v15928_v4  ;;  %v15976_v45 = vld [vmem:[#allocation6 + $0xc84] ss:$40 sps:$4 sm:$0xff]   ;;  %v15974_v46 = vld [vmem:[#allocation6 + $0xc80] ss:$40 sps:$4 sm:$0xff]  }
 0x311   :  { %v15875_v4 = vld [vmem:[#allocation6 + $0x4c0] ss:$40 sps:$4 sm:$0xff]  }
 0x312   :  { %6762 = vmatmul.mubr.bf16.vlgmr.msra.gmra.mrb[4].mxu1 %v18101_v47 }
 0x313   :  { %3716 = vmatpush1.bf16.msra.mxu0 %v15803_v0  ;;  %6771 = vmatpush1.bf16.msra.mxu1 %v15926_v3  ;;  %v15862_v0 = vld [vmem:[#allocation6 + $0x334] ss:$40 sps:$4 sm:$0xff]   ;;  %v15877_v3 = vld [vmem:[#allocation6 + $0x4c4] ss:$40 sps:$4 sm:$0xff]  }
 0x314   :  { %3717 = vmatprep.subr.bf16.mxu0 %v15808_v5  ;;  %6772 = vmatprep.subr.bf16.mxu1 %v15934_v7  ;;  %v15982_v5 = vld [vmem:[#allocation6 + $0xcd4] ss:$40 sps:$4 sm:$0xff]   ;;  %v15878_v7 = vld [vmem:[#allocation6 + $0x510] ss:$40 sps:$4 sm:$0xff]  }
 0x317   :  { %3718 = vmatpush1.bf16.msra.mxu0 %v15806_v11  ;;  %6773 = vmatpush1.bf16.msra.mxu1 %v15932_v9  ;;  %v15980_v11 = vld [vmem:[#allocation6 + $0xcd0] ss:$40 sps:$4 sm:$0xff]   ;;  %v15881_v9 = vld [vmem:[#allocation6 + $0x560] ss:$40 sps:$4 sm:$0xff]  }
 0x318   :  { %3719 = vmatprep.subr.bf16.mxu0 %v15811_v49  ;;  %6774 = vmatprep.subr.bf16.mxu1 %v15940_v16  ;;  %v15860_v49 = vld [vmem:[#allocation6 + $0x330] ss:$40 sps:$4 sm:$0xff]   ;;  %v15889_v16 = vld [vmem:[#allocation6 + $0x604] ss:$40 sps:$4 sm:$0xff]  }
 0x31b   :  { %3720 = vmatpush1.bf16.msra.mxu0 %v15809_v30  ;;  %6775 = vmatpush1.bf16.msra.mxu1 %v15938_v17  ;;  %v15865_v30 = vld [vmem:[#allocation6 + $0x384] ss:$40 sps:$4 sm:$0xff]   ;;  %v15887_v17 = vld [vmem:[#allocation6 + $0x600] ss:$40 sps:$4 sm:$0xff]  }
 0x31c   :  { %3721 = vmatprep.subr.bf16.mxu0 %v15814_v50  ;;  %6776 = vmatprep.subr.bf16.mxu1 %v15946_v19  ;;  %v15988_v50 = vld [vmem:[#allocation6 + $0xd24] ss:$40 sps:$4 sm:$0xff]  }
 0x31d   :  { %v15895_v19 = vld [vmem:[#allocation6 + $0x6a4] ss:$40 sps:$4 sm:$0xff]  }
 0x31f   :  { %3722 = vmatpush1.bf16.msra.mxu0 %v15812_v51  ;;  %6777 = vmatpush1.bf16.msra.mxu1 %v15944_v22  ;;  %v15986_v51 = vld [vmem:[#allocation6 + $0xd20] ss:$40 sps:$4 sm:$0xff]  }
 0x320   :  { %3723 = vmatprep.subr.bf16.mxu0 %v15817_v52  ;;  %6778 = vmatprep.subr.bf16.mxu1 %v15952_v25  ;;  %v15863_v52 = vld [vmem:[#allocation6 + $0x380] ss:$40 sps:$4 sm:$0xff]   ;;  %v15896_v25 = vld [vmem:[#allocation6 + $0x6f0] ss:$40 sps:$4 sm:$0xff]  }
 0x321   :  { %v15893_v22 = vld [vmem:[#allocation6 + $0x6a0] ss:$40 sps:$4 sm:$0xff]  }
 0x323   :  { %3724 = vmatpush1.bf16.msra.mxu0 %v15815_v53  ;;  %6779 = vmatpush1.bf16.msra.mxu1 %v15950_v26  ;;  %v15868_v53 = vld [vmem:[#allocation6 + $0x3d4] ss:$40 sps:$4 sm:$0xff]   ;;  %v16010_v26 = vld [vmem:[#allocation6 + $0xe60] ss:$40 sps:$4 sm:$0xff]  }
 0x324   :  { %3725 = vmatprep.subr.bf16.mxu0 %v15820_v48  ;;  %6780 = vmatprep.subr.bf16.mxu1 %v15958_v29  ;;  %v15994_v48 = vld [vmem:[#allocation6 + $0xd74] ss:$40 sps:$4 sm:$0xff]   ;;  %v15899_v29 = vld [vmem:[#allocation6 + $0x740] ss:$40 sps:$4 sm:$0xff]  }
 0x327   :  { %3726 = vmatpush1.bf16.msra.mxu0 %v15818_v54  ;;  %6781 = vmatpush1.bf16.msra.mxu1 %v15956_v33  ;;  %v15992_v54 = vld [vmem:[#allocation6 + $0xd70] ss:$40 sps:$4 sm:$0xff]  }
 0x328   :  { %3727 = vmatprep.subr.bf16.mxu0 %v15823_v55  ;;  %6782 = vmatprep.subr.bf16.mxu1 %v15964_v35  ;;  %v15866_v55 = vld [vmem:[#allocation6 + $0x3d0] ss:$40 sps:$4 sm:$0xff]  }
 0x329   :  { %v16016_v33 = vld [vmem:[#allocation6 + $0xeb0] ss:$40 sps:$4 sm:$0xff]  }
 0x32a   :  { %v15902_v35 = vld [vmem:[#allocation6 + $0x790] ss:$40 sps:$4 sm:$0xff]  }
 0x32b   :  { %3728 = vmatpush1.bf16.msra.mxu0 %v15821_v56  ;;  %6783 = vmatpush1.bf16.msra.mxu1 %v15962_v15  ;;  %v15871_v56 = vld [vmem:[#allocation6 + $0x424] ss:$40 sps:$4 sm:$0xff]  }
 0x32c   :  { %3729 = vmatprep.subr.bf16.mxu0 %v15826_v57  ;;  %6784 = vmatprep.subr.bf16.mxu1 %v15970_v41  ;;  %v16000_v57 = vld [vmem:[#allocation6 + $0xdc4] ss:$40 sps:$4 sm:$0xff]   ;;  %v15908_v41 = vld [vmem:[#allocation6 + $0x830] ss:$40 sps:$4 sm:$0xff]  }
 0x32d   :  { %v15907_v15 = vld [vmem:[#allocation6 + $0x7e4] ss:$40 sps:$4 sm:$0xff]  }
 0x32f   :  { %3730 = vmatpush1.bf16.msra.mxu0 %v15824_v58  ;;  %6785 = vmatpush1.bf16.msra.mxu1 %v15968_v42  ;;  %v15998_v58 = vld [vmem:[#allocation6 + $0xdc0] ss:$40 sps:$4 sm:$0xff]   ;;  %v15913_v42 = vld [vmem:[#allocation6 + $0x884] ss:$40 sps:$4 sm:$0xff]  }
 0x330   :  { %3731 = vmatprep.subr.bf16.mxu0 %v15829_v59  ;;  %6786 = vmatprep.subr.bf16.mxu1 %v15976_v45  ;;  %v15869_v59 = vld [vmem:[#allocation6 + $0x420] ss:$40 sps:$4 sm:$0xff]   ;;  %v15914_v45 = vld [vmem:[#allocation6 + $0x8d0] ss:$40 sps:$4 sm:$0xff]  }
 0x333   :  { %3732 = vmatpush1.bf16.msra.mxu0 %v15827_v61  ;;  %6787 = vmatpush1.bf16.msra.mxu1 %v15974_v46  ;;  %v15874_v61 = vld [vmem:[#allocation6 + $0x474] ss:$40 sps:$4 sm:$0xff]   ;;  %v15919_v46 = vld [vmem:[#allocation6 + $0x924] ss:$40 sps:$4 sm:$0xff]  }
 0x334   :  { %6934 = vmatprep.subr.bf16.mxu0 %v15832_v62  ;;  %6788 = vmatprep.subr.bf16.mxu1 %v15982_v5  ;;  %v16006_v62 = vld [vmem:[#allocation6 + $0xe14] ss:$40 sps:$4 sm:$0xff]   ;;  %v15920_v5 = vld [vmem:[#allocation6 + $0x970] ss:$40 sps:$4 sm:$0xff]  }
 0x336   :  { %3734 = vmatmul.mubr.bf16.vlgmr.msra.gmra.mrb[4].mxu0 %v18052_v40  ;;  %v15839_v40 = vld [vmem:[#allocation6 + $0x100] ss:$40 sps:$4 sm:$0xff]  }
 0x337   :  { %6935 = vmatpush1.bf16.msra.mxu0 %v15830_v63  ;;  %6966 = vmatprep.mubr.bf16.mxu0 %v18084_v10  ;;  %v16004_v63 = vld [vmem:[#allocation6 + $0xe10] ss:$40 sps:$4 sm:$0xff]  }
 0x338   :  { %6936 = vmatprep.subr.bf16.mxu0 %v15835_v2  ;;  %6789 = vmatpush1.bf16.msra.mxu1 %v15980_v11  ;;  %v15872_v2 = vld [vmem:[#allocation6 + $0x470] ss:$40 sps:$4 sm:$0xff]   ;;  %v15925_v11 = vld [vmem:[#allocation6 + $0x9c4] ss:$40 sps:$4 sm:$0xff]  }
 0x339   :  { %6790 = vmatprep.subr.bf16.mxu1 %v15988_v50  ;;  %v15929_v50 = vld [vmem:[#allocation6 + $0xa10] ss:$40 sps:$4 sm:$0xff]  }
 0x33b   :  { %6937 = vmatpush1.bf16.msra.mxu0 %v15833_v6  ;;  %v15880_v6 = vld [vmem:[#allocation6 + $0x514] ss:$40 sps:$4 sm:$0xff]  }
 0x33c   :  { %6938 = vmatprep.subr.bf16.mxu0 %v15838_v8  ;;  %6791 = vmatpush1.bf16.msra.mxu1 %v15986_v51  ;;  %v15883_v8 = vld [vmem:[#allocation6 + $0x564] ss:$40 sps:$4 sm:$0xff]  }
 0x33d   :  { %6792 = vmatprep.subr.bf16.mxu1 %v15994_v48  ;;  %v15937_v51 = vld [vmem:[#allocation6 + $0xa64] ss:$40 sps:$4 sm:$0xff]   ;;  %v15941_v48 = vld [vmem:[#allocation6 + $0xab0] ss:$40 sps:$4 sm:$0xff]  }
 0x33f   :  { %6939 = vmatpush1.bf16.msra.mxu0 %v15836_v12  ;;  %v15886_v12 = vld [vmem:[#allocation6 + $0x5b4] ss:$40 sps:$4 sm:$0xff]  }
 0x340   :  { %6940 = vmatprep.subr.bf16.mxu0 %v15841_v14  ;;  %6793 = vmatpush1.bf16.msra.mxu1 %v15992_v54  ;;  %v15884_v14 = vld [vmem:[#allocation6 + $0x5b0] ss:$40 sps:$4 sm:$0xff]   ;;  %v15949_v54 = vld [vmem:[#allocation6 + $0xb04] ss:$40 sps:$4 sm:$0xff]  }
 0x341   :  { %6794 = vmatprep.subr.bf16.mxu1 %v16000_v57  ;;  %v15953_v57 = vld [vmem:[#allocation6 + $0xb50] ss:$40 sps:$4 sm:$0xff]  }
 0x343   :  { %6941 = vmatpush1.bf16.msra.mxu0 %v15839_v40  ;;  %v15892_v40 = vld [vmem:[#allocation6 + $0x654] ss:$40 sps:$4 sm:$0xff]  }
 0x344   :  { %6942 = vmatprep.subr.bf16.mxu0 %v15844_v18  ;;  %6795 = vmatpush1.bf16.msra.mxu1 %v15998_v58  ;;  %v15890_v18 = vld [vmem:[#allocation6 + $0x650] ss:$40 sps:$4 sm:$0xff]   ;;  %v15961_v58 = vld [vmem:[#allocation6 + $0xba4] ss:$40 sps:$4 sm:$0xff]  }
 0x345   :  { %6796 = vmatprep.subr.bf16.mxu1 %v16006_v62  ;;  %v15965_v62 = vld [vmem:[#allocation6 + $0xbf0] ss:$40 sps:$4 sm:$0xff]  }
 0x347   :  { %6943 = vmatpush1.bf16.msra.mxu0 %v15842_v23  ;;  %v15898_v23 = vld [vmem:[#allocation6 + $0x6f4] ss:$40 sps:$4 sm:$0xff]  }
 0x348   :  { %6944 = vmatprep.subr.bf16.mxu0 %v15847_v13  ;;  %6797 = vmatpush1.bf16.msra.mxu1 %v16004_v63  ;;  %v16012_v13 = vld [vmem:[#allocation6 + $0xe64] ss:$40 sps:$4 sm:$0xff]  }
 0x349   :  { %6798 = vmatprep.subr.bf16.mxu1 %v16012_v13  ;;  %v15973_v63 = vld [vmem:[#allocation6 + $0xc44] ss:$40 sps:$4 sm:$0xff]   ;;  %v16019_v13 = vld [vmem:[#allocation6 + $0xec0] ss:$40 sps:$4 sm:$0xff]  }
 0x34b   :  { %6945 = vmatpush1.bf16.msra.mxu0 %v15845_v27  ;;  %v15901_v27 = vld [vmem:[#allocation6 + $0x744] ss:$40 sps:$4 sm:$0xff]  }
 0x34c   :  { %6946 = vmatprep.subr.bf16.mxu0 %v15850_v32  ;;  %6799 = vmatpush1.bf16.msra.mxu1 %v16010_v26  ;;  %v16018_v32 = vld [vmem:[#allocation6 + $0xeb4] ss:$40 sps:$4 sm:$0xff]   ;;  %v18110_v26 = vsub.s32 4, %v18063_v60 }
 0x34d   :  { %6800 = vmatprep.subr.bf16.mxu1 %v16018_v32  ;;  %v17534_v32 = vld [vmem:[#allocation4] sm:$0x3f] }
 0x34f   :  { %6947 = vmatpush1.bf16.msra.mxu0 %v15848_v34  ;;  %v15904_v34 = vld [vmem:[#allocation6 + $0x794] ss:$40 sps:$4 sm:$0xff]  }
 0x350   :  { %6948 = vmatprep.subr.bf16.mxu0 %v15853_v37  ;;  %6801 = vmatpush1.bf16.msra.mxu1 %v16016_v33  ;;  %v16024_v37 = vld [vmem:[#allocation6 + $0xc] ss:$40 sps:$4 sm:$0xff]  }
 0x351   :  { %6811 = vmatprep.subr.bf16.mxu1 %v16024_v37 }
 0x353   :  { %6949 = vmatpush1.bf16.msra.mxu0 %v15851_v21  ;;  %v15905_v21 = vld [vmem:[#allocation6 + $0x7e0] ss:$40 sps:$4 sm:$0xff]  }
 0x354   :  { %6950 = vmatprep.subr.bf16.mxu0 %v15856_v38  ;;  %v15910_v38 = vld [vmem:[#allocation6 + $0x834] ss:$40 sps:$4 sm:$0xff]  }
 0x357   :  { %6951 = vmatpush1.bf16.msra.mxu0 %v15854_v43  ;;  %v15911_v43 = vld [vmem:[#allocation6 + $0x880] ss:$40 sps:$4 sm:$0xff]  }
 0x358   :  { %6952 = vmatprep.subr.bf16.mxu0 %v15859_v44  ;;  %v15916_v44 = vld [vmem:[#allocation6 + $0x8d4] ss:$40 sps:$4 sm:$0xff]  }
 0x35b   :  { %6953 = vmatpush1.bf16.msra.mxu0 %v15857_v28  ;;  %v15917_v28 = vld [vmem:[#allocation6 + $0x920] ss:$40 sps:$4 sm:$0xff]  }
 0x35c   :  { %6954 = vmatprep.subr.bf16.mxu0 %v15862_v0  ;;  %v15922_v0 = vld [vmem:[#allocation6 + $0x974] ss:$40 sps:$4 sm:$0xff]  }
 0x35f   :  { %6955 = vmatpush1.bf16.msra.mxu0 %v15860_v49  ;;  %v15923_v49 = vld [vmem:[#allocation6 + $0x9c0] ss:$40 sps:$4 sm:$0xff]  }
 0x360   :  { %6956 = vmatprep.subr.bf16.mxu0 %v15865_v30  ;;  %v15931_v30 = vld [vmem:[#allocation6 + $0xa14] ss:$40 sps:$4 sm:$0xff]  }
 0x363   :  { %6957 = vmatpush1.bf16.msra.mxu0 %v15863_v52  ;;  %v15935_v52 = vld [vmem:[#allocation6 + $0xa60] ss:$40 sps:$4 sm:$0xff]  }
 0x364   :  { %6958 = vmatprep.subr.bf16.mxu0 %v15868_v53  ;;  %v15943_v53 = vld [vmem:[#allocation6 + $0xab4] ss:$40 sps:$4 sm:$0xff]  }
 0x367   :  { %6959 = vmatpush1.bf16.msra.mxu0 %v15866_v55  ;;  %v15947_v55 = vld [vmem:[#allocation6 + $0xb00] ss:$40 sps:$4 sm:$0xff]  }
 0x368   :  { %6960 = vmatprep.subr.bf16.mxu0 %v15871_v56  ;;  %v15955_v56 = vld [vmem:[#allocation6 + $0xb54] ss:$40 sps:$4 sm:$0xff]  }
 0x36b   :  { %6961 = vmatpush1.bf16.msra.mxu0 %v15869_v59  ;;  %v15959_v59 = vld [vmem:[#allocation6 + $0xba0] ss:$40 sps:$4 sm:$0xff]  }
 0x36c   :  { %6962 = vmatprep.subr.bf16.mxu0 %v15874_v61  ;;  %v15967_v61 = vld [vmem:[#allocation6 + $0xbf4] ss:$40 sps:$4 sm:$0xff]  }
 0x36f   :  { %6963 = vmatpush1.bf16.msra.mxu0 %v15872_v2  ;;  %v15971_v2 = vld [vmem:[#allocation6 + $0xc40] ss:$40 sps:$4 sm:$0xff]  }
 0x370   :  { %6964 = vmatprep.subr.bf16.mxu0 %v15877_v3  ;;  %v15979_v3 = vld [vmem:[#allocation6 + $0xc94] ss:$40 sps:$4 sm:$0xff]  }
 0x373   :  { %6965 = vmatpush1.bf16.msra.mxu0 %v15875_v4  ;;  %v15977_v4 = vld [vmem:[#allocation6 + $0xc90] ss:$40 sps:$4 sm:$0xff]  }
 0x374   :  { %6975 = vmatprep.subr.bf16.mxu0 %v15880_v6  ;;  %v15985_v6 = vld [vmem:[#allocation6 + $0xce4] ss:$40 sps:$4 sm:$0xff]  }
 0x376   :  { %6967 = vmatmul.mubr.bf16.vlgmr.msra.gmra.mrb[8].mxu0 %v18086_v36 }
 0x377   :  { %6976 = vmatpush1.bf16.msra.mxu0 %v15878_v7  ;;  %7007 = vmatprep.mubr.bf16.mxu0 %v18089_v39  ;;  %v15983_v7 = vld [vmem:[#allocation6 + $0xce0] ss:$40 sps:$4 sm:$0xff]  }
 0x378   :  { %6977 = vmatprep.subr.bf16.mxu0 %v15883_v8  ;;  %v15991_v8 = vld [vmem:[#allocation6 + $0xd34] ss:$40 sps:$4 sm:$0xff]  }
 0x37b   :  { %6978 = vmatpush1.bf16.msra.mxu0 %v15881_v9  ;;  %v15989_v9 = vld [vmem:[#allocation6 + $0xd30] ss:$40 sps:$4 sm:$0xff]  }
 0x37c   :  { %6979 = vmatprep.subr.bf16.mxu0 %v15886_v12  ;;  %v15997_v12 = vld [vmem:[#allocation6 + $0xd84] ss:$40 sps:$4 sm:$0xff]  }
 0x37f   :  { %6980 = vmatpush1.bf16.msra.mxu0 %v15884_v14  ;;  %v15995_v14 = vld [vmem:[#allocation6 + $0xd80] ss:$40 sps:$4 sm:$0xff]  }
 0x380   :  { %6981 = vmatprep.subr.bf16.mxu0 %v15889_v16  ;;  %v16003_v16 = vld [vmem:[#allocation6 + $0xdd4] ss:$40 sps:$4 sm:$0xff]  }
 0x383   :  { %6982 = vmatpush1.bf16.msra.mxu0 %v15887_v17  ;;  %v16001_v17 = vld [vmem:[#allocation6 + $0xdd0] ss:$40 sps:$4 sm:$0xff]  }
 0x384   :  { %6983 = vmatprep.subr.bf16.mxu0 %v15892_v40  ;;  %v16009_v40 = vld [vmem:[#allocation6 + $0xe24] ss:$40 sps:$4 sm:$0xff]  }
 0x387   :  { %6984 = vmatpush1.bf16.msra.mxu0 %v15890_v18  ;;  %v16007_v18 = vld [vmem:[#allocation6 + $0xe20] ss:$40 sps:$4 sm:$0xff]  }
 0x388   :  { %6985 = vmatprep.subr.bf16.mxu0 %v15895_v19  ;;  %v16015_v19 = vld [vmem:[#allocation6 + $0xe74] ss:$40 sps:$4 sm:$0xff]  }
 0x38b   :  { %6986 = vmatpush1.bf16.msra.mxu0 %v15893_v22  ;;  %v16013_v22 = vld [vmem:[#allocation6 + $0xe70] ss:$40 sps:$4 sm:$0xff]  }
 0x38c   :  { %6987 = vmatprep.subr.bf16.mxu0 %v15898_v23  ;;  %v16021_v23 = vld [vmem:[#allocation6 + $0xec4] ss:$40 sps:$4 sm:$0xff]  }
 0x38f   :  { %6988 = vmatpush1.bf16.msra.mxu0 %v15896_v25  ;;  %v16027_v25 = vld [vmem:[#allocation6 + $0x24] ss:$40 sps:$4 sm:$0xff]  }
 0x390   :  { %6989 = vmatprep.subr.bf16.mxu0 %v15901_v27  ;;  %v18113_v27 = vsub.s32 5, %v18063_v60 }
 0x392   :  { %v685_v33 = vrot.slane %v17534_v32, %v18113_v27 }
 0x393   :  { %6990 = vmatpush1.bf16.msra.mxu0 %v15899_v29  ;;  %v681_v29 = vrot.slane %v17534_v32, %v18110_v26  ;;  %v16082_v32 = vld [vmem:[#allocation6 + $0x328] ss:$40 sps:$4 sm:$0xff]  }
 0x394   :  { %6991 = vmatprep.subr.bf16.mxu0 %v15904_v34 }
 0x397   :  { %6992 = vmatpush1.bf16.msra.mxu0 %v15902_v35 }
 0x398   :  { %6993 = vmatprep.subr.bf16.mxu0 %v15907_v15 }
 0x39b   :  { %6994 = vmatpush1.bf16.msra.mxu0 %v15905_v21 }
 0x39c   :  { %6995 = vmatprep.subr.bf16.mxu0 %v15910_v38 }
 0x39f   :  { %6996 = vmatpush1.bf16.msra.mxu0 %v15908_v41 }
 0x3a0   :  { %6997 = vmatprep.subr.bf16.mxu0 %v15913_v42 }
 0x3a3   :  { %6998 = vmatpush1.bf16.msra.mxu0 %v15911_v43 }
 0x3a4   :  { %6999 = vmatprep.subr.bf16.mxu0 %v15916_v44  ;;  %v16022_v44 = vld [vmem:[#allocation6 + $0x8] ss:$40 sps:$4 sm:$0xff]  }
 0x3a7   :  { %7000 = vmatpush1.bf16.msra.mxu0 %v15914_v45  ;;  %v16025_v45 = vld [vmem:[#allocation6 + $0x20] ss:$40 sps:$4 sm:$0xff]  }
 0x3a8   :  { %7001 = vmatprep.subr.bf16.mxu0 %v15919_v46 }
 0x3ab   :  { %7002 = vmatpush1.bf16.msra.mxu0 %v15917_v28  ;;  %v16030_v28 = vld [vmem:[#allocation6 + $0x5c] ss:$40 sps:$4 sm:$0xff]  }
 0x3ac   :  { %7003 = vmatprep.subr.bf16.mxu0 %v15922_v0  ;;  %v16033_v0 = vld [vmem:[#allocation6 + $0x74] ss:$40 sps:$4 sm:$0xff]  }
 0x3af   :  { %7004 = vmatpush1.bf16.msra.mxu0 %v15920_v5  ;;  %v16028_v5 = vld [vmem:[#allocation6 + $0x58] ss:$40 sps:$4 sm:$0xff]  }
 0x3b0   :  { %7005 = vmatprep.subr.bf16.mxu0 %v15925_v11  ;;  %v16031_v11 = vld [vmem:[#allocation6 + $0x70] ss:$40 sps:$4 sm:$0xff]  }
 0x3b3   :  { %7006 = vmatpush1.bf16.msra.mxu0 %v15923_v49  ;;  %v16036_v49 = vld [vmem:[#allocation6 + $0xac] ss:$40 sps:$4 sm:$0xff]  }
 0x3b4   :  { %7016 = vmatprep.subr.bf16.mxu0 %v15931_v30  ;;  %v16039_v30 = vld [vmem:[#allocation6 + $0xc4] ss:$40 sps:$4 sm:$0xff]  }
 0x3b6   :  { %7008 = vmatmul.mubr.bf16.vlgmr.msra.gmra.mrb[8].mxu0 %v18101_v47 }
 0x3b7   :  { %7017 = vmatpush1.bf16.msra.mxu0 %v15929_v50  ;;  %v16034_v50 = vld [vmem:[#allocation6 + $0xa8] ss:$40 sps:$4 sm:$0xff]  }
 0x3b8   :  { %7018 = vmatprep.subr.bf16.mxu0 %v15937_v51  ;;  %v16037_v51 = vld [vmem:[#allocation6 + $0xc0] ss:$40 sps:$4 sm:$0xff]  }
 0x3bb   :  { %7019 = vmatpush1.bf16.msra.mxu0 %v15935_v52  ;;  %v16042_v52 = vld [vmem:[#allocation6 + $0xfc] ss:$40 sps:$4 sm:$0xff]  }
 0x3bc   :  { %7020 = vmatprep.subr.bf16.mxu0 %v15943_v53  ;;  %v16045_v53 = vld [vmem:[#allocation6 + $0x114] ss:$40 sps:$4 sm:$0xff]  }
 0x3bf   :  { %7021 = vmatpush1.bf16.msra.mxu0 %v15941_v48  ;;  %v16040_v48 = vld [vmem:[#allocation6 + $0xf8] ss:$40 sps:$4 sm:$0xff]  }
 0x3c0   :  { %7022 = vmatprep.subr.bf16.mxu0 %v15949_v54  ;;  %v16043_v54 = vld [vmem:[#allocation6 + $0x110] ss:$40 sps:$4 sm:$0xff]  }
 0x3c3   :  { %7023 = vmatpush1.bf16.msra.mxu0 %v15947_v55  ;;  %v16048_v55 = vld [vmem:[#allocation6 + $0x14c] ss:$40 sps:$4 sm:$0xff]  }
 0x3c4   :  { %7024 = vmatprep.subr.bf16.mxu0 %v15955_v56  ;;  %v16051_v56 = vld [vmem:[#allocation6 + $0x164] ss:$40 sps:$4 sm:$0xff]  }
 0x3c7   :  { %7025 = vmatpush1.bf16.msra.mxu0 %v15953_v57  ;;  %v16046_v57 = vld [vmem:[#allocation6 + $0x148] ss:$40 sps:$4 sm:$0xff]  }
 0x3c8   :  { %7026 = vmatprep.subr.bf16.mxu0 %v15961_v58  ;;  %v16049_v58 = vld [vmem:[#allocation6 + $0x160] ss:$40 sps:$4 sm:$0xff]  }
 0x3cb   :  { %7027 = vmatpush1.bf16.msra.mxu0 %v15959_v59  ;;  %v16054_v59 = vld [vmem:[#allocation6 + $0x19c] ss:$40 sps:$4 sm:$0xff]  }
 0x3cc   :  { %7028 = vmatprep.subr.bf16.mxu0 %v15967_v61  ;;  %v16057_v61 = vld [vmem:[#allocation6 + $0x1b4] ss:$40 sps:$4 sm:$0xff]  }
 0x3cf   :  { %7029 = vmatpush1.bf16.msra.mxu0 %v15965_v62  ;;  %v16052_v62 = vld [vmem:[#allocation6 + $0x198] ss:$40 sps:$4 sm:$0xff]  }
 0x3d0   :  { %7030 = vmatprep.subr.bf16.mxu0 %v15973_v63  ;;  %v16055_v63 = vld [vmem:[#allocation6 + $0x1b0] ss:$40 sps:$4 sm:$0xff]  }
 0x3d3   :  { %7031 = vmatpush1.bf16.msra.mxu0 %v15971_v2  ;;  %v16060_v2 = vld [vmem:[#allocation6 + $0x1ec] ss:$40 sps:$4 sm:$0xff]  }
 0x3d4   :  { %7032 = vmatprep.subr.bf16.mxu0 %v15979_v3  ;;  %v16063_v3 = vld [vmem:[#allocation6 + $0x204] ss:$40 sps:$4 sm:$0xff]  }
 0x3d7   :  { %7033 = vmatpush1.bf16.msra.mxu0 %v15977_v4  ;;  %v16058_v4 = vld [vmem:[#allocation6 + $0x1e8] ss:$40 sps:$4 sm:$0xff]  }
 0x3d8   :  { %7034 = vmatprep.subr.bf16.mxu0 %v15985_v6  ;;  %v16061_v6 = vld [vmem:[#allocation6 + $0x200] ss:$40 sps:$4 sm:$0xff]  }
 0x3db   :  { %7035 = vmatpush1.bf16.msra.mxu0 %v15983_v7  ;;  %v16066_v7 = vld [vmem:[#allocation6 + $0x23c] ss:$40 sps:$4 sm:$0xff]  }
 0x3dc   :  { %7036 = vmatprep.subr.bf16.mxu0 %v15991_v8  ;;  %v16069_v8 = vld [vmem:[#allocation6 + $0x254] ss:$40 sps:$4 sm:$0xff]  }
 0x3df   :  { %7037 = vmatpush1.bf16.msra.mxu0 %v15989_v9  ;;  %v16064_v9 = vld [vmem:[#allocation6 + $0x238] ss:$40 sps:$4 sm:$0xff]  }
 0x3e0   :  { %7038 = vmatprep.subr.bf16.mxu0 %v15997_v12  ;;  %v16067_v12 = vld [vmem:[#allocation6 + $0x250] ss:$40 sps:$4 sm:$0xff]  }
 0x3e3   :  { %7039 = vmatpush1.bf16.msra.mxu0 %v15995_v14  ;;  %v16072_v14 = vld [vmem:[#allocation6 + $0x28c] ss:$40 sps:$4 sm:$0xff]  }
 0x3e4   :  { %7040 = vmatprep.subr.bf16.mxu0 %v16003_v16  ;;  %v16075_v16 = vld [vmem:[#allocation6 + $0x2a4] ss:$40 sps:$4 sm:$0xff]  }
 0x3e7   :  { %7041 = vmatpush1.bf16.msra.mxu0 %v16001_v17  ;;  %v16070_v17 = vld [vmem:[#allocation6 + $0x288] ss:$40 sps:$4 sm:$0xff]  }
 0x3e8   :  { %7042 = vmatprep.subr.bf16.mxu0 %v16009_v40  ;;  %v16073_v40 = vld [vmem:[#allocation6 + $0x2a0] ss:$40 sps:$4 sm:$0xff]  }
 0x3eb   :  { %7043 = vmatpush1.bf16.msra.mxu0 %v16007_v18  ;;  %v16078_v18 = vld [vmem:[#allocation6 + $0x2dc] ss:$40 sps:$4 sm:$0xff]  }
 0x3ec   :  { %7044 = vmatprep.subr.bf16.mxu0 %v16015_v19  ;;  %v16081_v19 = vld [vmem:[#allocation6 + $0x2f4] ss:$40 sps:$4 sm:$0xff]  }
 0x3ef   :  { %7045 = vmatpush1.bf16.msra.mxu0 %v16013_v22  ;;  %v16076_v22 = vld [vmem:[#allocation6 + $0x2d8] ss:$40 sps:$4 sm:$0xff]  }
 0x3f0   :  { %7046 = vmatprep.subr.bf16.mxu0 %v16021_v23  ;;  %v16079_v23 = vld [vmem:[#allocation6 + $0x2f0] ss:$40 sps:$4 sm:$0xff]  }
 0x3f3   :  { %7047 = vmatpush1.bf16.msra.mxu0 %v16019_v13  ;;  %v16084_v13 = vld [vmem:[#allocation6 + $0x32c] ss:$40 sps:$4 sm:$0xff]  }
 0x3f4   :  { %7180 = vmatprep.subr.bf16.mxu0 %v16027_v25  ;;  %v16087_v25 = vld [vmem:[#allocation6 + $0x344] ss:$40 sps:$4 sm:$0xff]  }
 0x409   :  { %v3735_v34 = vpop.f32.mrb[4].mxu0 }
 0x40a   :  { %v14820_v37 = vadd.f32 %v3735_v34, %v681_v29  ;;  %v3737_v35 = vpop.f32.mrb[5].mxu0  ;;  %v16085_v29 = vld [vmem:[#allocation6 + $0x340] ss:$40 sps:$4 sm:$0xff]   ;;  %v16093_v34 = vld [vmem:[#allocation6 + $0x394] ss:$40 sps:$4 sm:$0xff]  }
 0x40b   :  { %v14821_v15 = vadd.f32 %v3737_v35, %v685_v33  ;;  %v3739_v21 = vpop.f32.mrb[6].mxu0  ;;  %v16090_v33 = vld [vmem:[#allocation6 + $0x37c] ss:$40 sps:$4 sm:$0xff]   ;;  %v16091_v35 = vld [vmem:[#allocation6 + $0x390] ss:$40 sps:$4 sm:$0xff]  }
 0x40c   :  { %v3746_v38 = vmax.f32 %v14820_v37, 0.0  ;;  %v3740_v41 = vpop.f32.mrb[7].mxu0  ;;  %v16088_v37 = vld [vmem:[#allocation6 + $0x378] ss:$40 sps:$4 sm:$0xff]   ;;  %v16099_v21 = vld [vmem:[#allocation6 + $0x3e4] ss:$40 sps:$4 sm:$0xff]  }
 0x40d   :  { %v3747_v42 = vmax.f32 %v14821_v15, 0.0  ;;  %v16096_v15 = vld [vmem:[#allocation6 + $0x3cc] ss:$40 sps:$4 sm:$0xff]   ;;  %v16097_v41 = vld [vmem:[#allocation6 + $0x3e0] ss:$40 sps:$4 sm:$0xff]  }
 0x40e   :  { %v18119_v46 = vpack.c.bf16 %v3746_v38, %v3746_v38  ;;  %v16094_v38 = vld [vmem:[#allocation6 + $0x3c8] ss:$40 sps:$4 sm:$0xff]  }
 0x40f   :  { %v18117_v43 = vpack.c.bf16 %v3747_v42, %v3747_v42  ;;  %v16102_v42 = vld [vmem:[#allocation6 + $0x41c] ss:$40 sps:$4 sm:$0xff]  }
 0x411   :  { %6802 = vmatprep.mubr.bf16.mxu1 %v18117_v43  ;;  %7048 = vmatprep.mubr.bf16.mxu0 %v18117_v43 }
 0x412   :  { %6803 = vmatmul.mubr.bf16.vlgmr.msra.gmra.mrb[4].mxu1 %v18119_v46  ;;  %7049 = vmatmul.mubr.bf16.vlgmr.msra.gmra.mrb[8].mxu0 %v18119_v46 }
 0x413   :  { %6812 = vmatpush1.bf16.msra.mxu1 %v16022_v44  ;;  %7181 = vmatpush1.bf16.msra.mxu0 %v16025_v45  ;;  %v16105_v44 = vld [vmem:[#allocation6 + $0x434] ss:$40 sps:$4 sm:$0xff]   ;;  %v16100_v45 = vld [vmem:[#allocation6 + $0x418] ss:$40 sps:$4 sm:$0xff]  }
 0x414   :  { %6843 = vmatprep.mubr.bf16.mxu1 %v18084_v10  ;;  %7212 = vmatprep.mubr.bf16.mxu0 %v18084_v10 }
 0x415   :  { %6813 = vmatprep.subr.bf16.mxu1 %v16030_v28  ;;  %7182 = vmatprep.subr.bf16.mxu0 %v16033_v0  ;;  %v16103_v28 = vld [vmem:[#allocation6 + $0x430] ss:$40 sps:$4 sm:$0xff]   ;;  %v16108_v0 = vld [vmem:[#allocation6 + $0x46c] ss:$40 sps:$4 sm:$0xff]  }
 0x417   :  { %6814 = vmatpush1.bf16.msra.mxu1 %v16028_v5  ;;  %7183 = vmatpush1.bf16.msra.mxu0 %v16031_v11  ;;  %v16111_v5 = vld [vmem:[#allocation6 + $0x484] ss:$40 sps:$4 sm:$0xff]   ;;  %v16106_v11 = vld [vmem:[#allocation6 + $0x468] ss:$40 sps:$4 sm:$0xff]  }
 0x418   :  { %6815 = vmatprep.subr.bf16.mxu1 %v16036_v49  ;;  %7184 = vmatprep.subr.bf16.mxu0 %v16039_v30  ;;  %v16109_v49 = vld [vmem:[#allocation6 + $0x480] ss:$40 sps:$4 sm:$0xff]   ;;  %v16114_v30 = vld [vmem:[#allocation6 + $0x4bc] ss:$40 sps:$4 sm:$0xff]  }
 0x41b   :  { %6816 = vmatpush1.bf16.msra.mxu1 %v16034_v50  ;;  %7185 = vmatpush1.bf16.msra.mxu0 %v16037_v51  ;;  %v16117_v50 = vld [vmem:[#allocation6 + $0x4d4] ss:$40 sps:$4 sm:$0xff]   ;;  %v16112_v51 = vld [vmem:[#allocation6 + $0x4b8] ss:$40 sps:$4 sm:$0xff]  }
 0x41c   :  { %6817 = vmatprep.subr.bf16.mxu1 %v16042_v52  ;;  %7186 = vmatprep.subr.bf16.mxu0 %v16045_v53  ;;  %v16115_v52 = vld [vmem:[#allocation6 + $0x4d0] ss:$40 sps:$4 sm:$0xff]   ;;  %v16120_v53 = vld [vmem:[#allocation6 + $0x50c] ss:$40 sps:$4 sm:$0xff]  }
 0x41f   :  { %6818 = vmatpush1.bf16.msra.mxu1 %v16040_v48  ;;  %7187 = vmatpush1.bf16.msra.mxu0 %v16043_v54  ;;  %v16123_v48 = vld [vmem:[#allocation6 + $0x524] ss:$40 sps:$4 sm:$0xff]   ;;  %v16118_v54 = vld [vmem:[#allocation6 + $0x508] ss:$40 sps:$4 sm:$0xff]  }
 0x420   :  { %6819 = vmatprep.subr.bf16.mxu1 %v16048_v55  ;;  %7188 = vmatprep.subr.bf16.mxu0 %v16051_v56  ;;  %v16121_v55 = vld [vmem:[#allocation6 + $0x520] ss:$40 sps:$4 sm:$0xff]   ;;  %v16126_v56 = vld [vmem:[#allocation6 + $0x55c] ss:$40 sps:$4 sm:$0xff]  }
 0x423   :  { %6820 = vmatpush1.bf16.msra.mxu1 %v16046_v57  ;;  %7189 = vmatpush1.bf16.msra.mxu0 %v16049_v58  ;;  %v16129_v57 = vld [vmem:[#allocation6 + $0x574] ss:$40 sps:$4 sm:$0xff]   ;;  %v16124_v58 = vld [vmem:[#allocation6 + $0x558] ss:$40 sps:$4 sm:$0xff]  }
 0x424   :  { %6821 = vmatprep.subr.bf16.mxu1 %v16054_v59  ;;  %7190 = vmatprep.subr.bf16.mxu0 %v16057_v61  ;;  %v16127_v59 = vld [vmem:[#allocation6 + $0x570] ss:$40 sps:$4 sm:$0xff]   ;;  %v16132_v61 = vld [vmem:[#allocation6 + $0x5ac] ss:$40 sps:$4 sm:$0xff]  }
 0x427   :  { %6822 = vmatpush1.bf16.msra.mxu1 %v16052_v62  ;;  %7191 = vmatpush1.bf16.msra.mxu0 %v16055_v63  ;;  %v16135_v62 = vld [vmem:[#allocation6 + $0x5c4] ss:$40 sps:$4 sm:$0xff]   ;;  %v16130_v63 = vld [vmem:[#allocation6 + $0x5a8] ss:$40 sps:$4 sm:$0xff]  }
 0x428   :  { %6823 = vmatprep.subr.bf16.mxu1 %v16060_v2  ;;  %7192 = vmatprep.subr.bf16.mxu0 %v16063_v3  ;;  %v16133_v2 = vld [vmem:[#allocation6 + $0x5c0] ss:$40 sps:$4 sm:$0xff]   ;;  %v16138_v3 = vld [vmem:[#allocation6 + $0x5fc] ss:$40 sps:$4 sm:$0xff]  }
 0x42b   :  { %6824 = vmatpush1.bf16.msra.mxu1 %v16058_v4  ;;  %7193 = vmatpush1.bf16.msra.mxu0 %v16061_v6  ;;  %v16141_v4 = vld [vmem:[#allocation6 + $0x614] ss:$40 sps:$4 sm:$0xff]   ;;  %v16136_v6 = vld [vmem:[#allocation6 + $0x5f8] ss:$40 sps:$4 sm:$0xff]  }
 0x42c   :  { %6825 = vmatprep.subr.bf16.mxu1 %v16066_v7  ;;  %7194 = vmatprep.subr.bf16.mxu0 %v16069_v8  ;;  %v16139_v7 = vld [vmem:[#allocation6 + $0x610] ss:$40 sps:$4 sm:$0xff]   ;;  %v16144_v8 = vld [vmem:[#allocation6 + $0x64c] ss:$40 sps:$4 sm:$0xff]  }
 0x42f   :  { %6826 = vmatpush1.bf16.msra.mxu1 %v16064_v9  ;;  %7195 = vmatpush1.bf16.msra.mxu0 %v16067_v12  ;;  %v16147_v9 = vld [vmem:[#allocation6 + $0x664] ss:$40 sps:$4 sm:$0xff]   ;;  %v16142_v12 = vld [vmem:[#allocation6 + $0x648] ss:$40 sps:$4 sm:$0xff]  }
 0x430   :  { %6827 = vmatprep.subr.bf16.mxu1 %v16072_v14  ;;  %7196 = vmatprep.subr.bf16.mxu0 %v16075_v16  ;;  %v16145_v14 = vld [vmem:[#allocation6 + $0x660] ss:$40 sps:$4 sm:$0xff]   ;;  %v16150_v16 = vld [vmem:[#allocation6 + $0x69c] ss:$40 sps:$4 sm:$0xff]  }
 0x433   :  { %6828 = vmatpush1.bf16.msra.mxu1 %v16070_v17  ;;  %7197 = vmatpush1.bf16.msra.mxu0 %v16073_v40  ;;  %v16153_v17 = vld [vmem:[#allocation6 + $0x6b4] ss:$40 sps:$4 sm:$0xff]   ;;  %v16148_v40 = vld [vmem:[#allocation6 + $0x698] ss:$40 sps:$4 sm:$0xff]  }
 0x434   :  { %6829 = vmatprep.subr.bf16.mxu1 %v16078_v18  ;;  %7198 = vmatprep.subr.bf16.mxu0 %v16081_v19  ;;  %v16151_v18 = vld [vmem:[#allocation6 + $0x6b0] ss:$40 sps:$4 sm:$0xff]   ;;  %v16156_v19 = vld [vmem:[#allocation6 + $0x6ec] ss:$40 sps:$4 sm:$0xff]  }
 0x437   :  { %6830 = vmatpush1.bf16.msra.mxu1 %v16076_v22  ;;  %7199 = vmatpush1.bf16.msra.mxu0 %v16079_v23  ;;  %v16159_v22 = vld [vmem:[#allocation6 + $0x704] ss:$40 sps:$4 sm:$0xff]   ;;  %v16154_v23 = vld [vmem:[#allocation6 + $0x6e8] ss:$40 sps:$4 sm:$0xff]  }
 0x438   :  { %6831 = vmatprep.subr.bf16.mxu1 %v16084_v13  ;;  %7200 = vmatprep.subr.bf16.mxu0 %v16087_v25  ;;  %v16157_v13 = vld [vmem:[#allocation6 + $0x700] ss:$40 sps:$4 sm:$0xff]   ;;  %v16162_v25 = vld [vmem:[#allocation6 + $0x73c] ss:$40 sps:$4 sm:$0xff]  }
 0x43b   :  { %6832 = vmatpush1.bf16.msra.mxu1 %v16082_v32  ;;  %7201 = vmatpush1.bf16.msra.mxu0 %v16085_v29  ;;  %v16165_v32 = vld [vmem:[#allocation6 + $0x754] ss:$40 sps:$4 sm:$0xff]   ;;  %v16160_v29 = vld [vmem:[#allocation6 + $0x738] ss:$40 sps:$4 sm:$0xff]  }
 0x43c   :  { %6833 = vmatprep.subr.bf16.mxu1 %v16090_v33  ;;  %7202 = vmatprep.subr.bf16.mxu0 %v16093_v34  ;;  %v16163_v33 = vld [vmem:[#allocation6 + $0x750] ss:$40 sps:$4 sm:$0xff]   ;;  %v16168_v34 = vld [vmem:[#allocation6 + $0x78c] ss:$40 sps:$4 sm:$0xff]  }
 0x43f   :  { %6834 = vmatpush1.bf16.msra.mxu1 %v16088_v37  ;;  %7203 = vmatpush1.bf16.msra.mxu0 %v16091_v35  ;;  %v16171_v37 = vld [vmem:[#allocation6 + $0x7a4] ss:$40 sps:$4 sm:$0xff]   ;;  %v16166_v35 = vld [vmem:[#allocation6 + $0x788] ss:$40 sps:$4 sm:$0xff]  }
 0x440   :  { %6835 = vmatprep.subr.bf16.mxu1 %v16096_v15  ;;  %7204 = vmatprep.subr.bf16.mxu0 %v16099_v21  ;;  %v16169_v15 = vld [vmem:[#allocation6 + $0x7a0] ss:$40 sps:$4 sm:$0xff]   ;;  %v16174_v21 = vld [vmem:[#allocation6 + $0x7dc] ss:$40 sps:$4 sm:$0xff]  }
 0x443   :  { %6836 = vmatpush1.bf16.msra.mxu1 %v16094_v38  ;;  %7205 = vmatpush1.bf16.msra.mxu0 %v16097_v41  ;;  %v16177_v38 = vld [vmem:[#allocation6 + $0x7f4] ss:$40 sps:$4 sm:$0xff]   ;;  %v16172_v41 = vld [vmem:[#allocation6 + $0x7d8] ss:$40 sps:$4 sm:$0xff]  }
 0x444   :  { %6837 = vmatprep.subr.bf16.mxu1 %v16102_v42  ;;  %7206 = vmatprep.subr.bf16.mxu0 %v16105_v44  ;;  %v16175_v42 = vld [vmem:[#allocation6 + $0x7f0] ss:$40 sps:$4 sm:$0xff]   ;;  %v16180_v44 = vld [vmem:[#allocation6 + $0x82c] ss:$40 sps:$4 sm:$0xff]  }
 0x447   :  { %6838 = vmatpush1.bf16.msra.mxu1 %v16100_v45  ;;  %7207 = vmatpush1.bf16.msra.mxu0 %v16103_v28  ;;  %v16183_v45 = vld [vmem:[#allocation6 + $0x844] ss:$40 sps:$4 sm:$0xff]   ;;  %v16178_v28 = vld [vmem:[#allocation6 + $0x828] ss:$40 sps:$4 sm:$0xff]  }
 0x448   :  { %6839 = vmatprep.subr.bf16.mxu1 %v16108_v0  ;;  %7208 = vmatprep.subr.bf16.mxu0 %v16111_v5  ;;  %v16181_v0 = vld [vmem:[#allocation6 + $0x840] ss:$40 sps:$4 sm:$0xff]   ;;  %v16186_v5 = vld [vmem:[#allocation6 + $0x87c] ss:$40 sps:$4 sm:$0xff]  }
 0x44b   :  { %6840 = vmatpush1.bf16.msra.mxu1 %v16106_v11  ;;  %7209 = vmatpush1.bf16.msra.mxu0 %v16109_v49  ;;  %v16189_v11 = vld [vmem:[#allocation6 + $0x894] ss:$40 sps:$4 sm:$0xff]   ;;  %v16184_v49 = vld [vmem:[#allocation6 + $0x878] ss:$40 sps:$4 sm:$0xff]  }
 0x44c   :  { %6841 = vmatprep.subr.bf16.mxu1 %v16114_v30  ;;  %7210 = vmatprep.subr.bf16.mxu0 %v16117_v50  ;;  %v16187_v30 = vld [vmem:[#allocation6 + $0x890] ss:$40 sps:$4 sm:$0xff]   ;;  %v16192_v50 = vld [vmem:[#allocation6 + $0x8cc] ss:$40 sps:$4 sm:$0xff]  }
 0x44f   :  { %6842 = vmatpush1.bf16.msra.mxu1 %v16112_v51  ;;  %7211 = vmatpush1.bf16.msra.mxu0 %v16115_v52  ;;  %v16195_v51 = vld [vmem:[#allocation6 + $0x8e4] ss:$40 sps:$4 sm:$0xff]   ;;  %v16190_v52 = vld [vmem:[#allocation6 + $0x8c8] ss:$40 sps:$4 sm:$0xff]  }
 0x450   :  { %6852 = vmatprep.subr.bf16.mxu1 %v16120_v53  ;;  %7221 = vmatprep.subr.bf16.mxu0 %v16123_v48  ;;  %v16193_v53 = vld [vmem:[#allocation6 + $0x8e0] ss:$40 sps:$4 sm:$0xff]   ;;  %v16198_v48 = vld [vmem:[#allocation6 + $0x91c] ss:$40 sps:$4 sm:$0xff]  }
 0x452   :  { %6844 = vmatmul.mubr.bf16.vlgmr.msra.gmra.mrb[8].mxu1 %v18086_v36  ;;  %7213 = vmatmul.mubr.bf16.vlgmr.msra.gmra.mrb[12].mxu0 %v18086_v36 }
 0x453   :  { %6853 = vmatpush1.bf16.msra.mxu1 %v16118_v54  ;;  %6884 = vmatprep.mubr.bf16.mxu1 %v18089_v39  ;;  %v16201_v54 = vld [vmem:[#allocation6 + $0x934] ss:$40 sps:$4 sm:$0xff]  }
 0x454   :  { %7222 = vmatpush1.bf16.msra.mxu0 %v16121_v55  ;;  %7253 = vmatprep.mubr.bf16.mxu0 %v18089_v39  ;;  %v16196_v55 = vld [vmem:[#allocation6 + $0x918] ss:$40 sps:$4 sm:$0xff]  }
 0x455   :  { %6854 = vmatprep.subr.bf16.mxu1 %v16126_v56  ;;  %7223 = vmatprep.subr.bf16.mxu0 %v16129_v57  ;;  %v16199_v56 = vld [vmem:[#allocation6 + $0x930] ss:$40 sps:$4 sm:$0xff]   ;;  %v16204_v57 = vld [vmem:[#allocation6 + $0x96c] ss:$40 sps:$4 sm:$0xff]  }
 0x457   :  { %6855 = vmatpush1.bf16.msra.mxu1 %v16124_v58  ;;  %v16207_v58 = vld [vmem:[#allocation6 + $0x984] ss:$40 sps:$4 sm:$0xff]  }
 0x458   :  { %7224 = vmatpush1.bf16.msra.mxu0 %v16127_v59  ;;  %6856 = vmatprep.subr.bf16.mxu1 %v16132_v61  ;;  %v16202_v59 = vld [vmem:[#allocation6 + $0x968] ss:$40 sps:$4 sm:$0xff]  }
 0x459   :  { %7225 = vmatprep.subr.bf16.mxu0 %v16135_v62  ;;  %v16205_v61 = vld [vmem:[#allocation6 + $0x980] ss:$40 sps:$4 sm:$0xff]   ;;  %v16210_v62 = vld [vmem:[#allocation6 + $0x9bc] ss:$40 sps:$4 sm:$0xff]  }
 0x45b   :  { %6857 = vmatpush1.bf16.msra.mxu1 %v16130_v63  ;;  %v16213_v63 = vld [vmem:[#allocation6 + $0x9d4] ss:$40 sps:$4 sm:$0xff]  }
 0x45c   :  { %7226 = vmatpush1.bf16.msra.mxu0 %v16133_v2  ;;  %6858 = vmatprep.subr.bf16.mxu1 %v16138_v3  ;;  %v16208_v2 = vld [vmem:[#allocation6 + $0x9b8] ss:$40 sps:$4 sm:$0xff]  }
 0x45d   :  { %7227 = vmatprep.subr.bf16.mxu0 %v16141_v4  ;;  %v16211_v3 = vld [vmem:[#allocation6 + $0x9d0] ss:$40 sps:$4 sm:$0xff]   ;;  %v16216_v4 = vld [vmem:[#allocation6 + $0xa0c] ss:$40 sps:$4 sm:$0xff]  }
 0x45f   :  { %6859 = vmatpush1.bf16.msra.mxu1 %v16136_v6  ;;  %v16219_v6 = vld [vmem:[#allocation6 + $0xa24] ss:$40 sps:$4 sm:$0xff]  }
 0x460   :  { %7228 = vmatpush1.bf16.msra.mxu0 %v16139_v7  ;;  %6860 = vmatprep.subr.bf16.mxu1 %v16144_v8  ;;  %v16214_v7 = vld [vmem:[#allocation6 + $0xa08] ss:$40 sps:$4 sm:$0xff]  }
 0x461   :  { %7229 = vmatprep.subr.bf16.mxu0 %v16147_v9  ;;  %v16217_v8 = vld [vmem:[#allocation6 + $0xa20] ss:$40 sps:$4 sm:$0xff]   ;;  %v16222_v9 = vld [vmem:[#allocation6 + $0xa5c] ss:$40 sps:$4 sm:$0xff]  }
 0x463   :  { %6861 = vmatpush1.bf16.msra.mxu1 %v16142_v12  ;;  %v16225_v12 = vld [vmem:[#allocation6 + $0xa74] ss:$40 sps:$4 sm:$0xff]  }
 0x464   :  { %7230 = vmatpush1.bf16.msra.mxu0 %v16145_v14  ;;  %6862 = vmatprep.subr.bf16.mxu1 %v16150_v16  ;;  %v16220_v14 = vld [vmem:[#allocation6 + $0xa58] ss:$40 sps:$4 sm:$0xff]  }
 0x465   :  { %7231 = vmatprep.subr.bf16.mxu0 %v16153_v17  ;;  %v16223_v16 = vld [vmem:[#allocation6 + $0xa70] ss:$40 sps:$4 sm:$0xff]   ;;  %v16228_v17 = vld [vmem:[#allocation6 + $0xaac] ss:$40 sps:$4 sm:$0xff]  }
 0x467   :  { %6863 = vmatpush1.bf16.msra.mxu1 %v16148_v40  ;;  %v16231_v40 = vld [vmem:[#allocation6 + $0xac4] ss:$40 sps:$4 sm:$0xff]  }
 0x468   :  { %7232 = vmatpush1.bf16.msra.mxu0 %v16151_v18  ;;  %6864 = vmatprep.subr.bf16.mxu1 %v16156_v19  ;;  %v16226_v18 = vld [vmem:[#allocation6 + $0xaa8] ss:$40 sps:$4 sm:$0xff]  }
 0x469   :  { %7233 = vmatprep.subr.bf16.mxu0 %v16159_v22  ;;  %v16229_v19 = vld [vmem:[#allocation6 + $0xac0] ss:$40 sps:$4 sm:$0xff]   ;;  %v16234_v22 = vld [vmem:[#allocation6 + $0xafc] ss:$40 sps:$4 sm:$0xff]  }
 0x46b   :  { %6865 = vmatpush1.bf16.msra.mxu1 %v16154_v23  ;;  %v16237_v23 = vld [vmem:[#allocation6 + $0xb14] ss:$40 sps:$4 sm:$0xff]  }
 0x46c   :  { %7234 = vmatpush1.bf16.msra.mxu0 %v16157_v13  ;;  %6866 = vmatprep.subr.bf16.mxu1 %v16162_v25  ;;  %v16232_v13 = vld [vmem:[#allocation6 + $0xaf8] ss:$40 sps:$4 sm:$0xff]  }
 0x46d   :  { %7235 = vmatprep.subr.bf16.mxu0 %v16165_v32  ;;  %v16235_v25 = vld [vmem:[#allocation6 + $0xb10] ss:$40 sps:$4 sm:$0xff]   ;;  %v16240_v32 = vld [vmem:[#allocation6 + $0xb4c] ss:$40 sps:$4 sm:$0xff]  }
 0x46f   :  { %6867 = vmatpush1.bf16.msra.mxu1 %v16160_v29  ;;  %v16243_v29 = vld [vmem:[#allocation6 + $0xb64] ss:$40 sps:$4 sm:$0xff]  }
 0x470   :  { %7236 = vmatpush1.bf16.msra.mxu0 %v16163_v33  ;;  %6868 = vmatprep.subr.bf16.mxu1 %v16168_v34  ;;  %v16238_v33 = vld [vmem:[#allocation6 + $0xb48] ss:$40 sps:$4 sm:$0xff]  }
 0x471   :  { %7237 = vmatprep.subr.bf16.mxu0 %v16171_v37  ;;  %v16241_v34 = vld [vmem:[#allocation6 + $0xb60] ss:$40 sps:$4 sm:$0xff]   ;;  %v16246_v37 = vld [vmem:[#allocation6 + $0xb9c] ss:$40 sps:$4 sm:$0xff]  }
 0x473   :  { %6869 = vmatpush1.bf16.msra.mxu1 %v16166_v35  ;;  %v16249_v35 = vld [vmem:[#allocation6 + $0xbb4] ss:$40 sps:$4 sm:$0xff]  }
 0x474   :  { %7238 = vmatpush1.bf16.msra.mxu0 %v16169_v15  ;;  %6870 = vmatprep.subr.bf16.mxu1 %v16174_v21  ;;  %v16244_v15 = vld [vmem:[#allocation6 + $0xb98] ss:$40 sps:$4 sm:$0xff]  }
 0x475   :  { %7239 = vmatprep.subr.bf16.mxu0 %v16177_v38  ;;  %v16247_v21 = vld [vmem:[#allocation6 + $0xbb0] ss:$40 sps:$4 sm:$0xff]   ;;  %v16252_v38 = vld [vmem:[#allocation6 + $0xbec] ss:$40 sps:$4 sm:$0xff]  }
 0x477   :  { %6871 = vmatpush1.bf16.msra.mxu1 %v16172_v41  ;;  %v16255_v41 = vld [vmem:[#allocation6 + $0xc04] ss:$40 sps:$4 sm:$0xff]  }
 0x478   :  { %7240 = vmatpush1.bf16.msra.mxu0 %v16175_v42  ;;  %6872 = vmatprep.subr.bf16.mxu1 %v16180_v44  ;;  %v16250_v42 = vld [vmem:[#allocation6 + $0xbe8] ss:$40 sps:$4 sm:$0xff]  }
 0x479   :  { %7241 = vmatprep.subr.bf16.mxu0 %v16183_v45  ;;  %v16253_v44 = vld [vmem:[#allocation6 + $0xc00] ss:$40 sps:$4 sm:$0xff]   ;;  %v16258_v45 = vld [vmem:[#allocation6 + $0xc3c] ss:$40 sps:$4 sm:$0xff]  }
 0x47b   :  { %6873 = vmatpush1.bf16.msra.mxu1 %v16178_v28  ;;  %v16261_v28 = vld [vmem:[#allocation6 + $0xc54] ss:$40 sps:$4 sm:$0xff]  }
 0x47c   :  { %7242 = vmatpush1.bf16.msra.mxu0 %v16181_v0  ;;  %6874 = vmatprep.subr.bf16.mxu1 %v16186_v5  ;;  %v16256_v0 = vld [vmem:[#allocation6 + $0xc38] ss:$40 sps:$4 sm:$0xff]  }
 0x47d   :  { %7243 = vmatprep.subr.bf16.mxu0 %v16189_v11  ;;  %v16259_v5 = vld [vmem:[#allocation6 + $0xc50] ss:$40 sps:$4 sm:$0xff]   ;;  %v16264_v11 = vld [vmem:[#allocation6 + $0xc8c] ss:$40 sps:$4 sm:$0xff]  }
 0x47f   :  { %6875 = vmatpush1.bf16.msra.mxu1 %v16184_v49  ;;  %v16267_v49 = vld [vmem:[#allocation6 + $0xca4] ss:$40 sps:$4 sm:$0xff]  }
 0x480   :  { %7244 = vmatpush1.bf16.msra.mxu0 %v16187_v30  ;;  %6876 = vmatprep.subr.bf16.mxu1 %v16192_v50  ;;  %v16262_v30 = vld [vmem:[#allocation6 + $0xc88] ss:$40 sps:$4 sm:$0xff]  }
 0x481   :  { %7245 = vmatprep.subr.bf16.mxu0 %v16195_v51  ;;  %v16265_v50 = vld [vmem:[#allocation6 + $0xca0] ss:$40 sps:$4 sm:$0xff]   ;;  %v16270_v51 = vld [vmem:[#allocation6 + $0xcdc] ss:$40 sps:$4 sm:$0xff]  }
 0x483   :  { %6877 = vmatpush1.bf16.msra.mxu1 %v16190_v52  ;;  %v16273_v52 = vld [vmem:[#allocation6 + $0xcf4] ss:$40 sps:$4 sm:$0xff]  }
 0x484   :  { %7246 = vmatpush1.bf16.msra.mxu0 %v16193_v53  ;;  %6878 = vmatprep.subr.bf16.mxu1 %v16198_v48  ;;  %v16268_v53 = vld [vmem:[#allocation6 + $0xcd8] ss:$40 sps:$4 sm:$0xff]  }
 0x485   :  { %7247 = vmatprep.subr.bf16.mxu0 %v16201_v54  ;;  %v16271_v48 = vld [vmem:[#allocation6 + $0xcf0] ss:$40 sps:$4 sm:$0xff]   ;;  %v16276_v54 = vld [vmem:[#allocation6 + $0xd2c] ss:$40 sps:$4 sm:$0xff]  }
 0x487   :  { %6879 = vmatpush1.bf16.msra.mxu1 %v16196_v55  ;;  %v16279_v55 = vld [vmem:[#allocation6 + $0xd44] ss:$40 sps:$4 sm:$0xff]  }
 0x488   :  { %7248 = vmatpush1.bf16.msra.mxu0 %v16199_v56  ;;  %6880 = vmatprep.subr.bf16.mxu1 %v16204_v57  ;;  %v16274_v56 = vld [vmem:[#allocation6 + $0xd28] ss:$40 sps:$4 sm:$0xff]  }
 0x489   :  { %7249 = vmatprep.subr.bf16.mxu0 %v16207_v58  ;;  %v16277_v57 = vld [vmem:[#allocation6 + $0xd40] ss:$40 sps:$4 sm:$0xff]   ;;  %v16282_v58 = vld [vmem:[#allocation6 + $0xd7c] ss:$40 sps:$4 sm:$0xff]  }
 0x48b   :  { %6881 = vmatpush1.bf16.msra.mxu1 %v16202_v59  ;;  %v16285_v59 = vld [vmem:[#allocation6 + $0xd94] ss:$40 sps:$4 sm:$0xff]  }
 0x48c   :  { %7250 = vmatpush1.bf16.msra.mxu0 %v16205_v61  ;;  %6882 = vmatprep.subr.bf16.mxu1 %v16210_v62  ;;  %v16280_v61 = vld [vmem:[#allocation6 + $0xd78] ss:$40 sps:$4 sm:$0xff]  }
 0x48d   :  { %7251 = vmatprep.subr.bf16.mxu0 %v16213_v63  ;;  %v16283_v62 = vld [vmem:[#allocation6 + $0xd90] ss:$40 sps:$4 sm:$0xff]   ;;  %v16288_v63 = vld [vmem:[#allocation6 + $0xdcc] ss:$40 sps:$4 sm:$0xff]  }
 0x48f   :  { %6883 = vmatpush1.bf16.msra.mxu1 %v16208_v2  ;;  %v16291_v2 = vld [vmem:[#allocation6 + $0xde4] ss:$40 sps:$4 sm:$0xff]  }
 0x490   :  { %7252 = vmatpush1.bf16.msra.mxu0 %v16211_v3  ;;  %6893 = vmatprep.subr.bf16.mxu1 %v16216_v4  ;;  %v16286_v3 = vld [vmem:[#allocation6 + $0xdc8] ss:$40 sps:$4 sm:$0xff]  }
 0x491   :  { %7262 = vmatprep.subr.bf16.mxu0 %v16219_v6  ;;  %v16289_v4 = vld [vmem:[#allocation6 + $0xde0] ss:$40 sps:$4 sm:$0xff]   ;;  %v16294_v6 = vld [vmem:[#allocation6 + $0xe1c] ss:$40 sps:$4 sm:$0xff]  }
 0x492   :  { %6885 = vmatmul.mubr.bf16.vlgmr.msra.gmra.mrb[8].mxu1 %v18101_v47 }
 0x493   :  { %7254 = vmatmul.mubr.bf16.vlgmr.msra.gmra.mrb[12].mxu0 %v18101_v47  ;;  %6894 = vmatpush1.bf16.msra.mxu1 %v16214_v7  ;;  %v16297_v7 = vld [vmem:[#allocation6 + $0xe34] ss:$40 sps:$4 sm:$0xff]  }
 0x494   :  { %6925 = vmatprep.mubr.bf16.mxu1 %v18117_v43  ;;  %7263 = vmatpush1.bf16.msra.mxu0 %v16217_v8  ;;  %v16292_v8 = vld [vmem:[#allocation6 + $0xe18] ss:$40 sps:$4 sm:$0xff]  }
 0x495   :  { %7294 = vmatprep.mubr.bf16.mxu0 %v18117_v43  ;;  %6895 = vmatprep.subr.bf16.mxu1 %v16222_v9  ;;  %v16295_v9 = vld [vmem:[#allocation6 + $0xe30] ss:$40 sps:$4 sm:$0xff]  }
 0x496   :  { %7264 = vmatprep.subr.bf16.mxu0 %v16225_v12  ;;  %v16300_v12 = vld [vmem:[#allocation6 + $0xe6c] ss:$40 sps:$4 sm:$0xff]  }
 0x497   :  { %6896 = vmatpush1.bf16.msra.mxu1 %v16220_v14  ;;  %v16303_v14 = vld [vmem:[#allocation6 + $0xe84] ss:$40 sps:$4 sm:$0xff]  }
 0x498   :  { %7265 = vmatpush1.bf16.msra.mxu0 %v16223_v16  ;;  %6897 = vmatprep.subr.bf16.mxu1 %v16228_v17  ;;  %v16298_v16 = vld [vmem:[#allocation6 + $0xe68] ss:$40 sps:$4 sm:$0xff]  }
 0x499   :  { %7266 = vmatprep.subr.bf16.mxu0 %v16231_v40  ;;  %v16301_v17 = vld [vmem:[#allocation6 + $0xe80] ss:$40 sps:$4 sm:$0xff]   ;;  %v16306_v40 = vld [vmem:[#allocation6 + $0xebc] ss:$40 sps:$4 sm:$0xff]  }
 0x49b   :  { %6898 = vmatpush1.bf16.msra.mxu1 %v16226_v18  ;;  %v16309_v18 = vld [vmem:[#allocation6 + $0xed4] ss:$40 sps:$4 sm:$0xff]  }
 0x49c   :  { %7267 = vmatpush1.bf16.msra.mxu0 %v16229_v19  ;;  %6899 = vmatprep.subr.bf16.mxu1 %v16234_v22  ;;  %v16304_v19 = vld [vmem:[#allocation6 + $0xeb8] ss:$40 sps:$4 sm:$0xff]  }
 0x49d   :  { %7268 = vmatprep.subr.bf16.mxu0 %v16237_v23  ;;  %v16307_v22 = vld [vmem:[#allocation6 + $0xed0] ss:$40 sps:$4 sm:$0xff]   ;;  %v16312_v23 = vld [vmem:[#allocation6 + $0x1c] ss:$40 sps:$4 sm:$0xff]  }
 0x49f   :  { %6900 = vmatpush1.bf16.msra.mxu1 %v16232_v13  ;;  %v16315_v13 = vld [vmem:[#allocation9 + $0xc] ss:$16 sps:$4 sm:$0xff]  }
 0x4a0   :  { %7269 = vmatpush1.bf16.msra.mxu0 %v16235_v25  ;;  %6901 = vmatprep.subr.bf16.mxu1 %v16240_v32  ;;  %v16310_v25 = vld [vmem:[#allocation6 + $0x18] ss:$40 sps:$4 sm:$0xff]  }
 0x4a1   :  { %7270 = vmatprep.subr.bf16.mxu0 %v16243_v29  ;;  %v16313_v32 = vld [vmem:[#allocation9 + $0x8] ss:$16 sps:$4 sm:$0xff]  }
 0x4a2   :  { %v16318_v29 = vld [vmem:[#allocation6 + $0x6c] ss:$40 sps:$4 sm:$0xff]  }
 0x4a3   :  { %6902 = vmatpush1.bf16.msra.mxu1 %v16238_v33  ;;  %v16321_v33 = vld [vmem:[#allocation9 + $0x2c] ss:$16 sps:$4 sm:$0xff]  }
 0x4a4   :  { %7271 = vmatpush1.bf16.msra.mxu0 %v16241_v34  ;;  %6903 = vmatprep.subr.bf16.mxu1 %v16246_v37  ;;  %v16316_v34 = vld [vmem:[#allocation6 + $0x68] ss:$40 sps:$4 sm:$0xff]  }
 0x4a5   :  { %7272 = vmatprep.subr.bf16.mxu0 %v16249_v35  ;;  %v16319_v37 = vld [vmem:[#allocation9 + $0x28] ss:$16 sps:$4 sm:$0xff]  }
 0x4a6   :  { %v16324_v35 = vld [vmem:[#allocation6 + $0xbc] ss:$40 sps:$4 sm:$0xff]  }
 0x4a7   :  { %6904 = vmatpush1.bf16.msra.mxu1 %v16244_v15  ;;  %v16327_v15 = vld [vmem:[#allocation9 + $0x4c] ss:$16 sps:$4 sm:$0xff]  }
 0x4a8   :  { %7273 = vmatpush1.bf16.msra.mxu0 %v16247_v21  ;;  %6905 = vmatprep.subr.bf16.mxu1 %v16252_v38  ;;  %v16322_v21 = vld [vmem:[#allocation6 + $0xb8] ss:$40 sps:$4 sm:$0xff]  }
 0x4a9   :  { %7274 = vmatprep.subr.bf16.mxu0 %v16255_v41  ;;  %v16325_v38 = vld [vmem:[#allocation9 + $0x48] ss:$16 sps:$4 sm:$0xff]  }
 0x4aa   :  { %v16330_v41 = vld [vmem:[#allocation6 + $0x10c] ss:$40 sps:$4 sm:$0xff]  }
 0x4ab   :  { %6906 = vmatpush1.bf16.msra.mxu1 %v16250_v42  ;;  %v16333_v42 = vld [vmem:[#allocation9 + $0x6c] ss:$16 sps:$4 sm:$0xff]  }
 0x4ac   :  { %7275 = vmatpush1.bf16.msra.mxu0 %v16253_v44  ;;  %6907 = vmatprep.subr.bf16.mxu1 %v16258_v45  ;;  %v16328_v44 = vld [vmem:[#allocation6 + $0x108] ss:$40 sps:$4 sm:$0xff]  }
 0x4ad   :  { %7276 = vmatprep.subr.bf16.mxu0 %v16261_v28  ;;  %v16331_v45 = vld [vmem:[#allocation9 + $0x68] ss:$16 sps:$4 sm:$0xff]   ;;  %v16339_v28 = vld [vmem:[#allocation9 + $0x8c] ss:$16 sps:$4 sm:$0xff]  }
 0x4af   :  { %6908 = vmatpush1.bf16.msra.mxu1 %v16256_v0  ;;  %v16334_v0 = vld [vmem:[#allocation6 + $0x158] ss:$40 sps:$4 sm:$0xff]  }
 0x4b0   :  { %7277 = vmatpush1.bf16.msra.mxu0 %v16259_v5  ;;  %6909 = vmatprep.subr.bf16.mxu1 %v16264_v11  ;;  %v16337_v5 = vld [vmem:[#allocation9 + $0x88] ss:$16 sps:$4 sm:$0xff]  }
 0x4b1   :  { %7278 = vmatprep.subr.bf16.mxu0 %v16267_v49  ;;  %v18138_v11 = vld [vmem:[#allocation7] sm:$0xff]  ;;  %v16342_v49 = vld [vmem:[#allocation6 + $0x1ac] ss:$40 sps:$4 sm:$0xff]  }
 0x4b3   :  { %6910 = vmatpush1.bf16.msra.mxu1 %v16262_v30  ;;  %v16345_v30 = vld [vmem:[#allocation9 + $0xac] ss:$16 sps:$4 sm:$0xff]  }
 0x4b4   :  { %7279 = vmatpush1.bf16.msra.mxu0 %v16265_v50  ;;  %6911 = vmatprep.subr.bf16.mxu1 %v16270_v51  ;;  %v4241_v50 = vrot.slane %v18138_v11, %v18068_v20  ;;  %v16340_v51 = vld [vmem:[#allocation6 + $0x1a8] ss:$40 sps:$4 sm:$0xff]  }
 0x4b5   :  { %7280 = vmatprep.subr.bf16.mxu0 %v16273_v52  ;;  %v4245_v52 = vrot.slane %v18138_v11, %v18071_v24 }
 0x4b7   :  { %6912 = vmatpush1.bf16.msra.mxu1 %v16268_v53  ;;  %v16343_v53 = vld [vmem:[#allocation9 + $0xa8] ss:$16 sps:$4 sm:$0xff]  }
 0x4b8   :  { %7281 = vmatpush1.bf16.msra.mxu0 %v16271_v48  ;;  %6913 = vmatprep.subr.bf16.mxu1 %v16276_v54  ;;  %v16348_v48 = vld [vmem:[#allocation6 + $0x1fc] ss:$40 sps:$4 sm:$0xff]  }
 0x4b9   :  { %7282 = vmatprep.subr.bf16.mxu0 %v16279_v55 }
 0x4bb   :  { %6914 = vmatpush1.bf16.msra.mxu1 %v16274_v56  ;;  %v16351_v56 = vld [vmem:[#allocation9 + $0xcc] ss:$16 sps:$4 sm:$0xff]  }
 0x4bc   :  { %7283 = vmatpush1.bf16.msra.mxu0 %v16277_v57  ;;  %6915 = vmatprep.subr.bf16.mxu1 %v16282_v58 }
 0x4bd   :  { %7284 = vmatprep.subr.bf16.mxu0 %v16285_v59 }
 0x4bf   :  { %6916 = vmatpush1.bf16.msra.mxu1 %v16280_v61 }
 0x4c0   :  { %7285 = vmatpush1.bf16.msra.mxu0 %v16283_v62  ;;  %6917 = vmatprep.subr.bf16.mxu1 %v16288_v63 }
 0x4c1   :  { %7286 = vmatprep.subr.bf16.mxu0 %v16291_v2  ;;  %v16346_v2 = vld [vmem:[#allocation6 + $0x1f8] ss:$40 sps:$4 sm:$0xff]  }
 0x4c3   :  { %6918 = vmatpush1.bf16.msra.mxu1 %v16286_v3 }
 0x4c4   :  { %7287 = vmatpush1.bf16.msra.mxu0 %v16289_v4  ;;  %6919 = vmatprep.subr.bf16.mxu1 %v16294_v6  ;;  %v16349_v6 = vld [vmem:[#allocation9 + $0xc8] ss:$16 sps:$4 sm:$0xff]  }
 0x4c5   :  { %7288 = vmatprep.subr.bf16.mxu0 %v16297_v7  ;;  %v16354_v7 = vld [vmem:[#allocation6 + $0x24c] ss:$40 sps:$4 sm:$0xff]  }
 0x4c7   :  { %6920 = vmatpush1.bf16.msra.mxu1 %v16292_v8 }
 0x4c8   :  { %7289 = vmatpush1.bf16.msra.mxu0 %v16295_v9  ;;  %6921 = vmatprep.subr.bf16.mxu1 %v16300_v12  ;;  %v16357_v9 = vld [vmem:[#allocation9 + $0xec] ss:$16 sps:$4 sm:$0xff]  }
 0x4c9   :  { %7290 = vmatprep.subr.bf16.mxu0 %v16303_v14  ;;  %v16352_v14 = vld [vmem:[#allocation6 + $0x248] ss:$40 sps:$4 sm:$0xff]  }
 0x4cb   :  { %6922 = vmatpush1.bf16.msra.mxu1 %v16298_v16  ;;  %v16355_v16 = vld [vmem:[#allocation9 + $0xe8] ss:$16 sps:$4 sm:$0xff]  }
 0x4cc   :  { %7291 = vmatpush1.bf16.msra.mxu0 %v16301_v17  ;;  %6923 = vmatprep.subr.bf16.mxu1 %v16306_v40  ;;  %v16360_v17 = vld [vmem:[#allocation6 + $0x29c] ss:$40 sps:$4 sm:$0xff]  }
 0x4cd   :  { %7292 = vmatprep.subr.bf16.mxu0 %v16309_v18  ;;  %v16363_v40 = vld [vmem:[#allocation9 + $0x10c] ss:$16 sps:$4 sm:$0xff]  }
 0x4ce   :  { %v16358_v18 = vld [vmem:[#allocation6 + $0x298] ss:$40 sps:$4 sm:$0xff]  }
 0x4cf   :  { %6924 = vmatpush1.bf16.msra.mxu1 %v16304_v19  ;;  %v16361_v19 = vld [vmem:[#allocation9 + $0x108] ss:$16 sps:$4 sm:$0xff]  }
 0x4d0   :  { %7293 = vmatpush1.bf16.msra.mxu0 %v16307_v22  ;;  %7057 = vmatprep.subr.bf16.mxu1 %v16312_v23  ;;  %v16366_v22 = vld [vmem:[#allocation6 + $0x2ec] ss:$40 sps:$4 sm:$0xff]  }
 0x4d1   :  { %9530 = vmatprep.subr.bf16.mxu0 %v16315_v13  ;;  %v16369_v23 = vld [vmem:[#allocation9 + $0x12c] ss:$16 sps:$4 sm:$0xff]  }
 0x4d2   :  { %6926 = vmatmul.mubr.bf16.vlgmr.msra.gmra.mrb[8].mxu1 %v18119_v46  ;;  %v16364_v13 = vld [vmem:[#allocation6 + $0x2e8] ss:$40 sps:$4 sm:$0xff]  }
 0x4d3   :  { %7295 = vmatmul.mubr.bf16.vlgmr.msra.gmra.mrb[12].mxu0 %v18119_v46  ;;  %7058 = vmatpush1.bf16.msra.mxu1 %v16310_v25  ;;  %v16367_v25 = vld [vmem:[#allocation9 + $0x128] ss:$16 sps:$4 sm:$0xff]  }
 0x4d4   :  { %7089 = vmatprep.mubr.bf16.mxu1 %v18084_v10  ;;  %9531 = vmatpush1.bf16.msra.mxu0 %v16313_v32  ;;  %v16336_v10 = vld [vmem:[#allocation6 + $0x15c] ss:$40 sps:$4 sm:$0xff]  }
 0x4d5   :  { %7059 = vmatprep.subr.bf16.mxu1 %v16318_v29  ;;  %9532 = vmatprep.subr.bf16.mxu0 %v16321_v33  ;;  %v16372_v32 = vld [vmem:[#allocation6 + $0x33c] ss:$40 sps:$4 sm:$0xff]  }
 0x4d6   :  { %v16375_v29 = vld [vmem:[#allocation9 + $0x14c] ss:$16 sps:$4 sm:$0xff]  }
 0x4d7   :  { %7060 = vmatpush1.bf16.msra.mxu1 %v16316_v34 }
 0x4d8   :  { %9533 = vmatpush1.bf16.msra.mxu0 %v16319_v37  ;;  %7061 = vmatprep.subr.bf16.mxu1 %v16324_v35  ;;  %v16370_v37 = vld [vmem:[#allocation6 + $0x338] ss:$40 sps:$4 sm:$0xff]  }
 0x4d9   :  { %9534 = vmatprep.subr.bf16.mxu0 %v16327_v15  ;;  %v16373_v35 = vld [vmem:[#allocation9 + $0x148] ss:$16 sps:$4 sm:$0xff]  }
 0x4da   :  { %v16378_v15 = vld [vmem:[#allocation6 + $0x38c] ss:$40 sps:$4 sm:$0xff]  }
 0x4db   :  { %7062 = vmatpush1.bf16.msra.mxu1 %v16322_v21 }
 0x4dc   :  { %9535 = vmatpush1.bf16.msra.mxu0 %v16325_v38  ;;  %7063 = vmatprep.subr.bf16.mxu1 %v16330_v41  ;;  %v16381_v38 = vld [vmem:[#allocation9 + $0x16c] ss:$16 sps:$4 sm:$0xff]  }
 0x4dd   :  { %9536 = vmatprep.subr.bf16.mxu0 %v16333_v42  ;;  %v16376_v41 = vld [vmem:[#allocation6 + $0x388] ss:$40 sps:$4 sm:$0xff]  }
 0x4df   :  { %7064 = vmatpush1.bf16.msra.mxu1 %v16328_v44  ;;  %v16379_v44 = vld [vmem:[#allocation9 + $0x168] ss:$16 sps:$4 sm:$0xff]  }
 0x4e0   :  { %9537 = vmatpush1.bf16.msra.mxu0 %v16331_v45  ;;  %7065 = vmatprep.subr.bf16.mxu1 %v16336_v10  ;;  %v16384_v45 = vld [vmem:[#allocation6 + $0x3dc] ss:$40 sps:$4 sm:$0xff]  }
 0x4e1   :  { %9538 = vmatprep.subr.bf16.mxu0 %v16339_v28  ;;  %v16387_v10 = vld [vmem:[#allocation9 + $0x18c] ss:$16 sps:$4 sm:$0xff]  }
 0x4e2   :  { %v16382_v28 = vld [vmem:[#allocation6 + $0x3d8] ss:$40 sps:$4 sm:$0xff]  }
 0x4e3   :  { %7066 = vmatpush1.bf16.msra.mxu1 %v16334_v0  ;;  %v16385_v0 = vld [vmem:[#allocation9 + $0x188] ss:$16 sps:$4 sm:$0xff]  }
 0x4e4   :  { %9539 = vmatpush1.bf16.msra.mxu0 %v16337_v5  ;;  %7067 = vmatprep.subr.bf16.mxu1 %v16342_v49  ;;  %v16390_v5 = vld [vmem:[#allocation6 + $0x42c] ss:$40 sps:$4 sm:$0xff]  }
 0x4e5   :  { %v6804_v54 = vpop.f32.mrb[4].mxu1  ;;  %v18144_v55 = vpop.f32.mrb[8].mxu0  ;;  %9540 = vmatprep.subr.bf16.mxu0 %v16345_v30  ;;  %v17535_v49 = vld [vmem:[%s18296_s0] sm:$0xff] }
 0x4e6   :  { %v6806_v57 = vpop.f32.mrb[5].mxu1  ;;  %v18146_v58 = vpop.f32.mrb[9].mxu0  ;;  %v14822_v59 = vadd.f32 %v6804_v54, %v4241_v50  ;;  %v171_v30 = vunpack.c.h.bf16 %v17535_v49  ;;  %v16393_v50 = vld [vmem:[#allocation9 + $0x1ac] ss:$16 sps:$4 sm:$0xff]  }
 0x4e7   :  { %v14823_v61 = vadd.f32 %v6806_v57, %v4245_v52  ;;  %7068 = vmatpush1.bf16.msra.mxu1 %v16340_v51  ;;  %v6808_v62 = vpop.f32.mrb[6].mxu1  ;;  %v7054_v63 = vpop.f32.mrb[10].mxu0  ;;  %v16388_v52 = vld [vmem:[#allocation6 + $0x428] ss:$40 sps:$4 sm:$0xff]   ;;  %v16396_v54 = vld [vmem:[#allocation6 + $0x47c] ss:$40 sps:$4 sm:$0xff]  }
 0x4e8   :  { %9541 = vmatpush1.bf16.msra.mxu0 %v16343_v53  ;;  %v6809_v3 = vpop.f32.mrb[7].mxu1  ;;  %v7055_v4 = vpop.f32.mrb[11].mxu0  ;;  %7069 = vmatprep.subr.bf16.mxu1 %v16348_v48  ;;  %v13975_v12 = vmul.f32 -1.442695, %v14822_v59  ;;  %v16391_v53 = vld [vmem:[#allocation9 + $0x1a8] ss:$16 sps:$4 sm:$0xff]  }
 0x4e9   :  { %v13976_v8 = vmul.f32 -1.442695, %v14823_v61  ;;  %9542 = vmatprep.subr.bf16.mxu0 %v16351_v56  ;;  %v16399_v56 = vld [vmem:[#allocation9 + $0x1cc] ss:$16 sps:$4 sm:$0xff]   ;;  %v16397_v61 = vld [vmem:[#allocation9 + $0x1c8] ss:$16 sps:$4 sm:$0xff]  }
 0x4ea   :  { %v16394_v59 = vld [vmem:[#allocation6 + $0x478] ss:$40 sps:$4 sm:$0xff]   ;;  %v16402_v62 = vld [vmem:[#allocation6 + $0x4cc] ss:$40 sps:$4 sm:$0xff]   ;;  %v16400_v4 = vld [vmem:[#allocation6 + $0x4c8] ss:$40 sps:$4 sm:$0xff]  }
 0x4eb   :  { %7070 = vmatpush1.bf16.msra.mxu1 %v16346_v2  ;;  %17494 = vpow2.f32 %v13976_v8  ;;  %v16405_v63 = vld [vmem:[#allocation9 + $0x1ec] ss:$16 sps:$4 sm:$0xff]   ;;  %v170_v2 = vunpack.c.l.bf16 %v17535_v49 }
 0x4ec   :  { %9543 = vmatpush1.bf16.msra.mxu0 %v16349_v6  ;;  %7071 = vmatprep.subr.bf16.mxu1 %v16354_v7  ;;  %17496 = vpow2.f32 %v13975_v12  ;;  %v16403_v6 = vld [vmem:[#allocation9 + $0x1e8] ss:$16 sps:$4 sm:$0xff]  }
 0x4ed   :  { %9544 = vmatprep.subr.bf16.mxu0 %v16357_v9  ;;  %v16408_v7 = vld [vmem:[#allocation6 + $0x51c] ss:$40 sps:$4 sm:$0xff]   ;;  %v16406_v12 = vld [vmem:[#allocation6 + $0x518] ss:$40 sps:$4 sm:$0xff]  }
 0x4ee   :  { %v16498_v9 = vld [vmem:[#allocation9 + $0x20c] ss:$16 sps:$4 sm:$0xff]  }
 0x4ef   :  { %7072 = vmatpush1.bf16.msra.mxu1 %v16352_v14  ;;  %v16411_v14 = vld [vmem:[#allocation6 + $0x56c] ss:$40 sps:$4 sm:$0xff]   ;;  %v16432_v49 = vld [vmem:[#allocation6 + $0x79c] ss:$40 sps:$4 sm:$0xff]  }
 0x4f0   :  { %9545 = vmatpush1.bf16.msra.mxu0 %v16355_v16  ;;  %7073 = vmatprep.subr.bf16.mxu1 %v16360_v17  ;;  %v16496_v17 = vld [vmem:[#allocation9 + $0x208] ss:$16 sps:$4 sm:$0xff]  }
 0x4f1   :  { %9546 = vmatprep.subr.bf16.mxu0 %v16363_v40  ;;  %v16504_v40 = vld [vmem:[#allocation9 + $0x22c] ss:$16 sps:$4 sm:$0xff]  }
 0x4f3   :  { %7074 = vmatpush1.bf16.msra.mxu1 %v16358_v18  ;;  %v16409_v18 = vld [vmem:[#allocation6 + $0x568] ss:$40 sps:$4 sm:$0xff]  }
 0x4f4   :  { %9547 = vmatpush1.bf16.msra.mxu0 %v16361_v19  ;;  %7075 = vmatprep.subr.bf16.mxu1 %v16366_v22  ;;  %v16414_v19 = vld [vmem:[#allocation6 + $0x5bc] ss:$40 sps:$4 sm:$0xff]  }
 0x4f5   :  { %9548 = vmatprep.subr.bf16.mxu0 %v16369_v23  ;;  %v17495_v33 = vpop.eup %17494  ;;  %v16502_v22 = vld [vmem:[#allocation9 + $0x228] ss:$16 sps:$4 sm:$0xff]   ;;  %v16510_v23 = vld [vmem:[#allocation9 + $0x24c] ss:$16 sps:$4 sm:$0xff]  }
 0x4f6   :  { %v7334_v34 = vadd.f32 1.0, %v17495_v33  ;;  %v17497_v21 = vpop.eup %17496  ;;  %v16420_v33 = vld [vmem:[#allocation6 + $0x65c] ss:$40 sps:$4 sm:$0xff]  }
 0x4f7   :  { %7076 = vmatpush1.bf16.msra.mxu1 %v16364_v13  ;;  %v7333_v42 = vadd.f32 1.0, %v17497_v21  ;;  %v16412_v13 = vld [vmem:[#allocation6 + $0x5b8] ss:$40 sps:$4 sm:$0xff]  }
 0x4f8   :  { %9549 = vmatpush1.bf16.msra.mxu0 %v16367_v25  ;;  %7077 = vmatprep.subr.bf16.mxu1 %v16372_v32  ;;  %17498 = vrcp.f32 %v7334_v34  ;;  %v16417_v25 = vld [vmem:[#allocation6 + $0x60c] ss:$40 sps:$4 sm:$0xff]  }
 0x4f9   :  { %9550 = vmatprep.subr.bf16.mxu0 %v16375_v29  ;;  %17500 = vrcp.f32 %v7333_v42  ;;  %v16508_v32 = vld [vmem:[#allocation9 + $0x248] ss:$16 sps:$4 sm:$0xff]   ;;  %v16522_v34 = vld [vmem:[#allocation9 + $0x28c] ss:$16 sps:$4 sm:$0xff]  }
 0x4fa   :  { %v16415_v29 = vld [vmem:[#allocation6 + $0x608] ss:$40 sps:$4 sm:$0xff]  }
 0x4fb   :  { %7078 = vmatpush1.bf16.msra.mxu1 %v16370_v37  ;;  %v16418_v37 = vld [vmem:[#allocation6 + $0x658] ss:$40 sps:$4 sm:$0xff]  }
 0x4fc   :  { %9551 = vmatpush1.bf16.msra.mxu0 %v16373_v35  ;;  %7079 = vmatprep.subr.bf16.mxu1 %v16378_v15  ;;  %v16423_v35 = vld [vmem:[#allocation6 + $0x6ac] ss:$40 sps:$4 sm:$0xff]  }
 0x4fd   :  { %9552 = vmatprep.subr.bf16.mxu0 %v16381_v38  ;;  %v16520_v15 = vld [vmem:[#allocation9 + $0x288] ss:$16 sps:$4 sm:$0xff]   ;;  %v16528_v21 = vld [vmem:[#allocation9 + $0x2ac] ss:$16 sps:$4 sm:$0xff]  }
 0x4fe   :  { %v16421_v38 = vld [vmem:[#allocation6 + $0x6a8] ss:$40 sps:$4 sm:$0xff]  }
 0x4ff   :  { %7080 = vmatpush1.bf16.msra.mxu1 %v16376_v41  ;;  %v16426_v41 = vld [vmem:[#allocation6 + $0x6fc] ss:$40 sps:$4 sm:$0xff]  }
 0x500   :  { %9553 = vmatpush1.bf16.msra.mxu0 %v16379_v44  ;;  %7081 = vmatprep.subr.bf16.mxu1 %v16384_v45  ;;  %v16526_v42 = vld [vmem:[#allocation9 + $0x2a8] ss:$16 sps:$4 sm:$0xff]   ;;  %v16534_v44 = vld [vmem:[#allocation9 + $0x2cc] ss:$16 sps:$4 sm:$0xff]  }
 0x501   :  { %9554 = vmatprep.subr.bf16.mxu0 %v16387_v10  ;;  %v16424_v45 = vld [vmem:[#allocation6 + $0x6f8] ss:$40 sps:$4 sm:$0xff]   ;;  %v16429_v10 = vld [vmem:[#allocation6 + $0x74c] ss:$40 sps:$4 sm:$0xff]  }
 0x502   :  { %v17499_v51 = vpop.eup %17498 }
 0x503   :  { %7082 = vmatpush1.bf16.msra.mxu1 %v16382_v28  ;;  %v7364_v48 = vmul.f32 %v17499_v51, %v171_v30  ;;  %v17501_v3 = vpop.eup %17500  ;;  %v16532_v28 = vld [vmem:[#allocation9 + $0x2c8] ss:$16 sps:$4 sm:$0xff]  }
 0x504   :  { %9555 = vmatpush1.bf16.msra.mxu0 %v16385_v0  ;;  %7083 = vmatprep.subr.bf16.mxu1 %v16390_v5  ;;  %v7363_v8 = vmul.f32 %v17501_v3, %v170_v2  ;;  %v16540_v0 = vld [vmem:[#allocation9 + $0x2ec] ss:$16 sps:$4 sm:$0xff]   ;;  %v16538_v30 = vld [vmem:[#allocation9 + $0x2e8] ss:$16 sps:$4 sm:$0xff]  }
 0x505   :  { %9556 = vmatprep.subr.bf16.mxu0 %v16393_v50  ;;  %v18151_v57 = vpack.c.bf16 %v7364_v48, %v7364_v48  ;;  %v16427_v5 = vld [vmem:[#allocation6 + $0x748] ss:$40 sps:$4 sm:$0xff]   ;;  %v16430_v51 = vld [vmem:[#allocation6 + $0x798] ss:$40 sps:$4 sm:$0xff]  }
 0x506   :  { %v18154_v16 = vpack.c.bf16 %v7363_v8, %v7363_v8  ;;  %v16546_v50 = vld [vmem:[#allocation9 + $0x30c] ss:$16 sps:$4 sm:$0xff]   ;;  %v16556_v2 = vld [vmem:[#allocation9 + $0x348] ss:$16 sps:$4 sm:$0xff]  }
 0x507   :  { %7084 = vmatpush1.bf16.msra.mxu1 %v16388_v52  ;;  %9562 = vmatprep.mubr.bf16.mxu0 %v18151_v57  ;;  %v16435_v52 = vld [vmem:[#allocation6 + $0x7ec] ss:$40 sps:$4 sm:$0xff]  }
 0x508   :  { %9557 = vmatpush1.bf16.msra.mxu0 %v16391_v53  ;;  %7085 = vmatprep.subr.bf16.mxu1 %v16396_v54  ;;  %v16544_v53 = vld [vmem:[#allocation9 + $0x308] ss:$16 sps:$4 sm:$0xff]   ;;  %v16552_v48 = vld [vmem:[#allocation9 + $0x32c] ss:$16 sps:$4 sm:$0xff]  }
 0x509   :  { %9558 = vmatprep.subr.bf16.mxu0 %v16399_v56  ;;  %v16433_v54 = vld [vmem:[#allocation6 + $0x7e8] ss:$40 sps:$4 sm:$0xff]   ;;  %v16438_v56 = vld [vmem:[#allocation6 + $0x83c] ss:$40 sps:$4 sm:$0xff]  }
 0x50a   :  { %v16564_v3 = vld [vmem:[#allocation9 + $0x36c] ss:$16 sps:$4 sm:$0xff]  }
 0x50b   :  { %7086 = vmatpush1.bf16.msra.mxu1 %v16394_v59  ;;  %v16550_v59 = vld [vmem:[#allocation9 + $0x328] ss:$16 sps:$4 sm:$0xff]   ;;  %v16570_v8 = vld [vmem:[#allocation9 + $0x38c] ss:$16 sps:$4 sm:$0xff]  }
 0x50c   :  { %9559 = vmatpush1.bf16.msra.mxu0 %v16397_v61  ;;  %7087 = vmatprep.subr.bf16.mxu1 %v16402_v62  ;;  %v16558_v61 = vld [vmem:[#allocation9 + $0x34c] ss:$16 sps:$4 sm:$0xff]  }
 0x50d   :  { %9560 = vmatprep.subr.bf16.mxu0 %v16405_v63  ;;  %v16436_v62 = vld [vmem:[#allocation6 + $0x838] ss:$40 sps:$4 sm:$0xff]   ;;  %v16441_v63 = vld [vmem:[#allocation6 + $0x88c] ss:$40 sps:$4 sm:$0xff]  }
 0x50f   :  { %7088 = vmatpush1.bf16.msra.mxu1 %v16400_v4  ;;  %v16439_v4 = vld [vmem:[#allocation6 + $0x888] ss:$40 sps:$4 sm:$0xff]  }
 0x510   :  { %9561 = vmatpush1.bf16.msra.mxu0 %v16403_v6  ;;  %7098 = vmatprep.subr.bf16.mxu1 %v16408_v7  ;;  %v16444_v6 = vld [vmem:[#allocation6 + $0x8dc] ss:$40 sps:$4 sm:$0xff]  }
 0x511   :  { %9571 = vmatprep.subr.bf16.mxu0 %v16498_v9  ;;  %v16562_v7 = vld [vmem:[#allocation9 + $0x368] ss:$16 sps:$4 sm:$0xff]  }
 0x512   :  { %7090 = vmatmul.mubr.bf16.vlgmr.msra.gmra.mrb[12].mxu1 %v18086_v36  ;;  %v16516_v36 = vld [vmem:[#allocation9 + $0x26c] ss:$16 sps:$4 sm:$0xff]  }
 0x513   :  { %9563 = vmatmul.mubr.bf16.vlgmr.msra.gmra.mrb[16].mxu0 %v18154_v16  ;;  %7099 = vmatpush1.bf16.msra.mxu1 %v16406_v12  ;;  %v16442_v9 = vld [vmem:[#allocation6 + $0x8d8] ss:$40 sps:$4 sm:$0xff]   ;;  %v16447_v12 = vld [vmem:[#allocation6 + $0x92c] ss:$40 sps:$4 sm:$0xff]  }
 0x514   :  { %7130 = vmatprep.mubr.bf16.mxu1 %v18089_v39  ;;  %7100 = vmatprep.subr.bf16.mxu1 %v16411_v14  ;;  %v16514_v39 = vld [vmem:[#allocation9 + $0x268] ss:$16 sps:$4 sm:$0xff]  }
 0x515   :  { %9572 = vmatpush1.bf16.msra.mxu0 %v16496_v17  ;;  %v16568_v14 = vld [vmem:[#allocation9 + $0x388] ss:$16 sps:$4 sm:$0xff]   ;;  %v16576_v17 = vld [vmem:[#allocation9 + $0x3ac] ss:$16 sps:$4 sm:$0xff]  }
 0x516   :  { %9573 = vmatprep.subr.bf16.mxu0 %v16504_v40  ;;  %v16445_v40 = vld [vmem:[#allocation6 + $0x928] ss:$40 sps:$4 sm:$0xff]  }
 0x517   :  { %7101 = vmatpush1.bf16.msra.mxu1 %v16409_v18  ;;  %v16450_v18 = vld [vmem:[#allocation6 + $0x97c] ss:$40 sps:$4 sm:$0xff]  }
 0x518   :  { %7102 = vmatprep.subr.bf16.mxu1 %v16414_v19  ;;  %v16574_v19 = vld [vmem:[#allocation9 + $0x3a8] ss:$16 sps:$4 sm:$0xff]  }
 0x519   :  { %9574 = vmatpush1.bf16.msra.mxu0 %v16502_v22  ;;  %v16582_v22 = vld [vmem:[#allocation9 + $0x3cc] ss:$16 sps:$4 sm:$0xff]  }
 0x51a   :  { %9575 = vmatprep.subr.bf16.mxu0 %v16510_v23  ;;  %v16448_v23 = vld [vmem:[#allocation6 + $0x978] ss:$40 sps:$4 sm:$0xff]  }
 0x51b   :  { %7103 = vmatpush1.bf16.msra.mxu1 %v16412_v13  ;;  %v16453_v13 = vld [vmem:[#allocation6 + $0x9cc] ss:$40 sps:$4 sm:$0xff]  }
 0x51c   :  { %7104 = vmatprep.subr.bf16.mxu1 %v16417_v25  ;;  %v16580_v25 = vld [vmem:[#allocation9 + $0x3c8] ss:$16 sps:$4 sm:$0xff]  }
 0x51d   :  { %9576 = vmatpush1.bf16.msra.mxu0 %v16508_v32  ;;  %v16588_v32 = vld [vmem:[#allocation9 + $0x3ec] ss:$16 sps:$4 sm:$0xff]  }
 0x51e   :  { %9577 = vmatprep.subr.bf16.mxu0 %v16516_v36  ;;  %v16451_v36 = vld [vmem:[#allocation6 + $0x9c8] ss:$40 sps:$4 sm:$0xff]  }
 0x51f   :  { %7105 = vmatpush1.bf16.msra.mxu1 %v16415_v29  ;;  %v16456_v29 = vld [vmem:[#allocation6 + $0xa1c] ss:$40 sps:$4 sm:$0xff]  }
 0x520   :  { %7106 = vmatprep.subr.bf16.mxu1 %v16420_v33  ;;  %v16586_v33 = vld [vmem:[#allocation9 + $0x3e8] ss:$16 sps:$4 sm:$0xff]  }
 0x521   :  { %9578 = vmatpush1.bf16.msra.mxu0 %v16514_v39  ;;  %v16594_v39 = vld [vmem:[#allocation9 + $0x40c] ss:$16 sps:$4 sm:$0xff]  }
 0x522   :  { %9579 = vmatprep.subr.bf16.mxu0 %v16522_v34  ;;  %v16454_v34 = vld [vmem:[#allocation6 + $0xa18] ss:$40 sps:$4 sm:$0xff]  }
 0x523   :  { %7107 = vmatpush1.bf16.msra.mxu1 %v16418_v37  ;;  %v16459_v37 = vld [vmem:[#allocation6 + $0xa6c] ss:$40 sps:$4 sm:$0xff]  }
 0x524   :  { %7108 = vmatprep.subr.bf16.mxu1 %v16423_v35  ;;  %v16457_v35 = vld [vmem:[#allocation6 + $0xa68] ss:$40 sps:$4 sm:$0xff]  }
 0x525   :  { %9580 = vmatpush1.bf16.msra.mxu0 %v16520_v15  ;;  %v16462_v15 = vld [vmem:[#allocation6 + $0xabc] ss:$40 sps:$4 sm:$0xff]  }
 0x526   :  { %9581 = vmatprep.subr.bf16.mxu0 %v16528_v21  ;;  %v16460_v21 = vld [vmem:[#allocation6 + $0xab8] ss:$40 sps:$4 sm:$0xff]  }
 0x527   :  { %7109 = vmatpush1.bf16.msra.mxu1 %v16421_v38  ;;  %v16465_v38 = vld [vmem:[#allocation6 + $0xb0c] ss:$40 sps:$4 sm:$0xff]  }
 0x528   :  { %7110 = vmatprep.subr.bf16.mxu1 %v16426_v41  ;;  %v16463_v41 = vld [vmem:[#allocation6 + $0xb08] ss:$40 sps:$4 sm:$0xff]  }
 0x529   :  { %9582 = vmatpush1.bf16.msra.mxu0 %v16526_v42  ;;  %v16468_v42 = vld [vmem:[#allocation6 + $0xb5c] ss:$40 sps:$4 sm:$0xff]  }
 0x52a   :  { %9583 = vmatprep.subr.bf16.mxu0 %v16534_v44  ;;  %v16466_v44 = vld [vmem:[#allocation6 + $0xb58] ss:$40 sps:$4 sm:$0xff]  }
 0x52b   :  { %7111 = vmatpush1.bf16.msra.mxu1 %v16424_v45  ;;  %v16471_v45 = vld [vmem:[#allocation6 + $0xbac] ss:$40 sps:$4 sm:$0xff]  }
 0x52c   :  { %7112 = vmatprep.subr.bf16.mxu1 %v16429_v10  ;;  %v16474_v10 = vld [vmem:[#allocation6 + $0xbfc] ss:$40 sps:$4 sm:$0xff]  }
 0x52d   :  { %9584 = vmatpush1.bf16.msra.mxu0 %v16532_v28  ;;  %v16477_v28 = vld [vmem:[#allocation6 + $0xc4c] ss:$40 sps:$4 sm:$0xff]  }
 0x52e   :  { %9585 = vmatprep.subr.bf16.mxu0 %v16540_v0  ;;  %v16475_v0 = vld [vmem:[#allocation6 + $0xc48] ss:$40 sps:$4 sm:$0xff]  }
 0x52f   :  { %7113 = vmatpush1.bf16.msra.mxu1 %v16427_v5  ;;  %v16480_v5 = vld [vmem:[#allocation6 + $0xc9c] ss:$40 sps:$4 sm:$0xff]  }
 0x530   :  { %7114 = vmatprep.subr.bf16.mxu1 %v16432_v49  ;;  %v16478_v49 = vld [vmem:[#allocation6 + $0xc98] ss:$40 sps:$4 sm:$0xff]  }
 0x531   :  { %9586 = vmatpush1.bf16.msra.mxu0 %v16538_v30  ;;  %v16483_v30 = vld [vmem:[#allocation6 + $0xcec] ss:$40 sps:$4 sm:$0xff]  }
 0x532   :  { %9587 = vmatprep.subr.bf16.mxu0 %v16546_v50  ;;  %v16481_v50 = vld [vmem:[#allocation6 + $0xce8] ss:$40 sps:$4 sm:$0xff]  }
 0x533   :  { %7115 = vmatpush1.bf16.msra.mxu1 %v16430_v51  ;;  %v16486_v51 = vld [vmem:[#allocation6 + $0xd3c] ss:$40 sps:$4 sm:$0xff]  }
 0x534   :  { %7116 = vmatprep.subr.bf16.mxu1 %v16435_v52  ;;  %v16484_v52 = vld [vmem:[#allocation6 + $0xd38] ss:$40 sps:$4 sm:$0xff]  }
 0x535   :  { %9588 = vmatpush1.bf16.msra.mxu0 %v16544_v53  ;;  %v16489_v53 = vld [vmem:[#allocation6 + $0xd8c] ss:$40 sps:$4 sm:$0xff]  }
 0x536   :  { %9589 = vmatprep.subr.bf16.mxu0 %v16552_v48  ;;  %v16487_v48 = vld [vmem:[#allocation6 + $0xd88] ss:$40 sps:$4 sm:$0xff]  }
 0x537   :  { %7117 = vmatpush1.bf16.msra.mxu1 %v16433_v54  ;;  %v16492_v54 = vld [vmem:[#allocation6 + $0xddc] ss:$40 sps:$4 sm:$0xff]  }
 0x538   :  { %7118 = vmatprep.subr.bf16.mxu1 %v16438_v56  ;;  %v16490_v56 = vld [vmem:[#allocation6 + $0xdd8] ss:$40 sps:$4 sm:$0xff]  }
 0x539   :  { %9590 = vmatpush1.bf16.msra.mxu0 %v16550_v59  ;;  %v16495_v59 = vld [vmem:[#allocation6 + $0xe2c] ss:$40 sps:$4 sm:$0xff]  }
 0x53a   :  { %9591 = vmatprep.subr.bf16.mxu0 %v16558_v61  ;;  %v16493_v61 = vld [vmem:[#allocation6 + $0xe28] ss:$40 sps:$4 sm:$0xff]  }
 0x53b   :  { %7119 = vmatpush1.bf16.msra.mxu1 %v16436_v62  ;;  %v16501_v62 = vld [vmem:[#allocation6 + $0xe7c] ss:$40 sps:$4 sm:$0xff]  }
 0x53c   :  { %7120 = vmatprep.subr.bf16.mxu1 %v16441_v63  ;;  %v16499_v63 = vld [vmem:[#allocation6 + $0xe78] ss:$40 sps:$4 sm:$0xff]  }
 0x53d   :  { %9592 = vmatpush1.bf16.msra.mxu0 %v16556_v2  ;;  %v16507_v2 = vld [vmem:[#allocation6 + $0xecc] ss:$40 sps:$4 sm:$0xff]  }
 0x53e   :  { %9593 = vmatprep.subr.bf16.mxu0 %v16564_v3  ;;  %v16505_v3 = vld [vmem:[#allocation6 + $0xec8] ss:$40 sps:$4 sm:$0xff]  }
 0x53f   :  { %7121 = vmatpush1.bf16.msra.mxu1 %v16439_v4  ;;  %v16513_v4 = vld [vmem:[#allocation9 + $0x4] ss:$16 sps:$4 sm:$0xff]  }
 0x540   :  { %7122 = vmatprep.subr.bf16.mxu1 %v16444_v6  ;;  %v16511_v6 = vld [vmem:[#allocation9] ss:$16 sps:$4 sm:$0xff]  }
 0x541   :  { %9594 = vmatpush1.bf16.msra.mxu0 %v16562_v7  ;;  %v16519_v7 = vld [vmem:[#allocation9 + $0x24] ss:$16 sps:$4 sm:$0xff]  }
 0x542   :  { %9595 = vmatprep.subr.bf16.mxu0 %v16570_v8  ;;  %v16517_v8 = vld [vmem:[#allocation9 + $0x20] ss:$16 sps:$4 sm:$0xff]  }
 0x543   :  { %7123 = vmatpush1.bf16.msra.mxu1 %v16442_v9  ;;  %v16525_v9 = vld [vmem:[#allocation9 + $0x44] ss:$16 sps:$4 sm:$0xff]  }
 0x544   :  { %7124 = vmatprep.subr.bf16.mxu1 %v16447_v12  ;;  %v16523_v12 = vld [vmem:[#allocation9 + $0x40] ss:$16 sps:$4 sm:$0xff]  }
 0x545   :  { %9596 = vmatpush1.bf16.msra.mxu0 %v16568_v14  ;;  %v16531_v14 = vld [vmem:[#allocation9 + $0x64] ss:$16 sps:$4 sm:$0xff]  }
 0x546   :  { %9597 = vmatprep.subr.bf16.mxu0 %v16576_v17  ;;  %v4261_v17 = vrot.slane %v18138_v11, %v18113_v27 }
 0x547   :  { %7125 = vmatpush1.bf16.msra.mxu1 %v16445_v40  ;;  %v16529_v40 = vld [vmem:[#allocation9 + $0x60] ss:$16 sps:$4 sm:$0xff]  }
 0x548   :  { %7126 = vmatprep.subr.bf16.mxu1 %v16450_v18  ;;  %v16537_v18 = vld [vmem:[#allocation9 + $0x84] ss:$16 sps:$4 sm:$0xff]  }
 0x549   :  { %9598 = vmatpush1.bf16.msra.mxu0 %v16574_v19  ;;  %v14827_v19 = vadd.f32 %v18146_v58, %v4261_v17 }
 0x54a   :  { %9599 = vmatprep.subr.bf16.mxu0 %v16582_v22 }
 0x54b   :  { %7127 = vmatpush1.bf16.msra.mxu1 %v16448_v23  ;;  %v13980_v22 = vmul.f32 -1.442695, %v14827_v19  ;;  %v4249_v23 = vrot.slane %v18138_v11, %v18096_v31  ;;  %v16592_v19 = vld [vmem:[#allocation9 + $0x408] ss:$16 sps:$4 sm:$0xff]  }
 0x54c   :  { %7128 = vmatprep.subr.bf16.mxu1 %v16453_v13  ;;  %v4253_v13 = vrot.slane %v18138_v11, %v18074_v1 }
 0x54d   :  { %9600 = vmatpush1.bf16.msra.mxu0 %v16580_v25  ;;  %v16541_v25 = vld [vmem:[#allocation9 + $0xa0] ss:$16 sps:$4 sm:$0xff]   ;;  %17502 = vpow2.f32 %v13980_v22  ;;  %v16600_v22 = vld [vmem:[#allocation9 + $0x42c] ss:$16 sps:$4 sm:$0xff]  }
 0x54e   :  { %9601 = vmatprep.subr.bf16.mxu0 %v16588_v32  ;;  %v16549_v32 = vld [vmem:[#allocation9 + $0xc4] ss:$16 sps:$4 sm:$0xff]  }
 0x54f   :  { %7129 = vmatpush1.bf16.msra.mxu1 %v16451_v36 }
 0x550   :  { %7139 = vmatprep.subr.bf16.mxu1 %v16456_v29 }
 0x551   :  { %9602 = vmatpush1.bf16.msra.mxu0 %v16586_v33 }
 0x552   :  { %7131 = vmatmul.mubr.bf16.vlgmr.msra.gmra.mrb[12].mxu1 %v18101_v47  ;;  %9612 = vmatprep.subr.bf16.mxu0 %v16594_v39  ;;  %v16469_v47 = vld [vmem:[#allocation6 + $0xba8] ss:$40 sps:$4 sm:$0xff]  }
 0x553   :  { %7140 = vmatpush1.bf16.msra.mxu1 %v16454_v34  ;;  %7171 = vmatprep.mubr.bf16.mxu1 %v18117_v43  ;;  %v16472_v43 = vld [vmem:[#allocation6 + $0xbf8] ss:$40 sps:$4 sm:$0xff]  }
 0x554   :  { %7141 = vmatprep.subr.bf16.mxu1 %v16459_v37 }
 0x557   :  { %7142 = vmatpush1.bf16.msra.mxu1 %v16457_v35  ;;  %v16547_v35 = vld [vmem:[#allocation9 + $0xc0] ss:$16 sps:$4 sm:$0xff]  }
 0x558   :  { %7143 = vmatprep.subr.bf16.mxu1 %v16462_v15 }
 0x55b   :  { %7144 = vmatpush1.bf16.msra.mxu1 %v16460_v21 }
 0x55c   :  { %7145 = vmatprep.subr.bf16.mxu1 %v16465_v38 }
 0x55f   :  { %7146 = vmatpush1.bf16.msra.mxu1 %v16463_v41  ;;  %v16555_v41 = vld [vmem:[#allocation9 + $0xe4] ss:$16 sps:$4 sm:$0xff]  }
 0x560   :  { %7147 = vmatprep.subr.bf16.mxu1 %v16468_v42 }
 0x563   :  { %7148 = vmatpush1.bf16.msra.mxu1 %v16466_v44 }
 0x564   :  { %7149 = vmatprep.subr.bf16.mxu1 %v16471_v45  ;;  %v16553_v45 = vld [vmem:[#allocation9 + $0xe0] ss:$16 sps:$4 sm:$0xff]  }
 0x567   :  { %7150 = vmatpush1.bf16.msra.mxu1 %v16469_v47  ;;  %v16561_v47 = vld [vmem:[#allocation9 + $0x104] ss:$16 sps:$4 sm:$0xff]  }
 0x568   :  { %7151 = vmatprep.subr.bf16.mxu1 %v16474_v10  ;;  %v17503_v10 = vpop.eup %17502 }
 0x56b   :  { %7152 = vmatpush1.bf16.msra.mxu1 %v16472_v43  ;;  %v16559_v43 = vld [vmem:[#allocation9 + $0x100] ss:$16 sps:$4 sm:$0xff]  }
 0x56c   :  { %7153 = vmatprep.subr.bf16.mxu1 %v16477_v28  ;;  %v16567_v28 = vld [vmem:[#allocation9 + $0x124] ss:$16 sps:$4 sm:$0xff]  }
 0x56f   :  { %7154 = vmatpush1.bf16.msra.mxu1 %v16475_v0  ;;  %v7338_v0 = vadd.f32 1.0, %v17503_v10  ;;  %v4257_v10 = vrot.slane %v18138_v11, %v18110_v26  ;;  %v16634_v11 = vld [vmem:[#allocation9 + $0x4e8] ss:$16 sps:$4 sm:$0xff]  }
 0x570   :  { %7155 = vmatprep.subr.bf16.mxu1 %v16480_v5  ;;  %v16565_v5 = vld [vmem:[#allocation9 + $0x120] ss:$16 sps:$4 sm:$0xff]  }
 0x573   :  { %7156 = vmatpush1.bf16.msra.mxu1 %v16478_v49 }
 0x574   :  { %7157 = vmatprep.subr.bf16.mxu1 %v16483_v30  ;;  %v16573_v30 = vld [vmem:[#allocation9 + $0x144] ss:$16 sps:$4 sm:$0xff]  }
 0x577   :  { %7158 = vmatpush1.bf16.msra.mxu1 %v16481_v50 }
 0x578   :  { %7159 = vmatprep.subr.bf16.mxu1 %v16486_v51 }
 0x57b   :  { %7160 = vmatpush1.bf16.msra.mxu1 %v16484_v52 }
 0x57c   :  { %7161 = vmatprep.subr.bf16.mxu1 %v16489_v53  ;;  %v16571_v53 = vld [vmem:[#allocation9 + $0x140] ss:$16 sps:$4 sm:$0xff]  }
 0x57f   :  { %7162 = vmatpush1.bf16.msra.mxu1 %v16487_v48  ;;  %v16579_v48 = vld [vmem:[#allocation9 + $0x164] ss:$16 sps:$4 sm:$0xff]  }
 0x580   :  { %7163 = vmatprep.subr.bf16.mxu1 %v16492_v54  ;;  %v16577_v54 = vld [vmem:[#allocation9 + $0x160] ss:$16 sps:$4 sm:$0xff]  }
 0x583   :  { %7164 = vmatpush1.bf16.msra.mxu1 %v16490_v56  ;;  %v16585_v56 = vld [vmem:[#allocation9 + $0x184] ss:$16 sps:$4 sm:$0xff]  }
 0x584   :  { %7165 = vmatprep.subr.bf16.mxu1 %v16495_v59  ;;  %v16583_v59 = vld [vmem:[#allocation9 + $0x180] ss:$16 sps:$4 sm:$0xff]  }
 0x587   :  { %7166 = vmatpush1.bf16.msra.mxu1 %v16493_v61  ;;  %v17536_v61 = vld [vmem:[%s18296_s0 + $0x8] sm:$0xff] }
 0x588   :  { %7167 = vmatprep.subr.bf16.mxu1 %v16501_v62  ;;  %v172_v62 = vunpack.c.l.bf16 %v17536_v61 }
 0x58b   :  { %7168 = vmatpush1.bf16.msra.mxu1 %v16499_v63 }
 0x58c   :  { %7169 = vmatprep.subr.bf16.mxu1 %v16507_v2  ;;  %v16591_v2 = vld [vmem:[#allocation9 + $0x1a4] ss:$16 sps:$4 sm:$0xff]  }
 0x58f   :  { %7170 = vmatpush1.bf16.msra.mxu1 %v16505_v3  ;;  %v173_v3 = vunpack.c.h.bf16 %v17536_v61  ;;  %v16651_v61 = vld [vmem:[#allocation9 + $0x2e4] ss:$16 sps:$4 sm:$0xff]  }
 0x590   :  { %9325 = vmatprep.subr.bf16.mxu1 %v16513_v4  ;;  %v18180_v4 = vld [vmem:[%s18296_s0 + $0x10] sm:$0xff] }
 0x592   :  { %7172 = vmatmul.mubr.bf16.vlgmr.msra.gmra.mrb[12].mxu1 %v18119_v46  ;;  %v16535_v46 = vld [vmem:[#allocation9 + $0x80] ss:$16 sps:$4 sm:$0xff]  }
 0x593   :  { %9326 = vmatpush1.bf16.msra.mxu1 %v16511_v6  ;;  %9357 = vmatprep.mubr.bf16.mxu1 %v18151_v57  ;;  %v16543_v57 = vld [vmem:[#allocation9 + $0xa4] ss:$16 sps:$4 sm:$0xff]   ;;  %v175_v6 = vunpack.c.h.bf16 %v18180_v4 }
 0x594   :  { %9327 = vmatprep.subr.bf16.mxu1 %v16519_v7 }
 0x597   :  { %9328 = vmatpush1.bf16.msra.mxu1 %v16517_v8 }
 0x598   :  { %9329 = vmatprep.subr.bf16.mxu1 %v16525_v9  ;;  %v16589_v9 = vld [vmem:[#allocation9 + $0x1a0] ss:$16 sps:$4 sm:$0xff]  }
 0x59b   :  { %9330 = vmatpush1.bf16.msra.mxu1 %v16523_v12 }
 0x59c   :  { %9331 = vmatprep.subr.bf16.mxu1 %v16531_v14 }
 0x59f   :  { %9332 = vmatpush1.bf16.msra.mxu1 %v16529_v40  ;;  %v16597_v40 = vld [vmem:[#allocation9 + $0x1c4] ss:$16 sps:$4 sm:$0xff]  }
 0x5a0   :  { %9333 = vmatprep.subr.bf16.mxu1 %v16537_v18 }
 0x5a3   :  { %9334 = vmatpush1.bf16.msra.mxu1 %v16535_v46 }
 0x5a4   :  { %9335 = vmatprep.subr.bf16.mxu1 %v16543_v57  ;;  %v16595_v57 = vld [vmem:[#allocation9 + $0x1c0] ss:$16 sps:$4 sm:$0xff]  }
 0x5a5   :  { %v6927_v36 = vpop.f32.mrb[8].mxu1 }
 0x5a6   :  { %v14824_v29 = vadd.f32 %v6927_v36, %v4249_v23  ;;  %v18170_v33 = vpop.f32.mrb[12].mxu0  ;;  %v6929_v58 = vpop.f32.mrb[9].mxu1  ;;  %v16606_v36 = vld [vmem:[#allocation9 + $0x44c] ss:$16 sps:$4 sm:$0xff]  }
 0x5a7   :  { %v14825_v39 = vadd.f32 %v6929_v58, %v4253_v13  ;;  %v18172_v34 = vpop.f32.mrb[13].mxu0  ;;  %v6931_v37 = vpop.f32.mrb[10].mxu1  ;;  %9336 = vmatpush1.bf16.msra.mxu1 %v16541_v25  ;;  %v16603_v13 = vld [vmem:[#allocation9 + $0x1e4] ss:$16 sps:$4 sm:$0xff]   ;;  %v16598_v25 = vld [vmem:[#allocation9 + $0x428] ss:$16 sps:$4 sm:$0xff]  }
 0x5a8   :  { %v13977_v15 = vmul.f32 -1.442695, %v14824_v29  ;;  %v7300_v21 = vpop.f32.mrb[14].mxu0  ;;  %v6932_v38 = vpop.f32.mrb[11].mxu1  ;;  %9337 = vmatprep.subr.bf16.mxu1 %v16549_v32  ;;  %v16601_v32 = vld [vmem:[#allocation9 + $0x1e0] ss:$16 sps:$4 sm:$0xff]  }
 0x5a9   :  { %v13978_v42 = vmul.f32 -1.442695, %v14825_v39  ;;  %v7301_v44 = vpop.f32.mrb[15].mxu0  ;;  %v16609_v29 = vld [vmem:[#allocation9 + $0x204] ss:$16 sps:$4 sm:$0xff]  }
 0x5aa   :  { %17504 = vpow2.f32 %v13977_v15  ;;  %v16604_v58 = vld [vmem:[#allocation9 + $0x448] ss:$16 sps:$4 sm:$0xff]   ;;  %v16607_v39 = vld [vmem:[#allocation9 + $0x200] ss:$16 sps:$4 sm:$0xff]   ;;  %v16612_v37 = vld [vmem:[#allocation9 + $0x46c] ss:$16 sps:$4 sm:$0xff]  }
 0x5ab   :  { %9338 = vmatpush1.bf16.msra.mxu1 %v16547_v35  ;;  %17506 = vpow2.f32 %v13978_v42  ;;  %v16615_v35 = vld [vmem:[#allocation9 + $0x224] ss:$16 sps:$4 sm:$0xff]   ;;  %v16610_v15 = vld [vmem:[#allocation9 + $0x468] ss:$16 sps:$4 sm:$0xff]   ;;  %v16613_v21 = vld [vmem:[#allocation9 + $0x220] ss:$16 sps:$4 sm:$0xff]  }
 0x5ac   :  { %9339 = vmatprep.subr.bf16.mxu1 %v16555_v41  ;;  %17508 = vrcp.f32 %v7338_v0  ;;  %v16618_v38 = vld [vmem:[#allocation9 + $0x48c] ss:$16 sps:$4 sm:$0xff]   ;;  %v16621_v41 = vld [vmem:[#allocation9 + $0x244] ss:$16 sps:$4 sm:$0xff]   ;;  %v16616_v42 = vld [vmem:[#allocation9 + $0x488] ss:$16 sps:$4 sm:$0xff]  }
 0x5ad   :  { %v16619_v44 = vld [vmem:[#allocation9 + $0x240] ss:$16 sps:$4 sm:$0xff]   ;;  %v16633_v0 = vld [vmem:[#allocation9 + $0x284] ss:$16 sps:$4 sm:$0xff]  }
 0x5af   :  { %9340 = vmatpush1.bf16.msra.mxu1 %v16553_v45  ;;  %v16624_v45 = vld [vmem:[#allocation9 + $0x4ac] ss:$16 sps:$4 sm:$0xff]  }
 0x5b0   :  { %9341 = vmatprep.subr.bf16.mxu1 %v16561_v47  ;;  %v16627_v47 = vld [vmem:[#allocation9 + $0x264] ss:$16 sps:$4 sm:$0xff]  }
 0x5b3   :  { %9342 = vmatpush1.bf16.msra.mxu1 %v16559_v43  ;;  %v16625_v43 = vld [vmem:[#allocation9 + $0x260] ss:$16 sps:$4 sm:$0xff]  }
 0x5b4   :  { %v17505_v49 = vpop.eup %17504  ;;  %9343 = vmatprep.subr.bf16.mxu1 %v16567_v28  ;;  %v16630_v28 = vld [vmem:[#allocation9 + $0x4cc] ss:$16 sps:$4 sm:$0xff]  }
 0x5b5   :  { %v7335_v50 = vadd.f32 1.0, %v17505_v49  ;;  %v17507_v51 = vpop.eup %17506  ;;  %v16628_v49 = vld [vmem:[#allocation9 + $0x4c8] ss:$16 sps:$4 sm:$0xff]  }
 0x5b6   :  { %v7336_v52 = vadd.f32 1.0, %v17507_v51  ;;  %v17509_v63 = vpop.eup %17508  ;;  %v16639_v51 = vld [vmem:[#allocation9 + $0x2a4] ss:$16 sps:$4 sm:$0xff]  }
 0x5b7   :  { %17510 = vrcp.f32 %v7335_v50  ;;  %9344 = vmatpush1.bf16.msra.mxu1 %v16565_v5  ;;  %v7368_v17 = vmul.f32 %v17509_v63, %v175_v6  ;;  %v14826_v5 = vadd.f32 %v18144_v55, %v4257_v10  ;;  %v16636_v50 = vld [vmem:[#allocation9 + $0x4ec] ss:$16 sps:$4 sm:$0xff]   ;;  %v16640_v55 = vld [vmem:[#allocation9 + $0x508] ss:$16 sps:$4 sm:$0xff]   ;;  %v16649_v63 = vld [vmem:[#allocation9 + $0x2e0] ss:$16 sps:$4 sm:$0xff]  }
 0x5b8   :  { %9345 = vmatprep.subr.bf16.mxu1 %v16573_v30  ;;  %17512 = vrcp.f32 %v7336_v52  ;;  %v16631_v30 = vld [vmem:[#allocation9 + $0x280] ss:$16 sps:$4 sm:$0xff]   ;;  %v16652_v6 = vld [vmem:[#allocation9 + $0x548] ss:$16 sps:$4 sm:$0xff]  }
 0x5b9   :  { %v18185_v23 = vpack.c.bf16 %v7368_v17, %v7368_v17  ;;  %v13979_v52 = vmul.f32 -1.442695, %v14826_v5  ;;  %v16658_v17 = vld [vmem:[#allocation9 + $0x568] ss:$16 sps:$4 sm:$0xff]   ;;  %v16691_v5 = vld [vmem:[#allocation9 + $0x3e0] ss:$16 sps:$4 sm:$0xff]  }
 0x5ba   :  { %v16736_v10 = vld [vmem:[#allocation9 + $0x608] ss:$16 sps:$4 sm:$0xff]  }
 0x5bb   :  { %9346 = vmatpush1.bf16.msra.mxu1 %v16571_v53  ;;  %v16637_v53 = vld [vmem:[#allocation9 + $0x2a0] ss:$16 sps:$4 sm:$0xff]   ;;  %17514 = vpow2.f32 %v13979_v52  ;;  %v16699_v52 = vld [vmem:[#allocation9 + $0x424] ss:$16 sps:$4 sm:$0xff]  }
 0x5bc   :  { %9347 = vmatprep.subr.bf16.mxu1 %v16579_v48  ;;  %v16642_v48 = vld [vmem:[#allocation9 + $0x50c] ss:$16 sps:$4 sm:$0xff]  }
 0x5bf   :  { %9348 = vmatpush1.bf16.msra.mxu1 %v16577_v54  ;;  %v16645_v54 = vld [vmem:[#allocation9 + $0x2c4] ss:$16 sps:$4 sm:$0xff]  }
 0x5c0   :  { %9349 = vmatprep.subr.bf16.mxu1 %v16585_v56  ;;  %v16643_v56 = vld [vmem:[#allocation9 + $0x2c0] ss:$16 sps:$4 sm:$0xff]  }
 0x5c1   :  { %v17511_v7 = vpop.eup %17510 }
 0x5c2   :  { %v17513_v8 = vpop.eup %17512  ;;  %v7365_v12 = vmul.f32 %v17511_v7, %v172_v62  ;;  %v16646_v62 = vld [vmem:[#allocation9 + $0x528] ss:$16 sps:$4 sm:$0xff]  }
 0x5c3   :  { %9350 = vmatpush1.bf16.msra.mxu1 %v16583_v59  ;;  %v7366_v14 = vmul.f32 %v17513_v8, %v173_v3  ;;  %v16648_v59 = vld [vmem:[#allocation9 + $0x52c] ss:$16 sps:$4 sm:$0xff]   ;;  %v16657_v3 = vld [vmem:[#allocation9 + $0x304] ss:$16 sps:$4 sm:$0xff]   ;;  %v16655_v8 = vld [vmem:[#allocation9 + $0x300] ss:$16 sps:$4 sm:$0xff]  }
 0x5c4   :  { %9351 = vmatprep.subr.bf16.mxu1 %v16591_v2  ;;  %v18183_v46 = vpack.c.bf16 %v7365_v12, %v7365_v12  ;;  %v16654_v2 = vld [vmem:[#allocation9 + $0x54c] ss:$16 sps:$4 sm:$0xff]   ;;  %v16663_v12 = vld [vmem:[#allocation9 + $0x324] ss:$16 sps:$4 sm:$0xff]  }
 0x5c5   :  { %v7376_v18 = vpack.c.bf16 %v7366_v14, %v7366_v14  ;;  %v17515_v7 = vpop.eup %17514 }
 0x5c6   :  { %v7337_v14 = vadd.f32 1.0, %v17515_v7  ;;  %v16780_v7 = vld [vmem:[#allocation9 + $0x6ec] ss:$16 sps:$4 sm:$0xff]  }
 0x5c7   :  { %9352 = vmatpush1.bf16.msra.mxu1 %v16589_v9  ;;  %9603 = vmatprep.mubr.bf16.mxu0 %v7376_v18  ;;  %v16660_v9 = vld [vmem:[#allocation9 + $0x56c] ss:$16 sps:$4 sm:$0xff]  }
 0x5c8   :  { %9353 = vmatprep.subr.bf16.mxu1 %v16597_v40  ;;  %9604 = vmatmul.mubr.bf16.vlgmr.msra.gmra.mrb[16].mxu0 %v18183_v46  ;;  %v16661_v40 = vld [vmem:[#allocation9 + $0x320] ss:$16 sps:$4 sm:$0xff]   ;;  %17516 = vrcp.f32 %v7337_v14  ;;  %v16786_v14 = vld [vmem:[#allocation9 + $0x70c] ss:$16 sps:$4 sm:$0xff]  }
 0x5c9   :  { %9613 = vmatpush1.bf16.msra.mxu0 %v16592_v19  ;;  %9644 = vmatprep.mubr.bf16.mxu0 %v18185_v23  ;;  %v16669_v19 = vld [vmem:[#allocation9 + $0x344] ss:$16 sps:$4 sm:$0xff]  }
 0x5ca   :  { %9614 = vmatprep.subr.bf16.mxu0 %v16600_v22  ;;  %v16667_v22 = vld [vmem:[#allocation9 + $0x340] ss:$16 sps:$4 sm:$0xff]  }
 0x5cb   :  { %9354 = vmatpush1.bf16.msra.mxu1 %v16595_v57  ;;  %v16664_v57 = vld [vmem:[#allocation9 + $0x588] ss:$16 sps:$4 sm:$0xff]  }
 0x5cc   :  { %9355 = vmatprep.subr.bf16.mxu1 %v16603_v13  ;;  %v16672_v13 = vld [vmem:[#allocation9 + $0x5ac] ss:$16 sps:$4 sm:$0xff]  }
 0x5cd   :  { %9615 = vmatpush1.bf16.msra.mxu0 %v16598_v25  ;;  %v16675_v25 = vld [vmem:[#allocation9 + $0x364] ss:$16 sps:$4 sm:$0xff]  }
 0x5ce   :  { %9616 = vmatprep.subr.bf16.mxu0 %v16606_v36  ;;  %v16673_v36 = vld [vmem:[#allocation9 + $0x360] ss:$16 sps:$4 sm:$0xff]  }
 0x5cf   :  { %9356 = vmatpush1.bf16.msra.mxu1 %v16601_v32  ;;  %v16670_v32 = vld [vmem:[#allocation9 + $0x5a8] ss:$16 sps:$4 sm:$0xff]  }
 0x5d0   :  { %9366 = vmatprep.subr.bf16.mxu1 %v16609_v29  ;;  %v16678_v29 = vld [vmem:[#allocation9 + $0x5cc] ss:$16 sps:$4 sm:$0xff]  }
 0x5d1   :  { %9617 = vmatpush1.bf16.msra.mxu0 %v16604_v58  ;;  %v16681_v58 = vld [vmem:[#allocation9 + $0x384] ss:$16 sps:$4 sm:$0xff]  }
 0x5d2   :  { %9358 = vmatmul.mubr.bf16.vlgmr.msra.gmra.mrb[16].mxu1 %v18154_v16  ;;  %9618 = vmatprep.subr.bf16.mxu0 %v16612_v37  ;;  %v16622_v16 = vld [vmem:[#allocation9 + $0x4a8] ss:$16 sps:$4 sm:$0xff]   ;;  %v16679_v37 = vld [vmem:[#allocation9 + $0x380] ss:$16 sps:$4 sm:$0xff]  }
 0x5d3   :  { %9367 = vmatpush1.bf16.msra.mxu1 %v16607_v39  ;;  %9398 = vmatprep.mubr.bf16.mxu1 %v7376_v18  ;;  %v16666_v18 = vld [vmem:[#allocation9 + $0x58c] ss:$16 sps:$4 sm:$0xff]   ;;  %v16676_v39 = vld [vmem:[#allocation9 + $0x5c8] ss:$16 sps:$4 sm:$0xff]  }
 0x5d4   :  { %9368 = vmatprep.subr.bf16.mxu1 %v16615_v35  ;;  %v16684_v35 = vld [vmem:[#allocation9 + $0x5ec] ss:$16 sps:$4 sm:$0xff]  }
 0x5d5   :  { %9619 = vmatpush1.bf16.msra.mxu0 %v16610_v15  ;;  %v174_v15 = vunpack.c.l.bf16 %v18180_v4  ;;  %v16744_v4 = vld [vmem:[#allocation9 + $0x62c] ss:$16 sps:$4 sm:$0xff]  }
 0x5d6   :  { %9620 = vmatprep.subr.bf16.mxu0 %v16618_v38  ;;  %v16687_v38 = vld [vmem:[#allocation9 + $0x3a4] ss:$16 sps:$4 sm:$0xff]  }
 0x5d7   :  { %9369 = vmatpush1.bf16.msra.mxu1 %v16613_v21  ;;  %v17517_v21 = vpop.eup %17516 }
 0x5d8   :  { %9370 = vmatprep.subr.bf16.mxu1 %v16621_v41  ;;  %v16682_v41 = vld [vmem:[#allocation9 + $0x5e8] ss:$16 sps:$4 sm:$0xff]  }
 0x5d9   :  { %9621 = vmatpush1.bf16.msra.mxu0 %v16616_v42  ;;  %v16685_v42 = vld [vmem:[#allocation9 + $0x3a0] ss:$16 sps:$4 sm:$0xff]  }
 0x5da   :  { %9622 = vmatprep.subr.bf16.mxu0 %v16624_v45  ;;  %v16738_v45 = vld [vmem:[#allocation9 + $0x60c] ss:$16 sps:$4 sm:$0xff]  }
 0x5db   :  { %9371 = vmatpush1.bf16.msra.mxu1 %v16619_v44  ;;  %v7367_v44 = vmul.f32 %v17517_v21, %v174_v15  ;;  %v16810_v15 = vld [vmem:[#allocation9 + $0x78c] ss:$16 sps:$4 sm:$0xff]   ;;  %v16726_v21 = vld [vmem:[#allocation9 + $0x544] ss:$16 sps:$4 sm:$0xff]  }
 0x5dc   :  { %9372 = vmatprep.subr.bf16.mxu1 %v16627_v47  ;;  %v16690_v47 = vld [vmem:[#allocation9 + $0x3c4] ss:$16 sps:$4 sm:$0xff]  }
 0x5dd   :  { %9623 = vmatpush1.bf16.msra.mxu0 %v16622_v16  ;;  %v18194_v16 = vpack.c.bf16 %v7367_v44, %v7367_v44  ;;  %v16729_v44 = vld [vmem:[#allocation9 + $0x564] ss:$16 sps:$4 sm:$0xff]  }
 0x5de   :  { %9624 = vmatprep.subr.bf16.mxu0 %v16630_v28  ;;  %v16693_v28 = vld [vmem:[#allocation9 + $0x3e4] ss:$16 sps:$4 sm:$0xff]  }
 0x5df   :  { %9373 = vmatpush1.bf16.msra.mxu1 %v16625_v43  ;;  %v16688_v43 = vld [vmem:[#allocation9 + $0x3c0] ss:$16 sps:$4 sm:$0xff]  }
 0x5e0   :  { %9374 = vmatprep.subr.bf16.mxu1 %v16633_v0  ;;  %v16742_v0 = vld [vmem:[#allocation9 + $0x628] ss:$16 sps:$4 sm:$0xff]  }
 0x5e1   :  { %9625 = vmatpush1.bf16.msra.mxu0 %v16628_v49  ;;  %v16750_v49 = vld [vmem:[#allocation9 + $0x64c] ss:$16 sps:$4 sm:$0xff]  }
 0x5e2   :  { %9626 = vmatprep.subr.bf16.mxu0 %v16636_v50  ;;  %v16748_v50 = vld [vmem:[#allocation9 + $0x648] ss:$16 sps:$4 sm:$0xff]  }
 0x5e3   :  { %9375 = vmatpush1.bf16.msra.mxu1 %v16631_v30  ;;  %v16696_v30 = vld [vmem:[#allocation9 + $0x404] ss:$16 sps:$4 sm:$0xff]  }
 0x5e4   :  { %9376 = vmatprep.subr.bf16.mxu1 %v16639_v51  ;;  %v16694_v51 = vld [vmem:[#allocation9 + $0x400] ss:$16 sps:$4 sm:$0xff]  }
 0x5e5   :  { %9627 = vmatpush1.bf16.msra.mxu0 %v16634_v11  ;;  %v16756_v11 = vld [vmem:[#allocation9 + $0x66c] ss:$16 sps:$4 sm:$0xff]  }
 0x5e6   :  { %9628 = vmatprep.subr.bf16.mxu0 %v16642_v48  ;;  %v16697_v48 = vld [vmem:[#allocation9 + $0x420] ss:$16 sps:$4 sm:$0xff]  }
 0x5e7   :  { %9377 = vmatpush1.bf16.msra.mxu1 %v16637_v53  ;;  %v16754_v53 = vld [vmem:[#allocation9 + $0x668] ss:$16 sps:$4 sm:$0xff]  }
 0x5e8   :  { %9378 = vmatprep.subr.bf16.mxu1 %v16645_v54  ;;  %v16762_v54 = vld [vmem:[#allocation9 + $0x68c] ss:$16 sps:$4 sm:$0xff]  }
 0x5e9   :  { %9629 = vmatpush1.bf16.msra.mxu0 %v16640_v55  ;;  %v16702_v55 = vld [vmem:[#allocation9 + $0x444] ss:$16 sps:$4 sm:$0xff]  }
 0x5ea   :  { %9630 = vmatprep.subr.bf16.mxu0 %v16648_v59  ;;  %v16700_v59 = vld [vmem:[#allocation9 + $0x440] ss:$16 sps:$4 sm:$0xff]  }
 0x5eb   :  { %9379 = vmatpush1.bf16.msra.mxu1 %v16643_v56  ;;  %v16760_v56 = vld [vmem:[#allocation9 + $0x688] ss:$16 sps:$4 sm:$0xff]  }
 0x5ec   :  { %9380 = vmatprep.subr.bf16.mxu1 %v16651_v61  ;;  %v16768_v61 = vld [vmem:[#allocation9 + $0x6ac] ss:$16 sps:$4 sm:$0xff]  }
 0x5ed   :  { %9631 = vmatpush1.bf16.msra.mxu0 %v16646_v62  ;;  %v16705_v62 = vld [vmem:[#allocation9 + $0x464] ss:$16 sps:$4 sm:$0xff]  }
 0x5ee   :  { %9632 = vmatprep.subr.bf16.mxu0 %v16654_v2  ;;  %v16774_v2 = vld [vmem:[#allocation9 + $0x6cc] ss:$16 sps:$4 sm:$0xff]  }
 0x5ef   :  { %9381 = vmatpush1.bf16.msra.mxu1 %v16649_v63  ;;  %v16703_v63 = vld [vmem:[#allocation9 + $0x460] ss:$16 sps:$4 sm:$0xff]  }
 0x5f0   :  { %9382 = vmatprep.subr.bf16.mxu1 %v16657_v3  ;;  %v16772_v3 = vld [vmem:[#allocation9 + $0x6c8] ss:$16 sps:$4 sm:$0xff]  }
 0x5f1   :  { %9633 = vmatpush1.bf16.msra.mxu0 %v16652_v6  ;;  %v16706_v6 = vld [vmem:[#allocation9 + $0x480] ss:$16 sps:$4 sm:$0xff]  }
 0x5f2   :  { %9634 = vmatprep.subr.bf16.mxu0 %v16660_v9  ;;  %v16778_v9 = vld [vmem:[#allocation9 + $0x6e8] ss:$16 sps:$4 sm:$0xff]  }
 0x5f3   :  { %9383 = vmatpush1.bf16.msra.mxu1 %v16655_v8  ;;  %v16711_v8 = vld [vmem:[#allocation9 + $0x4a4] ss:$16 sps:$4 sm:$0xff]  }
 0x5f4   :  { %9384 = vmatprep.subr.bf16.mxu1 %v16663_v12  ;;  %v16709_v12 = vld [vmem:[#allocation9 + $0x4a0] ss:$16 sps:$4 sm:$0xff]  }
 0x5f5   :  { %9635 = vmatpush1.bf16.msra.mxu0 %v16658_v17  ;;  %v16714_v17 = vld [vmem:[#allocation9 + $0x4c4] ss:$16 sps:$4 sm:$0xff]  }
 0x5f6   :  { %9636 = vmatprep.subr.bf16.mxu0 %v16666_v18  ;;  %v16712_v18 = vld [vmem:[#allocation9 + $0x4c0] ss:$16 sps:$4 sm:$0xff]  }
 0x5f7   :  { %9385 = vmatpush1.bf16.msra.mxu1 %v16661_v40  ;;  %v16784_v40 = vld [vmem:[#allocation9 + $0x708] ss:$16 sps:$4 sm:$0xff]  }
 0x5f8   :  { %9386 = vmatprep.subr.bf16.mxu1 %v16669_v19  ;;  %v16792_v19 = vld [vmem:[#allocation9 + $0x72c] ss:$16 sps:$4 sm:$0xff]  }
 0x5f9   :  { %9637 = vmatpush1.bf16.msra.mxu0 %v16664_v57  ;;  %v16717_v57 = vld [vmem:[#allocation9 + $0x4e4] ss:$16 sps:$4 sm:$0xff]  }
 0x5fa   :  { %9638 = vmatprep.subr.bf16.mxu0 %v16672_v13  ;;  %v16715_v13 = vld [vmem:[#allocation9 + $0x4e0] ss:$16 sps:$4 sm:$0xff]  }
 0x5fb   :  { %9387 = vmatpush1.bf16.msra.mxu1 %v16667_v22  ;;  %v16790_v22 = vld [vmem:[#allocation9 + $0x728] ss:$16 sps:$4 sm:$0xff]  }
 0x5fc   :  { %9388 = vmatprep.subr.bf16.mxu1 %v16675_v25  ;;  %v16798_v25 = vld [vmem:[#allocation9 + $0x74c] ss:$16 sps:$4 sm:$0xff]  }
 0x5fd   :  { %9639 = vmatpush1.bf16.msra.mxu0 %v16670_v32  ;;  %v16720_v32 = vld [vmem:[#allocation9 + $0x504] ss:$16 sps:$4 sm:$0xff]  }
 0x5fe   :  { %9640 = vmatprep.subr.bf16.mxu0 %v16678_v29  ;;  %v16718_v29 = vld [vmem:[#allocation9 + $0x500] ss:$16 sps:$4 sm:$0xff]  }
 0x5ff   :  { %9389 = vmatpush1.bf16.msra.mxu1 %v16673_v36  ;;  %v16796_v36 = vld [vmem:[#allocation9 + $0x748] ss:$16 sps:$4 sm:$0xff]  }
 0x600   :  { %9390 = vmatprep.subr.bf16.mxu1 %v16681_v58  ;;  %v16804_v58 = vld [vmem:[#allocation9 + $0x76c] ss:$16 sps:$4 sm:$0xff]  }
 0x601   :  { %9641 = vmatpush1.bf16.msra.mxu0 %v16676_v39  ;;  %v16723_v39 = vld [vmem:[#allocation9 + $0x524] ss:$16 sps:$4 sm:$0xff]  }
 0x602   :  { %9642 = vmatprep.subr.bf16.mxu0 %v16684_v35  ;;  %v16721_v35 = vld [vmem:[#allocation9 + $0x520] ss:$16 sps:$4 sm:$0xff]  }
 0x603   :  { %9391 = vmatpush1.bf16.msra.mxu1 %v16679_v37  ;;  %v16802_v37 = vld [vmem:[#allocation9 + $0x768] ss:$16 sps:$4 sm:$0xff]  }
 0x604   :  { %9392 = vmatprep.subr.bf16.mxu1 %v16687_v38  ;;  %v16808_v38 = vld [vmem:[#allocation9 + $0x788] ss:$16 sps:$4 sm:$0xff]  }
 0x605   :  { %9643 = vmatpush1.bf16.msra.mxu0 %v16682_v41  ;;  %v16724_v41 = vld [vmem:[#allocation9 + $0x540] ss:$16 sps:$4 sm:$0xff]  }
 0x606   :  { %9653 = vmatprep.subr.bf16.mxu0 %v16738_v45  ;;  %v16814_v45 = vld [vmem:[#allocation9 + $0x7a8] ss:$16 sps:$4 sm:$0xff]  }
 0x607   :  { %9393 = vmatpush1.bf16.msra.mxu1 %v16685_v42  ;;  %v16816_v42 = vld [vmem:[#allocation9 + $0x7ac] ss:$16 sps:$4 sm:$0xff]  }
 0x608   :  { %9394 = vmatprep.subr.bf16.mxu1 %v16690_v47  ;;  %9645 = vmatmul.mubr.bf16.vlgmr.msra.gmra.mrb[16].mxu0 %v18194_v16  ;;  %v16727_v47 = vld [vmem:[#allocation9 + $0x560] ss:$16 sps:$4 sm:$0xff]  }
 0x609   :  { %9654 = vmatpush1.bf16.msra.mxu0 %v16736_v10  ;;  %v16822_v10 = vld [vmem:[#allocation9 + $0x7cc] ss:$16 sps:$4 sm:$0xff]  }
 0x60a   :  { %9655 = vmatprep.subr.bf16.mxu0 %v16744_v4  ;;  %v16820_v4 = vld [vmem:[#allocation9 + $0x7c8] ss:$16 sps:$4 sm:$0xff]  }
 0x60b   :  { %9395 = vmatpush1.bf16.msra.mxu1 %v16688_v43  ;;  %v16732_v43 = vld [vmem:[#allocation9 + $0x584] ss:$16 sps:$4 sm:$0xff]  }
 0x60c   :  { %9396 = vmatprep.subr.bf16.mxu1 %v16693_v28  ;;  %v16730_v28 = vld [vmem:[#allocation9 + $0x580] ss:$16 sps:$4 sm:$0xff]  }
 0x60d   :  { %9656 = vmatpush1.bf16.msra.mxu0 %v16742_v0  ;;  %v16828_v0 = vld [vmem:[#allocation9 + $0x7ec] ss:$16 sps:$4 sm:$0xff]  }
 0x60e   :  { %9657 = vmatprep.subr.bf16.mxu0 %v16750_v49  ;;  %v16826_v49 = vld [vmem:[#allocation9 + $0x7e8] ss:$16 sps:$4 sm:$0xff]  }
 0x60f   :  { %9397 = vmatpush1.bf16.msra.mxu1 %v16691_v5  ;;  %v16735_v5 = vld [vmem:[#allocation9 + $0x5a4] ss:$16 sps:$4 sm:$0xff]  }
 0x610   :  { %9407 = vmatprep.subr.bf16.mxu1 %v16696_v30  ;;  %v16733_v30 = vld [vmem:[#allocation9 + $0x5a0] ss:$16 sps:$4 sm:$0xff]  }
 0x611   :  { %9658 = vmatpush1.bf16.msra.mxu0 %v16748_v50  ;;  %v16834_v50 = vld [vmem:[#allocation9 + $0x80c] ss:$16 sps:$4 sm:$0xff]  }
 0x612   :  { %9399 = vmatmul.mubr.bf16.vlgmr.msra.gmra.mrb[16].mxu1 %v18183_v46  ;;  %9659 = vmatprep.subr.bf16.mxu0 %v16756_v11  ;;  %v16766_v46 = vld [vmem:[#allocation9 + $0x6a8] ss:$16 sps:$4 sm:$0xff]   ;;  %v16747_v11 = vld [vmem:[#allocation9 + $0x5e4] ss:$16 sps:$4 sm:$0xff]  }
 0x613   :  { %9408 = vmatpush1.bf16.msra.mxu1 %v16694_v51  ;;  %9439 = vmatprep.mubr.bf16.mxu1 %v18185_v23  ;;  %v16708_v23 = vld [vmem:[#allocation9 + $0x484] ss:$16 sps:$4 sm:$0xff]  }
 0x614   :  { %9409 = vmatprep.subr.bf16.mxu1 %v16699_v52  ;;  %v16741_v51 = vld [vmem:[#allocation9 + $0x5c4] ss:$16 sps:$4 sm:$0xff]   ;;  %v16739_v52 = vld [vmem:[#allocation9 + $0x5c0] ss:$16 sps:$4 sm:$0xff]  }
 0x615   :  { %9660 = vmatpush1.bf16.msra.mxu0 %v16754_v53  ;;  %v16745_v53 = vld [vmem:[#allocation9 + $0x5e0] ss:$16 sps:$4 sm:$0xff]  }
 0x616   :  { %9661 = vmatprep.subr.bf16.mxu0 %v16762_v54  ;;  %v16751_v54 = vld [vmem:[#allocation9 + $0x600] ss:$16 sps:$4 sm:$0xff]  }
 0x617   :  { %9410 = vmatpush1.bf16.msra.mxu1 %v16697_v48  ;;  %v16753_v48 = vld [vmem:[#allocation9 + $0x604] ss:$16 sps:$4 sm:$0xff]  }
 0x618   :  { %9411 = vmatprep.subr.bf16.mxu1 %v16702_v55  ;;  %v16759_v55 = vld [vmem:[#allocation9 + $0x624] ss:$16 sps:$4 sm:$0xff]  }
 0x619   :  { %9662 = vmatpush1.bf16.msra.mxu0 %v16760_v56  ;;  %v16757_v56 = vld [vmem:[#allocation9 + $0x620] ss:$16 sps:$4 sm:$0xff]  }
 0x61a   :  { %9663 = vmatprep.subr.bf16.mxu0 %v16768_v61  ;;  %v18200_v61 = vld [vmem:[#allocation7 + $0x8] sm:$0x3] }
 0x61b   :  { %9412 = vmatpush1.bf16.msra.mxu1 %v16700_v59  ;;  %v16765_v59 = vld [vmem:[#allocation9 + $0x644] ss:$16 sps:$4 sm:$0xff]  }
 0x61c   :  { %9413 = vmatprep.subr.bf16.mxu1 %v16705_v62  ;;  %v16763_v62 = vld [vmem:[#allocation9 + $0x640] ss:$16 sps:$4 sm:$0xff]  }
 0x61d   :  { %9664 = vmatpush1.bf16.msra.mxu0 %v16766_v46  ;;  %v16771_v46 = vld [vmem:[#allocation9 + $0x664] ss:$16 sps:$4 sm:$0xff]  }
 0x61e   :  { %9665 = vmatprep.subr.bf16.mxu0 %v16774_v2  ;;  %v16769_v2 = vld [vmem:[#allocation9 + $0x660] ss:$16 sps:$4 sm:$0xff]  }
 0x61f   :  { %9414 = vmatpush1.bf16.msra.mxu1 %v16703_v63  ;;  %v4277_v63 = vrot.slane %v18200_v61, %v18071_v24 }
 0x620   :  { %9415 = vmatprep.subr.bf16.mxu1 %v16708_v23  ;;  %v16777_v23 = vld [vmem:[#allocation9 + $0x684] ss:$16 sps:$4 sm:$0xff]  }
 0x621   :  { %9666 = vmatpush1.bf16.msra.mxu0 %v16772_v3  ;;  %v14831_v3 = vadd.f32 %v18172_v34, %v4277_v63  ;;  %v16789_v34 = vld [vmem:[#allocation9 + $0x6c4] ss:$16 sps:$4 sm:$0xff]  }
 0x622   :  { %9667 = vmatprep.subr.bf16.mxu0 %v16780_v7  ;;  %v4268_v7 = vsub.s32 7, %v18063_v60 }
 0x623   :  { %9416 = vmatpush1.bf16.msra.mxu1 %v16706_v6  ;;  %v16775_v6 = vld [vmem:[#allocation9 + $0x680] ss:$16 sps:$4 sm:$0xff]  }
 0x624   :  { %9417 = vmatprep.subr.bf16.mxu1 %v16711_v8  ;;  %v16783_v8 = vld [vmem:[#allocation9 + $0x6a4] ss:$16 sps:$4 sm:$0xff]  }
 0x625   :  { %9668 = vmatpush1.bf16.msra.mxu0 %v16778_v9  ;;  %v13984_v9 = vmul.f32 -1.442695, %v14831_v3  ;;  %v16835_v3 = vld [vmem:[#allocation9 + $0x7c0] ss:$16 sps:$4 sm:$0xff]  }
 0x626   :  { %9669 = vmatprep.subr.bf16.mxu0 %v16786_v14 }
 0x627   :  { %9418 = vmatpush1.bf16.msra.mxu1 %v16709_v12  ;;  %v17538_v12 = vld [vmem:[#allocation7] sm:$0xff]  ;;  %17518 = vpow2.f32 %v13984_v9 }
 0x628   :  { %9419 = vmatprep.subr.bf16.mxu1 %v16714_v17  ;;  %v4269_v17 = vrot.slane %v17538_v12, %v4268_v7  ;;  %v16843_v9 = vld [vmem:[#allocation9 + $0x7e4] ss:$16 sps:$4 sm:$0xff]  }
 0x629   :  { %9670 = vmatpush1.bf16.msra.mxu0 %v16784_v40  ;;  %v16781_v40 = vld [vmem:[#allocation9 + $0x6a0] ss:$16 sps:$4 sm:$0xff]  }
 0x62a   :  { %9671 = vmatprep.subr.bf16.mxu0 %v16792_v19 }
 0x62b   :  { %9420 = vmatpush1.bf16.msra.mxu1 %v16712_v18 }
 0x62c   :  { %9421 = vmatprep.subr.bf16.mxu1 %v16717_v57 }
 0x62d   :  { %9672 = vmatpush1.bf16.msra.mxu0 %v16790_v22 }
 0x62e   :  { %9673 = vmatprep.subr.bf16.mxu0 %v16798_v25  ;;  %v16787_v25 = vld [vmem:[#allocation9 + $0x6c0] ss:$16 sps:$4 sm:$0xff]  }
 0x62f   :  { %9422 = vmatpush1.bf16.msra.mxu1 %v16715_v13 }
 0x630   :  { %9423 = vmatprep.subr.bf16.mxu1 %v16720_v32 }
 0x631   :  { %9674 = vmatpush1.bf16.msra.mxu0 %v16796_v36 }
 0x632   :  { %9675 = vmatprep.subr.bf16.mxu0 %v16804_v58 }
 0x633   :  { %9424 = vmatpush1.bf16.msra.mxu1 %v16718_v29  ;;  %v16795_v29 = vld [vmem:[#allocation9 + $0x6e4] ss:$16 sps:$4 sm:$0xff]  }
 0x634   :  { %9425 = vmatprep.subr.bf16.mxu1 %v16723_v39  ;;  %v16793_v39 = vld [vmem:[#allocation9 + $0x6e0] ss:$16 sps:$4 sm:$0xff]  }
 0x635   :  { %9676 = vmatpush1.bf16.msra.mxu0 %v16802_v37  ;;  %v16801_v37 = vld [vmem:[#allocation9 + $0x704] ss:$16 sps:$4 sm:$0xff]  }
 0x636   :  { %9677 = vmatprep.subr.bf16.mxu0 %v16810_v15  ;;  %v16799_v15 = vld [vmem:[#allocation9 + $0x700] ss:$16 sps:$4 sm:$0xff]  }
 0x637   :  { %9426 = vmatpush1.bf16.msra.mxu1 %v16721_v35  ;;  %v17519_v35 = vpop.eup %17518 }
 0x638   :  { %9427 = vmatprep.subr.bf16.mxu1 %v16726_v21  ;;  %v16807_v21 = vld [vmem:[#allocation9 + $0x724] ss:$16 sps:$4 sm:$0xff]  }
 0x639   :  { %9678 = vmatpush1.bf16.msra.mxu0 %v16808_v38  ;;  %v7342_v38 = vadd.f32 1.0, %v17519_v35  ;;  %v16862_v35 = vld [vmem:[#allocation9 + $0x8a8] ss:$16 sps:$4 sm:$0xff]  }
 0x63a   :  { %9679 = vmatprep.subr.bf16.mxu0 %v16816_v42 }
 0x63b   :  { %9428 = vmatpush1.bf16.msra.mxu1 %v16724_v41  ;;  %v16805_v41 = vld [vmem:[#allocation9 + $0x720] ss:$16 sps:$4 sm:$0xff]  }
 0x63c   :  { %9429 = vmatprep.subr.bf16.mxu1 %v16729_v44  ;;  %v16813_v44 = vld [vmem:[#allocation9 + $0x744] ss:$16 sps:$4 sm:$0xff]  }
 0x63d   :  { %9680 = vmatpush1.bf16.msra.mxu0 %v16814_v45 }
 0x63e   :  { %9681 = vmatprep.subr.bf16.mxu0 %v16822_v10 }
 0x63f   :  { %9430 = vmatpush1.bf16.msra.mxu1 %v16727_v47 }
 0x640   :  { %9431 = vmatprep.subr.bf16.mxu1 %v16732_v43  ;;  %v16811_v43 = vld [vmem:[#allocation9 + $0x740] ss:$16 sps:$4 sm:$0xff]  }
 0x641   :  { %9682 = vmatpush1.bf16.msra.mxu0 %v16820_v4  ;;  %v16819_v4 = vld [vmem:[#allocation9 + $0x764] ss:$16 sps:$4 sm:$0xff]  }
 0x642   :  { %9683 = vmatprep.subr.bf16.mxu0 %v16828_v0  ;;  %v16825_v0 = vld [vmem:[#allocation9 + $0x784] ss:$16 sps:$4 sm:$0xff]  }
 0x643   :  { %9432 = vmatpush1.bf16.msra.mxu1 %v16730_v28  ;;  %v16817_v28 = vld [vmem:[#allocation9 + $0x760] ss:$16 sps:$4 sm:$0xff]  }
 0x644   :  { %9433 = vmatprep.subr.bf16.mxu1 %v16735_v5  ;;  %v16823_v5 = vld [vmem:[#allocation9 + $0x780] ss:$16 sps:$4 sm:$0xff]  }
 0x645   :  { %9684 = vmatpush1.bf16.msra.mxu0 %v16826_v49  ;;  %v17539_v49 = vld [vmem:[%s18296_s0 + $0x18] sm:$0xff] }
 0x646   :  { %9694 = vmatprep.subr.bf16.mxu0 %v16834_v50  ;;  %v176_v50 = vunpack.c.l.bf16 %v17539_v49 }
 0x647   :  { %9434 = vmatpush1.bf16.msra.mxu1 %v16733_v30  ;;  %v177_v30 = vunpack.c.h.bf16 %v17539_v49  ;;  %v16891_v49 = vld [vmem:[#allocation9 + $0x8e4] ss:$16 sps:$4 sm:$0xff]  }
 0x648   :  { %9435 = vmatprep.subr.bf16.mxu1 %v16741_v51 }
 0x64b   :  { %9436 = vmatpush1.bf16.msra.mxu1 %v16739_v52  ;;  %v16831_v52 = vld [vmem:[#allocation9 + $0x7a4] ss:$16 sps:$4 sm:$0xff]  }
 0x64c   :  { %9437 = vmatprep.subr.bf16.mxu1 %v16747_v11  ;;  %v18217_v11 = vld [vmem:[%s18296_s0 + $0x20] sm:$0xff] }
 0x64f   :  { %9438 = vmatpush1.bf16.msra.mxu1 %v16745_v53  ;;  %v179_v53 = vunpack.c.h.bf16 %v18217_v11 }
 0x650   :  { %9448 = vmatprep.subr.bf16.mxu1 %v16753_v48 }
 0x652   :  { %9440 = vmatmul.mubr.bf16.vlgmr.msra.gmra.mrb[16].mxu1 %v18194_v16  ;;  %v4264_v16 = vsub.s32 6, %v18063_v60  ;;  %v17479_v60 = vld [vmem:[#allocation15 + $0x200] sm:$0xff]  }
 0x653   :  { %9449 = vmatpush1.bf16.msra.mxu1 %v16751_v54 }
 0x654   :  { %9450 = vmatprep.subr.bf16.mxu1 %v16759_v55  ;;  %v4265_v14 = vrot.slane %v17538_v12, %v4264_v16  ;;  %v16829_v55 = vld [vmem:[#allocation9 + $0x7a0] ss:$16 sps:$4 sm:$0xff]   ;;  %v16838_v12 = vld [vmem:[#allocation9 + $0x828] ss:$16 sps:$4 sm:$0xff]  }
 0x657   :  { %9451 = vmatpush1.bf16.msra.mxu1 %v16757_v56 }
 0x658   :  { %9452 = vmatprep.subr.bf16.mxu1 %v16765_v59 }
 0x65b   :  { %9453 = vmatpush1.bf16.msra.mxu1 %v16763_v62 }
 0x65c   :  { %9454 = vmatprep.subr.bf16.mxu1 %v16771_v46  ;;  %v16837_v46 = vld [vmem:[#allocation9 + $0x7c4] ss:$16 sps:$4 sm:$0xff]  }
 0x65f   :  { %9455 = vmatpush1.bf16.msra.mxu1 %v16769_v2  ;;  %v16832_v2 = vld [vmem:[#allocation9 + $0x808] ss:$16 sps:$4 sm:$0xff]  }
 0x660   :  { %9456 = vmatprep.subr.bf16.mxu1 %v16777_v23 }
 0x663   :  { %9457 = vmatpush1.bf16.msra.mxu1 %v16775_v6  ;;  %v16840_v6 = vld [vmem:[#allocation9 + $0x82c] ss:$16 sps:$4 sm:$0xff]  }
 0x664   :  { %9458 = vmatprep.subr.bf16.mxu1 %v16783_v8 }
 0x665   :  { %v7173_v18 = vpop.f32.mrb[12].mxu1 }
 0x666   :  { %v14828_v19 = vadd.f32 %v7173_v18, %v4265_v14  ;;  %v7175_v57 = vpop.f32.mrb[13].mxu1  ;;  %v16841_v14 = vld [vmem:[#allocation9 + $0x7e0] ss:$16 sps:$4 sm:$0xff]  }
 0x667   :  { %v14829_v22 = vadd.f32 %v7175_v57, %v4269_v17  ;;  %v7177_v13 = vpop.f32.mrb[14].mxu1  ;;  %9459 = vmatpush1.bf16.msra.mxu1 %v16781_v40  ;;  %v16846_v17 = vld [vmem:[#allocation9 + $0x84c] ss:$16 sps:$4 sm:$0xff]   ;;  %v16849_v40 = vld [vmem:[#allocation9 + $0x804] ss:$16 sps:$4 sm:$0xff]  }
 0x668   :  { %v13981_v32 = vmul.f32 -1.442695, %v14828_v19  ;;  %v7178_v36 = vpop.f32.mrb[15].mxu1  ;;  %9460 = vmatprep.subr.bf16.mxu1 %v16789_v34  ;;  %v16844_v34 = vld [vmem:[#allocation9 + $0x848] ss:$16 sps:$4 sm:$0xff]  }
 0x669   :  { %v13982_v58 = vmul.f32 -1.442695, %v14829_v22  ;;  %v16847_v18 = vld [vmem:[#allocation9 + $0x800] ss:$16 sps:$4 sm:$0xff]   ;;  %v16852_v19 = vld [vmem:[#allocation9 + $0x86c] ss:$16 sps:$4 sm:$0xff]  }
 0x66a   :  { %17520 = vpow2.f32 %v13981_v32  ;;  %v16855_v57 = vld [vmem:[#allocation9 + $0x824] ss:$16 sps:$4 sm:$0xff]   ;;  %v16850_v22 = vld [vmem:[#allocation9 + $0x868] ss:$16 sps:$4 sm:$0xff]   ;;  %v16853_v13 = vld [vmem:[#allocation9 + $0x820] ss:$16 sps:$4 sm:$0xff]  }
 0x66b   :  { %17522 = vpow2.f32 %v13982_v58  ;;  %9461 = vmatpush1.bf16.msra.mxu1 %v16787_v25  ;;  %v16858_v25 = vld [vmem:[#allocation9 + $0x88c] ss:$16 sps:$4 sm:$0xff]   ;;  %v16861_v32 = vld [vmem:[#allocation9 + $0x844] ss:$16 sps:$4 sm:$0xff]   ;;  %v16856_v36 = vld [vmem:[#allocation9 + $0x888] ss:$16 sps:$4 sm:$0xff]  }
 0x66c   :  { %9462 = vmatprep.subr.bf16.mxu1 %v16795_v29  ;;  %17524 = vrcp.f32 %v7342_v38  ;;  %v16859_v29 = vld [vmem:[#allocation9 + $0x840] ss:$16 sps:$4 sm:$0xff]   ;;  %v16864_v58 = vld [vmem:[#allocation9 + $0x8ac] ss:$16 sps:$4 sm:$0xff]   ;;  %v16873_v38 = vld [vmem:[#allocation9 + $0x884] ss:$16 sps:$4 sm:$0xff]  }
 0x66f   :  { %9463 = vmatpush1.bf16.msra.mxu1 %v16793_v39  ;;  %v16867_v39 = vld [vmem:[#allocation9 + $0x864] ss:$16 sps:$4 sm:$0xff]  }
 0x670   :  { %9464 = vmatprep.subr.bf16.mxu1 %v16801_v37  ;;  %v4273_v37 = vrot.slane %v18200_v61, %v18068_v20  ;;  %v16874_v61 = vld [vmem:[#allocation9 + $0x8e8] ss:$16 sps:$4 sm:$0xff]  }
 0x673   :  { %9465 = vmatpush1.bf16.msra.mxu1 %v16799_v15  ;;  %v16865_v15 = vld [vmem:[#allocation9 + $0x860] ss:$16 sps:$4 sm:$0xff]  }
 0x674   :  { %v17521_v42 = vpop.eup %17520  ;;  %9466 = vmatprep.subr.bf16.mxu1 %v16807_v21  ;;  %v16870_v21 = vld [vmem:[#allocation9 + $0x8cc] ss:$16 sps:$4 sm:$0xff]  }
 0x675   :  { %v17523_v45 = vpop.eup %17522  ;;  %v7339_v47 = vadd.f32 1.0, %v17521_v42  ;;  %v16868_v42 = vld [vmem:[#allocation9 + $0x8c8] ss:$16 sps:$4 sm:$0xff]  }
 0x676   :  { %v7340_v10 = vadd.f32 1.0, %v17523_v45  ;;  %v17525_v51 = vpop.eup %17524  ;;  %v16876_v45 = vld [vmem:[#allocation9 + $0x8ec] ss:$16 sps:$4 sm:$0xff]  }
 0x677   :  { %17526 = vrcp.f32 %v7339_v47  ;;  %9467 = vmatpush1.bf16.msra.mxu1 %v16805_v41  ;;  %v7372_v62 = vmul.f32 %v17525_v51, %v179_v53  ;;  %v14830_v41 = vadd.f32 %v18170_v33, %v4273_v37  ;;  %v16879_v47 = vld [vmem:[#allocation9 + $0x8a4] ss:$16 sps:$4 sm:$0xff]   ;;  %v16880_v33 = vld [vmem:[#allocation9 + $0x908] ss:$16 sps:$4 sm:$0xff]   ;;  %v16894_v51 = vld [vmem:[#allocation9 + $0x94c] ss:$16 sps:$4 sm:$0xff]  }
 0x678   :  { %17528 = vrcp.f32 %v7340_v10  ;;  %9468 = vmatprep.subr.bf16.mxu1 %v16813_v44  ;;  %v16871_v44 = vld [vmem:[#allocation9 + $0x880] ss:$16 sps:$4 sm:$0xff]   ;;  %v16892_v53 = vld [vmem:[#allocation9 + $0x948] ss:$16 sps:$4 sm:$0xff]  }
 0x679   :  { %v7382_v8 = vpack.c.bf16 %v7372_v62, %v7372_v62  ;;  %v13983_v10 = vmul.f32 -1.442695, %v14830_v41  ;;  %v16898_v62 = vld [vmem:[#allocation9 + $0x968] ss:$16 sps:$4 sm:$0xff]   ;;  %v16928_v37 = vld [vmem:[#allocation9 + $0x9c0] ss:$16 sps:$4 sm:$0xff]  }
 0x67a   :  { %v16936_v41 = vld [vmem:[#allocation12 + $0x4] ss:$40 sps:$4 sm:$0xff]  }
 0x67b   :  { %9469 = vmatpush1.bf16.msra.mxu1 %v16811_v43  ;;  %v16877_v43 = vld [vmem:[#allocation9 + $0x8a0] ss:$16 sps:$4 sm:$0xff]   ;;  %17530 = vpow2.f32 %v13983_v10  ;;  %v16955_v10 = vld [vmem:[#allocation12 + $0xf8] ss:$40 sps:$4 sm:$0xff]  }
 0x67c   :  { %9470 = vmatprep.subr.bf16.mxu1 %v16819_v4  ;;  %v16882_v4 = vld [vmem:[#allocation9 + $0x90c] ss:$16 sps:$4 sm:$0xff]  }
 0x67f   :  { %9471 = vmatpush1.bf16.msra.mxu1 %v16817_v28  ;;  %v16885_v28 = vld [vmem:[#allocation9 + $0x8c4] ss:$16 sps:$4 sm:$0xff]  }
 0x680   :  { %9472 = vmatprep.subr.bf16.mxu1 %v16825_v0  ;;  %v16883_v0 = vld [vmem:[#allocation9 + $0x8c0] ss:$16 sps:$4 sm:$0xff]  }
 0x681   :  { %v17527_v48 = vpop.eup %17526 }
 0x682   :  { %v17529_v54 = vpop.eup %17528  ;;  %v7369_v59 = vmul.f32 %v17527_v48, %v176_v50  ;;  %v16889_v50 = vld [vmem:[#allocation9 + $0x8e0] ss:$16 sps:$4 sm:$0xff]  }
 0x683   :  { %9473 = vmatpush1.bf16.msra.mxu1 %v16823_v5  ;;  %v7370_v56 = vmul.f32 %v17529_v54, %v177_v30  ;;  %v16888_v5 = vld [vmem:[#allocation9 + $0x92c] ss:$16 sps:$4 sm:$0xff]   ;;  %v16886_v30 = vld [vmem:[#allocation9 + $0x928] ss:$16 sps:$4 sm:$0xff]   ;;  %v16895_v54 = vld [vmem:[#allocation9 + $0x900] ss:$16 sps:$4 sm:$0xff]  }
 0x684   :  { %9474 = vmatprep.subr.bf16.mxu1 %v16831_v52  ;;  %v7379_v23 = vpack.c.bf16 %v7369_v59, %v7369_v59  ;;  %v16897_v52 = vld [vmem:[#allocation9 + $0x904] ss:$16 sps:$4 sm:$0xff]  }
 0x685   :  { %v7380_v63 = vpack.c.bf16 %v7370_v56, %v7370_v56  ;;  %v17531_v48 = vpop.eup %17530  ;;  %v16903_v56 = vld [vmem:[#allocation9 + $0x924] ss:$16 sps:$4 sm:$0xff]  }
 0x686   :  { %v7341_v59 = vadd.f32 1.0, %v17531_v48  ;;  %v16981_v48 = vld [vmem:[#allocation12 + $0x23c] ss:$40 sps:$4 sm:$0xff]  }
 0x687   :  { %9475 = vmatpush1.bf16.msra.mxu1 %v16829_v55  ;;  %9480 = vmatprep.mubr.bf16.mxu1 %v7380_v63  ;;  %v16900_v55 = vld [vmem:[#allocation9 + $0x96c] ss:$16 sps:$4 sm:$0xff]  }
 0x688   :  { %9685 = vmatprep.mubr.bf16.mxu0 %v7380_v63  ;;  %9476 = vmatprep.subr.bf16.mxu1 %v16837_v46  ;;  %v16901_v46 = vld [vmem:[#allocation9 + $0x920] ss:$16 sps:$4 sm:$0xff]   ;;  %v16906_v63 = vld [vmem:[#allocation9 + $0x98c] ss:$16 sps:$4 sm:$0xff]   ;;  %17532 = vrcp.f32 %v7341_v59 }
 0x689   :  { %9686 = vmatmul.mubr.bf16.vlgmr.msra.gmra.mrb[16].mxu0 %v7379_v23  ;;  %v16987_v59 = vld [vmem:[#allocation12 + $0x28c] ss:$40 sps:$4 sm:$0xff]  }
 0x68a   :  { %9695 = vmatpush1.bf16.msra.mxu0 %v16832_v2  ;;  %9726 = vmatprep.mubr.bf16.mxu0 %v7382_v8  ;;  %v16909_v2 = vld [vmem:[#allocation9 + $0x944] ss:$16 sps:$4 sm:$0xff]  }
 0x68b   :  { %9477 = vmatpush1.bf16.msra.mxu1 %v16835_v3  ;;  %9696 = vmatprep.subr.bf16.mxu0 %v16840_v6  ;;  %v16907_v3 = vld [vmem:[#allocation9 + $0x940] ss:$16 sps:$4 sm:$0xff]   ;;  %v16912_v6 = vld [vmem:[#allocation9 + $0x9ac] ss:$16 sps:$4 sm:$0xff]  }
 0x68c   :  { %9478 = vmatprep.subr.bf16.mxu1 %v16843_v9  ;;  %v16910_v9 = vld [vmem:[#allocation9 + $0x9a8] ss:$16 sps:$4 sm:$0xff]  }
 0x68e   :  { %9697 = vmatpush1.bf16.msra.mxu0 %v16838_v12  ;;  %v16913_v12 = vld [vmem:[#allocation9 + $0x960] ss:$16 sps:$4 sm:$0xff]  }
 0x68f   :  { %9479 = vmatpush1.bf16.msra.mxu1 %v16841_v14  ;;  %9698 = vmatprep.subr.bf16.mxu0 %v16846_v17  ;;  %v16918_v14 = vld [vmem:[#allocation9 + $0x9cc] ss:$16 sps:$4 sm:$0xff]   ;;  %v16921_v17 = vld [vmem:[#allocation9 + $0x984] ss:$16 sps:$4 sm:$0xff]  }
 0x690   :  { %9489 = vmatprep.subr.bf16.mxu1 %v16849_v40  ;;  %v16916_v40 = vld [vmem:[#allocation9 + $0x9c8] ss:$16 sps:$4 sm:$0xff]  }
 0x692   :  { %9699 = vmatpush1.bf16.msra.mxu0 %v16844_v34  ;;  %9481 = vmatmul.mubr.bf16.vlgmr.msra.gmra.mrb[16].mxu1 %v7379_v23  ;;  %v16904_v23 = vld [vmem:[#allocation9 + $0x988] ss:$16 sps:$4 sm:$0xff]   ;;  %v16919_v34 = vld [vmem:[#allocation9 + $0x980] ss:$16 sps:$4 sm:$0xff]  }
 0x693   :  { %9490 = vmatpush1.bf16.msra.mxu1 %v16847_v18  ;;  %9521 = vmatprep.mubr.bf16.mxu1 %v7382_v8  ;;  %v16915_v8 = vld [vmem:[#allocation9 + $0x964] ss:$16 sps:$4 sm:$0xff]   ;;  %v16924_v18 = vld [vmem:[#allocation9 + $0x9ec] ss:$16 sps:$4 sm:$0xff]  }
 0x694   :  { %9700 = vmatprep.subr.bf16.mxu0 %v16852_v19  ;;  %9491 = vmatprep.subr.bf16.mxu1 %v16855_v57  ;;  %v178_v19 = vunpack.c.l.bf16 %v18217_v11  ;;  %v17533_v57 = vpop.eup %17532  ;;  %v16933_v11 = vld [vmem:[#allocation9 + $0x9e4] ss:$16 sps:$4 sm:$0xff]  }
 0x696   :  { %9701 = vmatpush1.bf16.msra.mxu0 %v16850_v22  ;;  %v16927_v22 = vld [vmem:[#allocation9 + $0x9a4] ss:$16 sps:$4 sm:$0xff]  }
 0x697   :  { %9492 = vmatpush1.bf16.msra.mxu1 %v16853_v13  ;;  %9702 = vmatprep.subr.bf16.mxu0 %v16858_v25  ;;  %v16922_v13 = vld [vmem:[#allocation9 + $0x9e8] ss:$16 sps:$4 sm:$0xff]   ;;  %v16925_v25 = vld [vmem:[#allocation9 + $0x9a0] ss:$16 sps:$4 sm:$0xff]  }
 0x698   :  { %9493 = vmatprep.subr.bf16.mxu1 %v16861_v32  ;;  %v7371_v32 = vmul.f32 %v17533_v57, %v178_v19  ;;  %v16996_v19 = vld [vmem:[#allocation12 + $0x324] ss:$40 sps:$4 sm:$0xff]   ;;  %v16994_v57 = vld [vmem:[#allocation12 + $0x320] ss:$40 sps:$4 sm:$0xff]  }
 0x69a   :  { %9703 = vmatpush1.bf16.msra.mxu0 %v16856_v36  ;;  %v16939_v36 = vld [vmem:[#allocation12 + $0xc] ss:$40 sps:$4 sm:$0xff]  }
 0x69b   :  { %9494 = vmatpush1.bf16.msra.mxu1 %v16859_v29  ;;  %9704 = vmatprep.subr.bf16.mxu0 %v16864_v58  ;;  %v16930_v29 = vld [vmem:[#allocation9 + $0x9c4] ss:$16 sps:$4 sm:$0xff]  }
 0x69c   :  { %9495 = vmatprep.subr.bf16.mxu1 %v16867_v39  ;;  %v16937_v58 = vld [vmem:[#allocation12 + $0x8] ss:$40 sps:$4 sm:$0xff]   ;;  %v7381_v39 = vpack.c.bf16 %v7371_v32, %v7371_v32  ;;  %v17011_v32 = vld [vmem:[#allocation12 + $0x3cc] ss:$40 sps:$4 sm:$0xff]  }
 0x69e   :  { %9705 = vmatpush1.bf16.msra.mxu0 %v16862_v35  ;;  %v16945_v35 = vld [vmem:[#allocation12 + $0x5c] ss:$40 sps:$4 sm:$0xff]  }
 0x69f   :  { %9496 = vmatpush1.bf16.msra.mxu1 %v16865_v15  ;;  %9706 = vmatprep.subr.bf16.mxu0 %v16870_v21  ;;  %v16943_v15 = vld [vmem:[#allocation12 + $0x58] ss:$40 sps:$4 sm:$0xff]   ;;  %v16931_v21 = vld [vmem:[#allocation9 + $0x9e0] ss:$16 sps:$4 sm:$0xff]  }
 0x6a0   :  { %9497 = vmatprep.subr.bf16.mxu1 %v16873_v38  ;;  %v16951_v38 = vld [vmem:[#allocation12 + $0xac] ss:$40 sps:$4 sm:$0xff]  }
 0x6a2   :  { %9707 = vmatpush1.bf16.msra.mxu0 %v16868_v42  ;;  %v16949_v42 = vld [vmem:[#allocation12 + $0xa8] ss:$40 sps:$4 sm:$0xff]  }
 0x6a3   :  { %9498 = vmatpush1.bf16.msra.mxu1 %v16871_v44  ;;  %9708 = vmatprep.subr.bf16.mxu0 %v16876_v45  ;;  %v16934_v44 = vld [vmem:[#allocation12] ss:$40 sps:$4 sm:$0xff]   ;;  %v16957_v45 = vld [vmem:[#allocation12 + $0xfc] ss:$40 sps:$4 sm:$0xff]  }
 0x6a4   :  { %9499 = vmatprep.subr.bf16.mxu1 %v16879_v47  ;;  %v16942_v47 = vld [vmem:[#allocation12 + $0x54] ss:$40 sps:$4 sm:$0xff]  }
 0x6a6   :  { %9709 = vmatpush1.bf16.msra.mxu0 %v16874_v61  ;;  %v16940_v61 = vld [vmem:[#allocation12 + $0x50] ss:$40 sps:$4 sm:$0xff]  }
 0x6a7   :  { %9500 = vmatpush1.bf16.msra.mxu1 %v16877_v43  ;;  %9710 = vmatprep.subr.bf16.mxu0 %v16882_v4  ;;  %v16963_v43 = vld [vmem:[#allocation12 + $0x14c] ss:$40 sps:$4 sm:$0xff]  }
 0x6a8   :  { %9501 = vmatprep.subr.bf16.mxu1 %v16885_v28  ;;  %v16948_v4 = vld [vmem:[#allocation12 + $0xa4] ss:$40 sps:$4 sm:$0xff]   ;;  %v16961_v28 = vld [vmem:[#allocation12 + $0x148] ss:$40 sps:$4 sm:$0xff]  }
 0x6aa   :  { %9711 = vmatpush1.bf16.msra.mxu0 %v16880_v33  ;;  %v16946_v33 = vld [vmem:[#allocation12 + $0xa0] ss:$40 sps:$4 sm:$0xff]  }
 0x6ab   :  { %9502 = vmatpush1.bf16.msra.mxu1 %v16883_v0  ;;  %9712 = vmatprep.subr.bf16.mxu0 %v16888_v5  ;;  %v16969_v0 = vld [vmem:[#allocation12 + $0x19c] ss:$40 sps:$4 sm:$0xff]  }
 0x6ac   :  { %9503 = vmatprep.subr.bf16.mxu1 %v16891_v49  ;;  %v16954_v5 = vld [vmem:[#allocation12 + $0xf4] ss:$40 sps:$4 sm:$0xff]   ;;  %v16967_v49 = vld [vmem:[#allocation12 + $0x198] ss:$40 sps:$4 sm:$0xff]  }
 0x6ae   :  { %9713 = vmatpush1.bf16.msra.mxu0 %v16886_v30  ;;  %v16952_v30 = vld [vmem:[#allocation12 + $0xf0] ss:$40 sps:$4 sm:$0xff]  }
 0x6af   :  { %9504 = vmatpush1.bf16.msra.mxu1 %v16889_v50  ;;  %9714 = vmatprep.subr.bf16.mxu0 %v16894_v51  ;;  %v16975_v50 = vld [vmem:[#allocation12 + $0x1ec] ss:$40 sps:$4 sm:$0xff]  }
 0x6b0   :  { %9505 = vmatprep.subr.bf16.mxu1 %v16897_v52  ;;  %v16960_v51 = vld [vmem:[#allocation12 + $0x144] ss:$40 sps:$4 sm:$0xff]   ;;  %v16973_v52 = vld [vmem:[#allocation12 + $0x1e8] ss:$40 sps:$4 sm:$0xff]  }
 0x6b2   :  { %9715 = vmatpush1.bf16.msra.mxu0 %v16892_v53  ;;  %v16958_v53 = vld [vmem:[#allocation12 + $0x140] ss:$40 sps:$4 sm:$0xff]  }
 0x6b3   :  { %9506 = vmatpush1.bf16.msra.mxu1 %v16895_v54  ;;  %9716 = vmatprep.subr.bf16.mxu0 %v16900_v55  ;;  %v16966_v54 = vld [vmem:[#allocation12 + $0x194] ss:$40 sps:$4 sm:$0xff]   ;;  %v16979_v55 = vld [vmem:[#allocation12 + $0x238] ss:$40 sps:$4 sm:$0xff]  }
 0x6b4   :  { %9507 = vmatprep.subr.bf16.mxu1 %v16903_v56  ;;  %v16964_v56 = vld [vmem:[#allocation12 + $0x190] ss:$40 sps:$4 sm:$0xff]  }
 0x6b6   :  { %9717 = vmatpush1.bf16.msra.mxu0 %v16898_v62  ;;  %v16972_v62 = vld [vmem:[#allocation12 + $0x1e4] ss:$40 sps:$4 sm:$0xff]  }
 0x6b7   :  { %9508 = vmatpush1.bf16.msra.mxu1 %v16901_v46  ;;  %9718 = vmatprep.subr.bf16.mxu0 %v16906_v63  ;;  %v16985_v46 = vld [vmem:[#allocation12 + $0x288] ss:$40 sps:$4 sm:$0xff]  }
 0x6b8   :  { %9509 = vmatprep.subr.bf16.mxu1 %v16909_v2  ;;  %v16970_v63 = vld [vmem:[#allocation12 + $0x1e0] ss:$40 sps:$4 sm:$0xff]   ;;  %v16993_v2 = vld [vmem:[#allocation12 + $0x2dc] ss:$40 sps:$4 sm:$0xff]  }
 0x6ba   :  { %9719 = vmatpush1.bf16.msra.mxu0 %v16904_v23  ;;  %v16978_v23 = vld [vmem:[#allocation12 + $0x234] ss:$40 sps:$4 sm:$0xff]  }
 0x6bb   :  { %9510 = vmatpush1.bf16.msra.mxu1 %v16907_v3  ;;  %9720 = vmatprep.subr.bf16.mxu0 %v16912_v6  ;;  %v16991_v3 = vld [vmem:[#allocation12 + $0x2d8] ss:$40 sps:$4 sm:$0xff]  }
 0x6bc   :  { %9511 = vmatprep.subr.bf16.mxu1 %v16915_v8  ;;  %v16976_v6 = vld [vmem:[#allocation12 + $0x230] ss:$40 sps:$4 sm:$0xff]   ;;  %v16999_v8 = vld [vmem:[#allocation12 + $0x32c] ss:$40 sps:$4 sm:$0xff]  }
 0x6be   :  { %9721 = vmatpush1.bf16.msra.mxu0 %v16910_v9  ;;  %v16984_v9 = vld [vmem:[#allocation12 + $0x284] ss:$40 sps:$4 sm:$0xff]  }
 0x6bf   :  { %9512 = vmatpush1.bf16.msra.mxu1 %v16913_v12  ;;  %9722 = vmatprep.subr.bf16.mxu0 %v16918_v14  ;;  %v16997_v12 = vld [vmem:[#allocation12 + $0x328] ss:$40 sps:$4 sm:$0xff]  }
 0x6c0   :  { %9513 = vmatprep.subr.bf16.mxu1 %v16921_v17  ;;  %v16982_v14 = vld [vmem:[#allocation12 + $0x280] ss:$40 sps:$4 sm:$0xff]   ;;  %v17005_v17 = vld [vmem:[#allocation12 + $0x37c] ss:$40 sps:$4 sm:$0xff]  }
 0x6c2   :  { %9723 = vmatpush1.bf16.msra.mxu0 %v16916_v40  ;;  %v16990_v40 = vld [vmem:[#allocation12 + $0x2d4] ss:$40 sps:$4 sm:$0xff]  }
 0x6c3   :  { %9514 = vmatpush1.bf16.msra.mxu1 %v16919_v34  ;;  %9724 = vmatprep.subr.bf16.mxu0 %v16924_v18  ;;  %v17003_v34 = vld [vmem:[#allocation12 + $0x378] ss:$40 sps:$4 sm:$0xff]  }
 0x6c4   :  { %9515 = vmatprep.subr.bf16.mxu1 %v16927_v22  ;;  %v16988_v18 = vld [vmem:[#allocation12 + $0x2d0] ss:$40 sps:$4 sm:$0xff]   ;;  %v17002_v22 = vld [vmem:[#allocation12 + $0x374] ss:$40 sps:$4 sm:$0xff]  }
 0x6c6   :  { %9725 = vmatpush1.bf16.msra.mxu0 %v16922_v13  ;;  %v17000_v13 = vld [vmem:[#allocation12 + $0x370] ss:$40 sps:$4 sm:$0xff]  }
 0x6c7   :  { %9516 = vmatpush1.bf16.msra.mxu1 %v16925_v25  ;;  %11799 = vmatprep.subr.bf16.mxu0 %v16939_v36  ;;  %v17008_v25 = vld [vmem:[#allocation12 + $0x3c4] ss:$40 sps:$4 sm:$0xff]   ;;  %v17006_v36 = vld [vmem:[#allocation12 + $0x3c0] ss:$40 sps:$4 sm:$0xff]  }
 0x6c8   :  { %9517 = vmatprep.subr.bf16.mxu1 %v16930_v29  ;;  %v17009_v29 = vld [vmem:[#allocation12 + $0x3c8] ss:$40 sps:$4 sm:$0xff]  }
 0x6c9   :  { %9727 = vmatmul.mubr.bf16.vlgmr.msra.gmra.mrb[16].mxu0 %v7381_v39 }
 0x6ca   :  { %11800 = vmatpush1.bf16.msra.mxu0 %v16937_v58  ;;  %v17014_v58 = vld [vmem:[#allocation12 + $0x414] ss:$40 sps:$4 sm:$0xff]  }
 0x6cb   :  { %9518 = vmatpush1.bf16.msra.mxu1 %v16928_v37  ;;  %11801 = vmatprep.subr.bf16.mxu0 %v16945_v35  ;;  %v17012_v37 = vld [vmem:[#allocation12 + $0x410] ss:$40 sps:$4 sm:$0xff]  }
 0x6cc   :  { %9519 = vmatprep.subr.bf16.mxu1 %v16933_v11  ;;  %v17015_v35 = vld [vmem:[#allocation12 + $0x418] ss:$40 sps:$4 sm:$0xff]   ;;  %v17020_v11 = vld [vmem:[#allocation12 + $0x464] ss:$40 sps:$4 sm:$0xff]  }
 0x6ce   :  { %11802 = vmatpush1.bf16.msra.mxu0 %v16943_v15  ;;  %v17023_v15 = vld [vmem:[#allocation12 + $0x46c] ss:$40 sps:$4 sm:$0xff]  }
 0x6cf   :  { %9520 = vmatpush1.bf16.msra.mxu1 %v16931_v21  ;;  %11803 = vmatprep.subr.bf16.mxu0 %v16951_v38  ;;  %v17018_v21 = vld [vmem:[#allocation12 + $0x460] ss:$40 sps:$4 sm:$0xff]  }
 0x6d0   :  { %11717 = vmatprep.subr.bf16.mxu1 %v16936_v41  ;;  %v17021_v38 = vld [vmem:[#allocation12 + $0x468] ss:$40 sps:$4 sm:$0xff]   ;;  %v17026_v41 = vld [vmem:[#allocation12 + $0x4b4] ss:$40 sps:$4 sm:$0xff]  }
 0x6d2   :  { %9522 = vmatmul.mubr.bf16.vlgmr.msra.gmra.mrb[16].mxu1 %v7381_v39  ;;  %11804 = vmatpush1.bf16.msra.mxu0 %v16949_v42  ;;  %v17017_v39 = vld [vmem:[#allocation12 + $0x41c] ss:$40 sps:$4 sm:$0xff]  }
 0x6d3   :  { %11718 = vmatpush1.bf16.msra.mxu1 %v16934_v44  ;;  %11805 = vmatprep.subr.bf16.mxu0 %v16957_v45  ;;  %v17029_v42 = vld [vmem:[#allocation12 + $0x4bc] ss:$40 sps:$4 sm:$0xff]   ;;  %v17024_v44 = vld [vmem:[#allocation12 + $0x4b0] ss:$40 sps:$4 sm:$0xff]  }
 0x6d4   :  { %11719 = vmatprep.subr.bf16.mxu1 %v16942_v47  ;;  %v17027_v45 = vld [vmem:[#allocation12 + $0x4b8] ss:$40 sps:$4 sm:$0xff]   ;;  %v17032_v47 = vld [vmem:[#allocation12 + $0x504] ss:$40 sps:$4 sm:$0xff]  }
 0x6d6   :  { %11806 = vmatpush1.bf16.msra.mxu0 %v16955_v10  ;;  %v17035_v10 = vld [vmem:[#allocation12 + $0x50c] ss:$40 sps:$4 sm:$0xff]  }
 0x6d7   :  { %11720 = vmatpush1.bf16.msra.mxu1 %v16940_v61  ;;  %11807 = vmatprep.subr.bf16.mxu0 %v16963_v43 }
 0x6d8   :  { %11721 = vmatprep.subr.bf16.mxu1 %v16948_v4 }
 0x6da   :  { %11808 = vmatpush1.bf16.msra.mxu0 %v16961_v28  ;;  %v18226_v28 = vld [vmem:[#allocation10] sm:$0xf] }
 0x6db   :  { %11722 = vmatpush1.bf16.msra.mxu1 %v16946_v33  ;;  %11809 = vmatprep.subr.bf16.mxu0 %v16969_v0  ;;  %v7720_v0 = vrot.slane %v18226_v28, %v18074_v1 }
 0x6dc   :  { %11723 = vmatprep.subr.bf16.mxu1 %v16954_v5  ;;  %v7708_v5 = vrot.slane %v18226_v28, %v18068_v20 }
 0x6de   :  { %11810 = vmatpush1.bf16.msra.mxu0 %v16967_v49  ;;  %v7712_v49 = vrot.slane %v18226_v28, %v18071_v24 }
 0x6df   :  { %11724 = vmatpush1.bf16.msra.mxu1 %v16952_v30  ;;  %11811 = vmatprep.subr.bf16.mxu0 %v16975_v50 }
 0x6e0   :  { %11725 = vmatprep.subr.bf16.mxu1 %v16960_v51 }
 0x6e2   :  { %11812 = vmatpush1.bf16.msra.mxu0 %v16973_v52 }
 0x6e3   :  { %11726 = vmatpush1.bf16.msra.mxu1 %v16958_v53  ;;  %11813 = vmatprep.subr.bf16.mxu0 %v16981_v48 }
 0x6e4   :  { %11727 = vmatprep.subr.bf16.mxu1 %v16966_v54 }
 0x6e6   :  { %11814 = vmatpush1.bf16.msra.mxu0 %v16979_v55 }
 0x6e7   :  { %11728 = vmatpush1.bf16.msra.mxu1 %v16964_v56  ;;  %11815 = vmatprep.subr.bf16.mxu0 %v16987_v59 }
 0x6e8   :  { %11729 = vmatprep.subr.bf16.mxu1 %v16972_v62 }
 0x6ea   :  { %11816 = vmatpush1.bf16.msra.mxu0 %v16985_v46  ;;  %v17030_v46 = vld [vmem:[#allocation12 + $0x500] ss:$40 sps:$4 sm:$0xff]  }
 0x6eb   :  { %11730 = vmatpush1.bf16.msra.mxu1 %v16970_v63  ;;  %11817 = vmatprep.subr.bf16.mxu0 %v16993_v2  ;;  %v17033_v63 = vld [vmem:[#allocation12 + $0x508] ss:$40 sps:$4 sm:$0xff]  }
 0x6ec   :  { %11731 = vmatprep.subr.bf16.mxu1 %v16978_v23  ;;  %v17038_v23 = vld [vmem:[#allocation12 + $0x554] ss:$40 sps:$4 sm:$0xff]  }
 0x6ee   :  { %11818 = vmatpush1.bf16.msra.mxu0 %v16991_v3  ;;  %v17041_v3 = vld [vmem:[#allocation12 + $0x55c] ss:$40 sps:$4 sm:$0xff]  }
 0x6ef   :  { %11732 = vmatpush1.bf16.msra.mxu1 %v16976_v6  ;;  %11819 = vmatprep.subr.bf16.mxu0 %v16999_v8  ;;  %v17036_v8 = vld [vmem:[#allocation12 + $0x550] ss:$40 sps:$4 sm:$0xff]  }
 0x6f0   :  { %11733 = vmatprep.subr.bf16.mxu1 %v16984_v9  ;;  %v17039_v9 = vld [vmem:[#allocation12 + $0x558] ss:$40 sps:$4 sm:$0xff]  }
 0x6f2   :  { %11820 = vmatpush1.bf16.msra.mxu0 %v16997_v12  ;;  %v17044_v12 = vld [vmem:[#allocation12 + $0x5a4] ss:$40 sps:$4 sm:$0xff]  }
 0x6f3   :  { %11734 = vmatpush1.bf16.msra.mxu1 %v16982_v14  ;;  %11821 = vmatprep.subr.bf16.mxu0 %v17005_v17  ;;  %v17047_v14 = vld [vmem:[#allocation12 + $0x5ac] ss:$40 sps:$4 sm:$0xff]   ;;  %v17042_v17 = vld [vmem:[#allocation12 + $0x5a0] ss:$40 sps:$4 sm:$0xff]  }
 0x6f4   :  { %11735 = vmatprep.subr.bf16.mxu1 %v16990_v40  ;;  %v17045_v40 = vld [vmem:[#allocation12 + $0x5a8] ss:$40 sps:$4 sm:$0xff]  }
 0x6f6   :  { %11822 = vmatpush1.bf16.msra.mxu0 %v17003_v34  ;;  %v17050_v34 = vld [vmem:[#allocation12 + $0x5f4] ss:$40 sps:$4 sm:$0xff]  }
 0x6f7   :  { %11736 = vmatpush1.bf16.msra.mxu1 %v16988_v18  ;;  %11823 = vmatprep.subr.bf16.mxu0 %v17011_v32  ;;  %v17053_v18 = vld [vmem:[#allocation12 + $0x5fc] ss:$40 sps:$4 sm:$0xff]   ;;  %v17057_v32 = vld [vmem:[#allocation12 + $0x648] ss:$40 sps:$4 sm:$0xff]  }
 0x6f8   :  { %11737 = vmatprep.subr.bf16.mxu1 %v16996_v19  ;;  %v17048_v19 = vld [vmem:[#allocation12 + $0x5f0] ss:$40 sps:$4 sm:$0xff]  }
 0x6fa   :  { %11824 = vmatpush1.bf16.msra.mxu0 %v17009_v29  ;;  %v17065_v29 = vld [vmem:[#allocation12 + $0x69c] ss:$40 sps:$4 sm:$0xff]  }
 0x6fb   :  { %11738 = vmatpush1.bf16.msra.mxu1 %v16994_v57  ;;  %11825 = vmatprep.subr.bf16.mxu0 %v17017_v39  ;;  %v17051_v57 = vld [vmem:[#allocation12 + $0x5f8] ss:$40 sps:$4 sm:$0xff]  }
 0x6fc   :  { %11739 = vmatprep.subr.bf16.mxu1 %v17002_v22  ;;  %v17056_v22 = vld [vmem:[#allocation12 + $0x644] ss:$40 sps:$4 sm:$0xff]   ;;  %v17063_v39 = vld [vmem:[#allocation12 + $0x698] ss:$40 sps:$4 sm:$0xff]  }
 0x6fe   :  { %11826 = vmatpush1.bf16.msra.mxu0 %v17015_v35  ;;  %v17071_v35 = vld [vmem:[#allocation12 + $0x6ec] ss:$40 sps:$4 sm:$0xff]  }
 0x6ff   :  { %11740 = vmatpush1.bf16.msra.mxu1 %v17000_v13  ;;  %11827 = vmatprep.subr.bf16.mxu0 %v17023_v15  ;;  %v17059_v13 = vld [vmem:[#allocation12 + $0x64c] ss:$40 sps:$4 sm:$0xff]   ;;  %v17069_v15 = vld [vmem:[#allocation12 + $0x6e8] ss:$40 sps:$4 sm:$0xff]  }
 0x700   :  { %11741 = vmatprep.subr.bf16.mxu1 %v17008_v25  ;;  %v17054_v25 = vld [vmem:[#allocation12 + $0x640] ss:$40 sps:$4 sm:$0xff]  }
 0x702   :  { %11828 = vmatpush1.bf16.msra.mxu0 %v17021_v38  ;;  %v17077_v38 = vld [vmem:[#allocation12 + $0x73c] ss:$40 sps:$4 sm:$0xff]  }
 0x703   :  { %11742 = vmatpush1.bf16.msra.mxu1 %v17006_v36  ;;  %11829 = vmatprep.subr.bf16.mxu0 %v17029_v42  ;;  %v17062_v36 = vld [vmem:[#allocation12 + $0x694] ss:$40 sps:$4 sm:$0xff]   ;;  %v17075_v42 = vld [vmem:[#allocation12 + $0x738] ss:$40 sps:$4 sm:$0xff]  }
 0x704   :  { %11743 = vmatprep.subr.bf16.mxu1 %v17014_v58  ;;  %v17060_v58 = vld [vmem:[#allocation12 + $0x690] ss:$40 sps:$4 sm:$0xff]  }
 0x706   :  { %11830 = vmatpush1.bf16.msra.mxu0 %v17027_v45  ;;  %v17083_v45 = vld [vmem:[#allocation12 + $0x78c] ss:$40 sps:$4 sm:$0xff]  }
 0x707   :  { %11744 = vmatpush1.bf16.msra.mxu1 %v17012_v37  ;;  %11840 = vmatprep.subr.bf16.mxu0 %v17035_v10  ;;  %v17068_v37 = vld [vmem:[#allocation12 + $0x6e4] ss:$40 sps:$4 sm:$0xff]   ;;  %v17081_v10 = vld [vmem:[#allocation12 + $0x788] ss:$40 sps:$4 sm:$0xff]  }
 0x708   :  { %11745 = vmatprep.subr.bf16.mxu1 %v17020_v11  ;;  %v17066_v11 = vld [vmem:[#allocation12 + $0x6e0] ss:$40 sps:$4 sm:$0xff]  }
 0x70b   :  { %11746 = vmatpush1.bf16.msra.mxu1 %v17018_v21  ;;  %v17074_v21 = vld [vmem:[#allocation12 + $0x734] ss:$40 sps:$4 sm:$0xff]  }
 0x70c   :  { %11747 = vmatprep.subr.bf16.mxu1 %v17026_v41  ;;  %v17072_v41 = vld [vmem:[#allocation12 + $0x730] ss:$40 sps:$4 sm:$0xff]  }
 0x70f   :  { %11748 = vmatpush1.bf16.msra.mxu1 %v17024_v44  ;;  %v17080_v44 = vld [vmem:[#allocation12 + $0x784] ss:$40 sps:$4 sm:$0xff]  }
 0x710   :  { %11758 = vmatprep.subr.bf16.mxu1 %v17032_v47  ;;  %v17078_v47 = vld [vmem:[#allocation12 + $0x780] ss:$40 sps:$4 sm:$0xff]  }
 0x79c   :  { %v18224_v61 = vpop.f32.mrb[16].mxu0 }
 0x79d   :  { %v9730_v43 = vpop.f32.mrb[17].mxu0 }
 0x79e   :  { %v9732_v4 = vpop.f32.mrb[18].mxu0  ;;  %v14835_v50 = vadd.f32 %v9730_v43, %v7720_v0  ;;  %v17086_v43 = vld [vmem:[#allocation12 + $0x7d4] ss:$40 sps:$4 sm:$0xff]   ;;  %v17087_v0 = vld [vmem:[#allocation12 + $0x7d8] ss:$40 sps:$4 sm:$0xff]  }
 0x79f   :  { %v9733_v33 = vpop.f32.mrb[19].mxu0  ;;  %v17089_v4 = vld [vmem:[#allocation12 + $0x7dc] ss:$40 sps:$4 sm:$0xff]  }
 0x7a0   :  { %v9738_v59 = vmax.f32 %v14835_v50, 0.0  ;;  %v17084_v33 = vld [vmem:[#allocation12 + $0x7d0] ss:$40 sps:$4 sm:$0xff]  }
 0x7a1   :  { %v17093_v50 = vld [vmem:[#allocation12 + $0x828] ss:$40 sps:$4 sm:$0xff]  }
 0x7a2   :  { %v18240_v6 = vpack.c.bf16 %v9738_v59, %v9738_v59  ;;  %v17105_v59 = vld [vmem:[#allocation12 + $0x8c8] ss:$40 sps:$4 sm:$0xff]  }
 0x7a5   :  { %v9523_v30 = vpop.f32.mrb[16].mxu1 }
 0x7a6   :  { %v14832_v51 = vadd.f32 %v9523_v30, %v7708_v5  ;;  %v9525_v52 = vpop.f32.mrb[17].mxu1  ;;  %v17092_v5 = vld [vmem:[#allocation12 + $0x824] ss:$40 sps:$4 sm:$0xff]   ;;  %v17090_v30 = vld [vmem:[#allocation12 + $0x820] ss:$40 sps:$4 sm:$0xff]  }
 0x7a7   :  { %v14833_v53 = vadd.f32 %v9525_v52, %v7712_v49  ;;  %v9527_v48 = vpop.f32.mrb[18].mxu1  ;;  %v17095_v49 = vld [vmem:[#allocation12 + $0x82c] ss:$40 sps:$4 sm:$0xff]   ;;  %v17101_v52 = vld [vmem:[#allocation12 + $0x87c] ss:$40 sps:$4 sm:$0xff]  }
 0x7a8   :  { %v9735_v54 = vmax.f32 %v14832_v51, 0.0  ;;  %v9528_v55 = vpop.f32.mrb[19].mxu1  ;;  %v17098_v51 = vld [vmem:[#allocation12 + $0x874] ss:$40 sps:$4 sm:$0xff]   ;;  %v17099_v48 = vld [vmem:[#allocation12 + $0x878] ss:$40 sps:$4 sm:$0xff]  }
 0x7a9   :  { %v9736_v56 = vmax.f32 %v14833_v53, 0.0  ;;  %v17096_v53 = vld [vmem:[#allocation12 + $0x870] ss:$40 sps:$4 sm:$0xff]   ;;  %v17107_v55 = vld [vmem:[#allocation12 + $0x8cc] ss:$40 sps:$4 sm:$0xff]  }
 0x7aa   :  { %v18236_v2 = vpack.c.bf16 %v9735_v54, %v9735_v54  ;;  %v17104_v54 = vld [vmem:[#allocation12 + $0x8c4] ss:$40 sps:$4 sm:$0xff]  }
 0x7ab   :  { %v18234_v62 = vpack.c.bf16 %v9736_v56, %v9736_v56  ;;  %v17102_v56 = vld [vmem:[#allocation12 + $0x8c0] ss:$40 sps:$4 sm:$0xff]  }
 0x7ad   :  { %11749 = vmatprep.mubr.bf16.mxu1 %v18234_v62  ;;  %11831 = vmatprep.mubr.bf16.mxu0 %v18234_v62 }
 0x7ae   :  { %11750 = vmatmul.mubr.bf16.vlgmr.msra.gmra.mrb[20].mxu1 %v18236_v2  ;;  %11832 = vmatmul.mubr.bf16.vlgmr.msra.gmra.mrb[20].mxu0 %v18236_v2 }
 0x7af   :  { %11759 = vmatpush1.bf16.msra.mxu1 %v17030_v46  ;;  %11841 = vmatpush1.bf16.msra.mxu0 %v17033_v63  ;;  %v17110_v46 = vld [vmem:[#allocation12 + $0x914] ss:$40 sps:$4 sm:$0xff]  }
 0x7b0   :  { %11790 = vmatprep.mubr.bf16.mxu1 %v18240_v6  ;;  %11872 = vmatprep.mubr.bf16.mxu0 %v18240_v6  ;;  %v17113_v63 = vld [vmem:[#allocation12 + $0x91c] ss:$40 sps:$4 sm:$0xff]  }
 0x7b1   :  { %11760 = vmatprep.subr.bf16.mxu1 %v17038_v23  ;;  %11842 = vmatprep.subr.bf16.mxu0 %v17041_v3  ;;  %v17108_v23 = vld [vmem:[#allocation12 + $0x910] ss:$40 sps:$4 sm:$0xff]  }
 0x7b2   :  { %v17111_v3 = vld [vmem:[#allocation12 + $0x918] ss:$40 sps:$4 sm:$0xff]  }
 0x7b3   :  { %11761 = vmatpush1.bf16.msra.mxu1 %v17036_v8  ;;  %11843 = vmatpush1.bf16.msra.mxu0 %v17039_v9  ;;  %v7716_v8 = vrot.slane %v18226_v28, %v18096_v31  ;;  %v17116_v9 = vld [vmem:[#allocation12 + $0x964] ss:$40 sps:$4 sm:$0xff]   ;;  %v17128_v28 = vld [vmem:[#allocation12 + $0x14] ss:$40 sps:$4 sm:$0xff]  }
 0x7b4   :  { %11762 = vmatprep.subr.bf16.mxu1 %v17044_v12  ;;  %11844 = vmatprep.subr.bf16.mxu0 %v17047_v14  ;;  %v17119_v12 = vld [vmem:[#allocation12 + $0x96c] ss:$40 sps:$4 sm:$0xff]   ;;  %v17114_v14 = vld [vmem:[#allocation12 + $0x960] ss:$40 sps:$4 sm:$0xff]  }
 0x7b7   :  { %11763 = vmatpush1.bf16.msra.mxu1 %v17042_v17  ;;  %11845 = vmatpush1.bf16.msra.mxu0 %v17045_v40  ;;  %v17117_v17 = vld [vmem:[#allocation12 + $0x968] ss:$40 sps:$4 sm:$0xff]   ;;  %v14834_v40 = vadd.f32 %v18224_v61, %v7716_v8  ;;  %v17129_v61 = vld [vmem:[#allocation12 + $0x18] ss:$40 sps:$4 sm:$0xff]   ;;  %v17188_v8 = vld [vmem:[#allocation12 + $0x334] ss:$40 sps:$4 sm:$0xff]  }
 0x7b8   :  { %11764 = vmatprep.subr.bf16.mxu1 %v17050_v34  ;;  %11846 = vmatprep.subr.bf16.mxu0 %v17053_v18  ;;  %v17122_v34 = vld [vmem:[#allocation12 + $0x9b4] ss:$40 sps:$4 sm:$0xff]  }
 0x7b9   :  { %v17125_v18 = vld [vmem:[#allocation12 + $0x9bc] ss:$40 sps:$4 sm:$0xff]  }
 0x7bb   :  { %11765 = vmatpush1.bf16.msra.mxu1 %v17048_v19  ;;  %11847 = vmatpush1.bf16.msra.mxu0 %v17051_v57  ;;  %v17120_v19 = vld [vmem:[#allocation12 + $0x9b0] ss:$40 sps:$4 sm:$0xff]  }
 0x7bc   :  { %11766 = vmatprep.subr.bf16.mxu1 %v17056_v22  ;;  %11848 = vmatprep.subr.bf16.mxu0 %v17059_v13  ;;  %v17123_v57 = vld [vmem:[#allocation12 + $0x9b8] ss:$40 sps:$4 sm:$0xff]   ;;  %v9737_v22 = vmax.f32 %v14834_v40, 0.0  ;;  %v17131_v13 = vld [vmem:[#allocation12 + $0x1c] ss:$40 sps:$4 sm:$0xff]  }
 0x7bd   :  { %v17197_v40 = vld [vmem:[#allocation12 + $0x38c] ss:$40 sps:$4 sm:$0xff]  }
 0x7bf   :  { %11767 = vmatpush1.bf16.msra.mxu1 %v17054_v25  ;;  %11849 = vmatpush1.bf16.msra.mxu0 %v17057_v32  ;;  %v17126_v25 = vld [vmem:[#allocation12 + $0x10] ss:$40 sps:$4 sm:$0xff]   ;;  %v18249_v32 = vpack.c.bf16 %v9737_v22, %v9737_v22 }
 0x7c0   :  { %11768 = vmatprep.subr.bf16.mxu1 %v17062_v36  ;;  %11850 = vmatprep.subr.bf16.mxu0 %v17065_v29  ;;  %v17134_v36 = vld [vmem:[#allocation12 + $0x64] ss:$40 sps:$4 sm:$0xff]   ;;  %v17198_v22 = vld [vmem:[#allocation12 + $0x3d0] ss:$40 sps:$4 sm:$0xff]  }
 0x7c1   :  { %v17137_v29 = vld [vmem:[#allocation12 + $0x6c] ss:$40 sps:$4 sm:$0xff]  }
 0x7c3   :  { %11769 = vmatpush1.bf16.msra.mxu1 %v17060_v58  ;;  %11851 = vmatpush1.bf16.msra.mxu0 %v17063_v39  ;;  %v17132_v58 = vld [vmem:[#allocation12 + $0x60] ss:$40 sps:$4 sm:$0xff]  }
 0x7c4   :  { %11770 = vmatprep.subr.bf16.mxu1 %v17068_v37  ;;  %11852 = vmatprep.subr.bf16.mxu0 %v17071_v35  ;;  %v17135_v39 = vld [vmem:[#allocation12 + $0x68] ss:$40 sps:$4 sm:$0xff]   ;;  %v17140_v37 = vld [vmem:[#allocation12 + $0xb4] ss:$40 sps:$4 sm:$0xff]  }
 0x7c5   :  { %v17143_v35 = vld [vmem:[#allocation12 + $0xbc] ss:$40 sps:$4 sm:$0xff]  }
 0x7c7   :  { %11771 = vmatpush1.bf16.msra.mxu1 %v17066_v11  ;;  %11853 = vmatpush1.bf16.msra.mxu0 %v17069_v15  ;;  %v17138_v11 = vld [vmem:[#allocation12 + $0xb0] ss:$40 sps:$4 sm:$0xff]  }
 0x7c8   :  { %11772 = vmatprep.subr.bf16.mxu1 %v17074_v21  ;;  %11854 = vmatprep.subr.bf16.mxu0 %v17077_v38  ;;  %v17141_v15 = vld [vmem:[#allocation12 + $0xb8] ss:$40 sps:$4 sm:$0xff]   ;;  %v17146_v21 = vld [vmem:[#allocation12 + $0x104] ss:$40 sps:$4 sm:$0xff]  }
 0x7c9   :  { %v17149_v38 = vld [vmem:[#allocation12 + $0x10c] ss:$40 sps:$4 sm:$0xff]  }
 0x7cb   :  { %11773 = vmatpush1.bf16.msra.mxu1 %v17072_v41  ;;  %11855 = vmatpush1.bf16.msra.mxu0 %v17075_v42  ;;  %v17144_v41 = vld [vmem:[#allocation12 + $0x100] ss:$40 sps:$4 sm:$0xff]  }
 0x7cc   :  { %11774 = vmatprep.subr.bf16.mxu1 %v17080_v44  ;;  %11856 = vmatprep.subr.bf16.mxu0 %v17083_v45  ;;  %v17147_v42 = vld [vmem:[#allocation12 + $0x108] ss:$40 sps:$4 sm:$0xff]   ;;  %v17152_v44 = vld [vmem:[#allocation12 + $0x154] ss:$40 sps:$4 sm:$0xff]  }
 0x7cd   :  { %v17155_v45 = vld [vmem:[#allocation12 + $0x15c] ss:$40 sps:$4 sm:$0xff]  }
 0x7cf   :  { %11775 = vmatpush1.bf16.msra.mxu1 %v17078_v47  ;;  %11857 = vmatpush1.bf16.msra.mxu0 %v17081_v10  ;;  %v17150_v47 = vld [vmem:[#allocation12 + $0x150] ss:$40 sps:$4 sm:$0xff]  }
 0x7d0   :  { %11776 = vmatprep.subr.bf16.mxu1 %v17086_v43  ;;  %11858 = vmatprep.subr.bf16.mxu0 %v17089_v4  ;;  %v17153_v10 = vld [vmem:[#allocation12 + $0x158] ss:$40 sps:$4 sm:$0xff]   ;;  %v17158_v43 = vld [vmem:[#allocation12 + $0x1a4] ss:$40 sps:$4 sm:$0xff]  }
 0x7d1   :  { %v17161_v4 = vld [vmem:[#allocation12 + $0x1ac] ss:$40 sps:$4 sm:$0xff]  }
 0x7d3   :  { %11777 = vmatpush1.bf16.msra.mxu1 %v17084_v33  ;;  %11859 = vmatpush1.bf16.msra.mxu0 %v17087_v0  ;;  %v17156_v33 = vld [vmem:[#allocation12 + $0x1a0] ss:$40 sps:$4 sm:$0xff]  }
 0x7d4   :  { %11778 = vmatprep.subr.bf16.mxu1 %v17092_v5  ;;  %11860 = vmatprep.subr.bf16.mxu0 %v17095_v49  ;;  %v17159_v0 = vld [vmem:[#allocation12 + $0x1a8] ss:$40 sps:$4 sm:$0xff]   ;;  %v17164_v5 = vld [vmem:[#allocation12 + $0x1f4] ss:$40 sps:$4 sm:$0xff]  }
 0x7d5   :  { %v17167_v49 = vld [vmem:[#allocation12 + $0x1fc] ss:$40 sps:$4 sm:$0xff]  }
 0x7d7   :  { %11779 = vmatpush1.bf16.msra.mxu1 %v17090_v30  ;;  %11861 = vmatpush1.bf16.msra.mxu0 %v17093_v50  ;;  %v17162_v30 = vld [vmem:[#allocation12 + $0x1f0] ss:$40 sps:$4 sm:$0xff]  }
 0x7d8   :  { %11780 = vmatprep.subr.bf16.mxu1 %v17098_v51  ;;  %11862 = vmatprep.subr.bf16.mxu0 %v17101_v52  ;;  %v17165_v50 = vld [vmem:[#allocation12 + $0x1f8] ss:$40 sps:$4 sm:$0xff]   ;;  %v17170_v51 = vld [vmem:[#allocation12 + $0x244] ss:$40 sps:$4 sm:$0xff]  }
 0x7d9   :  { %v17173_v52 = vld [vmem:[#allocation12 + $0x24c] ss:$40 sps:$4 sm:$0xff]  }
 0x7db   :  { %11781 = vmatpush1.bf16.msra.mxu1 %v17096_v53  ;;  %11863 = vmatpush1.bf16.msra.mxu0 %v17099_v48  ;;  %v17168_v53 = vld [vmem:[#allocation12 + $0x240] ss:$40 sps:$4 sm:$0xff]  }
 0x7dc   :  { %11782 = vmatprep.subr.bf16.mxu1 %v17104_v54  ;;  %11864 = vmatprep.subr.bf16.mxu0 %v17107_v55  ;;  %v17171_v48 = vld [vmem:[#allocation12 + $0x248] ss:$40 sps:$4 sm:$0xff]   ;;  %v17176_v54 = vld [vmem:[#allocation12 + $0x294] ss:$40 sps:$4 sm:$0xff]  }
 0x7dd   :  { %v17179_v55 = vld [vmem:[#allocation12 + $0x29c] ss:$40 sps:$4 sm:$0xff]  }
 0x7df   :  { %11783 = vmatpush1.bf16.msra.mxu1 %v17102_v56  ;;  %11865 = vmatpush1.bf16.msra.mxu0 %v17105_v59  ;;  %v17174_v56 = vld [vmem:[#allocation12 + $0x290] ss:$40 sps:$4 sm:$0xff]  }
 0x7e0   :  { %11784 = vmatprep.subr.bf16.mxu1 %v17110_v46  ;;  %11866 = vmatprep.subr.bf16.mxu0 %v17113_v63  ;;  %v17177_v59 = vld [vmem:[#allocation12 + $0x298] ss:$40 sps:$4 sm:$0xff]   ;;  %v17182_v46 = vld [vmem:[#allocation12 + $0x2e4] ss:$40 sps:$4 sm:$0xff]  }
 0x7e1   :  { %v17185_v63 = vld [vmem:[#allocation12 + $0x2ec] ss:$40 sps:$4 sm:$0xff]  }
 0x7e3   :  { %11785 = vmatpush1.bf16.msra.mxu1 %v17108_v23  ;;  %11867 = vmatpush1.bf16.msra.mxu0 %v17111_v3  ;;  %v17180_v23 = vld [vmem:[#allocation12 + $0x2e0] ss:$40 sps:$4 sm:$0xff]  }
 0x7e4   :  { %11786 = vmatprep.subr.bf16.mxu1 %v17116_v9  ;;  %11868 = vmatprep.subr.bf16.mxu0 %v17119_v12  ;;  %v17183_v3 = vld [vmem:[#allocation12 + $0x2e8] ss:$40 sps:$4 sm:$0xff]   ;;  %v17191_v9 = vld [vmem:[#allocation12 + $0x33c] ss:$40 sps:$4 sm:$0xff]  }
 0x7e5   :  { %v17186_v12 = vld [vmem:[#allocation12 + $0x330] ss:$40 sps:$4 sm:$0xff]  }
 0x7e7   :  { %11787 = vmatpush1.bf16.msra.mxu1 %v17114_v14  ;;  %11869 = vmatpush1.bf16.msra.mxu0 %v17117_v17  ;;  %v17189_v14 = vld [vmem:[#allocation12 + $0x338] ss:$40 sps:$4 sm:$0xff]   ;;  %v17194_v17 = vld [vmem:[#allocation12 + $0x384] ss:$40 sps:$4 sm:$0xff]  }
 0x7e8   :  { %11788 = vmatprep.subr.bf16.mxu1 %v17122_v34  ;;  %11870 = vmatprep.subr.bf16.mxu0 %v17125_v18  ;;  %v17192_v34 = vld [vmem:[#allocation12 + $0x380] ss:$40 sps:$4 sm:$0xff]  }
 0x7e9   :  { %v17195_v18 = vld [vmem:[#allocation12 + $0x388] ss:$40 sps:$4 sm:$0xff]  }
 0x7eb   :  { %11789 = vmatpush1.bf16.msra.mxu1 %v17120_v19  ;;  %11871 = vmatpush1.bf16.msra.mxu0 %v17123_v57  ;;  %v17200_v19 = vld [vmem:[#allocation12 + $0x3d4] ss:$40 sps:$4 sm:$0xff]  }
 0x7ec   :  { %11881 = vmatprep.subr.bf16.mxu1 %v17128_v28  ;;  %11963 = vmatprep.subr.bf16.mxu0 %v17131_v13  ;;  %v17203_v57 = vld [vmem:[#allocation12 + $0x3dc] ss:$40 sps:$4 sm:$0xff]   ;;  %v17201_v28 = vld [vmem:[#allocation12 + $0x3d8] ss:$40 sps:$4 sm:$0xff]  }
 0x7ed   :  { %v17206_v13 = vld [vmem:[#allocation12 + $0x424] ss:$40 sps:$4 sm:$0xff]  }
 0x7ee   :  { %11791 = vmatmul.mubr.bf16.vlgmr.msra.gmra.mrb[20].mxu1 %v18249_v32  ;;  %11873 = vmatmul.mubr.bf16.vlgmr.msra.gmra.mrb[20].mxu0 %v18249_v32 }
 0x7ef   :  { %11882 = vmatpush1.bf16.msra.mxu1 %v17126_v25  ;;  %11913 = vmatprep.mubr.bf16.mxu1 %v18234_v62  ;;  %v17209_v25 = vld [vmem:[#allocation12 + $0x42c] ss:$40 sps:$4 sm:$0xff]  }
 0x7f0   :  { %11964 = vmatpush1.bf16.msra.mxu0 %v17129_v61  ;;  %11995 = vmatprep.mubr.bf16.mxu0 %v18234_v62  ;;  %v17204_v61 = vld [vmem:[#allocation12 + $0x420] ss:$40 sps:$4 sm:$0xff]  }
 0x7f1   :  { %11883 = vmatprep.subr.bf16.mxu1 %v17134_v36  ;;  %11965 = vmatprep.subr.bf16.mxu0 %v17137_v29  ;;  %v17207_v36 = vld [vmem:[#allocation12 + $0x428] ss:$40 sps:$4 sm:$0xff]   ;;  %v17212_v29 = vld [vmem:[#allocation12 + $0x474] ss:$40 sps:$4 sm:$0xff]  }
 0x7f3   :  { %11884 = vmatpush1.bf16.msra.mxu1 %v17132_v58  ;;  %v17215_v58 = vld [vmem:[#allocation12 + $0x47c] ss:$40 sps:$4 sm:$0xff]  }
 0x7f4   :  { %11966 = vmatpush1.bf16.msra.mxu0 %v17135_v39  ;;  %11885 = vmatprep.subr.bf16.mxu1 %v17140_v37  ;;  %v17210_v39 = vld [vmem:[#allocation12 + $0x470] ss:$40 sps:$4 sm:$0xff]  }
 0x7f5   :  { %11967 = vmatprep.subr.bf16.mxu0 %v17143_v35  ;;  %v17213_v37 = vld [vmem:[#allocation12 + $0x478] ss:$40 sps:$4 sm:$0xff]   ;;  %v17218_v35 = vld [vmem:[#allocation12 + $0x4c4] ss:$40 sps:$4 sm:$0xff]  }
 0x7f7   :  { %11886 = vmatpush1.bf16.msra.mxu1 %v17138_v11  ;;  %v17221_v11 = vld [vmem:[#allocation12 + $0x4cc] ss:$40 sps:$4 sm:$0xff]  }
 0x7f8   :  { %11968 = vmatpush1.bf16.msra.mxu0 %v17141_v15  ;;  %11887 = vmatprep.subr.bf16.mxu1 %v17146_v21  ;;  %v17216_v15 = vld [vmem:[#allocation12 + $0x4c0] ss:$40 sps:$4 sm:$0xff]  }
 0x7f9   :  { %11969 = vmatprep.subr.bf16.mxu0 %v17149_v38  ;;  %v17219_v21 = vld [vmem:[#allocation12 + $0x4c8] ss:$40 sps:$4 sm:$0xff]   ;;  %v17224_v38 = vld [vmem:[#allocation12 + $0x514] ss:$40 sps:$4 sm:$0xff]  }
 0x7fb   :  { %11888 = vmatpush1.bf16.msra.mxu1 %v17144_v41  ;;  %v17227_v41 = vld [vmem:[#allocation12 + $0x51c] ss:$40 sps:$4 sm:$0xff]  }
 0x7fc   :  { %11970 = vmatpush1.bf16.msra.mxu0 %v17147_v42  ;;  %11889 = vmatprep.subr.bf16.mxu1 %v17152_v44  ;;  %v17222_v42 = vld [vmem:[#allocation12 + $0x510] ss:$40 sps:$4 sm:$0xff]  }
 0x7fd   :  { %11971 = vmatprep.subr.bf16.mxu0 %v17155_v45  ;;  %v17225_v44 = vld [vmem:[#allocation12 + $0x518] ss:$40 sps:$4 sm:$0xff]   ;;  %v17230_v45 = vld [vmem:[#allocation12 + $0x564] ss:$40 sps:$4 sm:$0xff]  }
 0x7ff   :  { %11890 = vmatpush1.bf16.msra.mxu1 %v17150_v47  ;;  %v17233_v47 = vld [vmem:[#allocation12 + $0x56c] ss:$40 sps:$4 sm:$0xff]  }
 0x800   :  { %11972 = vmatpush1.bf16.msra.mxu0 %v17153_v10  ;;  %11891 = vmatprep.subr.bf16.mxu1 %v17158_v43  ;;  %v17228_v10 = vld [vmem:[#allocation12 + $0x560] ss:$40 sps:$4 sm:$0xff]  }
 0x801   :  { %11973 = vmatprep.subr.bf16.mxu0 %v17161_v4  ;;  %v17231_v43 = vld [vmem:[#allocation12 + $0x568] ss:$40 sps:$4 sm:$0xff]   ;;  %v17236_v4 = vld [vmem:[#allocation12 + $0x5b4] ss:$40 sps:$4 sm:$0xff]  }
 0x803   :  { %11892 = vmatpush1.bf16.msra.mxu1 %v17156_v33  ;;  %v17239_v33 = vld [vmem:[#allocation12 + $0x5bc] ss:$40 sps:$4 sm:$0xff]  }
 0x804   :  { %11974 = vmatpush1.bf16.msra.mxu0 %v17159_v0  ;;  %11893 = vmatprep.subr.bf16.mxu1 %v17164_v5  ;;  %v17234_v0 = vld [vmem:[#allocation12 + $0x5b0] ss:$40 sps:$4 sm:$0xff]  }
 0x805   :  { %11975 = vmatprep.subr.bf16.mxu0 %v17167_v49  ;;  %v17237_v5 = vld [vmem:[#allocation12 + $0x5b8] ss:$40 sps:$4 sm:$0xff]   ;;  %v17242_v49 = vld [vmem:[#allocation12 + $0x604] ss:$40 sps:$4 sm:$0xff]  }
 0x807   :  { %11894 = vmatpush1.bf16.msra.mxu1 %v17162_v30  ;;  %v17245_v30 = vld [vmem:[#allocation12 + $0x60c] ss:$40 sps:$4 sm:$0xff]  }
 0x808   :  { %11976 = vmatpush1.bf16.msra.mxu0 %v17165_v50  ;;  %11895 = vmatprep.subr.bf16.mxu1 %v17170_v51  ;;  %v17240_v50 = vld [vmem:[#allocation12 + $0x600] ss:$40 sps:$4 sm:$0xff]  }
 0x809   :  { %11977 = vmatprep.subr.bf16.mxu0 %v17173_v52  ;;  %v17243_v51 = vld [vmem:[#allocation12 + $0x608] ss:$40 sps:$4 sm:$0xff]   ;;  %v17248_v52 = vld [vmem:[#allocation12 + $0x654] ss:$40 sps:$4 sm:$0xff]  }
 0x80b   :  { %11896 = vmatpush1.bf16.msra.mxu1 %v17168_v53  ;;  %v17251_v53 = vld [vmem:[#allocation12 + $0x65c] ss:$40 sps:$4 sm:$0xff]  }
 0x80c   :  { %11978 = vmatpush1.bf16.msra.mxu0 %v17171_v48  ;;  %11897 = vmatprep.subr.bf16.mxu1 %v17176_v54  ;;  %v17246_v48 = vld [vmem:[#allocation12 + $0x650] ss:$40 sps:$4 sm:$0xff]  }
 0x80d   :  { %11979 = vmatprep.subr.bf16.mxu0 %v17179_v55  ;;  %v17249_v54 = vld [vmem:[#allocation12 + $0x658] ss:$40 sps:$4 sm:$0xff]   ;;  %v17254_v55 = vld [vmem:[#allocation12 + $0x6a4] ss:$40 sps:$4 sm:$0xff]  }
 0x80f   :  { %11898 = vmatpush1.bf16.msra.mxu1 %v17174_v56  ;;  %v17257_v56 = vld [vmem:[#allocation12 + $0x6ac] ss:$40 sps:$4 sm:$0xff]  }
 0x810   :  { %11980 = vmatpush1.bf16.msra.mxu0 %v17177_v59  ;;  %11899 = vmatprep.subr.bf16.mxu1 %v17182_v46  ;;  %v17252_v59 = vld [vmem:[#allocation12 + $0x6a0] ss:$40 sps:$4 sm:$0xff]  }
 0x811   :  { %11981 = vmatprep.subr.bf16.mxu0 %v17185_v63  ;;  %v17255_v46 = vld [vmem:[#allocation12 + $0x6a8] ss:$40 sps:$4 sm:$0xff]   ;;  %v17260_v63 = vld [vmem:[#allocation12 + $0x6f4] ss:$40 sps:$4 sm:$0xff]  }
 0x813   :  { %11900 = vmatpush1.bf16.msra.mxu1 %v17180_v23  ;;  %v17263_v23 = vld [vmem:[#allocation12 + $0x6fc] ss:$40 sps:$4 sm:$0xff]  }
 0x814   :  { %11982 = vmatpush1.bf16.msra.mxu0 %v17183_v3  ;;  %11901 = vmatprep.subr.bf16.mxu1 %v17188_v8  ;;  %v17258_v3 = vld [vmem:[#allocation12 + $0x6f0] ss:$40 sps:$4 sm:$0xff]  }
 0x815   :  { %11983 = vmatprep.subr.bf16.mxu0 %v17191_v9  ;;  %v17261_v8 = vld [vmem:[#allocation12 + $0x6f8] ss:$40 sps:$4 sm:$0xff]   ;;  %v17266_v9 = vld [vmem:[#allocation12 + $0x744] ss:$40 sps:$4 sm:$0xff]  }
 0x817   :  { %11902 = vmatpush1.bf16.msra.mxu1 %v17186_v12  ;;  %v17269_v12 = vld [vmem:[#allocation12 + $0x74c] ss:$40 sps:$4 sm:$0xff]  }
 0x818   :  { %11984 = vmatpush1.bf16.msra.mxu0 %v17189_v14  ;;  %11903 = vmatprep.subr.bf16.mxu1 %v17194_v17  ;;  %v17264_v14 = vld [vmem:[#allocation12 + $0x740] ss:$40 sps:$4 sm:$0xff]  }
 0x819   :  { %11985 = vmatprep.subr.bf16.mxu0 %v17197_v40  ;;  %v17267_v17 = vld [vmem:[#allocation12 + $0x748] ss:$40 sps:$4 sm:$0xff]   ;;  %v17272_v40 = vld [vmem:[#allocation12 + $0x794] ss:$40 sps:$4 sm:$0xff]  }
 0x81b   :  { %11904 = vmatpush1.bf16.msra.mxu1 %v17192_v34  ;;  %v17275_v34 = vld [vmem:[#allocation12 + $0x79c] ss:$40 sps:$4 sm:$0xff]  }
 0x81c   :  { %11986 = vmatpush1.bf16.msra.mxu0 %v17195_v18  ;;  %11905 = vmatprep.subr.bf16.mxu1 %v17200_v19  ;;  %v17270_v18 = vld [vmem:[#allocation12 + $0x790] ss:$40 sps:$4 sm:$0xff]  }
 0x81d   :  { %11987 = vmatprep.subr.bf16.mxu0 %v17203_v57  ;;  %v17273_v19 = vld [vmem:[#allocation12 + $0x798] ss:$40 sps:$4 sm:$0xff]   ;;  %v17278_v57 = vld [vmem:[#allocation12 + $0x7e4] ss:$40 sps:$4 sm:$0xff]  }
 0x81f   :  { %11906 = vmatpush1.bf16.msra.mxu1 %v17198_v22  ;;  %v17281_v22 = vld [vmem:[#allocation12 + $0x7ec] ss:$40 sps:$4 sm:$0xff]  }
 0x820   :  { %11988 = vmatpush1.bf16.msra.mxu0 %v17201_v28  ;;  %11907 = vmatprep.subr.bf16.mxu1 %v17206_v13  ;;  %v17276_v28 = vld [vmem:[#allocation12 + $0x7e0] ss:$40 sps:$4 sm:$0xff]  }
 0x821   :  { %11989 = vmatprep.subr.bf16.mxu0 %v17209_v25  ;;  %v17279_v13 = vld [vmem:[#allocation12 + $0x7e8] ss:$40 sps:$4 sm:$0xff]   ;;  %v17284_v25 = vld [vmem:[#allocation12 + $0x834] ss:$40 sps:$4 sm:$0xff]  }
 0x823   :  { %11908 = vmatpush1.bf16.msra.mxu1 %v17204_v61  ;;  %v17287_v61 = vld [vmem:[#allocation12 + $0x83c] ss:$40 sps:$4 sm:$0xff]  }
 0x824   :  { %11990 = vmatpush1.bf16.msra.mxu0 %v17207_v36  ;;  %11909 = vmatprep.subr.bf16.mxu1 %v17212_v29  ;;  %v17282_v36 = vld [vmem:[#allocation12 + $0x830] ss:$40 sps:$4 sm:$0xff]  }
 0x825   :  { %11991 = vmatprep.subr.bf16.mxu0 %v17215_v58  ;;  %v17285_v29 = vld [vmem:[#allocation12 + $0x838] ss:$40 sps:$4 sm:$0xff]   ;;  %v17290_v58 = vld [vmem:[#allocation12 + $0x884] ss:$40 sps:$4 sm:$0xff]  }
 0x827   :  { %11910 = vmatpush1.bf16.msra.mxu1 %v17210_v39  ;;  %v17293_v39 = vld [vmem:[#allocation12 + $0x88c] ss:$40 sps:$4 sm:$0xff]  }
 0x828   :  { %11992 = vmatpush1.bf16.msra.mxu0 %v17213_v37  ;;  %11911 = vmatprep.subr.bf16.mxu1 %v17218_v35  ;;  %v17288_v37 = vld [vmem:[#allocation12 + $0x880] ss:$40 sps:$4 sm:$0xff]  }
 0x829   :  { %11993 = vmatprep.subr.bf16.mxu0 %v17221_v11  ;;  %v17291_v35 = vld [vmem:[#allocation12 + $0x888] ss:$40 sps:$4 sm:$0xff]   ;;  %v17296_v11 = vld [vmem:[#allocation12 + $0x8d4] ss:$40 sps:$4 sm:$0xff]  }
 0x82b   :  { %11912 = vmatpush1.bf16.msra.mxu1 %v17216_v15  ;;  %v17299_v15 = vld [vmem:[#allocation12 + $0x8dc] ss:$40 sps:$4 sm:$0xff]  }
 0x82c   :  { %11994 = vmatpush1.bf16.msra.mxu0 %v17219_v21  ;;  %11922 = vmatprep.subr.bf16.mxu1 %v17224_v38  ;;  %v17294_v21 = vld [vmem:[#allocation12 + $0x8d0] ss:$40 sps:$4 sm:$0xff]  }
 0x82d   :  { %12004 = vmatprep.subr.bf16.mxu0 %v17227_v41  ;;  %v17297_v38 = vld [vmem:[#allocation12 + $0x8d8] ss:$40 sps:$4 sm:$0xff]   ;;  %v17302_v41 = vld [vmem:[#allocation12 + $0x924] ss:$40 sps:$4 sm:$0xff]  }
 0x82e   :  { %11914 = vmatmul.mubr.bf16.vlgmr.msra.gmra.mrb[24].mxu1 %v18236_v2 }
 0x82f   :  { %11996 = vmatmul.mubr.bf16.vlgmr.msra.gmra.mrb[24].mxu0 %v18236_v2  ;;  %11923 = vmatpush1.bf16.msra.mxu1 %v17222_v42  ;;  %v17305_v42 = vld [vmem:[#allocation12 + $0x92c] ss:$40 sps:$4 sm:$0xff]  }
 0x830   :  { %11954 = vmatprep.mubr.bf16.mxu1 %v18240_v6  ;;  %12005 = vmatpush1.bf16.msra.mxu0 %v17225_v44  ;;  %v17300_v44 = vld [vmem:[#allocation12 + $0x920] ss:$40 sps:$4 sm:$0xff]  }
 0x831   :  { %12036 = vmatprep.mubr.bf16.mxu0 %v18240_v6  ;;  %11924 = vmatprep.subr.bf16.mxu1 %v17230_v45  ;;  %v17303_v45 = vld [vmem:[#allocation12 + $0x928] ss:$40 sps:$4 sm:$0xff]  }
 0x832   :  { %12006 = vmatprep.subr.bf16.mxu0 %v17233_v47  ;;  %v17308_v47 = vld [vmem:[#allocation12 + $0x974] ss:$40 sps:$4 sm:$0xff]  }
 0x833   :  { %11925 = vmatpush1.bf16.msra.mxu1 %v17228_v10  ;;  %v17311_v10 = vld [vmem:[#allocation12 + $0x97c] ss:$40 sps:$4 sm:$0xff]  }
 0x834   :  { %12007 = vmatpush1.bf16.msra.mxu0 %v17231_v43  ;;  %11926 = vmatprep.subr.bf16.mxu1 %v17236_v4  ;;  %v17306_v43 = vld [vmem:[#allocation12 + $0x970] ss:$40 sps:$4 sm:$0xff]  }
 0x835   :  { %12008 = vmatprep.subr.bf16.mxu0 %v17239_v33  ;;  %v17309_v4 = vld [vmem:[#allocation12 + $0x978] ss:$40 sps:$4 sm:$0xff]   ;;  %v17314_v33 = vld [vmem:[#allocation12 + $0x9c4] ss:$40 sps:$4 sm:$0xff]  }
 0x837   :  { %11927 = vmatpush1.bf16.msra.mxu1 %v17234_v0  ;;  %v17317_v0 = vld [vmem:[#allocation12 + $0x9cc] ss:$40 sps:$4 sm:$0xff]  }
 0x838   :  { %12009 = vmatpush1.bf16.msra.mxu0 %v17237_v5  ;;  %11928 = vmatprep.subr.bf16.mxu1 %v17242_v49  ;;  %v17312_v5 = vld [vmem:[#allocation12 + $0x9c0] ss:$40 sps:$4 sm:$0xff]  }
 0x839   :  { %12010 = vmatprep.subr.bf16.mxu0 %v17245_v30  ;;  %v17315_v49 = vld [vmem:[#allocation12 + $0x9c8] ss:$40 sps:$4 sm:$0xff]   ;;  %v17320_v30 = vld [vmem:[#allocation12 + $0x24] ss:$40 sps:$4 sm:$0xff]  }
 0x83b   :  { %11929 = vmatpush1.bf16.msra.mxu1 %v17240_v50  ;;  %v17366_v50 = vld [vmem:[#allocation15 + $0x40] sm:$0xff]  }
 0x83c   :  { %12011 = vmatpush1.bf16.msra.mxu0 %v17243_v51  ;;  %11930 = vmatprep.subr.bf16.mxu1 %v17248_v52  ;;  %v17318_v51 = vld [vmem:[#allocation12 + $0x20] ss:$40 sps:$4 sm:$0xff]   ;;  %v17323_v52 = vld [vmem:[#allocation12 + $0x74] ss:$40 sps:$4 sm:$0xff]  }
 0x83d   :  { %12012 = vmatprep.subr.bf16.mxu0 %v17251_v53  ;;  %v17367_v53 = vld [vmem:[#allocation15] sm:$0xff]  }
 0x83f   :  { %11931 = vmatpush1.bf16.msra.mxu1 %v17246_v48  ;;  %v17371_v48 = vld [vmem:[#allocation15 + $0x48] sm:$0xff]  }
 0x840   :  { %12013 = vmatpush1.bf16.msra.mxu0 %v17249_v54  ;;  %11932 = vmatprep.subr.bf16.mxu1 %v17254_v55  ;;  %v17321_v54 = vld [vmem:[#allocation12 + $0x70] ss:$40 sps:$4 sm:$0xff]   ;;  %v17326_v55 = vld [vmem:[#allocation12 + $0xc4] ss:$40 sps:$4 sm:$0xff]  }
 0x841   :  { %12014 = vmatprep.subr.bf16.mxu0 %v17257_v56  ;;  %v17372_v56 = vld [vmem:[#allocation15 + $0x8] sm:$0xff]  }
 0x843   :  { %11933 = vmatpush1.bf16.msra.mxu1 %v17252_v59  ;;  %v17376_v59 = vld [vmem:[#allocation15 + $0x50] sm:$0xff]  }
 0x844   :  { %12015 = vmatpush1.bf16.msra.mxu0 %v17255_v46  ;;  %11934 = vmatprep.subr.bf16.mxu1 %v17260_v63  ;;  %v17324_v46 = vld [vmem:[#allocation12 + $0xc0] ss:$40 sps:$4 sm:$0xff]   ;;  %v17329_v63 = vld [vmem:[#allocation12 + $0x114] ss:$40 sps:$4 sm:$0xff]  }
 0x845   :  { %12016 = vmatprep.subr.bf16.mxu0 %v17263_v23  ;;  %v17377_v23 = vld [vmem:[#allocation15 + $0x10] sm:$0xff]  }
 0x847   :  { %11935 = vmatpush1.bf16.msra.mxu1 %v17258_v3  ;;  %v17381_v3 = vld [vmem:[#allocation15 + $0x58] sm:$0xff]  }
 0x848   :  { %12017 = vmatpush1.bf16.msra.mxu0 %v17261_v8  ;;  %11936 = vmatprep.subr.bf16.mxu1 %v17266_v9  ;;  %v17327_v8 = vld [vmem:[#allocation12 + $0x110] ss:$40 sps:$4 sm:$0xff]   ;;  %v17332_v9 = vld [vmem:[#allocation12 + $0x164] ss:$40 sps:$4 sm:$0xff]  }
 0x849   :  { %12018 = vmatprep.subr.bf16.mxu0 %v17269_v12  ;;  %v17386_v12 = vld [vmem:[#allocation15 + $0x60] sm:$0xff]  }
 0x84b   :  { %11937 = vmatpush1.bf16.msra.mxu1 %v17264_v14  ;;  %v17330_v14 = vld [vmem:[#allocation12 + $0x160] ss:$40 sps:$4 sm:$0xff]  }
 0x84c   :  { %12019 = vmatpush1.bf16.msra.mxu0 %v17267_v17  ;;  %11938 = vmatprep.subr.bf16.mxu1 %v17272_v40  ;;  %v17335_v17 = vld [vmem:[#allocation12 + $0x1b4] ss:$40 sps:$4 sm:$0xff]   ;;  %v17387_v40 = vld [vmem:[#allocation15 + $0x20] sm:$0xff]  }
 0x84d   :  { %12020 = vmatprep.subr.bf16.mxu0 %v17275_v34  ;;  %v17391_v34 = vld [vmem:[#allocation15 + $0x68] sm:$0xff]  }
 0x84f   :  { %11939 = vmatpush1.bf16.msra.mxu1 %v17270_v18  ;;  %v17333_v18 = vld [vmem:[#allocation12 + $0x1b0] ss:$40 sps:$4 sm:$0xff]  }
 0x850   :  { %12021 = vmatpush1.bf16.msra.mxu0 %v17273_v19  ;;  %11940 = vmatprep.subr.bf16.mxu1 %v17278_v57  ;;  %v17338_v19 = vld [vmem:[#allocation12 + $0x204] ss:$40 sps:$4 sm:$0xff]   ;;  %v17392_v57 = vld [vmem:[#allocation15 + $0x28] sm:$0xff]  }
 0x851   :  { %12022 = vmatprep.subr.bf16.mxu0 %v17281_v22  ;;  %v17396_v22 = vld [vmem:[#allocation15 + $0x70] sm:$0xff]  }
 0x853   :  { %11941 = vmatpush1.bf16.msra.mxu1 %v17276_v28  ;;  %v17336_v28 = vld [vmem:[#allocation12 + $0x200] ss:$40 sps:$4 sm:$0xff]  }
 0x854   :  { %12023 = vmatpush1.bf16.msra.mxu0 %v17279_v13  ;;  %11942 = vmatprep.subr.bf16.mxu1 %v17284_v25  ;;  %v17341_v13 = vld [vmem:[#allocation12 + $0x254] ss:$40 sps:$4 sm:$0xff]  }
 0x855   :  { %12024 = vmatprep.subr.bf16.mxu0 %v17287_v61  ;;  %v17397_v25 = vld [vmem:[#allocation15 + $0x30] sm:$0xff]   ;;  %v17401_v61 = vld [vmem:[#allocation15 + $0x78] sm:$0xff]  }
 0x857   :  { %11943 = vmatpush1.bf16.msra.mxu1 %v17282_v36  ;;  %v17339_v36 = vld [vmem:[#allocation12 + $0x250] ss:$40 sps:$4 sm:$0xff]  }
 0x858   :  { %12025 = vmatpush1.bf16.msra.mxu0 %v17285_v29  ;;  %11944 = vmatprep.subr.bf16.mxu1 %v17290_v58  ;;  %v17344_v29 = vld [vmem:[#allocation12 + $0x2a4] ss:$40 sps:$4 sm:$0xff]  }
 0x859   :  { %12026 = vmatprep.subr.bf16.mxu0 %v17293_v39  ;;  %v17402_v58 = vld [vmem:[#allocation15 + $0x38] sm:$0xff]  }
 0x85a   :  { %v17342_v39 = vld [vmem:[#allocation12 + $0x2a0] ss:$40 sps:$4 sm:$0xff]  }
 0x85b   :  { %11945 = vmatpush1.bf16.msra.mxu1 %v17288_v37  ;;  %v17347_v37 = vld [vmem:[#allocation12 + $0x2f4] ss:$40 sps:$4 sm:$0xff]  }
 0x85c   :  { %12027 = vmatpush1.bf16.msra.mxu0 %v17291_v35  ;;  %11946 = vmatprep.subr.bf16.mxu1 %v17296_v11  ;;  %v17446_v35 = vld [vmem:[#allocation15 + $0x140] sm:$0xff]  }
 0x85d   :  { %12028 = vmatprep.subr.bf16.mxu0 %v17299_v15  ;;  %v17345_v11 = vld [vmem:[#allocation12 + $0x2f0] ss:$40 sps:$4 sm:$0xff]   ;;  %v17350_v15 = vld [vmem:[#allocation12 + $0x344] ss:$40 sps:$4 sm:$0xff]  }
 0x85f   :  { %11947 = vmatpush1.bf16.msra.mxu1 %v17294_v21  ;;  %v17348_v21 = vld [vmem:[#allocation12 + $0x340] ss:$40 sps:$4 sm:$0xff]  }
 0x860   :  { %12029 = vmatpush1.bf16.msra.mxu0 %v17297_v38  ;;  %11948 = vmatprep.subr.bf16.mxu1 %v17302_v41  ;;  %v17353_v38 = vld [vmem:[#allocation12 + $0x394] ss:$40 sps:$4 sm:$0xff]   ;;  %v17351_v41 = vld [vmem:[#allocation12 + $0x390] ss:$40 sps:$4 sm:$0xff]  }
 0x861   :  { %12030 = vmatprep.subr.bf16.mxu0 %v17305_v42  ;;  %v17356_v42 = vld [vmem:[#allocation12 + $0x3e4] ss:$40 sps:$4 sm:$0xff]  }
 0x863   :  { %11949 = vmatpush1.bf16.msra.mxu1 %v17300_v44  ;;  %v17354_v44 = vld [vmem:[#allocation12 + $0x3e0] ss:$40 sps:$4 sm:$0xff]  }
 0x864   :  { %12031 = vmatpush1.bf16.msra.mxu0 %v17303_v45  ;;  %11950 = vmatprep.subr.bf16.mxu1 %v17308_v47  ;;  %v17359_v45 = vld [vmem:[#allocation12 + $0x434] ss:$40 sps:$4 sm:$0xff]   ;;  %v17357_v47 = vld [vmem:[#allocation12 + $0x430] ss:$40 sps:$4 sm:$0xff]  }
 0x865   :  { %12032 = vmatprep.subr.bf16.mxu0 %v17311_v10  ;;  %v17362_v10 = vld [vmem:[#allocation12 + $0x484] ss:$40 sps:$4 sm:$0xff]  }
 0x867   :  { %11951 = vmatpush1.bf16.msra.mxu1 %v17306_v43  ;;  %v17360_v43 = vld [vmem:[#allocation12 + $0x480] ss:$40 sps:$4 sm:$0xff]  }
 0x868   :  { %12033 = vmatpush1.bf16.msra.mxu0 %v17309_v4  ;;  %11952 = vmatprep.subr.bf16.mxu1 %v17314_v33  ;;  %v17365_v4 = vld [vmem:[#allocation12 + $0x4d4] ss:$40 sps:$4 sm:$0xff]   ;;  %v17363_v33 = vld [vmem:[#allocation12 + $0x4d0] ss:$40 sps:$4 sm:$0xff]  }
 0x869   :  { %12034 = vmatprep.subr.bf16.mxu0 %v17317_v0  ;;  %v17370_v0 = vld [vmem:[#allocation12 + $0x524] ss:$40 sps:$4 sm:$0xff]  }
 0x86b   :  { %11953 = vmatpush1.bf16.msra.mxu1 %v17312_v5  ;;  %v17368_v5 = vld [vmem:[#allocation12 + $0x520] ss:$40 sps:$4 sm:$0xff]  }
 0x86c   :  { %12035 = vmatpush1.bf16.msra.mxu0 %v17315_v49  ;;  %12045 = vmatprep.subr.bf16.mxu1 %v17320_v30  ;;  %v17375_v49 = vld [vmem:[#allocation12 + $0x574] ss:$40 sps:$4 sm:$0xff]   ;;  %v17373_v30 = vld [vmem:[#allocation12 + $0x570] ss:$40 sps:$4 sm:$0xff]  }
 0x86d   :  { %14706 = vmatprep.subr.bf16.mxu0 %v17366_v50  ;;  %v17380_v50 = vld [vmem:[#allocation12 + $0x5c4] ss:$40 sps:$4 sm:$0xff]  }
 0x86e   :  { %11955 = vmatmul.mubr.bf16.vlgmr.msra.gmra.mrb[24].mxu1 %v18249_v32 }
 0x86f   :  { %12037 = vmatmul.mubr.bf16.vlgmr.msra.gmra.mrb[24].mxu0 %v18249_v32  ;;  %12046 = vmatpush1.bf16.msra.mxu1 %v17318_v51  ;;  %v17378_v51 = vld [vmem:[#allocation12 + $0x5c0] ss:$40 sps:$4 sm:$0xff]  }
 0x870   :  { %12077 = vmatprep.mubr.bf16.mxu1 %v18234_v62  ;;  %12047 = vmatprep.subr.bf16.mxu1 %v17323_v52  ;;  %v17382_v62 = vld [vmem:[#allocation15 + $0x18] sm:$0xff]   ;;  %v17385_v52 = vld [vmem:[#allocation12 + $0x614] ss:$40 sps:$4 sm:$0xff]  }
 0x871   :  { %14707 = vmatpush3.bf16.msra.mxu0 %v17367_v53  ;;  %v17383_v53 = vld [vmem:[#allocation12 + $0x610] ss:$40 sps:$4 sm:$0xff]  }
 0x872   :  { %14708 = vmatprep.subr.bf16.mxu0 %v17371_v48  ;;  %v17390_v48 = vld [vmem:[#allocation12 + $0x664] ss:$40 sps:$4 sm:$0xff]  }
 0x873   :  { %12048 = vmatpush1.bf16.msra.mxu1 %v17321_v54  ;;  %v17388_v54 = vld [vmem:[#allocation12 + $0x660] ss:$40 sps:$4 sm:$0xff]  }
 0x874   :  { %12049 = vmatprep.subr.bf16.mxu1 %v17326_v55  ;;  %v18264_v55 = vld [vmem:[#allocation13] sm:$0xff] }
 0x875   :  { %14709 = vmatpush3.bf16.msra.mxu0 %v17372_v56  ;;  %v10074_v56 = vrot.slane %v18264_v55, %v18071_v24 }
 0x876   :  { %14710 = vmatprep.subr.bf16.mxu0 %v17376_v59  ;;  %v17393_v59 = vld [vmem:[#allocation12 + $0x6b0] ss:$40 sps:$4 sm:$0xff]  }
 0x877   :  { %12050 = vmatpush1.bf16.msra.mxu1 %v17324_v46  ;;  %v17400_v46 = vld [vmem:[#allocation12 + $0x704] ss:$40 sps:$4 sm:$0xff]  }
 0x878   :  { %12051 = vmatprep.subr.bf16.mxu1 %v17329_v63 }
 0x879   :  { %14711 = vmatpush3.bf16.msra.mxu0 %v17377_v23 }
 0x87a   :  { %14712 = vmatprep.subr.bf16.mxu0 %v17381_v3 }
 0x87b   :  { %12052 = vmatpush1.bf16.msra.mxu1 %v17327_v8 }
 0x87c   :  { %12053 = vmatprep.subr.bf16.mxu1 %v17332_v9 }
 0x87d   :  { %14713 = vmatpush3.bf16.msra.mxu0 %v17382_v62 }
 0x87e   :  { %14714 = vmatprep.subr.bf16.mxu0 %v17386_v12 }
 0x87f   :  { %12054 = vmatpush1.bf16.msra.mxu1 %v17330_v14 }
 0x880   :  { %12055 = vmatprep.subr.bf16.mxu1 %v17335_v17  ;;  %v17398_v17 = vld [vmem:[#allocation12 + $0x700] ss:$40 sps:$4 sm:$0xff]  }
 0x881   :  { %14715 = vmatpush3.bf16.msra.mxu0 %v17387_v40 }
 0x882   :  { %14716 = vmatprep.subr.bf16.mxu0 %v17391_v34 }
 0x883   :  { %12056 = vmatpush1.bf16.msra.mxu1 %v17333_v18 }
 0x884   :  { %12057 = vmatprep.subr.bf16.mxu1 %v17338_v19  ;;  %v17405_v19 = vld [vmem:[#allocation12 + $0x754] ss:$40 sps:$4 sm:$0xff]  }
 0x885   :  { %14717 = vmatpush3.bf16.msra.mxu0 %v17392_v57 }
 0x886   :  { %14718 = vmatprep.subr.bf16.mxu0 %v17396_v22 }
 0x887   :  { %12058 = vmatpush1.bf16.msra.mxu1 %v17336_v28  ;;  %v17403_v28 = vld [vmem:[#allocation12 + $0x750] ss:$40 sps:$4 sm:$0xff]  }
 0x888   :  { %12059 = vmatprep.subr.bf16.mxu1 %v17341_v13  ;;  %v17448_v13 = vld [vmem:[#allocation15 + $0x100] sm:$0xff]  }
 0x889   :  { %14719 = vmatpush3.bf16.msra.mxu0 %v17397_v25 }
 0x88a   :  { %14720 = vmatprep.subr.bf16.mxu0 %v17401_v61  ;;  %v17408_v61 = vld [vmem:[#allocation12 + $0x7a4] ss:$40 sps:$4 sm:$0xff]  }
 0x88b   :  { %12060 = vmatpush1.bf16.msra.mxu1 %v17339_v36  ;;  %v17450_v36 = vld [vmem:[#allocation15 + $0x148] sm:$0xff]  }
 0x88c   :  { %12061 = vmatprep.subr.bf16.mxu1 %v17344_v29  ;;  %v17406_v29 = vld [vmem:[#allocation12 + $0x7a0] ss:$40 sps:$4 sm:$0xff]  }
 0x88d   :  { %14721 = vmatpush3.bf16.msra.mxu0 %v17402_v58  ;;  %v17452_v58 = vld [vmem:[#allocation15 + $0x108] sm:$0xff]  }
 0x88e   :  { %14750 = vmatprep.subr.bf16.mxu0 %v17446_v35  ;;  %v17409_v35 = vld [vmem:[#allocation12 + $0x7f0] ss:$40 sps:$4 sm:$0xff]  }
 0x88f   :  { %12062 = vmatpush1.bf16.msra.mxu1 %v17342_v39  ;;  %v17411_v39 = vld [vmem:[#allocation12 + $0x7f4] ss:$40 sps:$4 sm:$0xff]  }
 0x890   :  { %12063 = vmatprep.subr.bf16.mxu1 %v17347_v37  ;;  %v17454_v37 = vld [vmem:[#allocation15 + $0x150] sm:$0xff]  }
 0x893   :  { %12064 = vmatpush1.bf16.msra.mxu1 %v17345_v11  ;;  %v17456_v11 = vld [vmem:[#allocation15 + $0x110] sm:$0xff]  }
 0x894   :  { %12065 = vmatprep.subr.bf16.mxu1 %v17350_v15  ;;  %v17414_v15 = vld [vmem:[#allocation12 + $0x844] ss:$40 sps:$4 sm:$0xff]  }
 0x897   :  { %12066 = vmatpush1.bf16.msra.mxu1 %v17348_v21  ;;  %v17458_v21 = vld [vmem:[#allocation15 + $0x158] sm:$0xff]  }
 0x898   :  { %12067 = vmatprep.subr.bf16.mxu1 %v17353_v38  ;;  %v17412_v38 = vld [vmem:[#allocation12 + $0x840] ss:$40 sps:$4 sm:$0xff]  }
 0x89b   :  { %12068 = vmatpush1.bf16.msra.mxu1 %v17351_v41  ;;  %v17460_v41 = vld [vmem:[#allocation15 + $0x118] sm:$0xff]  }
 0x89c   :  { %12069 = vmatprep.subr.bf16.mxu1 %v17356_v42  ;;  %v17417_v42 = vld [vmem:[#allocation12 + $0x894] ss:$40 sps:$4 sm:$0xff]  }
 0x89f   :  { %12070 = vmatpush1.bf16.msra.mxu1 %v17354_v44  ;;  %v17462_v44 = vld [vmem:[#allocation15 + $0x160] sm:$0xff]  }
 0x8a0   :  { %12071 = vmatprep.subr.bf16.mxu1 %v17359_v45  ;;  %v17415_v45 = vld [vmem:[#allocation12 + $0x890] ss:$40 sps:$4 sm:$0xff]  }
 0x8a3   :  { %12072 = vmatpush1.bf16.msra.mxu1 %v17357_v47  ;;  %v17464_v47 = vld [vmem:[#allocation15 + $0x120] sm:$0xff]  }
 0x8a4   :  { %12073 = vmatprep.subr.bf16.mxu1 %v17362_v10  ;;  %v17420_v10 = vld [vmem:[#allocation12 + $0x8e4] ss:$40 sps:$4 sm:$0xff]  }
 0x8a7   :  { %12074 = vmatpush1.bf16.msra.mxu1 %v17360_v43  ;;  %v17466_v43 = vld [vmem:[#allocation15 + $0x168] sm:$0xff]  }
 0x8a8   :  { %12075 = vmatprep.subr.bf16.mxu1 %v17365_v4  ;;  %v17418_v4 = vld [vmem:[#allocation12 + $0x8e0] ss:$40 sps:$4 sm:$0xff]  }
 0x8ab   :  { %12076 = vmatpush1.bf16.msra.mxu1 %v17363_v33  ;;  %v17468_v33 = vld [vmem:[#allocation15 + $0x128] sm:$0xff]  }
 0x8ac   :  { %12086 = vmatprep.subr.bf16.mxu1 %v17370_v0  ;;  %v17423_v0 = vld [vmem:[#allocation12 + $0x934] ss:$40 sps:$4 sm:$0xff]  }
 0x8ae   :  { %12078 = vmatmul.mubr.bf16.vlgmr.msra.gmra.mrb[28].mxu1 %v18236_v2  ;;  %v17395_v2 = vld [vmem:[#allocation12 + $0x6b4] ss:$40 sps:$4 sm:$0xff]  }
 0x8af   :  { %12087 = vmatpush1.bf16.msra.mxu1 %v17368_v5  ;;  %12118 = vmatprep.mubr.bf16.mxu1 %v18240_v6  ;;  %v10070_v6 = vrot.slane %v18264_v55, %v18068_v20  ;;  %v17470_v5 = vld [vmem:[#allocation15 + $0x170] sm:$0xff]  }
 0x8b0   :  { %12088 = vmatprep.subr.bf16.mxu1 %v17375_v49  ;;  %v17421_v49 = vld [vmem:[#allocation12 + $0x930] ss:$40 sps:$4 sm:$0xff]  }
 0x8b3   :  { %12089 = vmatpush1.bf16.msra.mxu1 %v17373_v30  ;;  %v17472_v30 = vld [vmem:[#allocation15 + $0x130] sm:$0xff]  }
 0x8b4   :  { %12090 = vmatprep.subr.bf16.mxu1 %v17380_v50  ;;  %v17426_v50 = vld [vmem:[#allocation12 + $0x984] ss:$40 sps:$4 sm:$0xff]  }
 0x8b7   :  { %12091 = vmatpush1.bf16.msra.mxu1 %v17378_v51  ;;  %v17474_v51 = vld [vmem:[#allocation15 + $0x178] sm:$0xff]  }
 0x8b8   :  { %12092 = vmatprep.subr.bf16.mxu1 %v17385_v52  ;;  %v10082_v52 = vrot.slane %v18264_v55, %v18074_v1 }
 0x8bb   :  { %12093 = vmatpush1.bf16.msra.mxu1 %v17383_v53  ;;  %v17424_v53 = vld [vmem:[#allocation12 + $0x980] ss:$40 sps:$4 sm:$0xff]  }
 0x8bc   :  { %12094 = vmatprep.subr.bf16.mxu1 %v17390_v48  ;;  %v17476_v48 = vld [vmem:[#allocation15 + $0x138] sm:$0xff]  }
 0x8bf   :  { %12095 = vmatpush1.bf16.msra.mxu1 %v17388_v54  ;;  %v17429_v54 = vld [vmem:[#allocation12 + $0x9d4] ss:$40 sps:$4 sm:$0xff]  }
 0x8c0   :  { %12096 = vmatprep.subr.bf16.mxu1 %v17395_v2 }
 0x8c1   :  { %v11792_v63 = vpop.f32.mrb[20].mxu1  ;;  %v18270_v23 = vpop.f32.mrb[20].mxu0 }
 0x8c2   :  { %v14836_v3 = vadd.f32 %v11792_v63, %v10070_v6  ;;  %v11794_v8 = vpop.f32.mrb[21].mxu1  ;;  %v18272_v9 = vpop.f32.mrb[21].mxu0  ;;  %v17427_v6 = vld [vmem:[#allocation12 + $0x9d0] ss:$40 sps:$4 sm:$0xff]  }
 0x8c3   :  { %v14837_v62 = vadd.f32 %v11794_v8, %v10074_v56  ;;  %v11796_v12 = vpop.f32.mrb[22].mxu1  ;;  %v11878_v14 = vpop.f32.mrb[22].mxu0  ;;  %12097 = vmatpush1.bf16.msra.mxu1 %v17393_v59  ;;  %v14839_v2 = vadd.f32 %v18272_v9, %v10082_v52  ;;  %v17430_v56 = vld [vmem:[#allocation15 + $0xc0] sm:$0xff]   ;;  %v17432_v63 = vld [vmem:[#allocation15 + $0xc8] sm:$0xff]   ;;  %v17434_v8 = vld [vmem:[#allocation15 + $0xd0] sm:$0xff]  }
 0x8c4   :  { %v12127_v40 = vmax.f32 %v14836_v3, 0.0  ;;  %v11797_v34 = vpop.f32.mrb[23].mxu1  ;;  %v11879_v18 = vpop.f32.mrb[23].mxu0  ;;  %12098 = vmatprep.subr.bf16.mxu1 %v17400_v46  ;;  %v17431_v46 = vld [vmem:[#allocation15 + $0x80] sm:$0xff]   ;;  %v17433_v3 = vld [vmem:[#allocation15 + $0x88] sm:$0xff]   ;;  %v17435_v9 = vld [vmem:[#allocation15 + $0x90] sm:$0xff]  }
 0x8c5   :  { %v12128_v57 = vmax.f32 %v14837_v62, 0.0  ;;  %v12130_v59 = vmax.f32 %v14839_v2, 0.0  ;;  %v17436_v62 = vld [vmem:[#allocation15 + $0xd8] sm:$0xff]   ;;  %v17438_v14 = vld [vmem:[#allocation15 + $0xe0] sm:$0xff]   ;;  %v17441_v34 = vld [vmem:[#allocation15 + $0xa8] sm:$0xff]  }
 0x8c6   :  { %v12137_v25 = vpack.c.bf16 %v12127_v40, %v12127_v40  ;;  %v17437_v12 = vld [vmem:[#allocation15 + $0x98] sm:$0xff]   ;;  %v17440_v40 = vld [vmem:[#allocation15 + $0xe8] sm:$0xff]   ;;  %v17442_v18 = vld [vmem:[#allocation15 + $0xf0] sm:$0xff]  }
 0x8c7   :  { %v12138_v22 = vpack.c.bf16 %v12128_v57, %v12128_v57  ;;  %12099 = vmatpush1.bf16.msra.mxu1 %v17398_v17  ;;  %v12140_v1 = vpack.c.bf16 %v12130_v59, %v12130_v59  ;;  %v17439_v17 = vld [vmem:[#allocation15 + $0xa0] sm:$0xff]  }
 0x8c8   :  { %12100 = vmatprep.subr.bf16.mxu1 %v17405_v19  ;;  %v17443_v19 = vld [vmem:[#allocation15 + $0xb0] sm:$0xff]  }
 0x8c9   :  { %12826 = vmatprep.mubr.bf16.mxu0 %v12138_v22  ;;  %v17444_v22 = vld [vmem:[#allocation15 + $0xf8] sm:$0xff]  }
 0x8ca   :  { %12827 = vmatmul.mubr.bf16.vlgmr.msra.gmra.mrb[28].mxu0 %v12137_v25  ;;  %v17447_v25 = vld [vmem:[#allocation15 + $0x1c0] sm:$0xff]  }
 0x8cb   :  { %12101 = vmatpush1.bf16.msra.mxu1 %v17403_v28  ;;  %14751 = vmatpush3.bf16.msra.mxu0 %v17448_v13  ;;  %v17445_v28 = vld [vmem:[#allocation15 + $0xb8] sm:$0xff]  }
 0x8cc   :  { %12102 = vmatprep.subr.bf16.mxu1 %v17408_v61  ;;  %14752 = vmatprep.subr.bf16.mxu0 %v17450_v36  ;;  %v17449_v61 = vld [vmem:[#allocation15 + $0x180] sm:$0xff]  }
 0x8cf   :  { %12103 = vmatpush1.bf16.msra.mxu1 %v17406_v29  ;;  %14753 = vmatpush3.bf16.msra.mxu0 %v17452_v58  ;;  %v17451_v29 = vld [vmem:[#allocation15 + $0x1c8] sm:$0xff]   ;;  %v17455_v58 = vld [vmem:[#allocation15 + $0x1d0] sm:$0xff]  }
 0x8d0   :  { %12104 = vmatprep.subr.bf16.mxu1 %v17411_v39  ;;  %14754 = vmatprep.subr.bf16.mxu0 %v17454_v37  ;;  %v17457_v39 = vld [vmem:[#allocation15 + $0x190] sm:$0xff]   ;;  %v17461_v37 = vld [vmem:[#allocation15 + $0x198] sm:$0xff]  }
 0x8d3   :  { %12105 = vmatpush1.bf16.msra.mxu1 %v17409_v35  ;;  %14755 = vmatpush3.bf16.msra.mxu0 %v17456_v11  ;;  %v17463_v35 = vld [vmem:[#allocation15 + $0x1e0] sm:$0xff]  }
 0x8d4   :  { %12106 = vmatprep.subr.bf16.mxu1 %v17414_v15  ;;  %14756 = vmatprep.subr.bf16.mxu0 %v17458_v21  ;;  %v17465_v11 = vld [vmem:[#allocation15 + $0x1a0] sm:$0xff]   ;;  %v17467_v15 = vld [vmem:[#allocation15 + $0x1e8] sm:$0xff]  }
 0x8d5   :  { %v17469_v21 = vld [vmem:[#allocation15 + $0x1a8] sm:$0xff]  }
 0x8d7   :  { %12107 = vmatpush1.bf16.msra.mxu1 %v17412_v38  ;;  %14757 = vmatpush3.bf16.msra.mxu0 %v17460_v41  ;;  %v17471_v38 = vld [vmem:[#allocation15 + $0x1f0] sm:$0xff]   ;;  %v17478_v41 = vld [vmem:[#allocation15 + $0x240] sm:$0xff]  }
 0x8d8   :  { %12108 = vmatprep.subr.bf16.mxu1 %v17417_v42  ;;  %14758 = vmatprep.subr.bf16.mxu0 %v17462_v44  ;;  %v17473_v42 = vld [vmem:[#allocation15 + $0x1b0] sm:$0xff]   ;;  %v17475_v44 = vld [vmem:[#allocation15 + $0x1f8] sm:$0xff]  }
 0x8db   :  { %12109 = vmatpush1.bf16.msra.mxu1 %v17415_v45  ;;  %14759 = vmatpush3.bf16.msra.mxu0 %v17464_v47  ;;  %v17477_v45 = vld [vmem:[#allocation15 + $0x1b8] sm:$0xff]   ;;  %v10086_v47 = vrot.slane %v18264_v55, %v18110_v26 }
 0x8dc   :  { %12110 = vmatprep.subr.bf16.mxu1 %v17420_v10  ;;  %14760 = vmatprep.subr.bf16.mxu0 %v17466_v43  ;;  %v10094_v10 = vrot.slane %v18264_v55, %v4264_v16  ;;  %v10090_v43 = vrot.slane %v18264_v55, %v18113_v27 }
 0x8df   :  { %12111 = vmatpush1.bf16.msra.mxu1 %v17418_v4  ;;  %14761 = vmatpush3.bf16.msra.mxu0 %v17468_v33  ;;  %v10098_v4 = vrot.slane %v18264_v55, %v4268_v7 }
 0x8e0   :  { %12112 = vmatprep.subr.bf16.mxu1 %v17423_v0  ;;  %14762 = vmatprep.subr.bf16.mxu0 %v17470_v5 }
 0x8e3   :  { %12113 = vmatpush1.bf16.msra.mxu1 %v17421_v49  ;;  %14763 = vmatpush3.bf16.msra.mxu0 %v17472_v30 }
 0x8e4   :  { %12114 = vmatprep.subr.bf16.mxu1 %v17426_v50  ;;  %14764 = vmatprep.subr.bf16.mxu0 %v17474_v51 }
 0x8e7   :  { %12115 = vmatpush1.bf16.msra.mxu1 %v17424_v53  ;;  %14765 = vmatpush3.bf16.msra.mxu0 %v17476_v48 }
 0x8e8   :  { %12116 = vmatprep.subr.bf16.mxu1 %v17429_v54  ;;  %14794 = vmatprep.subr.bf16.mxu0 %v17478_v41 }
 0x8eb   :  { %12117 = vmatpush1.bf16.msra.mxu1 %v17427_v6 }
 0x8ec   :  { %14728 = vmatprep.subr.bf16.mxu1 %v17430_v56 }
 0x8ee   :  { %12119 = vmatmul.mubr.bf16.vlgmr.msra.gmra.mrb[28].mxu1 %v18249_v32  ;;  %v10078_v32 = vrot.slane %v18264_v55, %v18096_v31  ;;  %v17453_v31 = vld [vmem:[#allocation15 + $0x188] sm:$0xff]  }
 0x8ef   :  { %14729 = vmatpush3.bf16.msra.mxu1 %v17431_v46  ;;  %12866 = vmatprep.mubr.bf16.mxu1 %v12140_v1  ;;  %v17480_v55 = vld [vmem:[#allocation15 + $0x248] sm:$0xff]   ;;  %v17482_v1 = vld [vmem:[#allocation15 + $0x250] sm:$0xff]  }
 0x8f0   :  { %14730 = vmatprep.subr.bf16.mxu1 %v17432_v63  ;;  %v14838_v57 = vadd.f32 %v18270_v23, %v10078_v32  ;;  %v17459_v23 = vld [vmem:[#allocation15 + $0x1d8] sm:$0xff]   ;;  %v17481_v63 = vld [vmem:[#allocation15 + $0x208] sm:$0xff]  }
 0x8f1   :  { %v17492_v32 = vld [vmem:[#allocation15 + $0x278] sm:$0xff]  }
 0x8f2   :  { %v12129_v13 = vmax.f32 %v14838_v57, 0.0 }
 0x8f3   :  { %14731 = vmatpush3.bf16.msra.mxu1 %v17433_v3  ;;  %v17483_v3 = vld [vmem:[#allocation15 + $0x210] sm:$0xff]  }
 0x8f4   :  { %14732 = vmatprep.subr.bf16.mxu1 %v17434_v8  ;;  %v12139_v36 = vpack.c.bf16 %v12129_v13, %v12129_v13  ;;  %v17484_v8 = vld [vmem:[#allocation15 + $0x258] sm:$0xff]  }
 0x8f7   :  { %14733 = vmatpush3.bf16.msra.mxu1 %v17435_v9  ;;  %v17485_v9 = vld [vmem:[#allocation15 + $0x218] sm:$0xff]  }
 0x8f8   :  { %14734 = vmatprep.subr.bf16.mxu1 %v17436_v62  ;;  %v17486_v62 = vld [vmem:[#allocation15 + $0x260] sm:$0xff]  }
 0x8fb   :  { %14735 = vmatpush3.bf16.msra.mxu1 %v17437_v12  ;;  %v17487_v12 = vld [vmem:[#allocation15 + $0x220] sm:$0xff]  }
 0x8fc   :  { %14736 = vmatprep.subr.bf16.mxu1 %v17438_v14  ;;  %v17488_v14 = vld [vmem:[#allocation15 + $0x268] sm:$0xff]  }
 0x8ff   :  { %14737 = vmatpush3.bf16.msra.mxu1 %v17439_v17  ;;  %v17489_v17 = vld [vmem:[#allocation15 + $0x228] sm:$0xff]  }
 0x900   :  { %14738 = vmatprep.subr.bf16.mxu1 %v17440_v40  ;;  %v17490_v40 = vld [vmem:[#allocation15 + $0x270] sm:$0xff]  }
 0x903   :  { %14739 = vmatpush3.bf16.msra.mxu1 %v17441_v34  ;;  %v17491_v34 = vld [vmem:[#allocation15 + $0x230] sm:$0xff]  }
 0x904   :  { %14740 = vmatprep.subr.bf16.mxu1 %v17442_v18  ;;  %v17493_v18 = vld [vmem:[#allocation15 + $0x238] sm:$0xff]  }
 0x907   :  { %14741 = vmatpush3.bf16.msra.mxu1 %v17443_v19 }
 0x908   :  { %14742 = vmatprep.subr.bf16.mxu1 %v17444_v22 }
 0x90b   :  { %14743 = vmatpush3.bf16.msra.mxu1 %v17445_v28 }
 0x90c   :  { %14772 = vmatprep.subr.bf16.mxu1 %v17447_v25  ;;  %v10064_v25 = vld [vmem:[#allocation13 + $0x8] sm:$0x3] }
 0x90e   :  { %12867 = vmatmul.mubr.bf16.vlgmr.msra.gmra.mrb[32].mxu1 %v12139_v36  ;;  %v10106_v36 = vrot.slane %v10064_v25, %v18071_v24 }
 0x90f   :  { %14773 = vmatpush3.bf16.msra.mxu1 %v17449_v61  ;;  %v10102_v61 = vrot.slane %v10064_v25, %v18068_v20 }
 0x910   :  { %14774 = vmatprep.subr.bf16.mxu1 %v17451_v29 }
 0x913   :  { %14775 = vmatpush3.bf16.msra.mxu1 %v17453_v31 }
 0x914   :  { %14776 = vmatprep.subr.bf16.mxu1 %v17455_v58 }
 0x917   :  { %14777 = vmatpush3.bf16.msra.mxu1 %v17457_v39 }
 0x918   :  { %14778 = vmatprep.subr.bf16.mxu1 %v17459_v23 }
 0x91b   :  { %14779 = vmatpush3.bf16.msra.mxu1 %v17461_v37 }
 0x91c   :  { %14780 = vmatprep.subr.bf16.mxu1 %v17463_v35 }
 0x91f   :  { %14781 = vmatpush3.bf16.msra.mxu1 %v17465_v11 }
 0x920   :  { %14782 = vmatprep.subr.bf16.mxu1 %v17467_v15 }
 0x923   :  { %14783 = vmatpush3.bf16.msra.mxu1 %v17469_v21 }
 0x924   :  { %14784 = vmatprep.subr.bf16.mxu1 %v17471_v38  ;;  %v14625_v38 = vld [vmem:[#allocation16] ss:$0 sm:$0xff] }
 0x927   :  { %14785 = vmatpush3.bf16.msra.mxu1 %v17473_v42 }
 0x928   :  { %14786 = vmatprep.subr.bf16.mxu1 %v17475_v44 }
 0x92b   :  { %14787 = vmatpush3.bf16.msra.mxu1 %v17477_v45 }
 0x941   :  { %v11956_v33 = vpop.f32.mrb[24].mxu1 }
 0x942   :  { %v14840_v0 = vadd.f32 %v11956_v33, %v10086_v47  ;;  %v12038_v5 = vpop.f32.mrb[24].mxu0  ;;  %v11958_v49 = vpop.f32.mrb[25].mxu1 }
 0x943   :  { %v14842_v30 = vadd.f32 %v12038_v5, %v10094_v10  ;;  %v14841_v50 = vadd.f32 %v11958_v49, %v10090_v43  ;;  %v12040_v51 = vpop.f32.mrb[25].mxu0  ;;  %v11960_v52 = vpop.f32.mrb[26].mxu1 }
 0x944   :  { %v12131_v26 = vmax.f32 %v14840_v0, 0.0  ;;  %v14843_v53 = vadd.f32 %v12040_v51, %v10098_v4  ;;  %v12042_v48 = vpop.f32.mrb[26].mxu0  ;;  %v11961_v54 = vpop.f32.mrb[27].mxu1 }
 0x945   :  { %v12133_v16 = vmax.f32 %v14842_v30, 0.0  ;;  %v12132_v2 = vmax.f32 %v14841_v50, 0.0  ;;  %v12043_v6 = vpop.f32.mrb[27].mxu0 }
 0x946   :  { %v12134_v27 = vmax.f32 %v14843_v53, 0.0  ;;  %v12141_v59 = vpack.c.bf16 %v12131_v26, %v12131_v26 }
 0x947   :  { %v12142_v56 = vpack.c.bf16 %v12132_v2, %v12132_v2  ;;  %v12143_v46 = vpack.c.bf16 %v12133_v16, %v12133_v16 }
 0x948   :  { %v12144_v7 = vpack.c.bf16 %v12134_v27, %v12134_v27 }
 0x949   :  { %12906 = vmatprep.mubr.bf16.mxu0 %v12142_v56 }
 0x94a   :  { %12946 = vmatprep.mubr.bf16.mxu1 %v12144_v7  ;;  %12907 = vmatmul.mubr.bf16.vlgmr.msra.gmra.mrb[32].mxu0 %v12141_v59 }
 0x94b   :  { %12947 = vmatmul.mubr.bf16.vlgmr.msra.gmra.mrb[36].mxu1 %v12143_v46  ;;  %14795 = vmatpush3.bf16.msra.mxu0 %v17479_v60 }
 0x94c   :  { %14796 = vmatprep.subr.bf16.mxu0 %v17480_v55 }
 0x94f   :  { %14797 = vmatpush3.bf16.msra.mxu0 %v17481_v63 }
 0x950   :  { %14798 = vmatprep.subr.bf16.mxu0 %v17482_v1 }
 0x953   :  { %14799 = vmatpush3.bf16.msra.mxu0 %v17483_v3 }
 0x954   :  { %14800 = vmatprep.subr.bf16.mxu0 %v17484_v8 }
 0x957   :  { %14801 = vmatpush3.bf16.msra.mxu0 %v17485_v9 }
 0x958   :  { %14802 = vmatprep.subr.bf16.mxu0 %v17486_v62 }
 0x95b   :  { %14803 = vmatpush3.bf16.msra.mxu0 %v17487_v12 }
 0x95c   :  { %14804 = vmatprep.subr.bf16.mxu0 %v17488_v14 }
 0x95f   :  { %14805 = vmatpush3.bf16.msra.mxu0 %v17489_v17 }
 0x960   :  { %14806 = vmatprep.subr.bf16.mxu0 %v17490_v40 }
 0x963   :  { %14807 = vmatpush3.bf16.msra.mxu0 %v17491_v34 }
 0x964   :  { %14808 = vmatprep.subr.bf16.mxu0 %v17492_v32 }
 0x967   :  { %14809 = vmatpush3.bf16.msra.mxu0 %v17493_v18 }
 0x99d   :  { %v14722_v19 = vpop.f32.mrb[28].mxu0 }
 0x99e   :  { %v14723_v57 = vpop.f32.mrb[29].mxu0 }
 0x99f   :  { %v14724_v22 = vadd.f32 %v14723_v57, %v14722_v19  ;;  %v14725_v28 = vpop.f32.mrb[30].mxu0 }
 0x9a0   :  { %v14726_v13 = vpop.f32.mrb[31].mxu0 }
 0x9a1   :  { %v12829_v44 = vadd.f32 %v14724_v22, %v14625_v38 }
 0x9c1   :  { %v12120_v29 = vpop.f32.mrb[28].mxu1 }
 0x9c2   :  { %v14844_v31 = vadd.f32 %v12120_v29, %v10102_v61  ;;  %v12122_v58 = vpop.f32.mrb[29].mxu1 }
 0x9c3   :  { %v14845_v39 = vadd.f32 %v12122_v58, %v10106_v36  ;;  %v12124_v23 = vpop.f32.mrb[30].mxu1 }
 0x9c4   :  { %v12135_v37 = vmax.f32 %v14844_v31, 0.0  ;;  %v12125_v35 = vpop.f32.mrb[31].mxu1 }
 0x9c5   :  { %v12136_v11 = vmax.f32 %v14845_v39, 0.0 }
 0x9c6   :  { %v12145_v21 = vpack.c.bf16 %v12135_v37, %v12135_v37 }
 0x9c7   :  { %v12146_v15 = vpack.c.bf16 %v12136_v11, %v12136_v11 }
 0x9c9   :  { %12986 = vmatprep.mubr.bf16.mxu0 %v12146_v15 }
 0x9ca   :  { %12987 = vmatmul.mubr.bf16.vlgmr.msra.gmra.mrb[36].mxu0 %v12145_v21 }
 0x9e1   :  { %v14744_v41 = vpop.f32.mrb[32].mxu1 }
 0x9e2   :  { %v14745_v42 = vpop.f32.mrb[33].mxu1 }
 0x9e3   :  { %v14746_v45 = vadd.f32 %v14745_v42, %v14744_v41  ;;  %v14747_v20 = vpop.f32.mrb[34].mxu1 }
 0x9e4   :  { %v14748_v47 = vpop.f32.mrb[35].mxu1 }
 0x9e5   :  { %v12869_v24 = vadd.f32 %v14746_v45, %v12829_v44 }
 0xa1d   :  { %v14766_v10 = vpop.f32.mrb[32].mxu0 }
 0xa1e   :  { %v14788_v43 = vpop.f32.mrb[36].mxu1  ;;  %v14767_v4 = vpop.f32.mrb[33].mxu0 }
 0xa1f   :  { %v14768_v33 = vadd.f32 %v14767_v4, %v14766_v10  ;;  %v14789_v0 = vpop.f32.mrb[37].mxu1  ;;  %v14769_v5 = vpop.f32.mrb[34].mxu0 }
 0xa20   :  { %v14790_v49 = vadd.f32 %v14789_v0, %v14788_v43  ;;  %v14791_v30 = vpop.f32.mrb[38].mxu1  ;;  %v14770_v50 = vpop.f32.mrb[35].mxu0 }
 0xa21   :  { %v12909_v51 = vadd.f32 %v14768_v33, %v12869_v24  ;;  %v14792_v52 = vpop.f32.mrb[39].mxu1 }
 0xa23   :  { %v12949_v26 = vadd.f32 %v14790_v49, %v12909_v51 }
 0xa9d   :  { %v14810_v53 = vpop.f32.mrb[36].mxu0 }
 0xa9e   :  { %v14811_v48 = vpop.f32.mrb[37].mxu0 }
 0xa9f   :  { %v14812_v54 = vadd.f32 %v14811_v48, %v14810_v53  ;;  %v14813_v16 = vpop.f32.mrb[38].mxu0 }
 0xaa0   :  { %v14814_v2 = vpop.f32.mrb[39].mxu0 }
 0xaa1   :  { %v12989_v6 = vadd.f32 %v14812_v54, %v12949_v26 }
 0xaa3   :  { %12994 = vst [vmem:[%s18307_s11] sm:$0xff] %v12989_v6 }
 0xaa4   :  { %12999 = vsyncpa [#allocation3], 1 }
 0xaa5   :  { %13000 = vsyncpa [#allocation5], 1 }
 0xaa6   :  { %13001 = vsyncpa [#allocation8], 1 }
 0xaa7   :  { %13002 = vsyncpa [#allocation11], 1 }
 0xaa8   :  { %13003 = vsyncpa [#allocation14], 1 }
 0xaa9   :  { %13004 = vsyncpa [#allocation17], 1 }

</bundles_post_ra>
